<compile_context>
chip_gen: v7x
topology: tpu7x:2x2x1
jax: 0.10.0
libtpu: 0.0.40
codegen_flags: <defaults>
</compile_context>

<pallas_src>
import math
import functools

import numpy as np
import jax
import jax.numpy as jnp
from jax.experimental import pallas as pl
from jax.experimental.pallas import tpu as pltpu

D_MODEL = 512
N_HEAD = 8
DIM_FF = 2048
VOCAB = 75
LN_EPS = 1e-5


# ----------------------------- Pallas kernels ------------------------------

def _linear_kernel(x_ref, w_ref, b_ref, o_ref, *, relu):
    # bf16 x bf16 -> f32 accumulate on the MXU
    acc = jnp.dot(x_ref[...].astype(w_ref.dtype), w_ref[...],
                  preferred_element_type=jnp.float32)
    acc = acc + b_ref[...]
    if relu:
        acc = jnp.maximum(acc, 0.0)
    o_ref[...] = acc.astype(o_ref.dtype)


def linear(x, w, b, *, relu=False, tn):
    """y = x @ w + b.  x:(M,K) f32, w:(K,N) bf16 (pre-transposed), b:(N,) f32."""
    M, K = x.shape
    N = w.shape[1]
    assert N % tn == 0
    return pl.pallas_call(
        functools.partial(_linear_kernel, relu=relu),
        out_shape=jax.ShapeDtypeStruct((M, N), jnp.float32),
        grid_spec=pltpu.PrefetchScalarGridSpec(
            num_scalar_prefetch=0,
            grid=(N // tn,),
            in_specs=[
                pl.BlockSpec((M, K), lambda j: (0, 0)),
                pl.BlockSpec((K, tn), lambda j: (0, j)),
                pl.BlockSpec((1, tn), lambda j: (0, j)),
            ],
            out_specs=pl.BlockSpec((M, tn), lambda j: (0, j)),
        ),
        compiler_params=pltpu.CompilerParams(dimension_semantics=("parallel",)),
    )(x, w, b.reshape(1, N))


def _layernorm_f32(z, g, b):
    mu = jnp.mean(z, axis=-1, keepdims=True)
    zc = z - mu
    var = jnp.mean(zc * zc, axis=-1, keepdims=True)
    return (zc * jax.lax.rsqrt(var + LN_EPS)) * g + b


def _linear_res_ln_kernel(x_ref, w_ref, b_ref, res_ref, g_ref, bb_ref, o_ref):
    y = jnp.dot(x_ref[...].astype(w_ref.dtype), w_ref[...],
                preferred_element_type=jnp.float32) + b_ref[...]
    z = res_ref[...].astype(jnp.float32) + y
    o_ref[...] = _layernorm_f32(z, g_ref[...], bb_ref[...]).astype(o_ref.dtype)


def linear_res_layernorm(x, w, b, residual, gamma, beta, *, tm=8):
    """LayerNorm(residual + x @ w + b): matmul with fused residual-add + LN epilogue."""
    M, K = x.shape
    N = w.shape[1]
    assert M % tm == 0
    return pl.pallas_call(
        _linear_res_ln_kernel,
        out_shape=jax.ShapeDtypeStruct((M, N), jnp.float32),
        grid_spec=pltpu.PrefetchScalarGridSpec(
            num_scalar_prefetch=0,
            grid=(M // tm,),
            in_specs=[
                pl.BlockSpec((tm, K), lambda i: (i, 0)),
                pl.BlockSpec((K, N), lambda i: (0, 0)),
                pl.BlockSpec((1, N), lambda i: (0, 0)),
                pl.BlockSpec((tm, N), lambda i: (i, 0)),
                pl.BlockSpec((1, N), lambda i: (0, 0)),
                pl.BlockSpec((1, N), lambda i: (0, 0)),
            ],
            out_specs=pl.BlockSpec((tm, N), lambda i: (i, 0)),
        ),
        compiler_params=pltpu.CompilerParams(dimension_semantics=("parallel",)),
    )(x, w, b.reshape(1, N), residual, gamma.reshape(1, N), beta.reshape(1, N))


def _ffn_res_ln_kernel(x_ref, w1_ref, b1_ref, w2_ref, b2_ref, g_ref, bb_ref, o_ref):
    x_f32 = x_ref[...].astype(jnp.float32)
    h = jnp.dot(x_ref[...].astype(w1_ref.dtype), w1_ref[...],
                preferred_element_type=jnp.float32) + b1_ref[...]
    h = jnp.maximum(h, 0.0)                       # ReLU; intermediate stays in VMEM/vregs
    y = jnp.dot(h.astype(w2_ref.dtype), w2_ref[...],
                preferred_element_type=jnp.float32) + b2_ref[...]
    z = x_f32 + y                                  # residual is the FFN input itself
    o_ref[...] = _layernorm_f32(z, g_ref[...], bb_ref[...]).astype(o_ref.dtype)


def ffn_res_layernorm(x, w1, b1, w2, b2, gamma, beta, *, tm=8):
    """LayerNorm(x + lin2(relu(lin1(x)))) in a single pallas_call."""
    M, E = x.shape
    FF = w1.shape[1]
    assert M % tm == 0
    return pl.pallas_call(
        _ffn_res_ln_kernel,
        out_shape=jax.ShapeDtypeStruct((M, E), jnp.float32),
        grid_spec=pltpu.PrefetchScalarGridSpec(
            num_scalar_prefetch=0,
            grid=(M // tm,),
            in_specs=[
                pl.BlockSpec((tm, E), lambda i: (i, 0)),
                pl.BlockSpec((E, FF), lambda i: (0, 0)),
                pl.BlockSpec((1, FF), lambda i: (0, 0)),
                pl.BlockSpec((FF, E), lambda i: (0, 0)),
                pl.BlockSpec((1, E), lambda i: (0, 0)),
                pl.BlockSpec((1, E), lambda i: (0, 0)),
                pl.BlockSpec((1, E), lambda i: (0, 0)),
            ],
            out_specs=pl.BlockSpec((tm, E), lambda i: (i, 0)),
        ),
        compiler_params=pltpu.CompilerParams(dimension_semantics=("parallel",)),
    )(x, w1, b1.reshape(1, FF), w2, b2.reshape(1, E),
      gamma.reshape(1, E), beta.reshape(1, E))


def _attn_kernel(q_ref, k_ref, v_ref, o_ref, *, scale):
    q = q_ref[...].astype(jnp.float32)                              # (bh, L, Dh)
    k = k_ref[...].astype(jnp.float32)                              # (bh, S, Dh)
    v = v_ref[...].astype(jnp.float32)                              # (bh, S, Dh)
    s = jnp.einsum('bqd,bkd->bqk', q, k,
                   preferred_element_type=jnp.float32) * scale      # (bh, L, S)
    s = s - jnp.max(s, axis=-1, keepdims=True)
    p = jnp.exp(s)
    p = p / jnp.sum(p, axis=-1, keepdims=True)
    o = jnp.einsum('bqk,bkd->bqd', p, v, preferred_element_type=jnp.float32)
    o_ref[...] = o.astype(o_ref.dtype)


def attention(q, k, v, *, scale, bh_block=8):
    """q:(BH,L,Dh), k/v:(BH,S,Dh) -> (BH,L,Dh); 8 heads per grid step."""
    BH, L, Dh = q.shape
    S = k.shape[1]
    bh_block = min(bh_block, BH)
    assert BH % bh_block == 0
    return pl.pallas_call(
        functools.partial(_attn_kernel, scale=scale),
        out_shape=jax.ShapeDtypeStruct((BH, L, Dh), jnp.float32),
        grid_spec=pltpu.PrefetchScalarGridSpec(
            num_scalar_prefetch=0,
            grid=(BH // bh_block,),
            in_specs=[
                pl.BlockSpec((bh_block, L, Dh), lambda i: (i, 0, 0)),
                pl.BlockSpec((bh_block, S, Dh), lambda i: (i, 0, 0)),
                pl.BlockSpec((bh_block, S, Dh), lambda i: (i, 0, 0)),
            ],
            out_specs=pl.BlockSpec((bh_block, L, Dh), lambda i: (i, 0, 0)),
        ),
        compiler_params=pltpu.CompilerParams(dimension_semantics=("parallel",)),
    )(q, k, v)


def _pe_kernel(x_ref, pe_ref, o_ref, *, scale):
    # broadcast the (S1, D) PE tile over the leading (seq) dim inside the kernel
    o_ref[...] = (x_ref[...] * scale + pe_ref[...][None, :, :]).astype(o_ref.dtype)


def pos_encode(x, pe_table):
    """x * sqrt(d_model) + pe[:, :x.size(1)]  (dropout is eval-mode identity)."""
    A, S1, D = x.shape
    pe = pe_table[:S1]                                  # (S1, D); S1 is the batch dim
    return pl.pallas_call(
        functools.partial(_pe_kernel, scale=math.sqrt(D_MODEL)),
        out_shape=jax.ShapeDtypeStruct((A, S1, D), x.dtype),
        grid_spec=pltpu.PrefetchScalarGridSpec(
            num_scalar_prefetch=0,
            grid=(1,),
            in_specs=[
                pl.BlockSpec((A, S1, D), lambda i: (0, 0, 0)),
                pl.BlockSpec((S1, D), lambda i: (0, 0)),
            ],
            out_specs=pl.BlockSpec((A, S1, D), lambda i: (0, 0, 0)),
        ),
    )(x, pe)


# ----------------------------- model blocks --------------------------------

def mha_core(q2, k2, v2, L, S, N):
    """Per-head scaled-dot-product attention; q2:(L*N,E), k2/v2:(S*N,E) -> (L*N,E)."""
    H = N_HEAD
    E = q2.shape[1]
    Dh = E // H
    q = q2.reshape(L, N * H, Dh).transpose(1, 0, 2)     # (N*H, L, Dh)
    k = k2.reshape(S, N * H, Dh).transpose(1, 0, 2)
    v = v2.reshape(S, N * H, Dh).transpose(1, 0, 2)
    o = attention(q, k, v, scale=1.0 / math.sqrt(Dh))
    return o.transpose(1, 0, 2).reshape(L * N, E)


def encoder_layer(x, p):
    L, N, E = x.shape
    x2 = x.reshape(L * N, E)
    sa = p["self_attn"]
    qkv = linear(x2, sa["in_proj_w"], sa["in_proj_b"], tn=3 * E // 2)   # fused QKV
    q2, k2, v2 = qkv[:, :E], qkv[:, E:2 * E], qkv[:, 2 * E:]
    a = mha_core(q2, k2, v2, L, L, N)
    x2 = linear_res_layernorm(a, sa["out_proj_w"], sa["out_proj_b"],
                              x2, p["norm1_g"], p["norm1_b"])
    x2 = ffn_res_layernorm(x2, p["lin1_w"], p["lin1_b"], p["lin2_w"], p["lin2_b"],
                           p["norm2_g"], p["norm2_b"])
    return x2.reshape(L, N, E)


def decoder_layer(t, mem, p):
    L, N, E = t.shape
    S = mem.shape[0]
    t2 = t.reshape(L * N, E)
    m2 = mem.reshape(S * N, E)

    # self-attention (fused QKV)
    sa = p["self_attn"]
    qkv = linear(t2, sa["in_proj_w"], sa["in_proj_b"], tn=3 * E // 2)
    q2, k2, v2 = qkv[:, :E], qkv[:, E:2 * E], qkv[:, 2 * E:]
    a = mha_core(q2, k2, v2, L, L, N)
    t2 = linear_res_layernorm(a, sa["out_proj_w"], sa["out_proj_b"],
                              t2, p["norm1_g"], p["norm1_b"])

    # cross-attention (Q from target, fused KV from memory)
    ca = p["cross_attn"]
    q2 = linear(t2, ca["q_proj_w"], ca["q_proj_b"], tn=E // 2)
    kv = linear(m2, ca["kv_proj_w"], ca["kv_proj_b"], tn=E)
    k2, v2 = kv[:, :E], kv[:, E:]
    a = mha_core(q2, k2, v2, L, S, N)
    t2 = linear_res_layernorm(a, ca["out_proj_w"], ca["out_proj_b"],
                              t2, p["norm2_g"], p["norm2_b"])

    # feed-forward
    t2 = ffn_res_layernorm(t2, p["lin1_w"], p["lin1_b"], p["lin2_w"], p["lin2_b"],
                           p["norm3_g"], p["norm3_b"])
    return t2.reshape(L, N, E)


def transformer_forward(params, x, txt):
    # (the reference module prints txt.shape here; dropout layers are eval-mode identities)
    x = pos_encode(x, params["pe_table"])
    for p in params["enc_layers"]:
        x = encoder_layer(x, p)
    emb = jnp.take(params["embed_w"], txt, axis=0)          # embedding gather (glue)
    t = pos_encode(emb, params["pe_table"])
    for p in params["dec_layers"]:
        t = decoder_layer(t, x, p)
    return t


# ----------------------------- parameters ----------------------------------

def build_pe_table(max_seq_len, d_model):
    # Exactly reproduces the (non-standard) loop in the reference PositionalEncoder.
    pe = np.zeros((max_seq_len, d_model), dtype=np.float32)
    pos = np.arange(max_seq_len, dtype=np.float64)[:, None]
    i = np.arange(0, d_model, 2, dtype=np.float64)[None, :]
    pe[:, 0::2] = np.sin(pos / 10000.0 ** (2.0 * i / d_model))
    pe[:, 1::2] = np.cos(pos / 10000.0 ** (2.0 * (i + 1) / d_model))
    return pe


def init_params(key, enc_layers=2, dec_layers=2):
    keys = iter(jax.random.split(key, 256))

    def dense_t(out_dim, in_dim, scale=0.02):
        # PyTorch stores (out, in); pre-transpose ONCE at init and keep bf16 on HBM.
        w = scale * jax.random.normal(next(keys), (out_dim, in_dim), dtype=jnp.float32)
        return jnp.transpose(w).astype(jnp.bfloat16)        # (in, out) bf16

    def self_attn_params():
        return dict(
            in_proj_w=dense_t(3 * D_MODEL, D_MODEL),         # (E, 3E)
            in_proj_b=jnp.zeros((3 * D_MODEL,), jnp.float32),
            out_proj_w=dense_t(D_MODEL, D_MODEL),             # (E, E)
            out_proj_b=jnp.zeros((D_MODEL,), jnp.float32),
        )

    def cross_attn_params():
        return dict(
            q_proj_w=dense_t(D_MODEL, D_MODEL),               # (E, E)
            q_proj_b=jnp.zeros((D_MODEL,), jnp.float32),
            kv_proj_w=dense_t(2 * D_MODEL, D_MODEL),          # (E, 2E)
            kv_proj_b=jnp.zeros((2 * D_MODEL,), jnp.float32),
            out_proj_w=dense_t(D_MODEL, D_MODEL),
            out_proj_b=jnp.zeros((D_MODEL,), jnp.float32),
        )

    def enc_layer_params():
        return dict(
            self_attn=self_attn_params(),
            lin1_w=dense_t(DIM_FF, D_MODEL),                  # (E, FF)
            lin1_b=jnp.zeros((DIM_FF,), jnp.float32),
            lin2_w=dense_t(D_MODEL, DIM_FF),                  # (FF, E)
            lin2_b=jnp.zeros((D_MODEL,), jnp.float32),
            norm1_g=jnp.ones((D_MODEL,), jnp.float32),
            norm1_b=jnp.zeros((D_MODEL,), jnp.float32),
            norm2_g=jnp.ones((D_MODEL,), jnp.float32),
            norm2_b=jnp.zeros((D_MODEL,), jnp.float32),
        )

    def dec_layer_params():
        d = enc_layer_params()
        d["cross_attn"] = cross_attn_params()
        d["norm3_g"] = jnp.ones((D_MODEL,), jnp.float32)
        d["norm3_b"] = jnp.zeros((D_MODEL,), jnp.float32)
        return d

    return dict(
        pe_table=jnp.asarray(build_pe_table(200, D_MODEL)),
        embed_w=jax.random.normal(next(keys), (VOCAB, D_MODEL), dtype=jnp.float32),
        enc_layers=[enc_layer_params() for _ in range(enc_layers)],
        dec_layers=[dec_layer_params() for _ in range(dec_layers)],
    )


# ----------------------------- main -----------------------------------------

if __name__ == "__main__":
    key = jax.random.PRNGKey(0)
    kp, kx, kt = jax.random.split(key, 3)

    # small shapes: src_seq=8, tgt_seq=8, batch=2, d_model=512 (fixed by the module),
    # 2 encoder + 2 decoder layers (constructor arguments).
    params = init_params(kp, enc_layers=2, dec_layers=2)
    S, T, B = 8, 8, 2
    x = jax.random.normal(kx, (S, B, D_MODEL), dtype=jnp.float32)
    txt = jax.random.randint(kt, (T, B), 0, VOCAB, dtype=jnp.int32)

    out = jax.jit(transformer_forward)(params, x, txt)
    out = jax.block_until_ready(out)
    assert out.shape == (T, B, D_MODEL)
    assert bool(jnp.all(jnp.isfinite(out)))
    print("KERNEL_OK")
</pallas_src>

<mosaic_0001>
module attributes {stable_mosaic.version = 11 : i64} {
  func.func @_pe_kernel(%arg0: i32, %arg1: memref<8x2x512xf32, #tpu.memory_space<vmem>>, %arg2: memref<2x512xf32, #tpu.memory_space<vmem>>, %arg3: memref<8x2x512xf32, #tpu.memory_space<vmem>>) attributes {dimension_semantics = [#tpu.dimension_semantics<arbitrary>], iteration_bounds = array<i64: 1>, scalar_prefetch = 0 : i64, scratch_operands = 0 : i64, tpu.core_type = #tpu.core_type<tc>, window_params = [{pipeline_mode = #tpu.pipeline_mode<synchronous>, transform_indices = @transform_0, window_bounds = array<i64: 8, 2, 512>}, {pipeline_mode = #tpu.pipeline_mode<synchronous>, transform_indices = @transform_1, window_bounds = array<i64: 2, 512>}, {pipeline_mode = #tpu.pipeline_mode<synchronous>, transform_indices = @transform_2, window_bounds = array<i64: 8, 2, 512>}]} {
    %c0 = arith.constant 0 : index
    %c0_0 = arith.constant 0 : index
    %c0_1 = arith.constant 0 : index
    %0 = vector.load %arg1[%c0, %c0_0, %c0_1] : memref<8x2x512xf32, #tpu.memory_space<vmem>>, vector<8x2x512xf32>
    %cst = arith.constant 22.6274166 : f32
    %1 = vector.broadcast %cst : f32 to vector<8x2x512xf32>
    %2 = arith.mulf %0, %1 : vector<8x2x512xf32>
    %c0_2 = arith.constant 0 : index
    %c0_3 = arith.constant 0 : index
    %3 = vector.load %arg2[%c0_2, %c0_3] : memref<2x512xf32, #tpu.memory_space<vmem>>, vector<2x512xf32>
    %4 = vector.shape_cast %3 : vector<2x512xf32> to vector<1x2x512xf32>
    %5 = vector.broadcast %4 : vector<1x2x512xf32> to vector<8x2x512xf32>
    %6 = arith.addf %2, %5 : vector<8x2x512xf32>
    %c0_4 = arith.constant 0 : index
    %c0_5 = arith.constant 0 : index
    %c0_6 = arith.constant 0 : index
    %7 = vector.load %arg3[%c0_4, %c0_5, %c0_6] : memref<8x2x512xf32, #tpu.memory_space<vmem>>, vector<8x2x512xf32>
    tpu.vector_store %arg3[%c0_4, %c0_5, %c0_6], %6 {strides = array<i32>} : memref<8x2x512xf32, #tpu.memory_space<vmem>>, vector<8x2x512xf32>,
    return
  }
  func.func @transform_0(%arg0: i32) -> (i32, i32, i32) {
    %c0_i32 = arith.constant 0 : i32
    %c0_i32_0 = arith.constant 0 : i32
    %c0_i32_1 = arith.constant 0 : i32
    %c0_i32_2 = arith.constant 0 : i32
    return %c0_i32, %c0_i32_0, %c0_i32_1 : i32, i32, i32
  }
  func.func @transform_1(%arg0: i32) -> (i32, i32) {
    %c0_i32 = arith.constant 0 : i32
    %c0_i32_0 = arith.constant 0 : i32
    %c0_i32_1 = arith.constant 0 : i32
    return %c0_i32, %c0_i32_0 : i32, i32
  }
  func.func @transform_2(%arg0: i32) -> (i32, i32, i32) {
    %c0_i32 = arith.constant 0 : i32
    %c0_i32_0 = arith.constant 0 : i32
    %c0_i32_1 = arith.constant 0 : i32
    %c0_i32_2 = arith.constant 0 : i32
    return %c0_i32, %c0_i32_0, %c0_i32_1 : i32, i32, i32
  }
}

module attributes {stable_mosaic.version = 11 : i64} {
  func.func @_linear_kernel(%arg0: i32, %arg1: memref<16x512xf32, #tpu.memory_space<vmem>>, %arg2: memref<512x768xbf16, #tpu.memory_space<vmem>>, %arg3: memref<1x768xf32, #tpu.memory_space<vmem>>, %arg4: memref<16x768xf32, #tpu.memory_space<vmem>>) attributes {dimension_semantics = [#tpu.dimension_semantics<parallel>], iteration_bounds = array<i64: 2>, scalar_prefetch = 0 : i64, scratch_operands = 0 : i64, tpu.core_type = #tpu.core_type<tc>, window_params = [{pipeline_mode = #tpu.pipeline_mode<synchronous>, transform_indices = @transform_0, window_bounds = array<i64: 16, 512>}, {transform_indices = @transform_1, window_bounds = array<i64: 512, 768>}, {transform_indices = @transform_2, window_bounds = array<i64: 1, 768>}, {transform_indices = @transform_3, window_bounds = array<i64: 16, 768>}]} {
    %c0 = arith.constant 0 : index
    %c0_0 = arith.constant 0 : index
    %0 = vector.load %arg1[%c0, %c0_0] : memref<16x512xf32, #tpu.memory_space<vmem>>, vector<16x512xf32>
    %1 = arith.truncf %0 : vector<16x512xf32> to vector<16x512xbf16>
    %c0_1 = arith.constant 0 : index
    %c0_2 = arith.constant 0 : index
    %2 = vector.load %arg2[%c0_1, %c0_2] : memref<512x768xbf16, #tpu.memory_space<vmem>>, vector<512x768xbf16>
    %cst = arith.constant dense<0.000000e+00> : vector<16x768xf32>
    %3 = tpu.matmul %1, %2, %cst {dimension_numbers = #tpu.dot_dimension_numbers<[1], [0], [0], [1], [0, 0, 1, 1], [], []>} : vector<16x512xbf16>, vector<512x768xbf16>, vector<16x768xf32> -> vector<16x768xf32>
    %c0_3 = arith.constant 0 : index
    %c0_4 = arith.constant 0 : index
    %4 = vector.load %arg3[%c0_3, %c0_4] : memref<1x768xf32, #tpu.memory_space<vmem>>, vector<1x768xf32>
    %5 = vector.broadcast %4 : vector<1x768xf32> to vector<16x768xf32>
    %6 = arith.addf %3, %5 : vector<16x768xf32>
    %c0_5 = arith.constant 0 : index
    %c0_6 = arith.constant 0 : index
    %7 = vector.load %arg4[%c0_5, %c0_6] : memref<16x768xf32, #tpu.memory_space<vmem>>, vector<16x768xf32>
    tpu.vector_store %arg4[%c0_5, %c0_6], %6 {strides = array<i32>} : memref<16x768xf32, #tpu.memory_space<vmem>>, vector<16x768xf32>,
    return
  }
  func.func @transform_0(%arg0: i32) -> (i32, i32) {
    %c0_i32 = arith.constant 0 : i32
    %c0_i32_0 = arith.constant 0 : i32
    %c0_i32_1 = arith.constant 0 : i32
    return %c0_i32, %c0_i32_0 : i32, i32
  }
  func.func @transform_1(%arg0: i32) -> (i32, i32) {
    %c0_i32 = arith.constant 0 : i32
    %c0_i32_0 = arith.constant 0 : i32
    return %c0_i32, %arg0 : i32, i32
  }
  func.func @transform_2(%arg0: i32) -> (i32, i32) {
    %c0_i32 = arith.constant 0 : i32
    %c0_i32_0 = arith.constant 0 : i32
    return %c0_i32, %arg0 : i32, i32
  }
  func.func @transform_3(%arg0: i32) -> (i32, i32) {
    %c0_i32 = arith.constant 0 : i32
    %c0_i32_0 = arith.constant 0 : i32
    return %c0_i32, %arg0 : i32, i32
  }
}

module attributes {stable_mosaic.version = 11 : i64} {
  func.func @_attn_kernel(%arg0: i32, %arg1: memref<8x8x64xf32, #tpu.memory_space<vmem>>, %arg2: memref<8x8x64xf32, #tpu.memory_space<vmem>>, %arg3: memref<8x8x64xf32, #tpu.memory_space<vmem>>, %arg4: memref<8x8x64xf32, #tpu.memory_space<vmem>>) attributes {dimension_semantics = [#tpu.dimension_semantics<parallel>], iteration_bounds = array<i64: 2>, scalar_prefetch = 0 : i64, scratch_operands = 0 : i64, tpu.core_type = #tpu.core_type<tc>, window_params = [{transform_indices = @transform_0, window_bounds = array<i64: 8, 8, 64>}, {transform_indices = @transform_1, window_bounds = array<i64: 8, 8, 64>}, {transform_indices = @transform_2, window_bounds = array<i64: 8, 8, 64>}, {transform_indices = @transform_3, window_bounds = array<i64: 8, 8, 64>}]} {
    %c0 = arith.constant 0 : index
    %c0_0 = arith.constant 0 : index
    %c0_1 = arith.constant 0 : index
    %0 = vector.load %arg1[%c0, %c0_0, %c0_1] : memref<8x8x64xf32, #tpu.memory_space<vmem>>, vector<8x8x64xf32>
    %c0_2 = arith.constant 0 : index
    %c0_3 = arith.constant 0 : index
    %c0_4 = arith.constant 0 : index
    %1 = vector.load %arg2[%c0_2, %c0_3, %c0_4] : memref<8x8x64xf32, #tpu.memory_space<vmem>>, vector<8x8x64xf32>
    %c0_5 = arith.constant 0 : index
    %c0_6 = arith.constant 0 : index
    %c0_7 = arith.constant 0 : index
    %2 = vector.load %arg3[%c0_5, %c0_6, %c0_7] : memref<8x8x64xf32, #tpu.memory_space<vmem>>, vector<8x8x64xf32>
    "tpu.trace_start"() <{level = 10 : i32, message = "bqd,bkd->bqk"}> : () -> ()
    %cst = arith.constant dense<0.000000e+00> : vector<8x8x8xf32>
    %3 = tpu.matmul %0, %1, %cst {dimension_numbers = #tpu.dot_dimension_numbers<[2], [2], [1], [1], [0, 0, 0, 1, 1, 1], [0], [0]>} : vector<8x8x64xf32>, vector<8x8x64xf32>, vector<8x8x8xf32> -> vector<8x8x8xf32>
    "tpu.trace_stop"() : () -> ()
    %cst_8 = arith.constant 1.250000e-01 : f32
    %4 = vector.broadcast %cst_8 : f32 to vector<8x8x8xf32>
    %5 = arith.mulf %3, %4 : vector<8x8x8xf32>
    %cst_9 = arith.constant dense<0xFF800000> : vector<8x8xf32>
    %6 = vector.multi_reduction <maximumf>, %5, %cst_9 [2] : vector<8x8x8xf32> to vector<8x8xf32>
    %7 = vector.shape_cast %6 : vector<8x8xf32> to vector<8x8x1xf32>
    %8 = vector.broadcast %7 : vector<8x8x1xf32> to vector<8x8x8xf32>
    %9 = arith.subf %5, %8 : vector<8x8x8xf32>
    %10 = math.exp %9 : vector<8x8x8xf32>
    %cst_10 = arith.constant dense<0.000000e+00> : vector<8x8xf32>
    %11 = vector.multi_reduction <add>, %10, %cst_10 [2] : vector<8x8x8xf32> to vector<8x8xf32>
    %12 = vector.shape_cast %11 : vector<8x8xf32> to vector<8x8x1xf32>
    %13 = vector.broadcast %12 : vector<8x8x1xf32> to vector<8x8x8xf32>
    %14 = arith.divf %10, %13 : vector<8x8x8xf32>
    "tpu.trace_start"() <{level = 10 : i32, message = "bqk,bkd->bqd"}> : () -> ()
    %cst_11 = arith.constant dense<0.000000e+00> : vector<8x8x64xf32>
    %15 = tpu.matmul %14, %2, %cst_11 {dimension_numbers = #tpu.dot_dimension_numbers<[2], [1], [1], [2], [0, 0, 0, 1, 1, 2], [0], [0]>} : vector<8x8x8xf32>, vector<8x8x64xf32>, vector<8x8x64xf32> -> vector<8x8x64xf32>
    "tpu.trace_stop"() : () -> ()
    %c0_12 = arith.constant 0 : index
    %c0_13 = arith.constant 0 : index
    %c0_14 = arith.constant 0 : index
    %16 = vector.load %arg4[%c0_12, %c0_13, %c0_14] : memref<8x8x64xf32, #tpu.memory_space<vmem>>, vector<8x8x64xf32>
    tpu.vector_store %arg4[%c0_12, %c0_13, %c0_14], %15 {strides = array<i32>} : memref<8x8x64xf32, #tpu.memory_space<vmem>>, vector<8x8x64xf32>,
    return
  }
  func.func @transform_0(%arg0: i32) -> (i32, i32, i32) {
    %c0_i32 = arith.constant 0 : i32
    %c0_i32_0 = arith.constant 0 : i32
    %c0_i32_1 = arith.constant 0 : i32
    return %arg0, %c0_i32, %c0_i32_0 : i32, i32, i32
  }
  func.func @transform_1(%arg0: i32) -> (i32, i32, i32) {
    %c0_i32 = arith.constant 0 : i32
    %c0_i32_0 = arith.constant 0 : i32
    %c0_i32_1 = arith.constant 0 : i32
    return %arg0, %c0_i32, %c0_i32_0 : i32, i32, i32
  }
  func.func @transform_2(%arg0: i32) -> (i32, i32, i32) {
    %c0_i32 = arith.constant 0 : i32
    %c0_i32_0 = arith.constant 0 : i32
    %c0_i32_1 = arith.constant 0 : i32
    return %arg0, %c0_i32, %c0_i32_0 : i32, i32, i32
  }
  func.func @transform_3(%arg0: i32) -> (i32, i32, i32) {
    %c0_i32 = arith.constant 0 : i32
    %c0_i32_0 = arith.constant 0 : i32
    %c0_i32_1 = arith.constant 0 : i32
    return %arg0, %c0_i32, %c0_i32_0 : i32, i32, i32
  }
}

module attributes {stable_mosaic.version = 11 : i64} {
  func.func @_linear_res_ln_kernel(%arg0: i32, %arg1: memref<8x512xf32, #tpu.memory_space<vmem>>, %arg2: memref<512x512xbf16, #tpu.memory_space<vmem>>, %arg3: memref<1x512xf32, #tpu.memory_space<vmem>>, %arg4: memref<8x512xf32, #tpu.memory_space<vmem>>, %arg5: memref<1x512xf32, #tpu.memory_space<vmem>>, %arg6: memref<1x512xf32, #tpu.memory_space<vmem>>, %arg7: memref<8x512xf32, #tpu.memory_space<vmem>>) attributes {dimension_semantics = [#tpu.dimension_semantics<parallel>], iteration_bounds = array<i64: 2>, scalar_prefetch = 0 : i64, scratch_operands = 0 : i64, tpu.core_type = #tpu.core_type<tc>, window_params = [{transform_indices = @transform_0, window_bounds = array<i64: 8, 512>}, {pipeline_mode = #tpu.pipeline_mode<synchronous>, transform_indices = @transform_1, window_bounds = array<i64: 512, 512>}, {pipeline_mode = #tpu.pipeline_mode<synchronous>, transform_indices = @transform_2, window_bounds = array<i64: 1, 512>}, {transform_indices = @transform_3, window_bounds = array<i64: 8, 512>}, {pipeline_mode = #tpu.pipeline_mode<synchronous>, transform_indices = @transform_4, window_bounds = array<i64: 1, 512>}, {pipeline_mode = #tpu.pipeline_mode<synchronous>, transform_indices = @transform_5, window_bounds = array<i64: 1, 512>}, {transform_indices = @transform_6, window_bounds = array<i64: 8, 512>}]} {
    %c0 = arith.constant 0 : index
    %c0_0 = arith.constant 0 : index
    %0 = vector.load %arg1[%c0, %c0_0] : memref<8x512xf32, #tpu.memory_space<vmem>>, vector<8x512xf32>
    %1 = arith.truncf %0 : vector<8x512xf32> to vector<8x512xbf16>
    %c0_1 = arith.constant 0 : index
    %c0_2 = arith.constant 0 : index
    %2 = vector.load %arg2[%c0_1, %c0_2] : memref<512x512xbf16, #tpu.memory_space<vmem>>, vector<512x512xbf16>
    %cst = arith.constant dense<0.000000e+00> : vector<8x512xf32>
    %3 = tpu.matmul %1, %2, %cst {dimension_numbers = #tpu.dot_dimension_numbers<[1], [0], [0], [1], [0, 0, 1, 1], [], []>} : vector<8x512xbf16>, vector<512x512xbf16>, vector<8x512xf32> -> vector<8x512xf32>
    %c0_3 = arith.constant 0 : index
    %c0_4 = arith.constant 0 : index
    %4 = vector.load %arg3[%c0_3, %c0_4] : memref<1x512xf32, #tpu.memory_space<vmem>>, vector<1x512xf32>
    %5 = vector.broadcast %4 : vector<1x512xf32> to vector<8x512xf32>
    %6 = arith.addf %3, %5 : vector<8x512xf32>
    %c0_5 = arith.constant 0 : index
    %c0_6 = arith.constant 0 : index
    %7 = vector.load %arg4[%c0_5, %c0_6] : memref<8x512xf32, #tpu.memory_space<vmem>>, vector<8x512xf32>
    %8 = arith.addf %7, %6 : vector<8x512xf32>
    %c0_7 = arith.constant 0 : index
    %c0_8 = arith.constant 0 : index
    %9 = vector.load %arg5[%c0_7, %c0_8] : memref<1x512xf32, #tpu.memory_space<vmem>>, vector<1x512xf32>
    %c0_9 = arith.constant 0 : index
    %c0_10 = arith.constant 0 : index
    %10 = vector.load %arg6[%c0_9, %c0_10] : memref<1x512xf32, #tpu.memory_space<vmem>>, vector<1x512xf32>
    %cst_11 = arith.constant dense<0.000000e+00> : vector<8xf32>
    %11 = vector.multi_reduction <add>, %8, %cst_11 [1] : vector<8x512xf32> to vector<8xf32>
    %12 = vector.shape_cast %11 : vector<8xf32> to vector<8x1xf32>
    %cst_12 = arith.constant 5.120000e+02 : f32
    %13 = vector.broadcast %cst_12 : f32 to vector<8x1xf32>
    %14 = arith.divf %12, %13 : vector<8x1xf32>
    %15 = vector.broadcast %14 : vector<8x1xf32> to vector<8x512xf32>
    %16 = arith.subf %8, %15 : vector<8x512xf32>
    %17 = arith.mulf %16, %16 : vector<8x512xf32>
    %cst_13 = arith.constant dense<0.000000e+00> : vector<8xf32>
    %18 = vector.multi_reduction <add>, %17, %cst_13 [1] : vector<8x512xf32> to vector<8xf32>
    %19 = vector.shape_cast %18 : vector<8xf32> to vector<8x1xf32>
    %cst_14 = arith.constant 5.120000e+02 : f32
    %20 = vector.broadcast %cst_14 : f32 to vector<8x1xf32>
    %21 = arith.divf %19, %20 : vector<8x1xf32>
    %cst_15 = arith.constant 9.99999974E-6 : f32
    %22 = vector.broadcast %cst_15 : f32 to vector<8x1xf32>
    %23 = arith.addf %21, %22 : vector<8x1xf32>
    %24 = math.rsqrt %23 : vector<8x1xf32>
    %25 = vector.broadcast %24 : vector<8x1xf32> to vector<8x512xf32>
    %26 = arith.mulf %16, %25 : vector<8x512xf32>
    %27 = vector.broadcast %9 : vector<1x512xf32> to vector<8x512xf32>
    %28 = arith.mulf %26, %27 : vector<8x512xf32>
    %29 = vector.broadcast %10 : vector<1x512xf32> to vector<8x512xf32>
    %30 = arith.addf %28, %29 : vector<8x512xf32>
    %c0_16 = arith.constant 0 : index
    %c0_17 = arith.constant 0 : index
    %31 = vector.load %arg7[%c0_16, %c0_17] : memref<8x512xf32, #tpu.memory_space<vmem>>, vector<8x512xf32>
    tpu.vector_store %arg7[%c0_16, %c0_17], %30 {strides = array<i32>} : memref<8x512xf32, #tpu.memory_space<vmem>>, vector<8x512xf32>,
    return
  }
  func.func @transform_0(%arg0: i32) -> (i32, i32) {
    %c0_i32 = arith.constant 0 : i32
    %c0_i32_0 = arith.constant 0 : i32
    return %arg0, %c0_i32 : i32, i32
  }
  func.func @transform_1(%arg0: i32) -> (i32, i32) {
    %c0_i32 = arith.constant 0 : i32
    %c0_i32_0 = arith.constant 0 : i32
    %c0_i32_1 = arith.constant 0 : i32
    return %c0_i32, %c0_i32_0 : i32, i32
  }
  func.func @transform_2(%arg0: i32) -> (i32, i32) {
    %c0_i32 = arith.constant 0 : i32
    %c0_i32_0 = arith.constant 0 : i32
    %c0_i32_1 = arith.constant 0 : i32
    return %c0_i32, %c0_i32_0 : i32, i32
  }
  func.func @transform_3(%arg0: i32) -> (i32, i32) {
    %c0_i32 = arith.constant 0 : i32
    %c0_i32_0 = arith.constant 0 : i32
    return %arg0, %c0_i32 : i32, i32
  }
  func.func @transform_4(%arg0: i32) -> (i32, i32) {
    %c0_i32 = arith.constant 0 : i32
    %c0_i32_0 = arith.constant 0 : i32
    %c0_i32_1 = arith.constant 0 : i32
    return %c0_i32, %c0_i32_0 : i32, i32
  }
  func.func @transform_5(%arg0: i32) -> (i32, i32) {
    %c0_i32 = arith.constant 0 : i32
    %c0_i32_0 = arith.constant 0 : i32
    %c0_i32_1 = arith.constant 0 : i32
    return %c0_i32, %c0_i32_0 : i32, i32
  }
  func.func @transform_6(%arg0: i32) -> (i32, i32) {
    %c0_i32 = arith.constant 0 : i32
    %c0_i32_0 = arith.constant 0 : i32
    return %arg0, %c0_i32 : i32, i32
  }
}

module attributes {stable_mosaic.version = 11 : i64} {
  func.func @_linear_kernel(%arg0: i32, %arg1: memref<16x512xf32, #tpu.memory_space<vmem>>, %arg2: memref<512x256xbf16, #tpu.memory_space<vmem>>, %arg3: memref<1x256xf32, #tpu.memory_space<vmem>>, %arg4: memref<16x256xf32, #tpu.memory_space<vmem>>) attributes {dimension_semantics = [#tpu.dimension_semantics<parallel>], iteration_bounds = array<i64: 2>, scalar_prefetch = 0 : i64, scratch_operands = 0 : i64, tpu.core_type = #tpu.core_type<tc>, window_params = [{pipeline_mode = #tpu.pipeline_mode<synchronous>, transform_indices = @transform_0, window_bounds = array<i64: 16, 512>}, {transform_indices = @transform_1, window_bounds = array<i64: 512, 256>}, {transform_indices = @transform_2, window_bounds = array<i64: 1, 256>}, {transform_indices = @transform_3, window_bounds = array<i64: 16, 256>}]} {
    %c0 = arith.constant 0 : index
    %c0_0 = arith.constant 0 : index
    %0 = vector.load %arg1[%c0, %c0_0] : memref<16x512xf32, #tpu.memory_space<vmem>>, vector<16x512xf32>
    %1 = arith.truncf %0 : vector<16x512xf32> to vector<16x512xbf16>
    %c0_1 = arith.constant 0 : index
    %c0_2 = arith.constant 0 : index
    %2 = vector.load %arg2[%c0_1, %c0_2] : memref<512x256xbf16, #tpu.memory_space<vmem>>, vector<512x256xbf16>
    %cst = arith.constant dense<0.000000e+00> : vector<16x256xf32>
    %3 = tpu.matmul %1, %2, %cst {dimension_numbers = #tpu.dot_dimension_numbers<[1], [0], [0], [1], [0, 0, 1, 1], [], []>} : vector<16x512xbf16>, vector<512x256xbf16>, vector<16x256xf32> -> vector<16x256xf32>
    %c0_3 = arith.constant 0 : index
    %c0_4 = arith.constant 0 : index
    %4 = vector.load %arg3[%c0_3, %c0_4] : memref<1x256xf32, #tpu.memory_space<vmem>>, vector<1x256xf32>
    %5 = vector.broadcast %4 : vector<1x256xf32> to vector<16x256xf32>
    %6 = arith.addf %3, %5 : vector<16x256xf32>
    %c0_5 = arith.constant 0 : index
    %c0_6 = arith.constant 0 : index
    %7 = vector.load %arg4[%c0_5, %c0_6] : memref<16x256xf32, #tpu.memory_space<vmem>>, vector<16x256xf32>
    tpu.vector_store %arg4[%c0_5, %c0_6], %6 {strides = array<i32>} : memref<16x256xf32, #tpu.memory_space<vmem>>, vector<16x256xf32>,
    return
  }
  func.func @transform_0(%arg0: i32) -> (i32, i32) {
    %c0_i32 = arith.constant 0 : i32
    %c0_i32_0 = arith.constant 0 : i32
    %c0_i32_1 = arith.constant 0 : i32
    return %c0_i32, %c0_i32_0 : i32, i32
  }
  func.func @transform_1(%arg0: i32) -> (i32, i32) {
    %c0_i32 = arith.constant 0 : i32
    %c0_i32_0 = arith.constant 0 : i32
    return %c0_i32, %arg0 : i32, i32
  }
  func.func @transform_2(%arg0: i32) -> (i32, i32) {
    %c0_i32 = arith.constant 0 : i32
    %c0_i32_0 = arith.constant 0 : i32
    return %c0_i32, %arg0 : i32, i32
  }
  func.func @transform_3(%arg0: i32) -> (i32, i32) {
    %c0_i32 = arith.constant 0 : i32
    %c0_i32_0 = arith.constant 0 : i32
    return %c0_i32, %arg0 : i32, i32
  }
}

module attributes {stable_mosaic.version = 11 : i64} {
  func.func @_linear_kernel(%arg0: i32, %arg1: memref<16x512xf32, #tpu.memory_space<vmem>>, %arg2: memref<512x768xbf16, #tpu.memory_space<vmem>>, %arg3: memref<1x768xf32, #tpu.memory_space<vmem>>, %arg4: memref<16x768xf32, #tpu.memory_space<vmem>>) attributes {dimension_semantics = [#tpu.dimension_semantics<parallel>], iteration_bounds = array<i64: 2>, scalar_prefetch = 0 : i64, scratch_operands = 0 : i64, tpu.core_type = #tpu.core_type<tc>, window_params = [{pipeline_mode = #tpu.pipeline_mode<synchronous>, transform_indices = @transform_0, window_bounds = array<i64: 16, 512>}, {transform_indices = @transform_1, window_bounds = array<i64: 512, 768>}, {transform_indices = @transform_2, window_bounds = array<i64: 1, 768>}, {transform_indices = @transform_3, window_bounds = array<i64: 16, 768>}]} {
    %c0 = arith.constant 0 : index
    %c0_0 = arith.constant 0 : index
    %0 = vector.load %arg1[%c0, %c0_0] : memref<16x512xf32, #tpu.memory_space<vmem>>, vector<16x512xf32>
    %1 = arith.truncf %0 : vector<16x512xf32> to vector<16x512xbf16>
    %c0_1 = arith.constant 0 : index
    %c0_2 = arith.constant 0 : index
    %2 = vector.load %arg2[%c0_1, %c0_2] : memref<512x768xbf16, #tpu.memory_space<vmem>>, vector<512x768xbf16>
    %cst = arith.constant dense<0.000000e+00> : vector<16x768xf32>
    %3 = tpu.matmul %1, %2, %cst {dimension_numbers = #tpu.dot_dimension_numbers<[1], [0], [0], [1], [0, 0, 1, 1], [], []>} : vector<16x512xbf16>, vector<512x768xbf16>, vector<16x768xf32> -> vector<16x768xf32>
    %c0_3 = arith.constant 0 : index
    %c0_4 = arith.constant 0 : index
    %4 = vector.load %arg3[%c0_3, %c0_4] : memref<1x768xf32, #tpu.memory_space<vmem>>, vector<1x768xf32>
    %5 = vector.broadcast %4 : vector<1x768xf32> to vector<16x768xf32>
    %6 = arith.addf %3, %5 : vector<16x768xf32>
    %c0_5 = arith.constant 0 : index
    %c0_6 = arith.constant 0 : index
    %7 = vector.load %arg4[%c0_5, %c0_6] : memref<16x768xf32, #tpu.memory_space<vmem>>, vector<16x768xf32>
    tpu.vector_store %arg4[%c0_5, %c0_6], %6 {strides = array<i32>} : memref<16x768xf32, #tpu.memory_space<vmem>>, vector<16x768xf32>,
    return
  }
  func.func @transform_0(%arg0: i32) -> (i32, i32) {
    %c0_i32 = arith.constant 0 : i32
    %c0_i32_0 = arith.constant 0 : i32
    %c0_i32_1 = arith.constant 0 : i32
    return %c0_i32, %c0_i32_0 : i32, i32
  }
  func.func @transform_1(%arg0: i32) -> (i32, i32) {
    %c0_i32 = arith.constant 0 : i32
    %c0_i32_0 = arith.constant 0 : i32
    return %c0_i32, %arg0 : i32, i32
  }
  func.func @transform_2(%arg0: i32) -> (i32, i32) {
    %c0_i32 = arith.constant 0 : i32
    %c0_i32_0 = arith.constant 0 : i32
    return %c0_i32, %arg0 : i32, i32
  }
  func.func @transform_3(%arg0: i32) -> (i32, i32) {
    %c0_i32 = arith.constant 0 : i32
    %c0_i32_0 = arith.constant 0 : i32
    return %c0_i32, %arg0 : i32, i32
  }
}

module attributes {stable_mosaic.version = 11 : i64} {
  func.func @_ffn_res_ln_kernel(%arg0: i32, %arg1: memref<8x512xf32, #tpu.memory_space<vmem>>, %arg2: memref<512x2048xbf16, #tpu.memory_space<vmem>>, %arg3: memref<1x2048xf32, #tpu.memory_space<vmem>>, %arg4: memref<2048x512xbf16, #tpu.memory_space<vmem>>, %arg5: memref<1x512xf32, #tpu.memory_space<vmem>>, %arg6: memref<1x512xf32, #tpu.memory_space<vmem>>, %arg7: memref<1x512xf32, #tpu.memory_space<vmem>>, %arg8: memref<8x512xf32, #tpu.memory_space<vmem>>) attributes {dimension_semantics = [#tpu.dimension_semantics<parallel>], iteration_bounds = array<i64: 2>, scalar_prefetch = 0 : i64, scratch_operands = 0 : i64, tpu.core_type = #tpu.core_type<tc>, window_params = [{transform_indices = @transform_0, window_bounds = array<i64: 8, 512>}, {pipeline_mode = #tpu.pipeline_mode<synchronous>, transform_indices = @transform_1, window_bounds = array<i64: 512, 2048>}, {pipeline_mode = #tpu.pipeline_mode<synchronous>, transform_indices = @transform_2, window_bounds = array<i64: 1, 2048>}, {pipeline_mode = #tpu.pipeline_mode<synchronous>, transform_indices = @transform_3, window_bounds = array<i64: 2048, 512>}, {pipeline_mode = #tpu.pipeline_mode<synchronous>, transform_indices = @transform_4, window_bounds = array<i64: 1, 512>}, {pipeline_mode = #tpu.pipeline_mode<synchronous>, transform_indices = @transform_5, window_bounds = array<i64: 1, 512>}, {pipeline_mode = #tpu.pipeline_mode<synchronous>, transform_indices = @transform_6, window_bounds = array<i64: 1, 512>}, {transform_indices = @transform_7, window_bounds = array<i64: 8, 512>}]} {
    %c0 = arith.constant 0 : index
    %c0_0 = arith.constant 0 : index
    %0 = vector.load %arg1[%c0, %c0_0] : memref<8x512xf32, #tpu.memory_space<vmem>>, vector<8x512xf32>
    %c0_1 = arith.constant 0 : index
    %c0_2 = arith.constant 0 : index
    %1 = vector.load %arg1[%c0_1, %c0_2] : memref<8x512xf32, #tpu.memory_space<vmem>>, vector<8x512xf32>
    %2 = arith.truncf %1 : vector<8x512xf32> to vector<8x512xbf16>
    %c0_3 = arith.constant 0 : index
    %c0_4 = arith.constant 0 : index
    %3 = vector.load %arg2[%c0_3, %c0_4] : memref<512x2048xbf16, #tpu.memory_space<vmem>>, vector<512x2048xbf16>
    %cst = arith.constant dense<0.000000e+00> : vector<8x2048xf32>
    %4 = tpu.matmul %2, %3, %cst {dimension_numbers = #tpu.dot_dimension_numbers<[1], [0], [0], [1], [0, 0, 1, 1], [], []>} : vector<8x512xbf16>, vector<512x2048xbf16>, vector<8x2048xf32> -> vector<8x2048xf32>
    %c0_5 = arith.constant 0 : index
    %c0_6 = arith.constant 0 : index
    %5 = vector.load %arg3[%c0_5, %c0_6] : memref<1x2048xf32, #tpu.memory_space<vmem>>, vector<1x2048xf32>
    %6 = vector.broadcast %5 : vector<1x2048xf32> to vector<8x2048xf32>
    %7 = arith.addf %4, %6 : vector<8x2048xf32>
    %cst_7 = arith.constant 0.000000e+00 : f32
    %8 = vector.broadcast %cst_7 : f32 to vector<8x2048xf32>
    %9 = arith.maximumf %7, %8 : vector<8x2048xf32>
    %10 = arith.truncf %9 : vector<8x2048xf32> to vector<8x2048xbf16>
    %c0_8 = arith.constant 0 : index
    %c0_9 = arith.constant 0 : index
    %11 = vector.load %arg4[%c0_8, %c0_9] : memref<2048x512xbf16, #tpu.memory_space<vmem>>, vector<2048x512xbf16>
    %cst_10 = arith.constant dense<0.000000e+00> : vector<8x512xf32>
    %12 = tpu.matmul %10, %11, %cst_10 {dimension_numbers = #tpu.dot_dimension_numbers<[1], [0], [0], [1], [0, 0, 1, 1], [], []>} : vector<8x2048xbf16>, vector<2048x512xbf16>, vector<8x512xf32> -> vector<8x512xf32>
    %c0_11 = arith.constant 0 : index
    %c0_12 = arith.constant 0 : index
    %13 = vector.load %arg5[%c0_11, %c0_12] : memref<1x512xf32, #tpu.memory_space<vmem>>, vector<1x512xf32>
    %14 = vector.broadcast %13 : vector<1x512xf32> to vector<8x512xf32>
    %15 = arith.addf %12, %14 : vector<8x512xf32>
    %16 = arith.addf %0, %15 : vector<8x512xf32>
    %c0_13 = arith.constant 0 : index
    %c0_14 = arith.constant 0 : index
    %17 = vector.load %arg6[%c0_13, %c0_14] : memref<1x512xf32, #tpu.memory_space<vmem>>, vector<1x512xf32>
    %c0_15 = arith.constant 0 : index
    %c0_16 = arith.constant 0 : index
    %18 = vector.load %arg7[%c0_15, %c0_16] : memref<1x512xf32, #tpu.memory_space<vmem>>, vector<1x512xf32>
    %cst_17 = arith.constant dense<0.000000e+00> : vector<8xf32>
    %19 = vector.multi_reduction <add>, %16, %cst_17 [1] : vector<8x512xf32> to vector<8xf32>
    %20 = vector.shape_cast %19 : vector<8xf32> to vector<8x1xf32>
    %cst_18 = arith.constant 5.120000e+02 : f32
    %21 = vector.broadcast %cst_18 : f32 to vector<8x1xf32>
    %22 = arith.divf %20, %21 : vector<8x1xf32>
    %23 = vector.broadcast %22 : vector<8x1xf32> to vector<8x512xf32>
    %24 = arith.subf %16, %23 : vector<8x512xf32>
    %25 = arith.mulf %24, %24 : vector<8x512xf32>
    %cst_19 = arith.constant dense<0.000000e+00> : vector<8xf32>
    %26 = vector.multi_reduction <add>, %25, %cst_19 [1] : vector<8x512xf32> to vector<8xf32>
    %27 = vector.shape_cast %26 : vector<8xf32> to vector<8x1xf32>
    %cst_20 = arith.constant 5.120000e+02 : f32
    %28 = vector.broadcast %cst_20 : f32 to vector<8x1xf32>
    %29 = arith.divf %27, %28 : vector<8x1xf32>
    %cst_21 = arith.constant 9.99999974E-6 : f32
    %30 = vector.broadcast %cst_21 : f32 to vector<8x1xf32>
    %31 = arith.addf %29, %30 : vector<8x1xf32>
    %32 = math.rsqrt %31 : vector<8x1xf32>
    %33 = vector.broadcast %32 : vector<8x1xf32> to vector<8x512xf32>
    %34 = arith.mulf %24, %33 : vector<8x512xf32>
    %35 = vector.broadcast %17 : vector<1x512xf32> to vector<8x512xf32>
    %36 = arith.mulf %34, %35 : vector<8x512xf32>
    %37 = vector.broadcast %18 : vector<1x512xf32> to vector<8x512xf32>
    %38 = arith.addf %36, %37 : vector<8x512xf32>
    %c0_22 = arith.constant 0 : index
    %c0_23 = arith.constant 0 : index
    %39 = vector.load %arg8[%c0_22, %c0_23] : memref<8x512xf32, #tpu.memory_space<vmem>>, vector<8x512xf32>
    tpu.vector_store %arg8[%c0_22, %c0_23], %38 {strides = array<i32>} : memref<8x512xf32, #tpu.memory_space<vmem>>, vector<8x512xf32>,
    return
  }
  func.func @transform_0(%arg0: i32) -> (i32, i32) {
    %c0_i32 = arith.constant 0 : i32
    %c0_i32_0 = arith.constant 0 : i32
    return %arg0, %c0_i32 : i32, i32
  }
  func.func @transform_1(%arg0: i32) -> (i32, i32) {
    %c0_i32 = arith.constant 0 : i32
    %c0_i32_0 = arith.constant 0 : i32
    %c0_i32_1 = arith.constant 0 : i32
    return %c0_i32, %c0_i32_0 : i32, i32
  }
  func.func @transform_2(%arg0: i32) -> (i32, i32) {
    %c0_i32 = arith.constant 0 : i32
    %c0_i32_0 = arith.constant 0 : i32
    %c0_i32_1 = arith.constant 0 : i32
    return %c0_i32, %c0_i32_0 : i32, i32
  }
  func.func @transform_3(%arg0: i32) -> (i32, i32) {
    %c0_i32 = arith.constant 0 : i32
    %c0_i32_0 = arith.constant 0 : i32
    %c0_i32_1 = arith.constant 0 : i32
    return %c0_i32, %c0_i32_0 : i32, i32
  }
  func.func @transform_4(%arg0: i32) -> (i32, i32) {
    %c0_i32 = arith.constant 0 : i32
    %c0_i32_0 = arith.constant 0 : i32
    %c0_i32_1 = arith.constant 0 : i32
    return %c0_i32, %c0_i32_0 : i32, i32
  }
  func.func @transform_5(%arg0: i32) -> (i32, i32) {
    %c0_i32 = arith.constant 0 : i32
    %c0_i32_0 = arith.constant 0 : i32
    %c0_i32_1 = arith.constant 0 : i32
    return %c0_i32, %c0_i32_0 : i32, i32
  }
  func.func @transform_6(%arg0: i32) -> (i32, i32) {
    %c0_i32 = arith.constant 0 : i32
    %c0_i32_0 = arith.constant 0 : i32
    %c0_i32_1 = arith.constant 0 : i32
    return %c0_i32, %c0_i32_0 : i32, i32
  }
  func.func @transform_7(%arg0: i32) -> (i32, i32) {
    %c0_i32 = arith.constant 0 : i32
    %c0_i32_0 = arith.constant 0 : i32
    return %arg0, %c0_i32 : i32, i32
  }
}

module attributes {stable_mosaic.version = 11 : i64} {
  func.func @_linear_kernel(%arg0: i32, %arg1: memref<16x512xf32, #tpu.memory_space<vmem>>, %arg2: memref<512x512xbf16, #tpu.memory_space<vmem>>, %arg3: memref<1x512xf32, #tpu.memory_space<vmem>>, %arg4: memref<16x512xf32, #tpu.memory_space<vmem>>) attributes {dimension_semantics = [#tpu.dimension_semantics<parallel>], iteration_bounds = array<i64: 2>, scalar_prefetch = 0 : i64, scratch_operands = 0 : i64, tpu.core_type = #tpu.core_type<tc>, window_params = [{pipeline_mode = #tpu.pipeline_mode<synchronous>, transform_indices = @transform_0, window_bounds = array<i64: 16, 512>}, {transform_indices = @transform_1, window_bounds = array<i64: 512, 512>}, {transform_indices = @transform_2, window_bounds = array<i64: 1, 512>}, {transform_indices = @transform_3, window_bounds = array<i64: 16, 512>}]} {
    %c0 = arith.constant 0 : index
    %c0_0 = arith.constant 0 : index
    %0 = vector.load %arg1[%c0, %c0_0] : memref<16x512xf32, #tpu.memory_space<vmem>>, vector<16x512xf32>
    %1 = arith.truncf %0 : vector<16x512xf32> to vector<16x512xbf16>
    %c0_1 = arith.constant 0 : index
    %c0_2 = arith.constant 0 : index
    %2 = vector.load %arg2[%c0_1, %c0_2] : memref<512x512xbf16, #tpu.memory_space<vmem>>, vector<512x512xbf16>
    %cst = arith.constant dense<0.000000e+00> : vector<16x512xf32>
    %3 = tpu.matmul %1, %2, %cst {dimension_numbers = #tpu.dot_dimension_numbers<[1], [0], [0], [1], [0, 0, 1, 1], [], []>} : vector<16x512xbf16>, vector<512x512xbf16>, vector<16x512xf32> -> vector<16x512xf32>
    %c0_3 = arith.constant 0 : index
    %c0_4 = arith.constant 0 : index
    %4 = vector.load %arg3[%c0_3, %c0_4] : memref<1x512xf32, #tpu.memory_space<vmem>>, vector<1x512xf32>
    %5 = vector.broadcast %4 : vector<1x512xf32> to vector<16x512xf32>
    %6 = arith.addf %3, %5 : vector<16x512xf32>
    %c0_5 = arith.constant 0 : index
    %c0_6 = arith.constant 0 : index
    %7 = vector.load %arg4[%c0_5, %c0_6] : memref<16x512xf32, #tpu.memory_space<vmem>>, vector<16x512xf32>
    tpu.vector_store %arg4[%c0_5, %c0_6], %6 {strides = array<i32>} : memref<16x512xf32, #tpu.memory_space<vmem>>, vector<16x512xf32>,
    return
  }
  func.func @transform_0(%arg0: i32) -> (i32, i32) {
    %c0_i32 = arith.constant 0 : i32
    %c0_i32_0 = arith.constant 0 : i32
    %c0_i32_1 = arith.constant 0 : i32
    return %c0_i32, %c0_i32_0 : i32, i32
  }
  func.func @transform_1(%arg0: i32) -> (i32, i32) {
    %c0_i32 = arith.constant 0 : i32
    %c0_i32_0 = arith.constant 0 : i32
    return %c0_i32, %arg0 : i32, i32
  }
  func.func @transform_2(%arg0: i32) -> (i32, i32) {
    %c0_i32 = arith.constant 0 : i32
    %c0_i32_0 = arith.constant 0 : i32
    return %c0_i32, %arg0 : i32, i32
  }
  func.func @transform_3(%arg0: i32) -> (i32, i32) {
    %c0_i32 = arith.constant 0 : i32
    %c0_i32_0 = arith.constant 0 : i32
    return %c0_i32, %arg0 : i32, i32
  }
}

</mosaic_0001>

<bundles_post_ra>
// kernel: transformer_forward.35
= control target key start
LH: loop header
LB: loop body
LE: loop exit
PB: predicated region body
PF: predicated region fallthrough
CT: control target
= control target key end

     0   :  { %s114_s0 = inlined_call_operand.vmem [shape: f32[8,2,512], index: 0, kind: input, shape index: {}]   ;;  %s115_s1 = inlined_call_operand.vmem [shape: f32[2,512], index: 1, kind: input, shape index: {}]   ;;  %s116_s2 = inlined_call_operand.vmem [shape: f32[8,2,512], index: 2, kind: output, shape index: {}]  }
   0x1   :  { %v11_v0 = vld [vmem:[%s114_s0] sm:$0xff]  ;;  %v12_v2 = vld [vmem:[%s114_s0 + $0x8] sm:$0xff]  ;;  %v13_v5 = vld [vmem:[%s114_s0 + $0x10] sm:$0xff] }
   0x2   :  { %v27_v1 = vld [vmem:[%s115_s1] sm:$0xff]  ;;  %v19_v3 = vmul.f32 22.627417, %v11_v0  ;;  %v20_v4 = vmul.f32 22.627417, %v12_v2  ;;  %v14_v6 = vld [vmem:[%s114_s0 + $0x18] sm:$0xff] }
   0x3   :  { %v21_v7 = vmul.f32 22.627417, %v13_v5  ;;  %v22_v8 = vmul.f32 22.627417, %v14_v6  ;;  %v15_v9 = vld [vmem:[%s114_s0 + $0x20] sm:$0xff]  ;;  %v16_v10 = vld [vmem:[%s114_s0 + $0x28] sm:$0xff] }
   0x4   :  { %v28_v11 = vadd.f32 %v27_v1, %v19_v3  ;;  %v29_v12 = vadd.f32 %v27_v1, %v20_v4  ;;  %v23_v13 = vmul.f32 22.627417, %v15_v9  ;;  %v24_v14 = vmul.f32 22.627417, %v16_v10  ;;  %v17_v15 = vld [vmem:[%s114_s0 + $0x30] sm:$0xff]  ;;  %v18_v16 = vld [vmem:[%s114_s0 + $0x38] sm:$0xff] }
   0x5   :  { %v30_v17 = vadd.f32 %v27_v1, %v21_v7  ;;  %v31_v18 = vadd.f32 %v27_v1, %v22_v8  ;;  %v25_v19 = vmul.f32 22.627417, %v17_v15  ;;  %v26_v20 = vmul.f32 22.627417, %v18_v16 }
   0x6   :  { %36 = vst [vmem:[%s116_s2] sm:$0xff] %v28_v11  ;;  %37 = vst [vmem:[%s116_s2 + $0x8] sm:$0xff] %v29_v12  ;;  %v32_v21 = vadd.f32 %v27_v1, %v23_v13  ;;  %v33_v22 = vadd.f32 %v27_v1, %v24_v14 }
   0x7   :  { %38 = vst [vmem:[%s116_s2 + $0x10] sm:$0xff] %v30_v17  ;;  %39 = vst [vmem:[%s116_s2 + $0x18] sm:$0xff] %v31_v18  ;;  %v34_v23 = vadd.f32 %v27_v1, %v25_v19  ;;  %v35_v24 = vadd.f32 %v27_v1, %v26_v20 }
   0x8   :  { %40 = vst [vmem:[%s116_s2 + $0x20] sm:$0xff] %v32_v21  ;;  %41 = vst [vmem:[%s116_s2 + $0x28] sm:$0xff] %v33_v22 }
   0x9   :  { %42 = vst [vmem:[%s116_s2 + $0x30] sm:$0xff] %v34_v23  ;;  %43 = vst [vmem:[%s116_s2 + $0x38] sm:$0xff] %v35_v24 }

// kernel: transformer_forward.37
= control target key start
LH: loop header
LB: loop body
LE: loop exit
PB: predicated region body
PF: predicated region fallthrough
CT: control target
= control target key end

     0   :  { %s1843_s12 = smov 0   ;;  %s2010_s0 = inlined_call_operand.vmem [shape: f32[16,8,64], index: 0, kind: input, shape index: {}]   ;;  %s2011_s1 = inlined_call_operand.vmem [shape: f32[16,8,64], index: 1, kind: input, shape index: {}]   ;;  %s2012_s2 = inlined_call_operand.vmem [shape: f32[16,8,64], index: 2, kind: input, shape index: {}]   ;;  %s2013_s3 = inlined_call_operand.vmem [shape: f32[16,8,64], index: 3, kind: output, shape index: {}]  }
   0x1 LB: > { %s1620_s13 = sadd.s32 4294967295, %s1819_s12   ;;  %p1624_p0 = scmp.ge.s32.totalorder %s1819_s12, 1  ;;  %s1819_s12 = sphi %s1843_s12, %s13_s12  }
   0x2   : > { %p160_p1 = scmp.lt.s32.totalorder %s1819_s12, 3 }
   0x4   : > { %p161_p2 = pnand %p1624_p0, %p160_p1 }
   0x5   : > { %s1625_s14 = sshll.u32 (!%p161_p2), %s1620_s13, 3  ;;  %v1821_v0 = vmov (!%p161_p2), 0.0   ;;  %vm1822_vm0 = vmmov (!%p161_p2), 0   ;;  %vm242_vm1 = vcmask (!%p161_p2), 523264   ;;  %vm859_vm2 = vcmask (!%p161_p2), 64512  }
   0x6   : > { %164 = sbr.rel (%p161_p2) target bundleno = 777 (0x309), region = 32  ;;  %1691 = vmatprep.subr.mxu0 (!%p161_p2), %v1821_v0  ;;  %p195_p3 = scmp.lt.s32.totalorder (!%p161_p2), %s1625_s14, 15  ;;  %1693 = vmatprep.mubr.msk.f32.mxu0 (!%p161_p2), %vm1822_vm0, %v1821_v0 }
   0x7   : > { %1696 = vmatprep.subr.mxu1 (!%p161_p2), %v1821_v0  ;;  %1698 = vmatprep.mubr.msk.f32.mxu1 (!%p161_p2), %vm1822_vm0, %v1821_v0 }
   0xd   : > { %s2015_s14 = smov (!%p195_p3, %s1625_s14), 15 }
   0xe   : > { %s1857_s15 = sshll.u32 %s2015_s14, 3 }
   0xf   : > { %s1863_s18 = scalar_lea.vmem %s2011_s1, %s1857_s15  ;;  %s1869_s21 = scalar_lea.vmem %s2010_s0, %s1857_s15 }
  0x10   : > { %v226_v1 = vld [vmem:[%s1863_s18] sm:$0xff]  ;;  %v227_v2 = vld [vmem:[%s1863_s18 + $0x8] sm:$0xff]  ;;  %v228_v5 = vld [vmem:[%s1863_s18 + $0x10] sm:$0xff]  ;;  %s1956_s24 = scalar_lea.vmem %s2012_s2, %s1857_s15  ;;  %s216_s27 = scalar_lea.vmem %s2013_s3, %s1857_s15 }
  0x11   : > { %1692 = vmatpush3.xpose.msk.msra.mxu0 %vm242_vm1, %v226_v1  ;;  %v218_v3 = vld [vmem:[%s1869_s21] sm:$0xff]  ;;  %1697 = vmatpush3.xpose.msk.msra.mxu1 %vm242_vm1, %v227_v2  ;;  %v219_v4 = vld [vmem:[%s1869_s21 + $0x8] sm:$0xff]  ;;  %v229_v6 = vld [vmem:[%s1863_s18 + $0x18] sm:$0xff] }
  0x12   : > { %1701 = vmatprep.subr.mxu0 %v1821_v0  ;;  %1706 = vmatprep.subr.mxu1 %v1821_v0  ;;  %v220_v7 = vld [vmem:[%s1869_s21 + $0x10] sm:$0xff]  ;;  %v230_v8 = vld [vmem:[%s1863_s18 + $0x20] sm:$0xff]  ;;  %v221_v9 = vld [vmem:[%s1869_s21 + $0x18] sm:$0xff] }
  0x13   : > { %v231_v10 = vld [vmem:[%s1863_s18 + $0x28] sm:$0xff]  ;;  %v222_v11 = vld [vmem:[%s1869_s21 + $0x20] sm:$0xff]  ;;  %v232_v12 = vld [vmem:[%s1863_s18 + $0x30] sm:$0xff] }
  0x14   : > { %1694 = vmatmul.mubr.msk.f32.vlgmr.msra.gmra.mrb[0].mxu0 %vm242_vm1, %v218_v3  ;;  %1699 = vmatmul.mubr.msk.f32.vlgmr.msra.gmra.mrb[0].mxu1 %vm242_vm1, %v219_v4  ;;  %v223_v13 = vld [vmem:[%s1869_s21 + $0x28] sm:$0xff]  ;;  %v233_v14 = vld [vmem:[%s1863_s18 + $0x38] sm:$0xff]  ;;  %v224_v15 = vld [vmem:[%s1869_s21 + $0x30] sm:$0xff] }
  0x15   : > { %1702 = vmatpush3.xpose.msk.msra.mxu0 %vm242_vm1, %v228_v5  ;;  %1703 = vmatprep.mubr.msk.f32.mxu0 %vm1822_vm0, %v1821_v0  ;;  %v225_v16 = vld [vmem:[%s1869_s21 + $0x38] sm:$0xff] }
  0x16   : > { %1711 = vmatprep.subr.mxu0 %v1821_v0  ;;  %1707 = vmatpush3.xpose.msk.msra.mxu1 %vm242_vm1, %v229_v6 }
  0x17   : > { %1708 = vmatprep.mubr.msk.f32.mxu1 %vm1822_vm0, %v1821_v0  ;;  %1716 = vmatprep.subr.mxu1 %v1821_v0 }
  0x18   : > { %1704 = vmatmul.mubr.msk.f32.vlgmr.msra.gmra.mrb[2].mxu0 %vm242_vm1, %v220_v7 }
  0x19   : > { %1712 = vmatpush3.xpose.msk.msra.mxu0 %vm242_vm1, %v230_v8  ;;  %1713 = vmatprep.mubr.msk.f32.mxu0 %vm1822_vm0, %v1821_v0 }
  0x1a   : > { %1709 = vmatmul.mubr.msk.f32.vlgmr.msra.gmra.mrb[2].mxu1 %vm242_vm1, %v221_v9  ;;  %1721 = vmatprep.subr.mxu0 %v1821_v0 }
  0x1b   : > { %1717 = vmatpush3.xpose.msk.msra.mxu1 %vm242_vm1, %v231_v10  ;;  %1718 = vmatprep.mubr.msk.f32.mxu1 %vm1822_vm0, %v1821_v0 }
  0x1c   : > { %1714 = vmatmul.mubr.msk.f32.vlgmr.msra.gmra.mrb[4].mxu0 %vm242_vm1, %v222_v11  ;;  %1726 = vmatprep.subr.mxu1 %v1821_v0 }
  0x1d   : > { %1722 = vmatpush3.xpose.msk.msra.mxu0 %vm242_vm1, %v232_v12  ;;  %1723 = vmatprep.mubr.msk.f32.mxu0 %vm1822_vm0, %v1821_v0 }
  0x1e   : > { %1719 = vmatmul.mubr.msk.f32.vlgmr.msra.gmra.mrb[4].mxu1 %vm242_vm1, %v223_v13  ;;  %1731 = vmatprep.subr.mxu0 %v1821_v0 }
  0x1f   : > { %1727 = vmatpush3.xpose.msk.msra.mxu1 %vm242_vm1, %v233_v14  ;;  %1728 = vmatprep.mubr.msk.f32.mxu1 %vm1822_vm0, %v1821_v0 }
  0x20   : > { %1724 = vmatmul.mubr.msk.f32.vlgmr.msra.gmra.mrb[6].mxu0 %vm242_vm1, %v224_v15  ;;  %1736 = vmatprep.subr.mxu1 %v1821_v0 }
  0x21   : > { %1733 = vmatprep.mubr.msk.f32.mxu0 %vm1822_vm0, %v1821_v0 }
  0x22   : > { %1729 = vmatmul.mubr.msk.f32.vlgmr.msra.gmra.mrb[6].mxu1 %vm242_vm1, %v225_v16 }
  0x23   : > { %1738 = vmatprep.mubr.msk.f32.mxu1 %vm1822_vm0, %v1821_v0 }
  0xe7   : > { %v315_v17 = vpop.f32.mrb[0].mxu0  ;;  %v391_v18 = vpop.f32.mrb[0].mxu1 }
  0xe8   : > { %v851_v19 = vmul.f32 0.125, %v315_v17  ;;  %v1695_v20 = vpop.f32.mrb[1].mxu0  ;;  %v852_v21 = vmul.f32 0.125, %v391_v18  ;;  %v1700_v22 = vpop.f32.mrb[1].mxu1 }
  0xea   : > { %v860_v23 = vsel %vm859_vm2, %v851_v19, -inf  ;;  %v863_v27 = vsel %vm859_vm2, %v852_v21, -inf }
  0xeb   : > { %861 = vmax.xlane.f32.xlu0 %v860_v23  ;;  %v467_v24 = vpop.f32.mrb[2].mxu0 }
  0xec   : > { %v853_v25 = vmul.f32 0.125, %v467_v24  ;;  %v1705_v26 = vpop.f32.mrb[3].mxu0 }
  0xed   : > { %v543_v28 = vpop.f32.mrb[2].mxu1  ;;  %v234_v26 = vld [vmem:[%s1956_s24] sm:$0xff] }
  0xee   : > { %v854_v29 = vmul.f32 0.125, %v543_v28  ;;  %v866_v30 = vsel %vm859_vm2, %v853_v25, -inf  ;;  %v1710_v31 = vpop.f32.mrb[3].mxu1  ;;  %1732 = vmatpush3.msra.mxu0 %v234_v26 }
  0xef   : > { %864 = vmax.xlane.f32.xlu0 %v863_v27  ;;  %867 = vmax.xlane.f32.xlu1 %v866_v30  ;;  %v619_v32 = vpop.f32.mrb[4].mxu0  ;;  %v235_v27 = vld [vmem:[%s1956_s24 + $0x8] sm:$0xff] }
  0xf0   : > { %v855_v33 = vmul.f32 0.125, %v619_v32  ;;  %v1715_v34 = vpop.f32.mrb[5].mxu0  ;;  %v869_v35 = vsel %vm859_vm2, %v854_v29, -inf  ;;  %1741 = vmatprep.subr.mxu0 %v1821_v0  ;;  %1737 = vmatpush3.msra.mxu1 %v235_v27 }
  0xf1   : > { %v695_v36 = vpop.f32.mrb[4].mxu1  ;;  %1746 = vmatprep.subr.mxu1 %v1821_v0 }
  0xf2   : > { %v856_v37 = vmul.f32 0.125, %v695_v36  ;;  %v872_v38 = vsel %vm859_vm2, %v855_v33, -inf  ;;  %v1720_v39 = vpop.f32.mrb[5].mxu1  ;;  %v236_v36 = vld [vmem:[%s1956_s24 + $0x10] sm:$0xff] }
  0xf3   : > { %870 = vmax.xlane.f32.xlu1 %v869_v35  ;;  %873 = vmax.xlane.f32.xlu0 %v872_v38  ;;  %v771_v40 = vpop.f32.mrb[6].mxu0 }
  0xf4   : > { %v857_v41 = vmul.f32 0.125, %v771_v40  ;;  %v875_v42 = vsel %vm859_vm2, %v856_v37, -inf  ;;  %v1725_v43 = vpop.f32.mrb[7].mxu0 }
  0xf5   : > { %v847_v44 = vpop.f32.mrb[6].mxu1 }
  0xf6   : > { %v858_v45 = vmul.f32 0.125, %v847_v44  ;;  %v878_v46 = vsel %vm859_vm2, %v857_v41, -inf  ;;  %v1730_v47 = vpop.f32.mrb[7].mxu1  ;;  %v238_v44 = vld [vmem:[%s1956_s24 + $0x20] sm:$0xff] }
  0xf7   : > { %876 = vmax.xlane.f32.xlu1 %v875_v42  ;;  %879 = vmax.xlane.f32.xlu0 %v878_v46  ;;  %v237_v42 = vld [vmem:[%s1956_s24 + $0x18] sm:$0xff] }
  0xf8   : > { %v881_v48 = vsel %vm859_vm2, %v858_v45, -inf }
  0xfb   : > { %882 = vmax.xlane.f32.xlu1 %v881_v48  ;;  %v239_v48 = vld [vmem:[%s1956_s24 + $0x28] sm:$0xff] }
 0x178   : > { %v862_v49 = vpop.xlane.xlu0 %861 }
 0x179   : > { %v884_v50 = vsub.f32 %v851_v19, %v862_v49 }
 0x17b   : > { %v892_v51 = vmul.f32 1.442695, %v884_v50  ;;  %v240_v50 = vld [vmem:[%s1956_s24 + $0x30] sm:$0xff] }
 0x17c   : > { %v865_v52 = vpop.xlane.xlu0 %864  ;;  %v868_v53 = vpop.xlane.xlu1 %867 }
 0x17d   : > { %1781 = vpow2.f32 %v892_v51  ;;  %v885_v54 = vsub.f32 %v852_v21, %v865_v52  ;;  %v886_v55 = vsub.f32 %v853_v25, %v868_v53 }
 0x17f   : > { %v894_v56 = vmul.f32 1.442695, %v885_v54  ;;  %v896_v57 = vmul.f32 1.442695, %v886_v55  ;;  %v241_v54 = vld [vmem:[%s1956_s24 + $0x38] sm:$0xff] }
 0x180   : > { %v871_v58 = vpop.xlane.xlu1 %870  ;;  %v874_v59 = vpop.xlane.xlu0 %873 }
 0x181   : > { %1783 = vpow2.f32 %v894_v56  ;;  %v887_v60 = vsub.f32 %v854_v29, %v871_v58  ;;  %v888_v61 = vsub.f32 %v855_v33, %v874_v59 }
 0x182   : > { %1785 = vpow2.f32 %v896_v57 }
 0x183   : > { %v898_v62 = vmul.f32 1.442695, %v887_v60  ;;  %v900_v63 = vmul.f32 1.442695, %v888_v61 }
 0x184   : > { %v877_v1 = vpop.xlane.xlu1 %876  ;;  %v880_v2 = vpop.xlane.xlu0 %879 }
 0x185   : > { %1787 = vpow2.f32 %v898_v62  ;;  %v889_v3 = vsub.f32 %v856_v37, %v877_v1  ;;  %v890_v4 = vsub.f32 %v857_v41, %v880_v2 }
 0x186   : > { %1789 = vpow2.f32 %v900_v63 }
 0x187   : > { %v1782_v5 = vpop.eup %1781  ;;  %v902_v6 = vmul.f32 1.442695, %v889_v3  ;;  %v904_v7 = vmul.f32 1.442695, %v890_v4 }
 0x188   : > { %v883_v8 = vpop.xlane.xlu1 %882  ;;  %v908_v9 = vsel %vm859_vm2, %v1782_v5, 0.0 }
 0x189   : > { %1791 = vpow2.f32 %v902_v6  ;;  %v891_v10 = vsub.f32 %v858_v45, %v883_v8  ;;  %909 = vadd.xlane.f32.xlu0 %v908_v9 }
 0x18a   : > { %1793 = vpow2.f32 %v904_v7 }
 0x18b   : > { %v1784_v11 = vpop.eup %1783  ;;  %v906_v12 = vmul.f32 1.442695, %v891_v10 }
 0x18c   : > { %v1786_v13 = vpop.eup %1785  ;;  %v911_v14 = vsel %vm859_vm2, %v1784_v11, 0.0 }
 0x18d   : > { %1795 = vpow2.f32 %v906_v12  ;;  %912 = vadd.xlane.f32.xlu1 %v911_v14  ;;  %v914_v15 = vsel %vm859_vm2, %v1786_v13, 0.0 }
 0x18e   : > { %915 = vadd.xlane.f32.xlu0 %v914_v15 }
 0x18f   : > { %v1788_v16 = vpop.eup %1787 }
 0x190   : > { %v1790_v17 = vpop.eup %1789  ;;  %v917_v18 = vsel %vm859_vm2, %v1788_v16, 0.0 }
 0x191   : > { %918 = vadd.xlane.f32.xlu1 %v917_v18  ;;  %v920_v19 = vsel %vm859_vm2, %v1790_v17, 0.0 }
 0x192   : > { %921 = vadd.xlane.f32.xlu0 %v920_v19 }
 0x193   : > { %v1940_v20 = vpop.eup %1791 }
 0x194   : > { %v1942_v21 = vpop.eup %1793  ;;  %v923_v22 = vsel %vm859_vm2, %v1940_v20, 0.0 }
 0x195   : > { %924 = vadd.xlane.f32.xlu1 %v923_v22  ;;  %v926_v23 = vsel %vm859_vm2, %v1942_v21, 0.0 }
 0x196   : > { %927 = vadd.xlane.f32.xlu0 %v926_v23 }
 0x197   : > { %v1948_v24 = vpop.eup %1795 }
 0x198   : > { %v929_v25 = vsel %vm859_vm2, %v1948_v24, 0.0 }
 0x199   : > { %930 = vadd.xlane.f32.xlu1 %v929_v25 }
 0x216   : > { %v910_v28 = vpop.xlane.xlu0 %909 }
 0x217   : > { %1797 = vrcp.f32 %v910_v28 }
 0x21a   : > { %v913_v29 = vpop.xlane.xlu1 %912 }
 0x21b   : > { %1799 = vrcp.f32 %v913_v29  ;;  %v916_v30 = vpop.xlane.xlu0 %915 }
 0x21c   : > { %1801 = vrcp.f32 %v916_v30 }
 0x21e   : > { %v919_v31 = vpop.xlane.xlu1 %918 }
 0x21f   : > { %1803 = vrcp.f32 %v919_v31  ;;  %v922_v32 = vpop.xlane.xlu0 %921 }
 0x220   : > { %1805 = vrcp.f32 %v922_v32 }
 0x221   : > { %v1798_v33 = vpop.eup %1797 }
 0x222   : > { %v933_v34 = vmul.f32 %v1798_v33, %v1782_v5  ;;  %v925_v35 = vpop.xlane.xlu1 %924 }
 0x223   : > { %1807 = vrcp.f32 %v925_v35  ;;  %v928_v37 = vpop.xlane.xlu0 %927 }
 0x224   : > { %1809 = vrcp.f32 %v928_v37  ;;  %1734 = vmatmul.mubr.msk.f32.vlgmr.msra.gmra.mrb[8].mxu0 %vm859_vm2, %v933_v34 }
 0x225   : > { %v1800_v38 = vpop.eup %1799  ;;  %1742 = vmatpush3.msra.mxu0 %v236_v36  ;;  %1743 = vmatprep.mubr.msk.f32.mxu0 %vm1822_vm0, %v1821_v0 }
 0x226   : > { %v1802_v39 = vpop.eup %1801  ;;  %v935_v40 = vmul.f32 %v1800_v38, %v1784_v11  ;;  %v931_v41 = vpop.xlane.xlu1 %930  ;;  %1751 = vmatprep.subr.mxu0 %v1821_v0 }
 0x227   : > { %v937_v43 = vmul.f32 %v1802_v39, %v1786_v13  ;;  %1811 = vrcp.f32 %v931_v41 }
 0x228   : > { %1739 = vmatmul.mubr.msk.f32.vlgmr.msra.gmra.mrb[8].mxu1 %vm859_vm2, %v935_v40 }
 0x229   : > { %v1804_v45 = vpop.eup %1803  ;;  %1744 = vmatmul.mubr.msk.f32.vlgmr.msra.gmra.mrb[10].mxu0 %vm859_vm2, %v937_v43  ;;  %1747 = vmatpush3.msra.mxu1 %v237_v42 }
 0x22a   : > { %v1806_v46 = vpop.eup %1805  ;;  %v939_v47 = vmul.f32 %v1804_v45, %v1788_v16  ;;  %1748 = vmatprep.mubr.msk.f32.mxu1 %vm1822_vm0, %v1821_v0  ;;  %1752 = vmatpush3.msra.mxu0 %v238_v44 }
 0x22b   : > { %v941_v49 = vmul.f32 %v1806_v46, %v1790_v17  ;;  %1753 = vmatprep.mubr.msk.f32.mxu0 %vm1822_vm0, %v1821_v0  ;;  %1756 = vmatprep.subr.mxu1 %v1821_v0 }
 0x22c   : > { %1749 = vmatmul.mubr.msk.f32.vlgmr.msra.gmra.mrb[10].mxu1 %vm859_vm2, %v939_v47  ;;  %1761 = vmatprep.subr.mxu0 %v1821_v0 }
 0x22d   : > { %v1808_v51 = vpop.eup %1807  ;;  %1754 = vmatmul.mubr.msk.f32.vlgmr.msra.gmra.mrb[12].mxu0 %vm859_vm2, %v941_v49  ;;  %1757 = vmatpush3.msra.mxu1 %v239_v48 }
 0x22e   : > { %v1810_v52 = vpop.eup %1809  ;;  %v943_v53 = vmul.f32 %v1808_v51, %v1940_v20  ;;  %1758 = vmatprep.mubr.msk.f32.mxu1 %vm1822_vm0, %v1821_v0  ;;  %1762 = vmatpush3.msra.mxu0 %v240_v50 }
 0x22f   : > { %v945_v55 = vmul.f32 %v1810_v52, %v1942_v21  ;;  %1763 = vmatprep.mubr.msk.f32.mxu0 %vm1822_vm0, %v1821_v0  ;;  %1766 = vmatprep.subr.mxu1 %v1821_v0 }
 0x230   : > { %1759 = vmatmul.mubr.msk.f32.vlgmr.msra.gmra.mrb[12].mxu1 %vm859_vm2, %v943_v53 }
 0x231   : > { %v1812_v56 = vpop.eup %1811  ;;  %1764 = vmatmul.mubr.msk.f32.vlgmr.msra.gmra.mrb[14].mxu0 %vm859_vm2, %v945_v55  ;;  %1767 = vmatpush3.msra.mxu1 %v241_v54 }
 0x232   : > { %v947_v57 = vmul.f32 %v1812_v56, %v1948_v24  ;;  %1768 = vmatprep.mubr.msk.f32.mxu1 %vm1822_vm0, %v1821_v0 }
 0x234   : > { %1769 = vmatmul.mubr.msk.f32.vlgmr.msra.gmra.mrb[14].mxu1 %vm859_vm2, %v947_v57 }
 0x2f7   : > { %v1017_v58 = vpop.f32.mrb[8].mxu0 }
 0x2f8   : > { %1532 = vst.msk [vmem:[%s216_s27] sm:$0xff] %vm242_vm1, %v1017_v58  ;;  %v1735_v59 = vpop.f32.mrb[9].mxu0 }
 0x2fb   : > { %v1090_v60 = vpop.f32.mrb[8].mxu1 }
 0x2fc   : > { %1533 = vst.msk [vmem:[%s216_s27 + $0x8] sm:$0xff] %vm242_vm1, %v1090_v60  ;;  %v1163_v61 = vpop.f32.mrb[10].mxu0  ;;  %v1740_v62 = vpop.f32.mrb[9].mxu1 }
 0x2fd   : > { %1534 = vst.msk [vmem:[%s216_s27 + $0x10] sm:$0xff] %vm242_vm1, %v1163_v61  ;;  %v1745_v63 = vpop.f32.mrb[11].mxu0 }
 0x2ff   : > { %v1236_v1 = vpop.f32.mrb[10].mxu1 }
 0x300   : > { %1535 = vst.msk [vmem:[%s216_s27 + $0x18] sm:$0xff] %vm242_vm1, %v1236_v1  ;;  %v1309_v0 = vpop.f32.mrb[12].mxu0  ;;  %v1750_v2 = vpop.f32.mrb[11].mxu1 }
 0x301   : > { %1536 = vst.msk [vmem:[%s216_s27 + $0x20] sm:$0xff] %vm242_vm1, %v1309_v0  ;;  %v1755_v3 = vpop.f32.mrb[13].mxu0 }
 0x303   : > { %v1382_v4 = vpop.f32.mrb[12].mxu1 }
 0x304   : > { %1537 = vst.msk [vmem:[%s216_s27 + $0x28] sm:$0xff] %vm242_vm1, %v1382_v4  ;;  %v1455_v5 = vpop.f32.mrb[14].mxu0  ;;  %v1760_v6 = vpop.f32.mrb[13].mxu1 }
 0x305   : > { %1538 = vst.msk [vmem:[%s216_s27 + $0x30] sm:$0xff] %vm242_vm1, %v1455_v5  ;;  %v1765_v7 = vpop.f32.mrb[15].mxu0 }
 0x307   : > { %v1528_v8 = vpop.f32.mrb[14].mxu1 }
 0x308   : > { %1539 = vst.msk [vmem:[%s216_s27 + $0x38] sm:$0xff] %vm242_vm1, %v1528_v8  ;;  %v1770_v9 = vpop.f32.mrb[15].mxu1 }
 0x309 PF: > { %s13_s12 = sadd.s32 1, %s1819_s12  }
 0x30a   : > { %p10_p4 = scmp.ge.s32.totalorder %s13_s12, 4  }
 0x30c   :  { %12 = sbr.rel (!%p10_p4) target bundleno = 1 (0x1), region = 68 }

// kernel: transformer_forward.38
= control target key start
LH: loop header
LB: loop body
LE: loop exit
PB: predicated region body
PF: predicated region fallthrough
CT: control target
= control target key end

     0   :  { %s1781_s21 = smov 0   ;;  %s2241_s0 = inlined_call_operand.vmem [shape: f32[16,512], index: 0, kind: input, shape index: {}]   ;;  %s2242_s1 = inlined_call_operand.vmem [shape: bf16[512,512], index: 1, kind: input, shape index: {}]   ;;  %s2243_s2 = inlined_call_operand.vmem [shape: f32[1,512], index: 2, kind: input, shape index: {}]   ;;  %s2244_s3 = inlined_call_operand.vmem [shape: f32[16,512], index: 3, kind: input, shape index: {}]   ;;  %s2245_s4 = inlined_call_operand.vmem [shape: f32[1,512], index: 4, kind: input, shape index: {}]   ;;  %s2246_s5 = inlined_call_operand.vmem [shape: f32[1,512], index: 5, kind: input, shape index: {}]   ;;  %s2247_s6 = inlined_call_operand.vmem [shape: f32[16,512], index: 6, kind: output, shape index: {}]  }
   0x1 LB: > { %s1392_s22 = sadd.s32 4294967295, %s1744_s21   ;;  %p1396_p0 = scmp.ge.s32.totalorder %s1744_s21, 1  ;;  %s1744_s21 = sphi %s1781_s21, %s16_s21  }
   0x2   : > { %p222_p1 = scmp.lt.s32.totalorder %s1744_s21, 3 }
   0x4   : > { %p223_p2 = pnand %p1396_p0, %p222_p1 }
   0x5   : > { %v1544_v0 = vld [vmem:[%s2242_s1 + $0x4] ss:$16 sps:$4 sm:$0xff] (!%p223_p2)   ;;  %v1548_v2 = vld [vmem:[%s2242_s1] ss:$16 sps:$4 sm:$0xff] (!%p223_p2)   ;;  %p257_p3 = scmp.lt.s32.totalorder (!%p223_p2), %s1392_s22, 1 }
   0x6   : > { %226 = sbr.rel (%p223_p2) target bundleno = 675 (0x2a3), region = 44  ;;  %v1546_v1 = vld [vmem:[%s2242_s1 + $0x204] ss:$16 sps:$4 sm:$0xff] (!%p223_p2)   ;;  %1070 = vmatprep.subr.bf16.mxu0 (!%p223_p2), %v1544_v0  ;;  %v1549_v3 = vld [vmem:[%s2242_s1 + $0x200] ss:$16 sps:$4 sm:$0xff] (!%p223_p2)  }
   0x7   : > { %1111 = vmatprep.subr.bf16.mxu1 (!%p223_p2), %v1546_v1  ;;  %v1550_v4 = vld [vmem:[%s2242_s1 + $0x24] ss:$16 sps:$4 sm:$0xff] (!%p223_p2)   ;;  %1071 = vmatpush1.bf16.msra.mxu0 (!%p223_p2), %v1548_v2  ;;  %v1554_v6 = vld [vmem:[%s2242_s1 + $0x20] ss:$16 sps:$4 sm:$0xff] (!%p223_p2)  }
   0x8   : > { %1112 = vmatpush1.bf16.msra.mxu1 (!%p223_p2), %v1549_v3  ;;  %v1552_v5 = vld [vmem:[%s2242_s1 + $0x224] ss:$16 sps:$4 sm:$0xff] (!%p223_p2)   ;;  %1072 = vmatprep.subr.bf16.mxu0 (!%p223_p2), %v1550_v4  ;;  %v1555_v7 = vld [vmem:[%s2242_s1 + $0x220] ss:$16 sps:$4 sm:$0xff] (!%p223_p2)  }
   0x9   : > { %1113 = vmatprep.subr.bf16.mxu1 (!%p223_p2), %v1552_v5  ;;  %v1556_v8 = vld [vmem:[%s2242_s1 + $0x44] ss:$16 sps:$4 sm:$0xff] (!%p223_p2)   ;;  %v1560_v10 = vld [vmem:[%s2242_s1 + $0x40] ss:$16 sps:$4 sm:$0xff] (!%p223_p2)  }
   0xa   : > { %v1558_v9 = vld [vmem:[%s2242_s1 + $0x244] ss:$16 sps:$4 sm:$0xff] (!%p223_p2)   ;;  %v1561_v11 = vld [vmem:[%s2242_s1 + $0x240] ss:$16 sps:$4 sm:$0xff] (!%p223_p2)  }
   0xb   : > { %1073 = vmatpush1.bf16.msra.mxu0 (!%p223_p2), %v1554_v6  ;;  %v1562_v12 = vld [vmem:[%s2242_s1 + $0x64] ss:$16 sps:$4 sm:$0xff] (!%p223_p2)   ;;  %v1566_v14 = vld [vmem:[%s2242_s1 + $0x60] ss:$16 sps:$4 sm:$0xff] (!%p223_p2)   ;;  %v1642_v6 = vld [vmem:[%s2242_s1 + $0xc] ss:$16 sps:$4 sm:$0xff] (!%p223_p2)  }
   0xc   : > { %1114 = vmatpush1.bf16.msra.mxu1 (!%p223_p2), %v1555_v7  ;;  %1074 = vmatprep.subr.bf16.mxu0 (!%p223_p2), %v1556_v8  ;;  %v1564_v13 = vld [vmem:[%s2242_s1 + $0x264] ss:$16 sps:$4 sm:$0xff] (!%p223_p2)   ;;  %v1567_v15 = vld [vmem:[%s2242_s1 + $0x260] ss:$16 sps:$4 sm:$0xff] (!%p223_p2)   ;;  %v1645_v7 = vld [vmem:[%s2242_s1 + $0x20c] ss:$16 sps:$4 sm:$0xff] (!%p223_p2)  }
   0xd   : > { %1115 = vmatprep.subr.bf16.mxu1 %v1558_v9  ;;  %v1568_v16 = vld [vmem:[%s2242_s1 + $0x84] ss:$16 sps:$4 sm:$0xff]   ;;  %v1572_v18 = vld [vmem:[%s2242_s1 + $0x80] ss:$16 sps:$4 sm:$0xff]   ;;  %s2249_s22 = smov (!%p257_p3, %s1392_s22), 1 }
   0xe   : > { %v1570_v17 = vld [vmem:[%s2242_s1 + $0x284] ss:$16 sps:$4 sm:$0xff]   ;;  %v1573_v19 = vld [vmem:[%s2242_s1 + $0x280] ss:$16 sps:$4 sm:$0xff]   ;;  %s1916_s15 = sshll.u32 %s2249_s22, 5 }
   0xf   : > { %1075 = vmatpush1.bf16.msra.mxu0 %v1560_v10  ;;  %v1574_v20 = vld [vmem:[%s2242_s1 + $0xa4] ss:$16 sps:$4 sm:$0xff]   ;;  %v1578_v22 = vld [vmem:[%s2242_s1 + $0xa0] ss:$16 sps:$4 sm:$0xff]   ;;  %s1931_s22 = scalar_lea.vmem %s2241_s0, %s1916_s15  ;;  %v1640_v10 = vld [vmem:[%s2242_s1 + $0x8] ss:$16 sps:$4 sm:$0xff]   ;;  %s266_s24 = scalar_lea.vmem %s2244_s3, %s1916_s15 }
  0x10   : > { %1116 = vmatpush1.bf16.msra.mxu1 %v1561_v11  ;;  %1076 = vmatprep.subr.bf16.mxu0 %v1562_v12  ;;  %v1576_v21 = vld [vmem:[%s2242_s1 + $0x2a4] ss:$16 sps:$4 sm:$0xff]   ;;  %v1579_v23 = vld [vmem:[%s2242_s1 + $0x2a0] ss:$16 sps:$4 sm:$0xff]   ;;  %v273_v46 = vld [vmem:[%s1931_s22 + $0x8] sm:$0xff]  ;;  %s271_s30 = scalar_lea.vmem %s2247_s6, %s1916_s15 }
  0x11   : > { %1117 = vmatprep.subr.bf16.mxu1 %v1564_v13  ;;  %v1580_v24 = vld [vmem:[%s2242_s1 + $0xc4] ss:$16 sps:$4 sm:$0xff]   ;;  %v1584_v26 = vld [vmem:[%s2242_s1 + $0xc0] ss:$16 sps:$4 sm:$0xff]   ;;  %v1946_v49 = vpack.c.bf16 %v273_v46, %v273_v46  ;;  %v275_v50 = vld [vmem:[%s1931_s22 + $0x18] sm:$0xff] }
  0x12   : > { %v1582_v25 = vld [vmem:[%s2242_s1 + $0x2c4] ss:$16 sps:$4 sm:$0xff]   ;;  %v1585_v27 = vld [vmem:[%s2242_s1 + $0x2c0] ss:$16 sps:$4 sm:$0xff]   ;;  %v279_v52 = vpack.c.bf16 %v275_v50, %v275_v50  ;;  %v1643_v11 = vld [vmem:[%s2242_s1 + $0x208] ss:$16 sps:$4 sm:$0xff]  }
  0x13   : > { %1077 = vmatpush1.bf16.msra.mxu0 %v1566_v14  ;;  %v1586_v28 = vld [vmem:[%s2242_s1 + $0xe4] ss:$16 sps:$4 sm:$0xff]   ;;  %v1590_v30 = vld [vmem:[%s2242_s1 + $0xe0] ss:$16 sps:$4 sm:$0xff]   ;;  %1102 = vmatprep.mubr.bf16.mxu0 %v1946_v49  ;;  %v1648_v12 = vld [vmem:[%s2242_s1 + $0x2c] ss:$16 sps:$4 sm:$0xff]  }
  0x14   : > { %1118 = vmatpush1.bf16.msra.mxu1 %v1567_v15  ;;  %1078 = vmatprep.subr.bf16.mxu0 %v1568_v16  ;;  %v1588_v29 = vld [vmem:[%s2242_s1 + $0x2e4] ss:$16 sps:$4 sm:$0xff]   ;;  %v1591_v31 = vld [vmem:[%s2242_s1 + $0x2e0] ss:$16 sps:$4 sm:$0xff]   ;;  %v1651_v13 = vld [vmem:[%s2242_s1 + $0x22c] ss:$16 sps:$4 sm:$0xff]  }
  0x15   : > { %1119 = vmatprep.subr.bf16.mxu1 %v1570_v17  ;;  %v1592_v32 = vld [vmem:[%s2242_s1 + $0x104] ss:$16 sps:$4 sm:$0xff]   ;;  %v1596_v34 = vld [vmem:[%s2242_s1 + $0x100] ss:$16 sps:$4 sm:$0xff]   ;;  %1143 = vmatprep.mubr.bf16.mxu1 %v279_v52  ;;  %v1646_v14 = vld [vmem:[%s2242_s1 + $0x28] ss:$16 sps:$4 sm:$0xff]  }
  0x16   : > { %v1594_v33 = vld [vmem:[%s2242_s1 + $0x304] ss:$16 sps:$4 sm:$0xff]   ;;  %v1597_v35 = vld [vmem:[%s2242_s1 + $0x300] ss:$16 sps:$4 sm:$0xff]   ;;  %v1649_v15 = vld [vmem:[%s2242_s1 + $0x228] ss:$16 sps:$4 sm:$0xff]  }
  0x17   : > { %1079 = vmatpush1.bf16.msra.mxu0 %v1572_v18  ;;  %v1598_v36 = vld [vmem:[%s2242_s1 + $0x124] ss:$16 sps:$4 sm:$0xff]   ;;  %v1602_v38 = vld [vmem:[%s2242_s1 + $0x120] ss:$16 sps:$4 sm:$0xff]   ;;  %v1654_v16 = vld [vmem:[%s2242_s1 + $0x4c] ss:$16 sps:$4 sm:$0xff]  }
  0x18   : > { %1120 = vmatpush1.bf16.msra.mxu1 %v1573_v19  ;;  %1080 = vmatprep.subr.bf16.mxu0 %v1574_v20  ;;  %v1600_v37 = vld [vmem:[%s2242_s1 + $0x324] ss:$16 sps:$4 sm:$0xff]   ;;  %v1603_v39 = vld [vmem:[%s2242_s1 + $0x320] ss:$16 sps:$4 sm:$0xff]   ;;  %v1657_v17 = vld [vmem:[%s2242_s1 + $0x24c] ss:$16 sps:$4 sm:$0xff]  }
  0x19   : > { %1121 = vmatprep.subr.bf16.mxu1 %v1576_v21  ;;  %v1604_v40 = vld [vmem:[%s2242_s1 + $0x144] ss:$16 sps:$4 sm:$0xff]   ;;  %v1608_v42 = vld [vmem:[%s2242_s1 + $0x140] ss:$16 sps:$4 sm:$0xff]   ;;  %v1652_v18 = vld [vmem:[%s2242_s1 + $0x48] ss:$16 sps:$4 sm:$0xff]  }
  0x1a   : > { %v1606_v41 = vld [vmem:[%s2242_s1 + $0x344] ss:$16 sps:$4 sm:$0xff]   ;;  %v1609_v43 = vld [vmem:[%s2242_s1 + $0x340] ss:$16 sps:$4 sm:$0xff]   ;;  %v1655_v19 = vld [vmem:[%s2242_s1 + $0x248] ss:$16 sps:$4 sm:$0xff]  }
  0x1b   : > { %1081 = vmatpush1.bf16.msra.mxu0 %v1578_v22  ;;  %v1610_v44 = vld [vmem:[%s2242_s1 + $0x164] ss:$16 sps:$4 sm:$0xff]   ;;  %v1614_v47 = vld [vmem:[%s2242_s1 + $0x160] ss:$16 sps:$4 sm:$0xff]   ;;  %v1660_v20 = vld [vmem:[%s2242_s1 + $0x6c] ss:$16 sps:$4 sm:$0xff]  }
  0x1c   : > { %1122 = vmatpush1.bf16.msra.mxu1 %v1579_v23  ;;  %1082 = vmatprep.subr.bf16.mxu0 %v1580_v24  ;;  %v1612_v45 = vld [vmem:[%s2242_s1 + $0x364] ss:$16 sps:$4 sm:$0xff]   ;;  %v1615_v48 = vld [vmem:[%s2242_s1 + $0x360] ss:$16 sps:$4 sm:$0xff]   ;;  %v1663_v21 = vld [vmem:[%s2242_s1 + $0x26c] ss:$16 sps:$4 sm:$0xff]  }
  0x1d   : > { %1123 = vmatprep.subr.bf16.mxu1 %v1582_v25  ;;  %v1616_v51 = vld [vmem:[%s2242_s1 + $0x184] ss:$16 sps:$4 sm:$0xff]   ;;  %v1620_v54 = vld [vmem:[%s2242_s1 + $0x180] ss:$16 sps:$4 sm:$0xff]   ;;  %v1658_v22 = vld [vmem:[%s2242_s1 + $0x68] ss:$16 sps:$4 sm:$0xff]  }
  0x1e   : > { %v1618_v53 = vld [vmem:[%s2242_s1 + $0x384] ss:$16 sps:$4 sm:$0xff]   ;;  %v1621_v55 = vld [vmem:[%s2242_s1 + $0x380] ss:$16 sps:$4 sm:$0xff]   ;;  %v1661_v23 = vld [vmem:[%s2242_s1 + $0x268] ss:$16 sps:$4 sm:$0xff]  }
  0x1f   : > { %1083 = vmatpush1.bf16.msra.mxu0 %v1584_v26  ;;  %v1622_v56 = vld [vmem:[%s2242_s1 + $0x1a4] ss:$16 sps:$4 sm:$0xff]   ;;  %v1626_v58 = vld [vmem:[%s2242_s1 + $0x1a0] ss:$16 sps:$4 sm:$0xff]   ;;  %v1666_v24 = vld [vmem:[%s2242_s1 + $0x8c] ss:$16 sps:$4 sm:$0xff]  }
  0x20   : > { %1124 = vmatpush1.bf16.msra.mxu1 %v1585_v27  ;;  %1084 = vmatprep.subr.bf16.mxu0 %v1586_v28  ;;  %v1624_v57 = vld [vmem:[%s2242_s1 + $0x3a4] ss:$16 sps:$4 sm:$0xff]   ;;  %v1627_v59 = vld [vmem:[%s2242_s1 + $0x3a0] ss:$16 sps:$4 sm:$0xff]   ;;  %v1669_v25 = vld [vmem:[%s2242_s1 + $0x28c] ss:$16 sps:$4 sm:$0xff]  }
  0x21   : > { %1125 = vmatprep.subr.bf16.mxu1 %v1588_v29  ;;  %v1628_v60 = vld [vmem:[%s2242_s1 + $0x1c4] ss:$16 sps:$4 sm:$0xff]   ;;  %v1632_v62 = vld [vmem:[%s2242_s1 + $0x1c0] ss:$16 sps:$4 sm:$0xff]   ;;  %v1664_v26 = vld [vmem:[%s2242_s1 + $0x88] ss:$16 sps:$4 sm:$0xff]  }
  0x22   : > { %v1630_v61 = vld [vmem:[%s2242_s1 + $0x3c4] ss:$16 sps:$4 sm:$0xff]   ;;  %v1633_v63 = vld [vmem:[%s2242_s1 + $0x3c0] ss:$16 sps:$4 sm:$0xff]   ;;  %v1667_v27 = vld [vmem:[%s2242_s1 + $0x288] ss:$16 sps:$4 sm:$0xff]  }
  0x23   : > { %1085 = vmatpush1.bf16.msra.mxu0 %v1590_v30  ;;  %v1634_v0 = vld [vmem:[%s2242_s1 + $0x1e4] ss:$16 sps:$4 sm:$0xff]   ;;  %v1638_v2 = vld [vmem:[%s2242_s1 + $0x1e0] ss:$16 sps:$4 sm:$0xff]   ;;  %v1672_v28 = vld [vmem:[%s2242_s1 + $0xac] ss:$16 sps:$4 sm:$0xff]  }
  0x24   : > { %1126 = vmatpush1.bf16.msra.mxu1 %v1591_v31  ;;  %1086 = vmatprep.subr.bf16.mxu0 %v1592_v32  ;;  %v1636_v1 = vld [vmem:[%s2242_s1 + $0x3e4] ss:$16 sps:$4 sm:$0xff]   ;;  %v1639_v3 = vld [vmem:[%s2242_s1 + $0x3e0] ss:$16 sps:$4 sm:$0xff]   ;;  %v1675_v29 = vld [vmem:[%s2242_s1 + $0x2ac] ss:$16 sps:$4 sm:$0xff]  }
  0x25   : > { %1127 = vmatprep.subr.bf16.mxu1 %v1594_v33  ;;  %v272_v4 = vld [vmem:[%s1931_s22] sm:$0xff]  ;;  %v274_v5 = vld [vmem:[%s1931_s22 + $0x10] sm:$0xff]  ;;  %v1670_v30 = vld [vmem:[%s2242_s1 + $0xa8] ss:$16 sps:$4 sm:$0xff]  }
  0x26   : > { %v2006_v8 = vpack.c.bf16 %v272_v4, %v272_v4  ;;  %v2008_v9 = vpack.c.bf16 %v274_v5, %v274_v5  ;;  %v1673_v31 = vld [vmem:[%s2242_s1 + $0x2a8] ss:$16 sps:$4 sm:$0xff]   ;;  %v1678_v32 = vld [vmem:[%s2242_s1 + $0xcc] ss:$16 sps:$4 sm:$0xff]  }
  0x27   : > { %1087 = vmatpush1.bf16.msra.mxu0 %v1596_v34  ;;  %v1681_v33 = vld [vmem:[%s2242_s1 + $0x2cc] ss:$16 sps:$4 sm:$0xff]   ;;  %v1676_v34 = vld [vmem:[%s2242_s1 + $0xc8] ss:$16 sps:$4 sm:$0xff]  }
  0x28   : > { %1128 = vmatpush1.bf16.msra.mxu1 %v1597_v35  ;;  %1088 = vmatprep.subr.bf16.mxu0 %v1598_v36  ;;  %v1679_v35 = vld [vmem:[%s2242_s1 + $0x2c8] ss:$16 sps:$4 sm:$0xff]   ;;  %v1684_v36 = vld [vmem:[%s2242_s1 + $0xec] ss:$16 sps:$4 sm:$0xff]  }
  0x29   : > { %1129 = vmatprep.subr.bf16.mxu1 %v1600_v37  ;;  %v1687_v37 = vld [vmem:[%s2242_s1 + $0x2ec] ss:$16 sps:$4 sm:$0xff]   ;;  %v1694_v46 = vld [vmem:[%s2242_s1 + $0x128] ss:$16 sps:$4 sm:$0xff]  }
  0x2a   : > { %v1700_v50 = vld [vmem:[%s2242_s1 + $0x148] ss:$16 sps:$4 sm:$0xff]   ;;  %v1732_v4 = vld [vmem:[%s2242_s1 + $0x1ec] ss:$16 sps:$4 sm:$0xff]  }
  0x2b   : > { %1089 = vmatpush1.bf16.msra.mxu0 %v1602_v38  ;;  %v1682_v38 = vld [vmem:[%s2242_s1 + $0xe8] ss:$16 sps:$4 sm:$0xff]   ;;  %v1735_v5 = vld [vmem:[%s2242_s1 + $0x3ec] ss:$16 sps:$4 sm:$0xff]  }
  0x2c   : > { %1130 = vmatpush1.bf16.msra.mxu1 %v1603_v39  ;;  %1090 = vmatprep.subr.bf16.mxu0 %v1604_v40  ;;  %v1685_v39 = vld [vmem:[%s2242_s1 + $0x2e8] ss:$16 sps:$4 sm:$0xff]   ;;  %v1690_v40 = vld [vmem:[%s2242_s1 + $0x10c] ss:$16 sps:$4 sm:$0xff]  }
  0x2d   : > { %1131 = vmatprep.subr.bf16.mxu1 %v1606_v41  ;;  %v1693_v41 = vld [vmem:[%s2242_s1 + $0x30c] ss:$16 sps:$4 sm:$0xff]  }
  0x2f   : > { %1091 = vmatpush1.bf16.msra.mxu0 %v1608_v42  ;;  %v1688_v42 = vld [vmem:[%s2242_s1 + $0x108] ss:$16 sps:$4 sm:$0xff]  }
  0x30   : > { %1132 = vmatpush1.bf16.msra.mxu1 %v1609_v43  ;;  %1092 = vmatprep.subr.bf16.mxu0 %v1610_v44  ;;  %v1691_v43 = vld [vmem:[%s2242_s1 + $0x308] ss:$16 sps:$4 sm:$0xff]   ;;  %v1696_v44 = vld [vmem:[%s2242_s1 + $0x12c] ss:$16 sps:$4 sm:$0xff]  }
  0x31   : > { %1133 = vmatprep.subr.bf16.mxu1 %v1612_v45  ;;  %v1699_v45 = vld [vmem:[%s2242_s1 + $0x32c] ss:$16 sps:$4 sm:$0xff]  }
  0x33   : > { %1093 = vmatpush1.bf16.msra.mxu0 %v1614_v47  ;;  %v1697_v47 = vld [vmem:[%s2242_s1 + $0x328] ss:$16 sps:$4 sm:$0xff]  }
  0x34   : > { %1134 = vmatpush1.bf16.msra.mxu1 %v1615_v48  ;;  %1094 = vmatprep.subr.bf16.mxu0 %v1616_v51  ;;  %v1702_v48 = vld [vmem:[%s2242_s1 + $0x14c] ss:$16 sps:$4 sm:$0xff]   ;;  %v1703_v51 = vld [vmem:[%s2242_s1 + $0x348] ss:$16 sps:$4 sm:$0xff]  }
  0x35   : > { %1135 = vmatprep.subr.bf16.mxu1 %v1618_v53  ;;  %v1711_v53 = vld [vmem:[%s2242_s1 + $0x36c] ss:$16 sps:$4 sm:$0xff]  }
  0x37   : > { %1095 = vmatpush1.bf16.msra.mxu0 %v1620_v54  ;;  %v1706_v54 = vld [vmem:[%s2242_s1 + $0x168] ss:$16 sps:$4 sm:$0xff]  }
  0x38   : > { %1136 = vmatpush1.bf16.msra.mxu1 %v1621_v55  ;;  %1096 = vmatprep.subr.bf16.mxu0 %v1622_v56  ;;  %v1709_v55 = vld [vmem:[%s2242_s1 + $0x368] ss:$16 sps:$4 sm:$0xff]   ;;  %v1714_v56 = vld [vmem:[%s2242_s1 + $0x18c] ss:$16 sps:$4 sm:$0xff]  }
  0x39   : > { %1137 = vmatprep.subr.bf16.mxu1 %v1624_v57  ;;  %v1717_v57 = vld [vmem:[%s2242_s1 + $0x38c] ss:$16 sps:$4 sm:$0xff]  }
  0x3b   : > { %1097 = vmatpush1.bf16.msra.mxu0 %v1626_v58  ;;  %v1712_v58 = vld [vmem:[%s2242_s1 + $0x188] ss:$16 sps:$4 sm:$0xff]  }
  0x3c   : > { %1138 = vmatpush1.bf16.msra.mxu1 %v1627_v59  ;;  %1098 = vmatprep.subr.bf16.mxu0 %v1628_v60  ;;  %v1715_v59 = vld [vmem:[%s2242_s1 + $0x388] ss:$16 sps:$4 sm:$0xff]   ;;  %v1720_v60 = vld [vmem:[%s2242_s1 + $0x1ac] ss:$16 sps:$4 sm:$0xff]  }
  0x3d   : > { %1139 = vmatprep.subr.bf16.mxu1 %v1630_v61  ;;  %v1723_v61 = vld [vmem:[%s2242_s1 + $0x3ac] ss:$16 sps:$4 sm:$0xff]  }
  0x3f   : > { %1099 = vmatpush1.bf16.msra.mxu0 %v1632_v62  ;;  %v1718_v62 = vld [vmem:[%s2242_s1 + $0x1a8] ss:$16 sps:$4 sm:$0xff]  }
  0x40   : > { %1140 = vmatpush1.bf16.msra.mxu1 %v1633_v63  ;;  %1100 = vmatprep.subr.bf16.mxu0 %v1634_v0  ;;  %v1721_v63 = vld [vmem:[%s2242_s1 + $0x3a8] ss:$16 sps:$4 sm:$0xff]   ;;  %v1726_v0 = vld [vmem:[%s2242_s1 + $0x1cc] ss:$16 sps:$4 sm:$0xff]  }
  0x41   : > { %1141 = vmatprep.subr.bf16.mxu1 %v1636_v1  ;;  %v1729_v1 = vld [vmem:[%s2242_s1 + $0x3cc] ss:$16 sps:$4 sm:$0xff]  }
  0x43   : > { %1101 = vmatpush1.bf16.msra.mxu0 %v1638_v2  ;;  %v1724_v2 = vld [vmem:[%s2242_s1 + $0x1c8] ss:$16 sps:$4 sm:$0xff]  }
  0x44   : > { %1142 = vmatpush1.bf16.msra.mxu1 %v1639_v3  ;;  %1152 = vmatprep.subr.bf16.mxu0 %v1642_v6  ;;  %v1727_v3 = vld [vmem:[%s2242_s1 + $0x3c8] ss:$16 sps:$4 sm:$0xff]  }
  0x45   : > { %1193 = vmatprep.subr.bf16.mxu1 %v1645_v7  ;;  %v1730_v6 = vld [vmem:[%s2242_s1 + $0x1e8] ss:$16 sps:$4 sm:$0xff]  }
  0x46   : > { %1103 = vmatmul.mubr.bf16.vlgmr.msra.gmra.mrb[0].mxu0 %v2006_v8  ;;  %v1733_v7 = vld [vmem:[%s2242_s1 + $0x3e8] ss:$16 sps:$4 sm:$0xff]  }
  0x47   : > { %1144 = vmatmul.mubr.bf16.vlgmr.msra.gmra.mrb[0].mxu1 %v2008_v9  ;;  %1153 = vmatpush1.bf16.msra.mxu0 %v1640_v10  ;;  %v410_v10 = vlaneseq }
  0x48   : > { %1194 = vmatpush1.bf16.msra.mxu1 %v1643_v11  ;;  %1154 = vmatprep.subr.bf16.mxu0 %v1648_v12 }
  0x49   : > { %1195 = vmatprep.subr.bf16.mxu1 %v1651_v13  ;;  %1184 = vmatprep.mubr.bf16.mxu0 %v1946_v49  ;;  %v1705_v49 = vld [vmem:[%s2242_s1 + $0x34c] ss:$16 sps:$4 sm:$0xff]   ;;  %v411_v11 = vshrl.u32 %v410_v10, 7  ;;  %v408_v13 = vld [vmem:[%s2243_s2] sm:$0xf] }
  0x4a   : > { %1225 = vmatprep.mubr.bf16.mxu1 %v279_v52  ;;  %v1708_v52 = vld [vmem:[%s2242_s1 + $0x16c] ss:$16 sps:$4 sm:$0xff]  }
  0x4b   : > { %1155 = vmatpush1.bf16.msra.mxu0 %v1646_v14  ;;  %v2201_v12 = vsub.s32 0, %v411_v11  ;;  %v2206_v14 = vsub.s32 1, %v411_v11 }
  0x4c   : > { %1196 = vmatpush1.bf16.msra.mxu1 %v1649_v15  ;;  %1156 = vmatprep.subr.bf16.mxu0 %v1654_v16 }
  0x4d   : > { %1197 = vmatprep.subr.bf16.mxu1 %v1657_v17  ;;  %v413_v15 = vrot.slane %v408_v13, %v2201_v12  ;;  %v417_v16 = vrot.slane %v408_v13, %v2206_v14 }
  0x4f   : > { %1157 = vmatpush1.bf16.msra.mxu0 %v1652_v18 }
  0x50   : > { %1198 = vmatpush1.bf16.msra.mxu1 %v1655_v19  ;;  %1158 = vmatprep.subr.bf16.mxu0 %v1660_v20 }
  0x51   : > { %1199 = vmatprep.subr.bf16.mxu1 %v1663_v21 }
  0x53   : > { %1159 = vmatpush1.bf16.msra.mxu0 %v1658_v22 }
  0x54   : > { %1200 = vmatpush1.bf16.msra.mxu1 %v1661_v23  ;;  %1160 = vmatprep.subr.bf16.mxu0 %v1666_v24 }
  0x55   : > { %1201 = vmatprep.subr.bf16.mxu1 %v1669_v25 }
  0x57   : > { %1161 = vmatpush1.bf16.msra.mxu0 %v1664_v26 }
  0x58   : > { %1202 = vmatpush1.bf16.msra.mxu1 %v1667_v27  ;;  %1162 = vmatprep.subr.bf16.mxu0 %v1672_v28  ;;  %v2210_v27 = vsub.s32 2, %v411_v11  ;;  %v2212_v28 = vsub.s32 3, %v411_v11 }
  0x59   : > { %1203 = vmatprep.subr.bf16.mxu1 %v1675_v29 }
  0x5a   : > { %v421_v29 = vrot.slane %v408_v13, %v2210_v27 }
  0x5b   : > { %1163 = vmatpush1.bf16.msra.mxu0 %v1670_v30  ;;  %v1234_v30 = vld [vmem:[%s266_s24] sm:$0xff] }
  0x5c   : > { %1204 = vmatpush1.bf16.msra.mxu1 %v1673_v31  ;;  %1164 = vmatprep.subr.bf16.mxu0 %v1678_v32  ;;  %v1235_v31 = vld [vmem:[%s266_s24 + $0x8] sm:$0xff]  ;;  %v425_v32 = vrot.slane %v408_v13, %v2212_v28 }
  0x5d   : > { %1205 = vmatprep.subr.bf16.mxu1 %v1681_v33 }
  0x5f   : > { %1165 = vmatpush1.bf16.msra.mxu0 %v1676_v34 }
  0x60   : > { %1206 = vmatpush1.bf16.msra.mxu1 %v1679_v35  ;;  %1166 = vmatprep.subr.bf16.mxu0 %v1684_v36 }
  0x61   : > { %1207 = vmatprep.subr.bf16.mxu1 %v1687_v37 }
  0x63   : > { %1167 = vmatpush1.bf16.msra.mxu0 %v1682_v38 }
  0x64   : > { %1208 = vmatpush1.bf16.msra.mxu1 %v1685_v39  ;;  %1168 = vmatprep.subr.bf16.mxu0 %v1690_v40  ;;  %v1236_v40 = vld [vmem:[%s266_s24 + $0x10] sm:$0xff] }
  0x65   : > { %1209 = vmatprep.subr.bf16.mxu1 %v1693_v41 }
  0x67   : > { %1169 = vmatpush1.bf16.msra.mxu0 %v1688_v42 }
  0x68   : > { %1210 = vmatpush1.bf16.msra.mxu1 %v1691_v43  ;;  %1170 = vmatprep.subr.bf16.mxu0 %v1696_v44 }
  0x69   : > { %1211 = vmatprep.subr.bf16.mxu1 %v1699_v45 }
  0x6b   : > { %1171 = vmatpush1.bf16.msra.mxu0 %v1694_v46 }
  0x6c   : > { %1212 = vmatpush1.bf16.msra.mxu1 %v1697_v47  ;;  %1172 = vmatprep.subr.bf16.mxu0 %v1702_v48  ;;  %v1237_v47 = vld [vmem:[%s266_s24 + $0x18] sm:$0xff] }
  0x6d   : > { %1213 = vmatprep.subr.bf16.mxu1 %v1705_v49 }
  0x6f   : > { %1173 = vmatpush1.bf16.msra.mxu0 %v1700_v50 }
  0x70   : > { %1214 = vmatpush1.bf16.msra.mxu1 %v1703_v51  ;;  %1174 = vmatprep.subr.bf16.mxu0 %v1708_v52 }
  0x71   : > { %1215 = vmatprep.subr.bf16.mxu1 %v1711_v53 }
  0x73   : > { %1175 = vmatpush1.bf16.msra.mxu0 %v1706_v54 }
  0x74   : > { %1216 = vmatpush1.bf16.msra.mxu1 %v1709_v55  ;;  %1176 = vmatprep.subr.bf16.mxu0 %v1714_v56 }
  0x75   : > { %1217 = vmatprep.subr.bf16.mxu1 %v1717_v57 }
  0x77   : > { %1177 = vmatpush1.bf16.msra.mxu0 %v1712_v58 }
  0x78   : > { %1218 = vmatpush1.bf16.msra.mxu1 %v1715_v59  ;;  %1178 = vmatprep.subr.bf16.mxu0 %v1720_v60 }
  0x79   : > { %1219 = vmatprep.subr.bf16.mxu1 %v1723_v61 }
  0x7b   : > { %1179 = vmatpush1.bf16.msra.mxu0 %v1718_v62 }
  0x7c   : > { %1220 = vmatpush1.bf16.msra.mxu1 %v1721_v63  ;;  %1180 = vmatprep.subr.bf16.mxu0 %v1726_v0 }
  0x7d   : > { %1221 = vmatprep.subr.bf16.mxu1 %v1729_v1 }
  0x7f   : > { %1181 = vmatpush1.bf16.msra.mxu0 %v1724_v2 }
  0x80   : > { %1222 = vmatpush1.bf16.msra.mxu1 %v1727_v3  ;;  %1182 = vmatprep.subr.bf16.mxu0 %v1732_v4 }
  0x81   : > { %1223 = vmatprep.subr.bf16.mxu1 %v1735_v5 }
  0x83   : > { %1183 = vmatpush1.bf16.msra.mxu0 %v1730_v6  ;;  %v1242_v6 = vld [vmem:[%s2245_s4] sm:$0xf] }
  0x84   : > { %1224 = vmatpush1.bf16.msra.mxu1 %v1733_v7  ;;  %v1243_v7 = vld [vmem:[%s2246_s5] sm:$0xf]  ;;  %v1275_v10 = vrot.slane %v1242_v6, %v2201_v12  ;;  %v1279_v11 = vrot.slane %v1242_v6, %v2206_v14  ;;  %v1283_v13 = vrot.slane %v1242_v6, %v2210_v27 }
  0x86   : > { %1185 = vmatmul.mubr.bf16.vlgmr.msra.gmra.mrb[4].mxu0 %v2006_v8 }
  0x87   : > { %1226 = vmatmul.mubr.bf16.vlgmr.msra.gmra.mrb[4].mxu1 %v2008_v9 }
 0x119   : > { %v1104_v17 = vpop.f32.mrb[0].mxu0 }
 0x11a   : > { %v1145_v18 = vpop.f32.mrb[0].mxu1  ;;  %v1105_v8 = vadd.f32 %v1104_v17, %v413_v15  ;;  %v1106_v19 = vpop.f32.mrb[1].mxu0  ;;  %v1287_v15 = vrot.slane %v1242_v6, %v2212_v28  ;;  %v1300_v17 = vrot.slane %v1243_v7, %v2201_v12 }
 0x11b   : > { %v1147_v9 = vpop.f32.mrb[1].mxu1  ;;  %v1107_v20 = vadd.f32 %v1106_v19, %v417_v16  ;;  %v1108_v21 = vpop.f32.mrb[2].mxu0  ;;  %v1312_v19 = vrot.slane %v1243_v7, %v2212_v28 }
 0x11c   : > { %v1149_v22 = vpop.f32.mrb[2].mxu1  ;;  %v1146_v23 = vadd.f32 %v1145_v18, %v1105_v8  ;;  %v1109_v24 = vpop.f32.mrb[3].mxu0  ;;  %v1304_v18 = vrot.slane %v1243_v7, %v2206_v14  ;;  %v1308_v8 = vrot.slane %v1243_v7, %v2210_v27 }
 0x11d   : > { %v1150_v25 = vpop.f32.mrb[3].mxu1  ;;  %v1148_v26 = vadd.f32 %v1147_v9, %v1107_v20 }
 0x11e   : > { %v1238_v35 = vadd.f32 %v1234_v30, %v1146_v23 }
 0x11f   : > { %v1239_v36 = vadd.f32 %v1235_v31, %v1148_v26 }
 0x121   : > { %v1244_v50 = vadd.f32 %v1239_v36, %v1238_v35 }
 0x159   : > { %v1186_v33 = vpop.f32.mrb[4].mxu0 }
 0x15a   : > { %v1227_v34 = vpop.f32.mrb[4].mxu1  ;;  %v1187_v37 = vadd.f32 %v1186_v33, %v421_v29  ;;  %v1188_v38 = vpop.f32.mrb[5].mxu0 }
 0x15b   : > { %v1229_v39 = vpop.f32.mrb[5].mxu1  ;;  %v1189_v41 = vadd.f32 %v1188_v38, %v425_v32  ;;  %v1190_v42 = vpop.f32.mrb[6].mxu0 }
 0x15c   : > { %v1231_v43 = vpop.f32.mrb[6].mxu1  ;;  %v1228_v44 = vadd.f32 %v1227_v34, %v1187_v37  ;;  %v1191_v45 = vpop.f32.mrb[7].mxu0 }
 0x15d   : > { %v1232_v46 = vpop.f32.mrb[7].mxu1  ;;  %v1230_v48 = vadd.f32 %v1229_v39, %v1189_v41 }
 0x15e   : > { %v1240_v49 = vadd.f32 %v1236_v40, %v1228_v44 }
 0x15f   : > { %v1241_v51 = vadd.f32 %v1237_v47, %v1230_v48 }
 0x160   : > { %v1245_v52 = vadd.f32 %v1244_v50, %v1240_v49 }
 0x162   : > { %v1246_v53 = vadd.f32 %v1245_v52, %v1241_v51 }
 0x164   : > { %1247 = vadd.xlane.f32.xlu0 %v1246_v53 }
 0x1f1   : > { %v1248_v54 = vpop.xlane.xlu0 %1247 }
 0x1f2   : > { %v1250_v55 = vmul.f32 0.001953125, %v1248_v54 }
 0x1f4   : > { %v1251_v56 = vsub.f32 %v1238_v35, %v1250_v55  ;;  %v1252_v57 = vsub.f32 %v1239_v36, %v1250_v55  ;;  %v1253_v58 = vsub.f32 %v1240_v49, %v1250_v55  ;;  %v1254_v59 = vsub.f32 %v1241_v51, %v1250_v55 }
 0x1f6   : > { %v1255_v60 = vmul.f32 %v1251_v56, %v1251_v56  ;;  %v1256_v61 = vmul.f32 %v1252_v57, %v1252_v57  ;;  %v1257_v62 = vmul.f32 %v1253_v58, %v1253_v58  ;;  %v1258_v0 = vmul.f32 %v1254_v59, %v1254_v59 }
 0x1f8   : > { %v1259_v63 = vadd.f32 %v1256_v61, %v1255_v60 }
 0x1fa   : > { %v1260_v1 = vadd.f32 %v1259_v63, %v1257_v62 }
 0x1fc   : > { %v1261_v2 = vadd.f32 %v1260_v1, %v1258_v0 }
 0x1fe   : > { %1262 = vadd.xlane.f32.xlu0 %v1261_v2 }
 0x28b   : > { %v1263_v3 = vpop.xlane.xlu0 %1262 }
 0x28c   : > { %v1264_v4 = vmul.f32 0.001953125, %v1263_v3 }
 0x28e   : > { %v1265_v5 = vadd.f32 1e-05, %v1264_v4 }
 0x290   : > { %1736 = vrsqrt.f32 %v1265_v5 }
 0x29a   : > { %v1737_v16 = vpop.eup %1736 }
 0x29b   : > { %v1267_v9 = vmul.f32 %v1737_v16, %v1251_v56  ;;  %v1268_v20 = vmul.f32 %v1737_v16, %v1252_v57  ;;  %v1269_v21 = vmul.f32 %v1737_v16, %v1253_v58  ;;  %v1270_v22 = vmul.f32 %v1737_v16, %v1254_v59 }
 0x29d   : > { %v1292_v23 = vmul.f32 %v1275_v10, %v1267_v9  ;;  %v1293_v24 = vmul.f32 %v1279_v11, %v1268_v20  ;;  %v1294_v25 = vmul.f32 %v1283_v13, %v1269_v21  ;;  %v1295_v26 = vmul.f32 %v1287_v15, %v1270_v22 }
 0x29f   : > { %v1317_v29 = vadd.f32 %v1300_v17, %v1292_v23  ;;  %v1318_v12 = vadd.f32 %v1304_v18, %v1293_v24  ;;  %v1319_v30 = vadd.f32 %v1308_v8, %v1294_v25  ;;  %v1320_v14 = vadd.f32 %v1312_v19, %v1295_v26 }
 0x2a1   : > { %1321 = vst [vmem:[%s271_s30] sm:$0xff] %v1317_v29  ;;  %1322 = vst [vmem:[%s271_s30 + $0x8] sm:$0xff] %v1318_v12 }
 0x2a2   : > { %1323 = vst [vmem:[%s271_s30 + $0x10] sm:$0xff] %v1319_v30  ;;  %1324 = vst [vmem:[%s271_s30 + $0x18] sm:$0xff] %v1320_v14 }
 0x2a3 PF: > { %s16_s21 = sadd.s32 1, %s1744_s21  }
 0x2a4   : > { %p13_p4 = scmp.ge.s32.totalorder %s16_s21, 4  }
 0x2a6   :  { %15 = sbr.rel (!%p13_p4) target bundleno = 1 (0x1), region = 77 }

// kernel: transformer_forward.36
= control target key start
LH: loop header
LB: loop body
LE: loop exit
PB: predicated region body
PF: predicated region fallthrough
CT: control target
= control target key end

     0   :  { %8 = vsyncpa [#allocation3], 0  ;;  %s2826_s0 = inlined_call_operand.vmem [shape: f32[16,512], index: 0, kind: input, shape index: {}]   ;;  %s2827_s1 = inlined_call_operand.hbm [shape: bf16[512,1536], index: 1, kind: input, shape index: {}]   ;;  %s2828_s2 = inlined_call_operand.vmem [shape: f32[1,1536], index: 2, kind: input, shape index: {}]   ;;  %s2829_s3 = inlined_call_operand.vmem [shape: f32[16,1536], index: 3, kind: output, shape index: {}]  }
   0x1   :  { %10 = vsyncpa [#allocation3 + $0x1], 0  ;;  %s2441_s12 = smov 0   ;;  %s2443_s13 = smov 0  }
   0x2   :  { %s2445_s14 = smov 0   ;;  %s2447_s15 = smov 0  }
   0x3 LB: > { %s2460_s16 = sadd.s32 4294967295, %s2415_s15   ;;  %s2463_s17 = sadd.s32 1, %s2415_s15   ;;  %s2415_s15 = sphi %s2447_s15, %s2837_s15   ;;  %s2411_s14 = sphi %s2445_s14, %s2836_s14   ;;  %s2407_s13 = sphi %s2443_s13, %s2835_s13   ;;  %s2403_s12 = sphi %s2441_s12, %s2834_s12  }
   0x4   : > { %s41_s18 = ssub.s32 %s2415_s15, %s2463_s17  ;;  %s44_s19 = sadd.s32 1, %s2411_s14 }
   0x5   : > { %p42_p0 = scmp.eq.s32.totalorder %s41_s18, 0  ;;  %p51_p1 = scmp.ne.s32.totalorder %s2411_s14, %s2407_s13 }
   0x6   : > { %p52_p2 = scmp.eq.s32.totalorder %s2415_s15, 0  ;;  %p57_p3 = scmp.ne.s32.totalorder %s2407_s13, %s2403_s12 }
   0x7   : > { %s2473_s20 = scalar_select %p42_p0, %s2411_s14, %s44_s19  }
   0x8   : > { %p53_p4 = por %p52_p2, %p51_p1  ;;  %p58_p5 = scmp.eq.s32.totalorder %s2460_s16, 0 }
   0x9   : > { %p107_p6 = scmp.eq.s32.totalorder %s2460_s16, 1  ;;  %p2027_p8 = scmp.lt.s32.totalorder %s2415_s15, 2 }
   0xa   : > { %p2477_p7 = por %p58_p5, %p57_p3  ;;  %s136_s23 = sand.u32 1, %s2411_s14  }
   0xb   : > { %p2482_p9 = por %p107_p6, %p51_p1  ;;  %s2018_s24 = smul.u32 1536, %s136_s23 }
   0xc   : > { %s1992_s25 = smul.u32 384, %s2415_s15  ;;  %p2488_p10 = pnand %p2027_p8, %p53_p4 }
   0xd   : > { %s2831_s22 = scalar_select %p2482_p9, 1, 0 }
   0xe   : > { %s2495_s29 = scalar_lea.hbm %s2827_s1, %s1992_s25  ;;  %s140_s30 = scalar_lea.vmem [#allocation2], %s2018_s24 }
   0xf   : > { %s147_s4 = sshll.u32 %s140_s30, 4  ;;  %s2499_s5 = scalar_lea.sflag [#allocation3], %s136_s23  ;;  %s2497_s4 = int_to_ptr.vmem [resolvable:$true] %s147_s4 }
  0x10   : > { %s2351_s6 = scalar_lea.hbm %s2495_s29, 24576  ;;  %p2353_p12 = pneg %p2488_p10 }
  0x11   : > { %p2352_p11 = scmp.ne.s32.totalorder %s2495_s29, %s2351_s6  ;;  %s2356_s9 = scalar_lea.hbm %s2827_s1, 49152 }
  0x12   : > { %p2357_p1 = scmp.lt.u32.totalorder %s2495_s29, %s2827_s1  ;;  %p2358_p2 = scmp.lt.u32.totalorder %s2356_s9, %s2351_s6 }
  0x13   : > { %p2354_p13 = pnand %p2353_p12, %p2352_p11  ;;  %p2360_p4 = scmp.lt.u32.totalorder %s2351_s6, %s2495_s29 }
  0x14   : > { %p2359_p3 = por %p2358_p2, %p2357_p1 }
  0x15   : > { %p2355_p0 = pneg %p2354_p13 }
  0x16   : > { %p2361_p5 = por %p2360_p4, %p2359_p3 }
  0x18   : > { %p2362_p6 = pnand %p2361_p5, %p2355_p0 }
  0x1a   : > { %2365 = shalt.err (!%p2362_p6)
}
  0x1b   : > { %s2366_s12 = scalar_lea.vmem %s2497_s4, 24576  ;;  %s2417_s18 = smov [#allocation2]  }
  0x1c   : > { %p2367_p8 = scmp.ne.s32.totalorder %s2497_s4, %s2366_s12  ;;  %s2371_s19 = sshll.u32 %s2417_s18, 4  ;;  %s2372_s19 = int_to_ptr.vmem [resolvable:$false] %s2371_s19 }
  0x1d   : > { %s2373_s23 = scalar_lea.vmem %s2372_s19, 49152  ;;  %p2374_p9 = scmp.lt.s32.totalorder %s2497_s4, %s2372_s19 }
  0x1e   : > { %p2369_p11 = pnand %p2367_p8, %p2353_p12  ;;  %p2375_p1 = scmp.lt.s32.totalorder %s2373_s23, %s2366_s12 }
  0x20   : > { %p2370_p13 = pneg %p2369_p11  ;;  %p2376_p2 = por %p2375_p1, %p2374_p9 }
  0x22   : > { %p2377_p3 = pnand %p2376_p2, %p2370_p13 }
  0x24   : > { %2380 = shalt.err (!%p2377_p3)
}
  0x25   : > { %s2418_s24 = smov 768   ;;  %s2419_s25 = smov 384  }
  0x26   : > { %s2420_s27 = smov 24   ;;  %p1796_p12 = scmp.ge.s32.totalorder %s2415_s15, 1 }
  0x27   : > { %2026 = dma.hbm_to_vmem [thread:$0]  (!%p2488_p10), %s2495_s29, 24576, %s2497_s4, %s2499_s5, %s2418_s24, %s2419_s25, %s2420_s27  }
  0x28   : > { %p163_p0 = scmp.lt.s32.totalorder %s2415_s15, 3 }
  0x2a   : > { %p164_p4 = pnand %p1796_p12, %p163_p0 }
  0x2b   : > { %s2530_s28 = sand.u32 (!%p164_p4), 1, %s2407_s13  }
  0x2c   : > { %167 = sbr.rel (%p164_p4) target bundleno = 472 (0x1d8), region = 32  ;;  %s170_s6 = scalar_lea.sflag (!%p164_p4), [#allocation3], %s2530_s28 }
  0x2d   : > { %s2019_s30 = smul.u32 (!%p164_p4), 1536, %s2530_s28 }
  0x2f   : > { %s2534_s7 = scalar_lea.vmem (!%p164_p4), [#allocation2], %s2019_s30 }
  0x33   : > { %2398 = dma.done.wait (%p2477_p7), %s170_s6, 24576  }
  0x34   : > { %2400 = vsyncadd (%p2477_p7), %s170_s6, 4294942720  ;;  %v2063_v0 = vld [vmem:[%s2534_s7 + $0x4] ss:$24 sps:$4 sm:$0xff]   ;;  %v2067_v2 = vld [vmem:[%s2534_s7] ss:$24 sps:$4 sm:$0xff]   ;;  %s200_s27 = smul.u32 6, %s2460_s16 }
  0x35   : > { %v2065_v1 = vld [vmem:[%s2534_s7 + $0x304] ss:$24 sps:$4 sm:$0xff]   ;;  %1402 = vmatprep.subr.bf16.mxu1 %v2063_v0  ;;  %v2068_v3 = vld [vmem:[%s2534_s7 + $0x300] ss:$24 sps:$4 sm:$0xff]   ;;  %v2069_v4 = vld [vmem:[%s2534_s7 + $0x34] ss:$24 sps:$4 sm:$0xff]  }
  0x36   : > { %1445 = vmatprep.subr.bf16.mxu0 %v2065_v1  ;;  %1403 = vmatpush1.bf16.msra.mxu1 %v2067_v2  ;;  %v2071_v5 = vld [vmem:[%s2534_s7 + $0x334] ss:$24 sps:$4 sm:$0xff]   ;;  %v2073_v6 = vld [vmem:[%s2534_s7 + $0x30] ss:$24 sps:$4 sm:$0xff]   ;;  %v2075_v8 = vld [vmem:[%s2534_s7 + $0x64] ss:$24 sps:$4 sm:$0xff]  }
  0x37   : > { %1446 = vmatpush1.bf16.msra.mxu0 %v2068_v3  ;;  %1404 = vmatprep.subr.bf16.mxu1 %v2069_v4  ;;  %v2074_v7 = vld [vmem:[%s2534_s7 + $0x330] ss:$24 sps:$4 sm:$0xff]   ;;  %v2077_v9 = vld [vmem:[%s2534_s7 + $0x364] ss:$24 sps:$4 sm:$0xff]   ;;  %v2079_v10 = vld [vmem:[%s2534_s7 + $0x60] ss:$24 sps:$4 sm:$0xff]  }
  0x38   : > { %1447 = vmatprep.subr.bf16.mxu0 %v2071_v5  ;;  %v2080_v11 = vld [vmem:[%s2534_s7 + $0x360] ss:$24 sps:$4 sm:$0xff]   ;;  %v2081_v12 = vld [vmem:[%s2534_s7 + $0x94] ss:$24 sps:$4 sm:$0xff]   ;;  %v2085_v14 = vld [vmem:[%s2534_s7 + $0x90] ss:$24 sps:$4 sm:$0xff]  }
  0x39   : > { %v2083_v13 = vld [vmem:[%s2534_s7 + $0x394] ss:$24 sps:$4 sm:$0xff]   ;;  %v2086_v15 = vld [vmem:[%s2534_s7 + $0x390] ss:$24 sps:$4 sm:$0xff]   ;;  %v2087_v16 = vld [vmem:[%s2534_s7 + $0xc4] ss:$24 sps:$4 sm:$0xff]  }
  0x3a   : > { %1405 = vmatpush1.bf16.msra.mxu1 %v2073_v6  ;;  %v2089_v17 = vld [vmem:[%s2534_s7 + $0x3c4] ss:$24 sps:$4 sm:$0xff]   ;;  %v2091_v18 = vld [vmem:[%s2534_s7 + $0xc0] ss:$24 sps:$4 sm:$0xff]   ;;  %v2093_v20 = vld [vmem:[%s2534_s7 + $0xf4] ss:$24 sps:$4 sm:$0xff]  }
  0x3b   : > { %1448 = vmatpush1.bf16.msra.mxu0 %v2074_v7  ;;  %1406 = vmatprep.subr.bf16.mxu1 %v2075_v8  ;;  %v2092_v19 = vld [vmem:[%s2534_s7 + $0x3c0] ss:$24 sps:$4 sm:$0xff]   ;;  %v2095_v21 = vld [vmem:[%s2534_s7 + $0x3f4] ss:$24 sps:$4 sm:$0xff]   ;;  %v2097_v22 = vld [vmem:[%s2534_s7 + $0xf0] ss:$24 sps:$4 sm:$0xff]  }
  0x3c   : > { %1449 = vmatprep.subr.bf16.mxu0 %v2077_v9  ;;  %v2098_v23 = vld [vmem:[%s2534_s7 + $0x3f0] ss:$24 sps:$4 sm:$0xff]   ;;  %v2099_v24 = vld [vmem:[%s2534_s7 + $0x124] ss:$24 sps:$4 sm:$0xff]   ;;  %v2103_v26 = vld [vmem:[%s2534_s7 + $0x120] ss:$24 sps:$4 sm:$0xff]  }
  0x3d   : > { %v2101_v25 = vld [vmem:[%s2534_s7 + $0x424] ss:$24 sps:$4 sm:$0xff]   ;;  %v2104_v27 = vld [vmem:[%s2534_s7 + $0x420] ss:$24 sps:$4 sm:$0xff]   ;;  %v2105_v28 = vld [vmem:[%s2534_s7 + $0x154] ss:$24 sps:$4 sm:$0xff]  }
  0x3e   : > { %1407 = vmatpush1.bf16.msra.mxu1 %v2079_v10  ;;  %v2107_v29 = vld [vmem:[%s2534_s7 + $0x454] ss:$24 sps:$4 sm:$0xff]   ;;  %v2109_v30 = vld [vmem:[%s2534_s7 + $0x150] ss:$24 sps:$4 sm:$0xff]   ;;  %v2111_v32 = vld [vmem:[%s2534_s7 + $0x184] ss:$24 sps:$4 sm:$0xff]  }
  0x3f   : > { %1450 = vmatpush1.bf16.msra.mxu0 %v2080_v11  ;;  %1408 = vmatprep.subr.bf16.mxu1 %v2081_v12  ;;  %v2110_v31 = vld [vmem:[%s2534_s7 + $0x450] ss:$24 sps:$4 sm:$0xff]   ;;  %v2113_v33 = vld [vmem:[%s2534_s7 + $0x484] ss:$24 sps:$4 sm:$0xff]   ;;  %v2115_v34 = vld [vmem:[%s2534_s7 + $0x180] ss:$24 sps:$4 sm:$0xff]  }
  0x40   : > { %1451 = vmatprep.subr.bf16.mxu0 %v2083_v13  ;;  %v2116_v35 = vld [vmem:[%s2534_s7 + $0x480] ss:$24 sps:$4 sm:$0xff]   ;;  %v2117_v36 = vld [vmem:[%s2534_s7 + $0x1b4] ss:$24 sps:$4 sm:$0xff]   ;;  %v2121_v38 = vld [vmem:[%s2534_s7 + $0x1b0] ss:$24 sps:$4 sm:$0xff]  }
  0x41   : > { %v2119_v37 = vld [vmem:[%s2534_s7 + $0x4b4] ss:$24 sps:$4 sm:$0xff]   ;;  %v2122_v39 = vld [vmem:[%s2534_s7 + $0x4b0] ss:$24 sps:$4 sm:$0xff]   ;;  %v2123_v40 = vld [vmem:[%s2534_s7 + $0x1e4] ss:$24 sps:$4 sm:$0xff]  }
  0x42   : > { %1409 = vmatpush1.bf16.msra.mxu1 %v2085_v14  ;;  %v2125_v41 = vld [vmem:[%s2534_s7 + $0x4e4] ss:$24 sps:$4 sm:$0xff]   ;;  %v2127_v42 = vld [vmem:[%s2534_s7 + $0x1e0] ss:$24 sps:$4 sm:$0xff]   ;;  %v2129_v44 = vld [vmem:[%s2534_s7 + $0x214] ss:$24 sps:$4 sm:$0xff]  }
  0x43   : > { %1452 = vmatpush1.bf16.msra.mxu0 %v2086_v15  ;;  %1410 = vmatprep.subr.bf16.mxu1 %v2087_v16  ;;  %v2128_v43 = vld [vmem:[%s2534_s7 + $0x4e0] ss:$24 sps:$4 sm:$0xff]   ;;  %v2131_v45 = vld [vmem:[%s2534_s7 + $0x514] ss:$24 sps:$4 sm:$0xff]   ;;  %v2133_v50 = vld [vmem:[%s2534_s7 + $0x210] ss:$24 sps:$4 sm:$0xff]  }
  0x44   : > { %1453 = vmatprep.subr.bf16.mxu0 %v2089_v17  ;;  %v207_v46 = vld [vmem:[%s2826_s0 + $0x8] sm:$0xff]  ;;  %v209_v48 = vld [vmem:[%s2826_s0 + $0x18] sm:$0xff]  ;;  %v206_v6 = vld [vmem:[%s2826_s0] sm:$0xff]  ;;  %p201_p7 = scmp.lt.s32.totalorder %s200_s27, 11  ;;  %p2833_p9 = scmp.ne.s32.totalorder %s2831_s22, 0 }
  0x45   : > { %v211_v47 = vld [vmem:[%s2826_s0 + $0x28] sm:$0xff]  ;;  %v213_v49 = vld [vmem:[%s2826_s0 + $0x38] sm:$0xff]  ;;  %v210_v7 = vld [vmem:[%s2826_s0 + $0x20] sm:$0xff] }
  0x46   : > { %1411 = vmatpush1.bf16.msra.mxu1 %v2091_v18  ;;  %v2134_v51 = vld [vmem:[%s2534_s7 + $0x510] ss:$24 sps:$4 sm:$0xff]   ;;  %v2135_v52 = vld [vmem:[%s2534_s7 + $0x244] ss:$24 sps:$4 sm:$0xff]   ;;  %v2601_v53 = vpack.c.bf16 %v211_v47, %v207_v46  ;;  %v2603_v54 = vpack.c.bf16 %v213_v49, %v209_v48  ;;  %v2139_v56 = vld [vmem:[%s2534_s7 + $0x240] ss:$24 sps:$4 sm:$0xff]   ;;  %v2636_v12 = vpack.c.bf16 %v210_v7, %v206_v6 }
  0x47   : > { %1454 = vmatpush1.bf16.msra.mxu0 %v2092_v19  ;;  %1412 = vmatprep.subr.bf16.mxu1 %v2093_v20  ;;  %v2137_v55 = vld [vmem:[%s2534_s7 + $0x544] ss:$24 sps:$4 sm:$0xff]   ;;  %v2140_v57 = vld [vmem:[%s2534_s7 + $0x540] ss:$24 sps:$4 sm:$0xff]   ;;  %v2141_v58 = vld [vmem:[%s2534_s7 + $0x274] ss:$24 sps:$4 sm:$0xff]  }
  0x48   : > { %1455 = vmatprep.subr.bf16.mxu0 %v2095_v21  ;;  %1434 = vmatprep.mubr.bf16.mxu1 %v2601_v53  ;;  %v2143_v59 = vld [vmem:[%s2534_s7 + $0x574] ss:$24 sps:$4 sm:$0xff]   ;;  %v2145_v60 = vld [vmem:[%s2534_s7 + $0x270] ss:$24 sps:$4 sm:$0xff]   ;;  %v2147_v62 = vld [vmem:[%s2534_s7 + $0x2a4] ss:$24 sps:$4 sm:$0xff]  }
  0x49   : > { %1477 = vmatprep.mubr.bf16.mxu0 %v2603_v54  ;;  %v2146_v61 = vld [vmem:[%s2534_s7 + $0x570] ss:$24 sps:$4 sm:$0xff]   ;;  %v2149_v63 = vld [vmem:[%s2534_s7 + $0x5a4] ss:$24 sps:$4 sm:$0xff]   ;;  %v2151_v0 = vld [vmem:[%s2534_s7 + $0x2a0] ss:$24 sps:$4 sm:$0xff]  }
  0x4a   : > { %1413 = vmatpush1.bf16.msra.mxu1 %v2097_v22  ;;  %v2152_v1 = vld [vmem:[%s2534_s7 + $0x5a0] ss:$24 sps:$4 sm:$0xff]   ;;  %v2153_v2 = vld [vmem:[%s2534_s7 + $0x2d4] ss:$24 sps:$4 sm:$0xff]   ;;  %v2157_v4 = vld [vmem:[%s2534_s7 + $0x2d0] ss:$24 sps:$4 sm:$0xff]  }
  0x4b   : > { %1456 = vmatpush1.bf16.msra.mxu0 %v2098_v23  ;;  %1414 = vmatprep.subr.bf16.mxu1 %v2099_v24  ;;  %v2155_v3 = vld [vmem:[%s2534_s7 + $0x5d4] ss:$24 sps:$4 sm:$0xff]   ;;  %v2158_v5 = vld [vmem:[%s2534_s7 + $0x5d0] ss:$24 sps:$4 sm:$0xff]   ;;  %v2170_v17 = vld [vmem:[%s2534_s7 + $0x44] ss:$24 sps:$4 sm:$0xff]  }
  0x4c   : > { %1457 = vmatprep.subr.bf16.mxu0 %v2101_v25  ;;  %v208_v8 = vld [vmem:[%s2826_s0 + $0x10] sm:$0xff]  ;;  %v2161_v10 = vld [vmem:[%s2534_s7 + $0xc] ss:$24 sps:$4 sm:$0xff]   ;;  %v2159_v14 = vld [vmem:[%s2534_s7 + $0x8] ss:$24 sps:$4 sm:$0xff]   ;;  %s2839_s27 = smov (!%p201_p7, %s200_s27), 11 }
  0x4d   : > { %v212_v9 = vld [vmem:[%s2826_s0 + $0x30] sm:$0xff]  ;;  %v2168_v19 = vld [vmem:[%s2534_s7 + $0x40] ss:$24 sps:$4 sm:$0xff]   ;;  %v2173_v20 = vld [vmem:[%s2534_s7 + $0x6c] ss:$24 sps:$4 sm:$0xff]   ;;  %s203_s15 = scalar_lea.vmem %s2828_s2, %s2839_s27 }
  0x4e   : > { %1415 = vmatpush1.bf16.msra.mxu1 %v2103_v26  ;;  %v2164_v11 = vld [vmem:[%s2534_s7 + $0x14] ss:$24 sps:$4 sm:$0xff]   ;;  %v2638_v13 = vpack.c.bf16 %v212_v9, %v208_v8  ;;  %v2162_v15 = vld [vmem:[%s2534_s7 + $0x10] ss:$24 sps:$4 sm:$0xff]   ;;  %v2182_v25 = vld [vmem:[%s2534_s7 + $0xa4] ss:$24 sps:$4 sm:$0xff]  }
  0x4f   : > { %1458 = vmatpush1.bf16.msra.mxu0 %v2104_v27  ;;  %1416 = vmatprep.subr.bf16.mxu1 %v2105_v28  ;;  %v2167_v16 = vld [vmem:[%s2534_s7 + $0x3c] ss:$24 sps:$4 sm:$0xff]   ;;  %v2165_v18 = vld [vmem:[%s2534_s7 + $0x38] ss:$24 sps:$4 sm:$0xff]   ;;  %v2171_v22 = vld [vmem:[%s2534_s7 + $0x68] ss:$24 sps:$4 sm:$0xff]  }
  0x50   : > { %1459 = vmatprep.subr.bf16.mxu0 %v2107_v29  ;;  %v2176_v21 = vld [vmem:[%s2534_s7 + $0x74] ss:$24 sps:$4 sm:$0xff]   ;;  %v2174_v23 = vld [vmem:[%s2534_s7 + $0x70] ss:$24 sps:$4 sm:$0xff]   ;;  %v2180_v27 = vld [vmem:[%s2534_s7 + $0xa0] ss:$24 sps:$4 sm:$0xff]  }
  0x51   : > { %v2179_v24 = vld [vmem:[%s2534_s7 + $0x9c] ss:$24 sps:$4 sm:$0xff]   ;;  %v2177_v26 = vld [vmem:[%s2534_s7 + $0x98] ss:$24 sps:$4 sm:$0xff]   ;;  %v2185_v28 = vld [vmem:[%s2534_s7 + $0xcc] ss:$24 sps:$4 sm:$0xff]  }
  0x52   : > { %1417 = vmatpush1.bf16.msra.mxu1 %v2109_v30  ;;  %v2188_v29 = vld [vmem:[%s2534_s7 + $0xd4] ss:$24 sps:$4 sm:$0xff]   ;;  %v2183_v30 = vld [vmem:[%s2534_s7 + $0xc8] ss:$24 sps:$4 sm:$0xff]   ;;  %v2218_v49 = vld [vmem:[%s2534_s7 + $0x1c4] ss:$24 sps:$4 sm:$0xff]  }
  0x53   : > { %1460 = vmatpush1.bf16.msra.mxu0 %v2110_v31  ;;  %1418 = vmatprep.subr.bf16.mxu1 %v2111_v32  ;;  %v2186_v31 = vld [vmem:[%s2534_s7 + $0xd0] ss:$24 sps:$4 sm:$0xff]   ;;  %v2191_v32 = vld [vmem:[%s2534_s7 + $0xfc] ss:$24 sps:$4 sm:$0xff]  }
  0x54   : > { %1461 = vmatprep.subr.bf16.mxu0 %v2113_v33  ;;  %v2194_v33 = vld [vmem:[%s2534_s7 + $0x104] ss:$24 sps:$4 sm:$0xff]   ;;  %v2207_v46 = vld [vmem:[%s2534_s7 + $0x188] ss:$24 sps:$4 sm:$0xff]   ;;  %v2248_v6 = vld [vmem:[%s2534_s7 + $0x2b4] ss:$24 sps:$4 sm:$0xff]  }
  0x55   : > { %v2210_v47 = vld [vmem:[%s2534_s7 + $0x190] ss:$24 sps:$4 sm:$0xff]   ;;  %v2215_v48 = vld [vmem:[%s2534_s7 + $0x1bc] ss:$24 sps:$4 sm:$0xff]  }
  0x56   : > { %1419 = vmatpush1.bf16.msra.mxu1 %v2115_v34  ;;  %v2189_v34 = vld [vmem:[%s2534_s7 + $0xf8] ss:$24 sps:$4 sm:$0xff]   ;;  %v2243_v7 = vld [vmem:[%s2534_s7 + $0x2a8] ss:$24 sps:$4 sm:$0xff]   ;;  %v2251_v9 = vld [vmem:[%s2534_s7 + $0x2dc] ss:$24 sps:$4 sm:$0xff]  }
  0x57   : > { %1462 = vmatpush1.bf16.msra.mxu0 %v2116_v35  ;;  %1420 = vmatprep.subr.bf16.mxu1 %v2117_v36  ;;  %v2192_v35 = vld [vmem:[%s2534_s7 + $0x100] ss:$24 sps:$4 sm:$0xff]   ;;  %v2197_v36 = vld [vmem:[%s2534_s7 + $0x12c] ss:$24 sps:$4 sm:$0xff]   ;;  %v2246_v8 = vld [vmem:[%s2534_s7 + $0x2b0] ss:$24 sps:$4 sm:$0xff]  }
  0x58   : > { %1463 = vmatprep.subr.bf16.mxu0 %v2119_v37  ;;  %v2200_v37 = vld [vmem:[%s2534_s7 + $0x134] ss:$24 sps:$4 sm:$0xff]  }
  0x5a   : > { %1421 = vmatpush1.bf16.msra.mxu1 %v2121_v38  ;;  %v2195_v38 = vld [vmem:[%s2534_s7 + $0x128] ss:$24 sps:$4 sm:$0xff]  }
  0x5b   : > { %1464 = vmatpush1.bf16.msra.mxu0 %v2122_v39  ;;  %1422 = vmatprep.subr.bf16.mxu1 %v2123_v40  ;;  %v2198_v39 = vld [vmem:[%s2534_s7 + $0x130] ss:$24 sps:$4 sm:$0xff]   ;;  %v2203_v40 = vld [vmem:[%s2534_s7 + $0x15c] ss:$24 sps:$4 sm:$0xff]  }
  0x5c   : > { %1465 = vmatprep.subr.bf16.mxu0 %v2125_v41  ;;  %v2206_v41 = vld [vmem:[%s2534_s7 + $0x164] ss:$24 sps:$4 sm:$0xff]  }
  0x5e   : > { %1423 = vmatpush1.bf16.msra.mxu1 %v2127_v42  ;;  %v2201_v42 = vld [vmem:[%s2534_s7 + $0x158] ss:$24 sps:$4 sm:$0xff]  }
  0x5f   : > { %1466 = vmatpush1.bf16.msra.mxu0 %v2128_v43  ;;  %1424 = vmatprep.subr.bf16.mxu1 %v2129_v44  ;;  %v2204_v43 = vld [vmem:[%s2534_s7 + $0x160] ss:$24 sps:$4 sm:$0xff]   ;;  %v2209_v44 = vld [vmem:[%s2534_s7 + $0x18c] ss:$24 sps:$4 sm:$0xff]  }
  0x60   : > { %1467 = vmatprep.subr.bf16.mxu0 %v2131_v45  ;;  %v2212_v45 = vld [vmem:[%s2534_s7 + $0x194] ss:$24 sps:$4 sm:$0xff]  }
  0x62   : > { %1425 = vmatpush1.bf16.msra.mxu1 %v2133_v50  ;;  %v2213_v50 = vld [vmem:[%s2534_s7 + $0x1b8] ss:$24 sps:$4 sm:$0xff]  }
  0x63   : > { %1468 = vmatpush1.bf16.msra.mxu0 %v2134_v51  ;;  %1426 = vmatprep.subr.bf16.mxu1 %v2135_v52  ;;  %v2216_v51 = vld [vmem:[%s2534_s7 + $0x1c0] ss:$24 sps:$4 sm:$0xff]   ;;  %v2221_v52 = vld [vmem:[%s2534_s7 + $0x1ec] ss:$24 sps:$4 sm:$0xff]  }
  0x64   : > { %1469 = vmatprep.subr.bf16.mxu0 %v2137_v55  ;;  %v2219_v55 = vld [vmem:[%s2534_s7 + $0x1e8] ss:$24 sps:$4 sm:$0xff]  }
  0x66   : > { %1427 = vmatpush1.bf16.msra.mxu1 %v2139_v56  ;;  %v2222_v56 = vld [vmem:[%s2534_s7 + $0x1f0] ss:$24 sps:$4 sm:$0xff]  }
  0x67   : > { %1470 = vmatpush1.bf16.msra.mxu0 %v2140_v57  ;;  %1428 = vmatprep.subr.bf16.mxu1 %v2141_v58  ;;  %v2227_v57 = vld [vmem:[%s2534_s7 + $0x21c] ss:$24 sps:$4 sm:$0xff]  }
  0x68   : > { %1471 = vmatprep.subr.bf16.mxu0 %v2143_v59  ;;  %v2230_v58 = vld [vmem:[%s2534_s7 + $0x224] ss:$24 sps:$4 sm:$0xff]   ;;  %v2225_v59 = vld [vmem:[%s2534_s7 + $0x218] ss:$24 sps:$4 sm:$0xff]  }
  0x6a   : > { %1429 = vmatpush1.bf16.msra.mxu1 %v2145_v60  ;;  %v2228_v60 = vld [vmem:[%s2534_s7 + $0x220] ss:$24 sps:$4 sm:$0xff]  }
  0x6b   : > { %1472 = vmatpush1.bf16.msra.mxu0 %v2146_v61  ;;  %1430 = vmatprep.subr.bf16.mxu1 %v2147_v62  ;;  %v2233_v61 = vld [vmem:[%s2534_s7 + $0x24c] ss:$24 sps:$4 sm:$0xff]  }
  0x6c   : > { %1473 = vmatprep.subr.bf16.mxu0 %v2149_v63  ;;  %v2236_v62 = vld [vmem:[%s2534_s7 + $0x254] ss:$24 sps:$4 sm:$0xff]   ;;  %v2231_v63 = vld [vmem:[%s2534_s7 + $0x248] ss:$24 sps:$4 sm:$0xff]  }
  0x6e   : > { %1431 = vmatpush1.bf16.msra.mxu1 %v2151_v0  ;;  %v2234_v0 = vld [vmem:[%s2534_s7 + $0x250] ss:$24 sps:$4 sm:$0xff]  }
  0x6f   : > { %1474 = vmatpush1.bf16.msra.mxu0 %v2152_v1  ;;  %1432 = vmatprep.subr.bf16.mxu1 %v2153_v2  ;;  %v2239_v1 = vld [vmem:[%s2534_s7 + $0x27c] ss:$24 sps:$4 sm:$0xff]  }
  0x70   : > { %1475 = vmatprep.subr.bf16.mxu0 %v2155_v3  ;;  %v2242_v2 = vld [vmem:[%s2534_s7 + $0x284] ss:$24 sps:$4 sm:$0xff]   ;;  %v2237_v3 = vld [vmem:[%s2534_s7 + $0x278] ss:$24 sps:$4 sm:$0xff]  }
  0x72   : > { %1433 = vmatpush1.bf16.msra.mxu1 %v2157_v4  ;;  %v2240_v4 = vld [vmem:[%s2534_s7 + $0x280] ss:$24 sps:$4 sm:$0xff]  }
  0x73   : > { %1476 = vmatpush1.bf16.msra.mxu0 %v2158_v5  ;;  %1488 = vmatprep.subr.bf16.mxu1 %v2161_v10  ;;  %v2245_v5 = vld [vmem:[%s2534_s7 + $0x2ac] ss:$24 sps:$4 sm:$0xff]  }
  0x74   : > { %1574 = vmatprep.subr.bf16.mxu0 %v2164_v11  ;;  %v2254_v10 = vld [vmem:[%s2534_s7 + $0x2e4] ss:$24 sps:$4 sm:$0xff]   ;;  %v2249_v11 = vld [vmem:[%s2534_s7 + $0x2d8] ss:$24 sps:$4 sm:$0xff]  }
  0x75   : > { %1435 = vmatmul.mubr.bf16.vlgmr.msra.gmra.mrb[0].mxu1 %v2636_v12 }
  0x76   : > { %1478 = vmatmul.mubr.bf16.vlgmr.msra.gmra.mrb[0].mxu0 %v2638_v13  ;;  %1489 = vmatpush1.bf16.msra.mxu1 %v2159_v14  ;;  %v2252_v14 = vld [vmem:[%s2534_s7 + $0x2e0] ss:$24 sps:$4 sm:$0xff]  }
  0x77   : > { %1575 = vmatpush1.bf16.msra.mxu0 %v2162_v15  ;;  %1490 = vmatprep.subr.bf16.mxu1 %v2167_v16  ;;  %v2257_v15 = vld [vmem:[%s2534_s7 + $0x30c] ss:$24 sps:$4 sm:$0xff]  }
  0x78   : > { %1576 = vmatprep.subr.bf16.mxu0 %v2170_v17  ;;  %1520 = vmatprep.mubr.bf16.mxu1 %v2601_v53  ;;  %v2260_v16 = vld [vmem:[%s2534_s7 + $0x314] ss:$24 sps:$4 sm:$0xff]   ;;  %v2255_v17 = vld [vmem:[%s2534_s7 + $0x308] ss:$24 sps:$4 sm:$0xff]  }
  0x79   : > { %1606 = vmatprep.mubr.bf16.mxu0 %v2601_v53  ;;  %v2224_v53 = vld [vmem:[%s2534_s7 + $0x1f4] ss:$24 sps:$4 sm:$0xff]  }
  0x7a   : > { %1491 = vmatpush1.bf16.msra.mxu1 %v2165_v18  ;;  %v2258_v18 = vld [vmem:[%s2534_s7 + $0x310] ss:$24 sps:$4 sm:$0xff]  }
  0x7b   : > { %1577 = vmatpush1.bf16.msra.mxu0 %v2168_v19  ;;  %1492 = vmatprep.subr.bf16.mxu1 %v2173_v20  ;;  %v2263_v19 = vld [vmem:[%s2534_s7 + $0x33c] ss:$24 sps:$4 sm:$0xff]  }
  0x7c   : > { %1578 = vmatprep.subr.bf16.mxu0 %v2176_v21  ;;  %v2266_v20 = vld [vmem:[%s2534_s7 + $0x344] ss:$24 sps:$4 sm:$0xff]   ;;  %v2261_v21 = vld [vmem:[%s2534_s7 + $0x338] ss:$24 sps:$4 sm:$0xff]  }
  0x7e   : > { %1493 = vmatpush1.bf16.msra.mxu1 %v2171_v22  ;;  %v2264_v22 = vld [vmem:[%s2534_s7 + $0x340] ss:$24 sps:$4 sm:$0xff]  }
  0x7f   : > { %1579 = vmatpush1.bf16.msra.mxu0 %v2174_v23  ;;  %1494 = vmatprep.subr.bf16.mxu1 %v2179_v24  ;;  %v2269_v23 = vld [vmem:[%s2534_s7 + $0x36c] ss:$24 sps:$4 sm:$0xff]  }
  0x80   : > { %1580 = vmatprep.subr.bf16.mxu0 %v2182_v25  ;;  %v2272_v24 = vld [vmem:[%s2534_s7 + $0x374] ss:$24 sps:$4 sm:$0xff]   ;;  %v2270_v25 = vld [vmem:[%s2534_s7 + $0x370] ss:$24 sps:$4 sm:$0xff]  }
  0x82   : > { %1495 = vmatpush1.bf16.msra.mxu1 %v2177_v26  ;;  %v2275_v26 = vld [vmem:[%s2534_s7 + $0x39c] ss:$24 sps:$4 sm:$0xff]  }
  0x83   : > { %1581 = vmatpush1.bf16.msra.mxu0 %v2180_v27  ;;  %1496 = vmatprep.subr.bf16.mxu1 %v2185_v28  ;;  %v2278_v27 = vld [vmem:[%s2534_s7 + $0x3a4] ss:$24 sps:$4 sm:$0xff]   ;;  %v2273_v28 = vld [vmem:[%s2534_s7 + $0x398] ss:$24 sps:$4 sm:$0xff]  }
  0x84   : > { %1582 = vmatprep.subr.bf16.mxu0 %v2188_v29  ;;  %v2276_v29 = vld [vmem:[%s2534_s7 + $0x3a0] ss:$24 sps:$4 sm:$0xff]  }
  0x86   : > { %1497 = vmatpush1.bf16.msra.mxu1 %v2183_v30  ;;  %v2284_v30 = vld [vmem:[%s2534_s7 + $0x3d4] ss:$24 sps:$4 sm:$0xff]  }
  0x87   : > { %1583 = vmatpush1.bf16.msra.mxu0 %v2186_v31  ;;  %1498 = vmatprep.subr.bf16.mxu1 %v2191_v32  ;;  %v2279_v31 = vld [vmem:[%s2534_s7 + $0x3c8] ss:$24 sps:$4 sm:$0xff]  }
  0x88   : > { %1584 = vmatprep.subr.bf16.mxu0 %v2194_v33  ;;  %v2282_v32 = vld [vmem:[%s2534_s7 + $0x3d0] ss:$24 sps:$4 sm:$0xff]   ;;  %v2287_v33 = vld [vmem:[%s2534_s7 + $0x3fc] ss:$24 sps:$4 sm:$0xff]  }
  0x8a   : > { %1499 = vmatpush1.bf16.msra.mxu1 %v2189_v34  ;;  %v2290_v34 = vld [vmem:[%s2534_s7 + $0x404] ss:$24 sps:$4 sm:$0xff]  }
  0x8b   : > { %1585 = vmatpush1.bf16.msra.mxu0 %v2192_v35  ;;  %1500 = vmatprep.subr.bf16.mxu1 %v2197_v36  ;;  %v2285_v35 = vld [vmem:[%s2534_s7 + $0x3f8] ss:$24 sps:$4 sm:$0xff]  }
  0x8c   : > { %1586 = vmatprep.subr.bf16.mxu0 %v2200_v37  ;;  %v2288_v36 = vld [vmem:[%s2534_s7 + $0x400] ss:$24 sps:$4 sm:$0xff]   ;;  %v2293_v37 = vld [vmem:[%s2534_s7 + $0x42c] ss:$24 sps:$4 sm:$0xff]  }
  0x8e   : > { %1501 = vmatpush1.bf16.msra.mxu1 %v2195_v38  ;;  %v2296_v38 = vld [vmem:[%s2534_s7 + $0x434] ss:$24 sps:$4 sm:$0xff]  }
  0x8f   : > { %1587 = vmatpush1.bf16.msra.mxu0 %v2198_v39  ;;  %1502 = vmatprep.subr.bf16.mxu1 %v2203_v40  ;;  %v2291_v39 = vld [vmem:[%s2534_s7 + $0x428] ss:$24 sps:$4 sm:$0xff]  }
  0x90   : > { %1588 = vmatprep.subr.bf16.mxu0 %v2206_v41  ;;  %v2294_v40 = vld [vmem:[%s2534_s7 + $0x430] ss:$24 sps:$4 sm:$0xff]   ;;  %v2299_v41 = vld [vmem:[%s2534_s7 + $0x45c] ss:$24 sps:$4 sm:$0xff]  }
  0x92   : > { %1503 = vmatpush1.bf16.msra.mxu1 %v2201_v42  ;;  %v2302_v42 = vld [vmem:[%s2534_s7 + $0x464] ss:$24 sps:$4 sm:$0xff]  }
  0x93   : > { %1589 = vmatpush1.bf16.msra.mxu0 %v2204_v43  ;;  %1504 = vmatprep.subr.bf16.mxu1 %v2209_v44  ;;  %v2297_v43 = vld [vmem:[%s2534_s7 + $0x458] ss:$24 sps:$4 sm:$0xff]  }
  0x94   : > { %1590 = vmatprep.subr.bf16.mxu0 %v2212_v45  ;;  %v2300_v44 = vld [vmem:[%s2534_s7 + $0x460] ss:$24 sps:$4 sm:$0xff]   ;;  %v2305_v45 = vld [vmem:[%s2534_s7 + $0x48c] ss:$24 sps:$4 sm:$0xff]  }
  0x96   : > { %1505 = vmatpush1.bf16.msra.mxu1 %v2207_v46  ;;  %v2308_v46 = vld [vmem:[%s2534_s7 + $0x494] ss:$24 sps:$4 sm:$0xff]  }
  0x97   : > { %1591 = vmatpush1.bf16.msra.mxu0 %v2210_v47  ;;  %1506 = vmatprep.subr.bf16.mxu1 %v2215_v48  ;;  %v2303_v47 = vld [vmem:[%s2534_s7 + $0x488] ss:$24 sps:$4 sm:$0xff]  }
  0x98   : > { %1592 = vmatprep.subr.bf16.mxu0 %v2218_v49  ;;  %v2306_v48 = vld [vmem:[%s2534_s7 + $0x490] ss:$24 sps:$4 sm:$0xff]   ;;  %v2311_v49 = vld [vmem:[%s2534_s7 + $0x4bc] ss:$24 sps:$4 sm:$0xff]  }
  0x9a   : > { %1507 = vmatpush1.bf16.msra.mxu1 %v2213_v50  ;;  %v2314_v50 = vld [vmem:[%s2534_s7 + $0x4c4] ss:$24 sps:$4 sm:$0xff]  }
  0x9b   : > { %1593 = vmatpush1.bf16.msra.mxu0 %v2216_v51  ;;  %1508 = vmatprep.subr.bf16.mxu1 %v2221_v52  ;;  %v2309_v51 = vld [vmem:[%s2534_s7 + $0x4b8] ss:$24 sps:$4 sm:$0xff]  }
  0x9c   : > { %1594 = vmatprep.subr.bf16.mxu0 %v2224_v53  ;;  %v2312_v52 = vld [vmem:[%s2534_s7 + $0x4c0] ss:$24 sps:$4 sm:$0xff]   ;;  %v2317_v53 = vld [vmem:[%s2534_s7 + $0x4ec] ss:$24 sps:$4 sm:$0xff]  }
  0x9e   : > { %1509 = vmatpush1.bf16.msra.mxu1 %v2219_v55  ;;  %v2320_v55 = vld [vmem:[%s2534_s7 + $0x4f4] ss:$24 sps:$4 sm:$0xff]  }
  0x9f   : > { %1595 = vmatpush1.bf16.msra.mxu0 %v2222_v56  ;;  %1510 = vmatprep.subr.bf16.mxu1 %v2227_v57  ;;  %v2315_v56 = vld [vmem:[%s2534_s7 + $0x4e8] ss:$24 sps:$4 sm:$0xff]  }
  0xa0   : > { %1596 = vmatprep.subr.bf16.mxu0 %v2230_v58  ;;  %v2318_v57 = vld [vmem:[%s2534_s7 + $0x4f0] ss:$24 sps:$4 sm:$0xff]   ;;  %v2323_v58 = vld [vmem:[%s2534_s7 + $0x51c] ss:$24 sps:$4 sm:$0xff]  }
  0xa2   : > { %1511 = vmatpush1.bf16.msra.mxu1 %v2225_v59  ;;  %v2326_v59 = vld [vmem:[%s2534_s7 + $0x524] ss:$24 sps:$4 sm:$0xff]  }
  0xa3   : > { %1597 = vmatpush1.bf16.msra.mxu0 %v2228_v60  ;;  %1512 = vmatprep.subr.bf16.mxu1 %v2233_v61  ;;  %v2321_v60 = vld [vmem:[%s2534_s7 + $0x518] ss:$24 sps:$4 sm:$0xff]  }
  0xa4   : > { %1598 = vmatprep.subr.bf16.mxu0 %v2236_v62  ;;  %v2324_v61 = vld [vmem:[%s2534_s7 + $0x520] ss:$24 sps:$4 sm:$0xff]   ;;  %v2329_v62 = vld [vmem:[%s2534_s7 + $0x54c] ss:$24 sps:$4 sm:$0xff]  }
  0xa6   : > { %1513 = vmatpush1.bf16.msra.mxu1 %v2231_v63  ;;  %v2332_v63 = vld [vmem:[%s2534_s7 + $0x554] ss:$24 sps:$4 sm:$0xff]  }
  0xa7   : > { %1599 = vmatpush1.bf16.msra.mxu0 %v2234_v0  ;;  %1514 = vmatprep.subr.bf16.mxu1 %v2239_v1  ;;  %v2327_v0 = vld [vmem:[%s2534_s7 + $0x548] ss:$24 sps:$4 sm:$0xff]  }
  0xa8   : > { %1600 = vmatprep.subr.bf16.mxu0 %v2242_v2  ;;  %v2330_v1 = vld [vmem:[%s2534_s7 + $0x550] ss:$24 sps:$4 sm:$0xff]   ;;  %v2335_v2 = vld [vmem:[%s2534_s7 + $0x57c] ss:$24 sps:$4 sm:$0xff]  }
  0xaa   : > { %1515 = vmatpush1.bf16.msra.mxu1 %v2237_v3  ;;  %v2338_v3 = vld [vmem:[%s2534_s7 + $0x584] ss:$24 sps:$4 sm:$0xff]  }
  0xab   : > { %1601 = vmatpush1.bf16.msra.mxu0 %v2240_v4  ;;  %1516 = vmatprep.subr.bf16.mxu1 %v2245_v5  ;;  %v2333_v4 = vld [vmem:[%s2534_s7 + $0x578] ss:$24 sps:$4 sm:$0xff]  }
  0xac   : > { %1602 = vmatprep.subr.bf16.mxu0 %v2248_v6  ;;  %v2336_v5 = vld [vmem:[%s2534_s7 + $0x580] ss:$24 sps:$4 sm:$0xff]   ;;  %v2341_v6 = vld [vmem:[%s2534_s7 + $0x5ac] ss:$24 sps:$4 sm:$0xff]  }
  0xae   : > { %1517 = vmatpush1.bf16.msra.mxu1 %v2243_v7  ;;  %v2344_v7 = vld [vmem:[%s2534_s7 + $0x5b4] ss:$24 sps:$4 sm:$0xff]  }
  0xaf   : > { %1603 = vmatpush1.bf16.msra.mxu0 %v2246_v8  ;;  %1518 = vmatprep.subr.bf16.mxu1 %v2251_v9  ;;  %v2339_v8 = vld [vmem:[%s2534_s7 + $0x5a8] ss:$24 sps:$4 sm:$0xff]  }
  0xb0   : > { %1604 = vmatprep.subr.bf16.mxu0 %v2254_v10  ;;  %v2342_v9 = vld [vmem:[%s2534_s7 + $0x5b0] ss:$24 sps:$4 sm:$0xff]   ;;  %v2347_v10 = vld [vmem:[%s2534_s7 + $0x5dc] ss:$24 sps:$4 sm:$0xff]  }
  0xb2   : > { %1519 = vmatpush1.bf16.msra.mxu1 %v2249_v11  ;;  %v2350_v11 = vld [vmem:[%s2534_s7 + $0x5e4] ss:$24 sps:$4 sm:$0xff]  }
  0xb3   : > { %1605 = vmatpush1.bf16.msra.mxu0 %v2252_v14  ;;  %1531 = vmatprep.subr.bf16.mxu1 %v2257_v15  ;;  %v2345_v14 = vld [vmem:[%s2534_s7 + $0x5d8] ss:$24 sps:$4 sm:$0xff]  }
  0xb4   : > { %1617 = vmatprep.subr.bf16.mxu0 %v2260_v16  ;;  %v2348_v15 = vld [vmem:[%s2534_s7 + $0x5e0] ss:$24 sps:$4 sm:$0xff]   ;;  %v412_v16 = vlaneseq }
  0xb5   : > { %1521 = vmatmul.mubr.bf16.vlgmr.msra.gmra.mrb[4].mxu1 %v2636_v12 }
  0xb6   : > { %1607 = vmatmul.mubr.bf16.vlgmr.msra.gmra.mrb[4].mxu0 %v2636_v12  ;;  %1532 = vmatpush1.bf16.msra.mxu1 %v2255_v17  ;;  %v2267_v12 = vld [vmem:[%s2534_s7 + $0x368] ss:$24 sps:$4 sm:$0xff]   ;;  %v413_v17 = vshrl.u32 %v412_v16, 7 }
  0xb7   : > { %1618 = vmatpush1.bf16.msra.mxu0 %v2258_v18  ;;  %1533 = vmatprep.subr.bf16.mxu1 %v2263_v19  ;;  %v410_v19 = vld [vmem:[%s203_s15] sm:$0x3f] }
  0xb8   : > { %1619 = vmatprep.subr.bf16.mxu0 %v2266_v20  ;;  %1563 = vmatprep.mubr.bf16.mxu1 %v2603_v54  ;;  %v414_v18 = vsub.s32 0, %v413_v17  ;;  %v418_v20 = vsub.s32 1, %v413_v17 }
  0xb9   : > { %1649 = vmatprep.mubr.bf16.mxu0 %v2603_v54  ;;  %v2281_v54 = vld [vmem:[%s2534_s7 + $0x3cc] ss:$24 sps:$4 sm:$0xff]   ;;  %s2020_s7 = smul.u32 96, %s2530_s28 }
  0xba   : > { %1534 = vmatpush1.bf16.msra.mxu1 %v2261_v21  ;;  %v415_v21 = vrot.slane %v410_v19, %v414_v18  ;;  %s1993_s28 = smul.u32 (%p2833_p9), 48, %s2460_s16 }
  0xbb   : > { %1620 = vmatpush1.bf16.msra.mxu0 %v2264_v22  ;;  %1535 = vmatprep.subr.bf16.mxu1 %v2269_v23  ;;  %v419_v22 = vrot.slane %v410_v19, %v418_v20  ;;  %s2781_s21 = scalar_lea.vmem [#allocation4], %s2020_s7 }
  0xbc   : > { %1621 = vmatprep.subr.bf16.mxu0 %v2272_v24  ;;  %s1681_s29 = scalar_lea.vmem (%p2833_p9), %s2829_s3, %s1993_s28 }
  0xbe   : > { %1536 = vmatpush1.bf16.msra.mxu1 %v2267_v12 }
  0xbf   : > { %1622 = vmatpush1.bf16.msra.mxu0 %v2270_v25  ;;  %1537 = vmatprep.subr.bf16.mxu1 %v2275_v26 }
  0xc0   : > { %1623 = vmatprep.subr.bf16.mxu0 %v2278_v27 }
  0xc2   : > { %1538 = vmatpush1.bf16.msra.mxu1 %v2273_v28 }
  0xc3   : > { %1624 = vmatpush1.bf16.msra.mxu0 %v2276_v29  ;;  %1539 = vmatprep.subr.bf16.mxu1 %v2281_v54 }
  0xc4   : > { %1625 = vmatprep.subr.bf16.mxu0 %v2284_v30 }
  0xc6   : > { %1540 = vmatpush1.bf16.msra.mxu1 %v2279_v31 }
  0xc7   : > { %1626 = vmatpush1.bf16.msra.mxu0 %v2282_v32  ;;  %1541 = vmatprep.subr.bf16.mxu1 %v2287_v33 }
  0xc8   : > { %1627 = vmatprep.subr.bf16.mxu0 %v2290_v34 }
  0xca   : > { %1542 = vmatpush1.bf16.msra.mxu1 %v2285_v35 }
  0xcb   : > { %1628 = vmatpush1.bf16.msra.mxu0 %v2288_v36  ;;  %1543 = vmatprep.subr.bf16.mxu1 %v2293_v37  ;;  %v422_v36 = vsub.s32 2, %v413_v17  ;;  %v430_v37 = vsub.s32 4, %v413_v17 }
  0xcc   : > { %1629 = vmatprep.subr.bf16.mxu0 %v2296_v38  ;;  %v426_v38 = vsub.s32 3, %v413_v17 }
  0xce   : > { %1544 = vmatpush1.bf16.msra.mxu1 %v2291_v39  ;;  %v434_v39 = vsub.s32 5, %v413_v17 }
  0xcf   : > { %1630 = vmatpush1.bf16.msra.mxu0 %v2294_v40  ;;  %1545 = vmatprep.subr.bf16.mxu1 %v2299_v41  ;;  %v423_v40 = vrot.slane %v410_v19, %v422_v36  ;;  %v431_v41 = vrot.slane %v410_v19, %v430_v37 }
  0xd0   : > { %1631 = vmatprep.subr.bf16.mxu0 %v2302_v42  ;;  %v427_v42 = vrot.slane %v410_v19, %v426_v38 }
  0xd2   : > { %1546 = vmatpush1.bf16.msra.mxu1 %v2297_v43  ;;  %v435_v43 = vrot.slane %v410_v19, %v434_v39 }
  0xd3   : > { %1632 = vmatpush1.bf16.msra.mxu0 %v2300_v44  ;;  %1547 = vmatprep.subr.bf16.mxu1 %v2305_v45 }
  0xd4   : > { %1633 = vmatprep.subr.bf16.mxu0 %v2308_v46 }
  0xd6   : > { %1548 = vmatpush1.bf16.msra.mxu1 %v2303_v47 }
  0xd7   : > { %1634 = vmatpush1.bf16.msra.mxu0 %v2306_v48  ;;  %1549 = vmatprep.subr.bf16.mxu1 %v2311_v49 }
  0xd8   : > { %1635 = vmatprep.subr.bf16.mxu0 %v2314_v50 }
  0xda   : > { %1550 = vmatpush1.bf16.msra.mxu1 %v2309_v51 }
  0xdb   : > { %1636 = vmatpush1.bf16.msra.mxu0 %v2312_v52  ;;  %1551 = vmatprep.subr.bf16.mxu1 %v2317_v53 }
  0xdc   : > { %1637 = vmatprep.subr.bf16.mxu0 %v2320_v55 }
  0xde   : > { %1552 = vmatpush1.bf16.msra.mxu1 %v2315_v56 }
  0xdf   : > { %1638 = vmatpush1.bf16.msra.mxu0 %v2318_v57  ;;  %1553 = vmatprep.subr.bf16.mxu1 %v2323_v58 }
  0xe0   : > { %1639 = vmatprep.subr.bf16.mxu0 %v2326_v59 }
  0xe2   : > { %1554 = vmatpush1.bf16.msra.mxu1 %v2321_v60 }
  0xe3   : > { %1640 = vmatpush1.bf16.msra.mxu0 %v2324_v61  ;;  %1555 = vmatprep.subr.bf16.mxu1 %v2329_v62 }
  0xe4   : > { %1641 = vmatprep.subr.bf16.mxu0 %v2332_v63 }
  0xe6   : > { %1556 = vmatpush1.bf16.msra.mxu1 %v2327_v0 }
  0xe7   : > { %1642 = vmatpush1.bf16.msra.mxu0 %v2330_v1  ;;  %1557 = vmatprep.subr.bf16.mxu1 %v2335_v2 }
  0xe8   : > { %1643 = vmatprep.subr.bf16.mxu0 %v2338_v3 }
  0xea   : > { %1558 = vmatpush1.bf16.msra.mxu1 %v2333_v4 }
  0xeb   : > { %1644 = vmatpush1.bf16.msra.mxu0 %v2336_v5  ;;  %1559 = vmatprep.subr.bf16.mxu1 %v2341_v6 }
  0xec   : > { %1645 = vmatprep.subr.bf16.mxu0 %v2344_v7 }
  0xee   : > { %1560 = vmatpush1.bf16.msra.mxu1 %v2339_v8 }
  0xef   : > { %1646 = vmatpush1.bf16.msra.mxu0 %v2342_v9  ;;  %1561 = vmatprep.subr.bf16.mxu1 %v2347_v10 }
  0xf0   : > { %1647 = vmatprep.subr.bf16.mxu0 %v2350_v11 }
  0xf2   : > { %1562 = vmatpush1.bf16.msra.mxu1 %v2345_v14 }
  0xf3   : > { %1648 = vmatpush1.bf16.msra.mxu0 %v2348_v15 }
  0xf5   : > { %1564 = vmatmul.mubr.bf16.vlgmr.msra.gmra.mrb[4].mxu1 %v2638_v13 }
  0xf6   : > { %1650 = vmatmul.mubr.bf16.vlgmr.msra.gmra.mrb[4].mxu0 %v2638_v13 }
 0x148   : > { %v1436_v23 = vpop.f32.mrb[0].mxu1 }
 0x149   : > { %v1479_v24 = vpop.f32.mrb[0].mxu0  ;;  %v1437_v12 = vadd.f32 %v1436_v23, %v415_v21  ;;  %v1438_v25 = vpop.f32.mrb[1].mxu1 }
 0x14a   : > { %v1481_v13 = vpop.f32.mrb[1].mxu0  ;;  %v1439_v26 = vadd.f32 %v1438_v25, %v419_v22  ;;  %v1440_v27 = vpop.f32.mrb[2].mxu1 }
 0x14b   : > { %v1483_v28 = vpop.f32.mrb[2].mxu0  ;;  %v1480_v29 = vadd.f32 %v1479_v24, %v1437_v12  ;;  %v1441_v54 = vadd.f32 %v1440_v27, %v415_v21  ;;  %v1442_v30 = vpop.f32.mrb[3].mxu1 }
 0x14c   : > { %v1485_v31 = vpop.f32.mrb[3].mxu0  ;;  %v1482_v32 = vadd.f32 %v1481_v13, %v1439_v26  ;;  %v1443_v33 = vadd.f32 %v1442_v30, %v419_v22 }
 0x14d   : > { %1660 = vst [vmem:[%s2781_s21] sm:$0xff] %v1480_v29  ;;  %v1484_v34 = vadd.f32 %v1483_v28, %v1441_v54 }
 0x14e   : > { %1661 = vst [vmem:[%s2781_s21 + $0x8] sm:$0xff] %v1482_v32  ;;  %v1486_v35 = vadd.f32 %v1485_v31, %v1443_v33 }
 0x14f   : > { %1666 = vst [vmem:[%s2781_s21 + $0x30] sm:$0xff] %v1484_v34 }
 0x150   : > { %1667 = vst [vmem:[%s2781_s21 + $0x38] sm:$0xff] %v1486_v35 }
 0x154   : > { %v1694_v61 = vld [vmem:[%s2781_s21] sm:$0xff] (%p2833_p9) }
 0x155   : > { %v1696_v62 = vld [vmem:[%s2781_s21 + $0x8] sm:$0xff] (%p2833_p9)  ;;  %1695 = vst [vmem:[%s1681_s29] sm:$0xff] (%p2833_p9), %v1694_v61 }
 0x156   : > { %v1706_v3 = vld [vmem:[%s2781_s21 + $0x30] sm:$0xff] (%p2833_p9)  ;;  %1697 = vst [vmem:[%s1681_s29 + $0x8] sm:$0xff] (%p2833_p9), %v1696_v62 }
 0x157   : > { %v1708_v4 = vld [vmem:[%s2781_s21 + $0x38] sm:$0xff] (%p2833_p9)  ;;  %1707 = vst [vmem:[%s1681_s29 + $0x60] sm:$0xff] (%p2833_p9), %v1706_v3 }
 0x158   : > { %1709 = vst [vmem:[%s1681_s29 + $0x68] sm:$0xff] (%p2833_p9), %v1708_v4 }
 0x1c8   : > { %v1565_v44 = vpop.f32.mrb[4].mxu1 }
 0x1c9   : > { %v1651_v45 = vpop.f32.mrb[4].mxu0  ;;  %v2002_v46 = vadd.f32 %v1565_v44, %v423_v40  ;;  %v1567_v48 = vpop.f32.mrb[5].mxu1  ;;  %1678 = sbr.rel (!%p2833_p9) target bundleno = 472 (0x1d8), region = 40 }
 0x1ca   : > { %v2006_v47 = vadd.f32 %v1651_v45, %v431_v41  ;;  %v1653_v49 = vpop.f32.mrb[5].mxu0  ;;  %v2003_v50 = vadd.f32 %v1567_v48, %v427_v42  ;;  %v1569_v52 = vpop.f32.mrb[6].mxu1 }
 0x1cb   : > { %v2007_v51 = vadd.f32 %v1653_v49, %v435_v43  ;;  %v1655_v53 = vpop.f32.mrb[6].mxu0  ;;  %1662 = vst [vmem:[%s2781_s21 + $0x10] sm:$0xff] %v2002_v46  ;;  %v2004_v55 = vadd.f32 %v1569_v52, %v423_v40  ;;  %v1571_v57 = vpop.f32.mrb[7].mxu1 }
 0x1cc   : > { %1664 = vst [vmem:[%s2781_s21 + $0x20] sm:$0xff] %v2006_v47  ;;  %v2008_v56 = vadd.f32 %v1655_v53, %v431_v41  ;;  %v1657_v58 = vpop.f32.mrb[7].mxu0  ;;  %1663 = vst [vmem:[%s2781_s21 + $0x18] sm:$0xff] %v2003_v50  ;;  %v2005_v59 = vadd.f32 %v1571_v57, %v427_v42 }
 0x1cd   : > { %1665 = vst [vmem:[%s2781_s21 + $0x28] sm:$0xff] %v2007_v51  ;;  %v2009_v60 = vadd.f32 %v1657_v58, %v435_v43  ;;  %1668 = vst [vmem:[%s2781_s21 + $0x40] sm:$0xff] %v2004_v55 }
 0x1ce   : > { %1670 = vst [vmem:[%s2781_s21 + $0x50] sm:$0xff] %v2008_v56  ;;  %1669 = vst [vmem:[%s2781_s21 + $0x48] sm:$0xff] %v2005_v59 }
 0x1cf   : > { %1671 = vst [vmem:[%s2781_s21 + $0x58] sm:$0xff] %v2009_v60 }
 0x1d2   : > { %v1698_v63 = vld [vmem:[%s2781_s21 + $0x10] sm:$0xff] }
 0x1d3   : > { %v1700_v0 = vld [vmem:[%s2781_s21 + $0x18] sm:$0xff]  ;;  %v1702_v1 = vld [vmem:[%s2781_s21 + $0x20] sm:$0xff]  ;;  %1699 = vst [vmem:[%s1681_s29 + $0x10] sm:$0xff] %v1698_v63 }
 0x1d4   : > { %v1704_v2 = vld [vmem:[%s2781_s21 + $0x28] sm:$0xff]  ;;  %v1710_v5 = vld [vmem:[%s2781_s21 + $0x40] sm:$0xff]  ;;  %1701 = vst [vmem:[%s1681_s29 + $0x18] sm:$0xff] %v1700_v0  ;;  %1703 = vst [vmem:[%s1681_s29 + $0x20] sm:$0xff] %v1702_v1 }
 0x1d5   : > { %1705 = vst [vmem:[%s1681_s29 + $0x28] sm:$0xff] %v1704_v2  ;;  %1711 = vst [vmem:[%s1681_s29 + $0x70] sm:$0xff] %v1710_v5  ;;  %v1712_v6 = vld [vmem:[%s2781_s21 + $0x48] sm:$0xff]  ;;  %v1714_v7 = vld [vmem:[%s2781_s21 + $0x50] sm:$0xff] }
 0x1d6   : > { %v1716_v8 = vld [vmem:[%s2781_s21 + $0x58] sm:$0xff]  ;;  %1713 = vst [vmem:[%s1681_s29 + $0x78] sm:$0xff] %v1712_v6  ;;  %1715 = vst [vmem:[%s1681_s29 + $0x80] sm:$0xff] %v1714_v7 }
 0x1d7   : > { %1717 = vst [vmem:[%s1681_s29 + $0x88] sm:$0xff] %v1716_v8 }
 0x1d8 PF: > { %p13_p10 = scmp.ge.s32.totalorder %s2463_s17, 4   ;;  %s2834_s12 = smov %s2407_s13 }
 0x1d9   : > { %s2835_s13 = smov %s2411_s14  ;;  %s2836_s14 = smov %s2473_s20 }
 0x1da   : > { %s2837_s15 = smov %s2463_s17  ;;  %15 = sbr.rel (!%p13_p10) target bundleno = 3 (0x3), region = 98 }
 0x1e1   :  { %1733 = vsyncpa [#allocation3], 1 }
 0x1e2   :  { %1735 = vsyncpa [#allocation3 + $0x1], 1 }

// kernel: transformer_forward.39
= control target key start
LH: loop header
LB: loop body
LE: loop exit
PB: predicated region body
PF: predicated region fallthrough
CT: control target
= control target key end

     0   :  { %s1323_s12 = smov 0   ;;  %s1325_s13 = smov 0   ;;  %s1613_s0 = inlined_call_operand.vmem [shape: f32[16,512], index: 0, kind: input, shape index: {}]   ;;  %s1614_s1 = inlined_call_operand.vmem [shape: bf16[512,512], index: 1, kind: input, shape index: {}]   ;;  %s1615_s2 = inlined_call_operand.vmem [shape: f32[1,512], index: 2, kind: input, shape index: {}]   ;;  %s1616_s3 = inlined_call_operand.vmem [shape: f32[16,512], index: 3, kind: output, shape index: {}]  }
   0x1   :  { %s1327_s14 = smov 0  }
   0x2 LB: > { %s1339_s15 = sadd.s32 4294967295, %s1301_s14   ;;  %s1342_s16 = sadd.s32 1, %s1301_s14   ;;  %s1301_s14 = sphi %s1327_s14, %s1620_s14   ;;  %s1297_s13 = sphi %s1325_s13, %s1619_s13   ;;  %s1293_s12 = sphi %s1323_s12, %s1618_s12  }
   0x3   : > { %s38_s17 = ssub.s32 %s1301_s14, %s1342_s16  ;;  %s41_s18 = sadd.s32 1, %s1297_s13 }
   0x4   : > { %p39_p0 = scmp.eq.s32.totalorder %s38_s17, 0  ;;  %p48_p1 = scmp.ne.s32.totalorder %s1297_s13, %s1293_s12 }
   0x5   : > { %p49_p2 = scmp.eq.s32.totalorder %s1301_s14, 0  ;;  %p104_p3 = scmp.eq.s32.totalorder %s1339_s15, 1 }
   0x6   : > { %s1352_s19 = scalar_select %p39_p0, %s1297_s13, %s41_s18  }
   0x7   : > { %p50_p4 = por %p49_p2, %p48_p1  ;;  %p1354_p5 = por %p104_p3, %p48_p1 }
   0x8   : > { %p1072_p6 = scmp.ge.s32.totalorder %s1301_s14, 2 }
   0xa   : > { %129 = sbr.rel (%p1072_p6) target bundleno = 53 (0x35), region = 20 }
  0x11   : > { %132 = sbr.rel (!%p50_p4) target bundleno = 53 (0x35), region = 24  ;;  %s134_s21 = sand.u32 (%p50_p4), 1, %s1297_s13  }
  0x12   : > { %s1149_s22 = sshll.u32 (%p50_p4), %s1301_s14, 3  ;;  %s1073_s23 = sshll.u32 (%p50_p4), %s134_s21, 9 }
  0x13   : > { %s1364_s26 = scalar_lea.vmem (%p50_p4), %s1614_s1, %s1149_s22  ;;  %s1369_s27 = scalar_lea.vmem (%p50_p4), [#allocation2], %s1073_s23 }
  0x14   : > { %v293_v0 = vld [vmem:[%s1364_s26] sm:$0xff] (%p50_p4)  ;;  %v295_v1 = vld [vmem:[%s1364_s26 + $0x10] sm:$0xff] (%p50_p4) }
  0x15   : > { %v297_v2 = vld [vmem:[%s1364_s26 + $0x20] sm:$0xff] (%p50_p4)  ;;  %294 = vst [vmem:[%s1369_s27] sm:$0xff] (%p50_p4), %v293_v0  ;;  %296 = vst [vmem:[%s1369_s27 + $0x8] sm:$0xff] (%p50_p4), %v295_v1  ;;  %v299_v3 = vld [vmem:[%s1364_s26 + $0x30] sm:$0xff] (%p50_p4) }
  0x16   : > { %298 = vst [vmem:[%s1369_s27 + $0x10] sm:$0xff] (%p50_p4), %v297_v2  ;;  %v301_v4 = vld [vmem:[%s1364_s26 + $0x40] sm:$0xff] (%p50_p4)  ;;  %v303_v5 = vld [vmem:[%s1364_s26 + $0x50] sm:$0xff] (%p50_p4)  ;;  %300 = vst [vmem:[%s1369_s27 + $0x18] sm:$0xff] (%p50_p4), %v299_v3 }
  0x17   : > { %302 = vst [vmem:[%s1369_s27 + $0x20] sm:$0xff] (%p50_p4), %v301_v4  ;;  %304 = vst [vmem:[%s1369_s27 + $0x28] sm:$0xff] (%p50_p4), %v303_v5  ;;  %v305_v6 = vld [vmem:[%s1364_s26 + $0x60] sm:$0xff] (%p50_p4)  ;;  %v307_v7 = vld [vmem:[%s1364_s26 + $0x70] sm:$0xff] (%p50_p4) }
  0x18   : > { %v309_v8 = vld [vmem:[%s1364_s26 + $0x80] sm:$0xff]  ;;  %306 = vst [vmem:[%s1369_s27 + $0x30] sm:$0xff] %v305_v6  ;;  %308 = vst [vmem:[%s1369_s27 + $0x38] sm:$0xff] %v307_v7  ;;  %v311_v9 = vld [vmem:[%s1364_s26 + $0x90] sm:$0xff] }
  0x19   : > { %310 = vst [vmem:[%s1369_s27 + $0x40] sm:$0xff] %v309_v8  ;;  %v313_v10 = vld [vmem:[%s1364_s26 + $0xa0] sm:$0xff]  ;;  %v315_v11 = vld [vmem:[%s1364_s26 + $0xb0] sm:$0xff]  ;;  %312 = vst [vmem:[%s1369_s27 + $0x48] sm:$0xff] %v311_v9 }
  0x1a   : > { %314 = vst [vmem:[%s1369_s27 + $0x50] sm:$0xff] %v313_v10  ;;  %316 = vst [vmem:[%s1369_s27 + $0x58] sm:$0xff] %v315_v11  ;;  %v317_v12 = vld [vmem:[%s1364_s26 + $0xc0] sm:$0xff]  ;;  %v319_v13 = vld [vmem:[%s1364_s26 + $0xd0] sm:$0xff] }
  0x1b   : > { %v321_v14 = vld [vmem:[%s1364_s26 + $0xe0] sm:$0xff]  ;;  %318 = vst [vmem:[%s1369_s27 + $0x60] sm:$0xff] %v317_v12  ;;  %320 = vst [vmem:[%s1369_s27 + $0x68] sm:$0xff] %v319_v13  ;;  %v323_v15 = vld [vmem:[%s1364_s26 + $0xf0] sm:$0xff] }
  0x1c   : > { %322 = vst [vmem:[%s1369_s27 + $0x70] sm:$0xff] %v321_v14  ;;  %v325_v16 = vld [vmem:[%s1364_s26 + $0x100] sm:$0xff]  ;;  %v327_v17 = vld [vmem:[%s1364_s26 + $0x110] sm:$0xff]  ;;  %324 = vst [vmem:[%s1369_s27 + $0x78] sm:$0xff] %v323_v15 }
  0x1d   : > { %326 = vst [vmem:[%s1369_s27 + $0x80] sm:$0xff] %v325_v16  ;;  %328 = vst [vmem:[%s1369_s27 + $0x88] sm:$0xff] %v327_v17  ;;  %v329_v18 = vld [vmem:[%s1364_s26 + $0x120] sm:$0xff]  ;;  %v331_v19 = vld [vmem:[%s1364_s26 + $0x130] sm:$0xff] }
  0x1e   : > { %v333_v20 = vld [vmem:[%s1364_s26 + $0x140] sm:$0xff]  ;;  %330 = vst [vmem:[%s1369_s27 + $0x90] sm:$0xff] %v329_v18  ;;  %332 = vst [vmem:[%s1369_s27 + $0x98] sm:$0xff] %v331_v19  ;;  %v335_v21 = vld [vmem:[%s1364_s26 + $0x150] sm:$0xff] }
  0x1f   : > { %334 = vst [vmem:[%s1369_s27 + $0xa0] sm:$0xff] %v333_v20  ;;  %v337_v22 = vld [vmem:[%s1364_s26 + $0x160] sm:$0xff]  ;;  %v339_v23 = vld [vmem:[%s1364_s26 + $0x170] sm:$0xff]  ;;  %336 = vst [vmem:[%s1369_s27 + $0xa8] sm:$0xff] %v335_v21 }
  0x20   : > { %338 = vst [vmem:[%s1369_s27 + $0xb0] sm:$0xff] %v337_v22  ;;  %340 = vst [vmem:[%s1369_s27 + $0xb8] sm:$0xff] %v339_v23  ;;  %v341_v24 = vld [vmem:[%s1364_s26 + $0x180] sm:$0xff]  ;;  %v343_v25 = vld [vmem:[%s1364_s26 + $0x190] sm:$0xff] }
  0x21   : > { %v345_v26 = vld [vmem:[%s1364_s26 + $0x1a0] sm:$0xff]  ;;  %342 = vst [vmem:[%s1369_s27 + $0xc0] sm:$0xff] %v341_v24  ;;  %344 = vst [vmem:[%s1369_s27 + $0xc8] sm:$0xff] %v343_v25  ;;  %v347_v27 = vld [vmem:[%s1364_s26 + $0x1b0] sm:$0xff] }
  0x22   : > { %346 = vst [vmem:[%s1369_s27 + $0xd0] sm:$0xff] %v345_v26  ;;  %v349_v28 = vld [vmem:[%s1364_s26 + $0x1c0] sm:$0xff]  ;;  %v351_v29 = vld [vmem:[%s1364_s26 + $0x1d0] sm:$0xff]  ;;  %348 = vst [vmem:[%s1369_s27 + $0xd8] sm:$0xff] %v347_v27 }
  0x23   : > { %350 = vst [vmem:[%s1369_s27 + $0xe0] sm:$0xff] %v349_v28  ;;  %352 = vst [vmem:[%s1369_s27 + $0xe8] sm:$0xff] %v351_v29  ;;  %v353_v30 = vld [vmem:[%s1364_s26 + $0x1e0] sm:$0xff]  ;;  %v355_v31 = vld [vmem:[%s1364_s26 + $0x1f0] sm:$0xff] }
  0x24   : > { %v357_v32 = vld [vmem:[%s1364_s26 + $0x200] sm:$0xff]  ;;  %354 = vst [vmem:[%s1369_s27 + $0xf0] sm:$0xff] %v353_v30  ;;  %356 = vst [vmem:[%s1369_s27 + $0xf8] sm:$0xff] %v355_v31  ;;  %v359_v33 = vld [vmem:[%s1364_s26 + $0x210] sm:$0xff] }
  0x25   : > { %358 = vst [vmem:[%s1369_s27 + $0x100] sm:$0xff] %v357_v32  ;;  %v361_v34 = vld [vmem:[%s1364_s26 + $0x220] sm:$0xff]  ;;  %v363_v35 = vld [vmem:[%s1364_s26 + $0x230] sm:$0xff]  ;;  %360 = vst [vmem:[%s1369_s27 + $0x108] sm:$0xff] %v359_v33 }
  0x26   : > { %362 = vst [vmem:[%s1369_s27 + $0x110] sm:$0xff] %v361_v34  ;;  %364 = vst [vmem:[%s1369_s27 + $0x118] sm:$0xff] %v363_v35  ;;  %v365_v36 = vld [vmem:[%s1364_s26 + $0x240] sm:$0xff]  ;;  %v367_v37 = vld [vmem:[%s1364_s26 + $0x250] sm:$0xff] }
  0x27   : > { %v369_v38 = vld [vmem:[%s1364_s26 + $0x260] sm:$0xff]  ;;  %366 = vst [vmem:[%s1369_s27 + $0x120] sm:$0xff] %v365_v36  ;;  %368 = vst [vmem:[%s1369_s27 + $0x128] sm:$0xff] %v367_v37  ;;  %v371_v39 = vld [vmem:[%s1364_s26 + $0x270] sm:$0xff] }
  0x28   : > { %370 = vst [vmem:[%s1369_s27 + $0x130] sm:$0xff] %v369_v38  ;;  %v373_v40 = vld [vmem:[%s1364_s26 + $0x280] sm:$0xff]  ;;  %v375_v41 = vld [vmem:[%s1364_s26 + $0x290] sm:$0xff]  ;;  %372 = vst [vmem:[%s1369_s27 + $0x138] sm:$0xff] %v371_v39 }
  0x29   : > { %374 = vst [vmem:[%s1369_s27 + $0x140] sm:$0xff] %v373_v40  ;;  %376 = vst [vmem:[%s1369_s27 + $0x148] sm:$0xff] %v375_v41  ;;  %v377_v42 = vld [vmem:[%s1364_s26 + $0x2a0] sm:$0xff]  ;;  %v379_v43 = vld [vmem:[%s1364_s26 + $0x2b0] sm:$0xff] }
  0x2a   : > { %v381_v44 = vld [vmem:[%s1364_s26 + $0x2c0] sm:$0xff]  ;;  %378 = vst [vmem:[%s1369_s27 + $0x150] sm:$0xff] %v377_v42  ;;  %380 = vst [vmem:[%s1369_s27 + $0x158] sm:$0xff] %v379_v43  ;;  %v383_v45 = vld [vmem:[%s1364_s26 + $0x2d0] sm:$0xff] }
  0x2b   : > { %382 = vst [vmem:[%s1369_s27 + $0x160] sm:$0xff] %v381_v44  ;;  %v385_v46 = vld [vmem:[%s1364_s26 + $0x2e0] sm:$0xff]  ;;  %v387_v47 = vld [vmem:[%s1364_s26 + $0x2f0] sm:$0xff]  ;;  %384 = vst [vmem:[%s1369_s27 + $0x168] sm:$0xff] %v383_v45 }
  0x2c   : > { %386 = vst [vmem:[%s1369_s27 + $0x170] sm:$0xff] %v385_v46  ;;  %388 = vst [vmem:[%s1369_s27 + $0x178] sm:$0xff] %v387_v47  ;;  %v389_v48 = vld [vmem:[%s1364_s26 + $0x300] sm:$0xff]  ;;  %v391_v49 = vld [vmem:[%s1364_s26 + $0x310] sm:$0xff] }
  0x2d   : > { %v393_v50 = vld [vmem:[%s1364_s26 + $0x320] sm:$0xff]  ;;  %390 = vst [vmem:[%s1369_s27 + $0x180] sm:$0xff] %v389_v48  ;;  %392 = vst [vmem:[%s1369_s27 + $0x188] sm:$0xff] %v391_v49  ;;  %v395_v51 = vld [vmem:[%s1364_s26 + $0x330] sm:$0xff] }
  0x2e   : > { %394 = vst [vmem:[%s1369_s27 + $0x190] sm:$0xff] %v393_v50  ;;  %v397_v52 = vld [vmem:[%s1364_s26 + $0x340] sm:$0xff]  ;;  %v399_v53 = vld [vmem:[%s1364_s26 + $0x350] sm:$0xff]  ;;  %396 = vst [vmem:[%s1369_s27 + $0x198] sm:$0xff] %v395_v51 }
  0x2f   : > { %398 = vst [vmem:[%s1369_s27 + $0x1a0] sm:$0xff] %v397_v52  ;;  %400 = vst [vmem:[%s1369_s27 + $0x1a8] sm:$0xff] %v399_v53  ;;  %v401_v54 = vld [vmem:[%s1364_s26 + $0x360] sm:$0xff]  ;;  %v403_v55 = vld [vmem:[%s1364_s26 + $0x370] sm:$0xff] }
  0x30   : > { %v405_v56 = vld [vmem:[%s1364_s26 + $0x380] sm:$0xff]  ;;  %402 = vst [vmem:[%s1369_s27 + $0x1b0] sm:$0xff] %v401_v54  ;;  %404 = vst [vmem:[%s1369_s27 + $0x1b8] sm:$0xff] %v403_v55  ;;  %v407_v57 = vld [vmem:[%s1364_s26 + $0x390] sm:$0xff] }
  0x31   : > { %406 = vst [vmem:[%s1369_s27 + $0x1c0] sm:$0xff] %v405_v56  ;;  %v409_v58 = vld [vmem:[%s1364_s26 + $0x3a0] sm:$0xff]  ;;  %v411_v59 = vld [vmem:[%s1364_s26 + $0x3b0] sm:$0xff]  ;;  %408 = vst [vmem:[%s1369_s27 + $0x1c8] sm:$0xff] %v407_v57 }
  0x32   : > { %410 = vst [vmem:[%s1369_s27 + $0x1d0] sm:$0xff] %v409_v58  ;;  %412 = vst [vmem:[%s1369_s27 + $0x1d8] sm:$0xff] %v411_v59  ;;  %v413_v60 = vld [vmem:[%s1364_s26 + $0x3c0] sm:$0xff]  ;;  %v415_v61 = vld [vmem:[%s1364_s26 + $0x3d0] sm:$0xff] }
  0x33   : > { %v417_v62 = vld [vmem:[%s1364_s26 + $0x3e0] sm:$0xff]  ;;  %414 = vst [vmem:[%s1369_s27 + $0x1e0] sm:$0xff] %v413_v60  ;;  %416 = vst [vmem:[%s1369_s27 + $0x1e8] sm:$0xff] %v415_v61  ;;  %v419_v63 = vld [vmem:[%s1364_s26 + $0x3f0] sm:$0xff] }
  0x34   : > { %418 = vst [vmem:[%s1369_s27 + $0x1f0] sm:$0xff] %v417_v62  ;;  %420 = vst [vmem:[%s1369_s27 + $0x1f8] sm:$0xff] %v419_v63 }
  0x35 PF: > { %p1076_p7 = scmp.ge.s32.totalorder %s1301_s14, 1  ;;  %p433_p8 = scmp.lt.s32.totalorder %s1301_s14, 3 }
  0x37   : > { %p434_p9 = pnand %p1076_p7, %p433_p8 }
  0x38   : > { %s440_s28 = sand.u32 (!%p434_p9), 1, %s1293_s12   ;;  %v474_v0 = vld [vmem:[%s1613_s0 + $0x8] sm:$0xff] (!%p434_p9)  ;;  %v476_v2 = vld [vmem:[%s1613_s0 + $0x18] sm:$0xff] (!%p434_p9)  ;;  %s1079_s26 = sshll.u32 (!%p434_p9), %s1339_s15, 1 }
  0x39   : > { %437 = sbr.rel (%p434_p9) target bundleno = 353 (0x161), region = 66  ;;  %v478_v1 = vld [vmem:[%s1613_s0 + $0x28] sm:$0xff] (!%p434_p9)  ;;  %s1077_s8 = sshll.u32 (!%p434_p9), %s440_s28, 9  ;;  %v480_v4 = vld [vmem:[%s1613_s0 + $0x38] sm:$0xff] (!%p434_p9) }
  0x3a   : > { %v482_v3 = vpack.c.bf16 (!%p434_p9), %v478_v1, %v474_v0  ;;  %v484_v5 = vpack.c.bf16 (!%p434_p9), %v480_v4, %v476_v2  ;;  %s1513_s11 = scalar_lea.vmem (!%p434_p9), [#allocation2], %s1077_s8  ;;  %v473_v4 = vld [vmem:[%s1613_s0] sm:$0xff] (!%p434_p9)  ;;  %p468_p10 = scmp.lt.s32.totalorder (!%p434_p9), %s1079_s26, 3 }
  0x3b   : > { %v1183_v6 = vld [vmem:[%s1513_s11 + $0x4] ss:$8 sps:$4 sm:$0xff] (!%p434_p9)   ;;  %v1187_v8 = vld [vmem:[%s1513_s11] ss:$8 sps:$4 sm:$0xff] (!%p434_p9)   ;;  %v1189_v10 = vld [vmem:[%s1513_s11 + $0x14] ss:$8 sps:$4 sm:$0xff] (!%p434_p9)  }
  0x3c   : > { %913 = vmatprep.mubr.bf16.mxu1 (!%p434_p9), %v482_v3  ;;  %v1185_v7 = vld [vmem:[%s1513_s11 + $0x104] ss:$8 sps:$4 sm:$0xff] (!%p434_p9)   ;;  %956 = vmatprep.mubr.bf16.mxu0 (!%p434_p9), %v484_v5  ;;  %v1188_v9 = vld [vmem:[%s1513_s11 + $0x100] ss:$8 sps:$4 sm:$0xff] (!%p434_p9)   ;;  %v1191_v11 = vld [vmem:[%s1513_s11 + $0x114] ss:$8 sps:$4 sm:$0xff] (!%p434_p9)  }
  0x3d   : > { %881 = vmatprep.subr.bf16.mxu1 (!%p434_p9), %v1183_v6  ;;  %924 = vmatprep.subr.bf16.mxu0 (!%p434_p9), %v1185_v7  ;;  %v1193_v12 = vld [vmem:[%s1513_s11 + $0x10] ss:$8 sps:$4 sm:$0xff] (!%p434_p9)   ;;  %v1195_v14 = vld [vmem:[%s1513_s11 + $0x24] ss:$8 sps:$4 sm:$0xff] (!%p434_p9)   ;;  %v1199_v16 = vld [vmem:[%s1513_s11 + $0x20] ss:$8 sps:$4 sm:$0xff] (!%p434_p9)  }
  0x3e   : > { %882 = vmatpush1.bf16.msra.mxu1 (!%p434_p9), %v1187_v8  ;;  %925 = vmatpush1.bf16.msra.mxu0 (!%p434_p9), %v1188_v9  ;;  %v1194_v13 = vld [vmem:[%s1513_s11 + $0x110] ss:$8 sps:$4 sm:$0xff] (!%p434_p9)   ;;  %v1197_v15 = vld [vmem:[%s1513_s11 + $0x124] ss:$8 sps:$4 sm:$0xff] (!%p434_p9)   ;;  %v1200_v17 = vld [vmem:[%s1513_s11 + $0x120] ss:$8 sps:$4 sm:$0xff] (!%p434_p9)  }
  0x3f   : > { %883 = vmatprep.subr.bf16.mxu1 (!%p434_p9), %v1189_v10  ;;  %926 = vmatprep.subr.bf16.mxu0 (!%p434_p9), %v1191_v11  ;;  %v1201_v18 = vld [vmem:[%s1513_s11 + $0x34] ss:$8 sps:$4 sm:$0xff] (!%p434_p9)   ;;  %v1205_v20 = vld [vmem:[%s1513_s11 + $0x30] ss:$8 sps:$4 sm:$0xff] (!%p434_p9)   ;;  %v1207_v22 = vld [vmem:[%s1513_s11 + $0x44] ss:$8 sps:$4 sm:$0xff] (!%p434_p9)  }
  0x40   : > { %v1203_v19 = vld [vmem:[%s1513_s11 + $0x134] ss:$8 sps:$4 sm:$0xff]   ;;  %v1206_v21 = vld [vmem:[%s1513_s11 + $0x130] ss:$8 sps:$4 sm:$0xff]   ;;  %v1209_v23 = vld [vmem:[%s1513_s11 + $0x144] ss:$8 sps:$4 sm:$0xff]  }
  0x41   : > { %v1211_v24 = vld [vmem:[%s1513_s11 + $0x40] ss:$8 sps:$4 sm:$0xff]   ;;  %v1213_v26 = vld [vmem:[%s1513_s11 + $0x54] ss:$8 sps:$4 sm:$0xff]   ;;  %v1217_v28 = vld [vmem:[%s1513_s11 + $0x50] ss:$8 sps:$4 sm:$0xff]  }
  0x42   : > { %884 = vmatpush1.bf16.msra.mxu1 %v1193_v12  ;;  %927 = vmatpush1.bf16.msra.mxu0 %v1194_v13  ;;  %v1212_v25 = vld [vmem:[%s1513_s11 + $0x140] ss:$8 sps:$4 sm:$0xff]   ;;  %v1215_v27 = vld [vmem:[%s1513_s11 + $0x154] ss:$8 sps:$4 sm:$0xff]   ;;  %v1218_v29 = vld [vmem:[%s1513_s11 + $0x150] ss:$8 sps:$4 sm:$0xff]   ;;  %v551_v12 = vlaneseq }
  0x43   : > { %885 = vmatprep.subr.bf16.mxu1 %v1195_v14  ;;  %928 = vmatprep.subr.bf16.mxu0 %v1197_v15  ;;  %v1219_v30 = vld [vmem:[%s1513_s11 + $0x64] ss:$8 sps:$4 sm:$0xff]   ;;  %v1223_v32 = vld [vmem:[%s1513_s11 + $0x60] ss:$8 sps:$4 sm:$0xff]   ;;  %v1225_v34 = vld [vmem:[%s1513_s11 + $0x74] ss:$8 sps:$4 sm:$0xff]  }
  0x44   : > { %v1221_v31 = vld [vmem:[%s1513_s11 + $0x164] ss:$8 sps:$4 sm:$0xff]   ;;  %v1224_v33 = vld [vmem:[%s1513_s11 + $0x160] ss:$8 sps:$4 sm:$0xff]   ;;  %v1227_v35 = vld [vmem:[%s1513_s11 + $0x174] ss:$8 sps:$4 sm:$0xff]  }
  0x45   : > { %v1229_v36 = vld [vmem:[%s1513_s11 + $0x70] ss:$8 sps:$4 sm:$0xff]   ;;  %v1231_v38 = vld [vmem:[%s1513_s11 + $0x84] ss:$8 sps:$4 sm:$0xff]   ;;  %v1235_v40 = vld [vmem:[%s1513_s11 + $0x80] ss:$8 sps:$4 sm:$0xff]  }
  0x46   : > { %886 = vmatpush1.bf16.msra.mxu1 %v1199_v16  ;;  %929 = vmatpush1.bf16.msra.mxu0 %v1200_v17  ;;  %v1230_v37 = vld [vmem:[%s1513_s11 + $0x170] ss:$8 sps:$4 sm:$0xff]   ;;  %v1233_v39 = vld [vmem:[%s1513_s11 + $0x184] ss:$8 sps:$4 sm:$0xff]   ;;  %v1236_v41 = vld [vmem:[%s1513_s11 + $0x180] ss:$8 sps:$4 sm:$0xff]  }
  0x47   : > { %887 = vmatprep.subr.bf16.mxu1 %v1201_v18  ;;  %930 = vmatprep.subr.bf16.mxu0 %v1203_v19  ;;  %v1237_v42 = vld [vmem:[%s1513_s11 + $0x94] ss:$8 sps:$4 sm:$0xff]   ;;  %v1241_v44 = vld [vmem:[%s1513_s11 + $0x90] ss:$8 sps:$4 sm:$0xff]   ;;  %v1243_v46 = vld [vmem:[%s1513_s11 + $0xa4] ss:$8 sps:$4 sm:$0xff]  }
  0x48   : > { %v1239_v43 = vld [vmem:[%s1513_s11 + $0x194] ss:$8 sps:$4 sm:$0xff]   ;;  %v1242_v45 = vld [vmem:[%s1513_s11 + $0x190] ss:$8 sps:$4 sm:$0xff]   ;;  %v1245_v47 = vld [vmem:[%s1513_s11 + $0x1a4] ss:$8 sps:$4 sm:$0xff]  }
  0x49   : > { %v1247_v48 = vld [vmem:[%s1513_s11 + $0xa0] ss:$8 sps:$4 sm:$0xff]   ;;  %v1249_v50 = vld [vmem:[%s1513_s11 + $0xb4] ss:$8 sps:$4 sm:$0xff]   ;;  %v1253_v52 = vld [vmem:[%s1513_s11 + $0xb0] ss:$8 sps:$4 sm:$0xff]  }
  0x4a   : > { %888 = vmatpush1.bf16.msra.mxu1 %v1205_v20  ;;  %931 = vmatpush1.bf16.msra.mxu0 %v1206_v21  ;;  %v1248_v49 = vld [vmem:[%s1513_s11 + $0x1a0] ss:$8 sps:$4 sm:$0xff]   ;;  %v1251_v51 = vld [vmem:[%s1513_s11 + $0x1b4] ss:$8 sps:$4 sm:$0xff]   ;;  %v1254_v53 = vld [vmem:[%s1513_s11 + $0x1b0] ss:$8 sps:$4 sm:$0xff]  }
  0x4b   : > { %889 = vmatprep.subr.bf16.mxu1 %v1207_v22  ;;  %932 = vmatprep.subr.bf16.mxu0 %v1209_v23  ;;  %v1255_v54 = vld [vmem:[%s1513_s11 + $0xc4] ss:$8 sps:$4 sm:$0xff]   ;;  %v1259_v56 = vld [vmem:[%s1513_s11 + $0xc0] ss:$8 sps:$4 sm:$0xff]   ;;  %v1261_v58 = vld [vmem:[%s1513_s11 + $0xd4] ss:$8 sps:$4 sm:$0xff]  }
  0x4c   : > { %v1257_v55 = vld [vmem:[%s1513_s11 + $0x1c4] ss:$8 sps:$4 sm:$0xff]   ;;  %v1260_v57 = vld [vmem:[%s1513_s11 + $0x1c0] ss:$8 sps:$4 sm:$0xff]   ;;  %v1263_v59 = vld [vmem:[%s1513_s11 + $0x1d4] ss:$8 sps:$4 sm:$0xff]  }
  0x4d   : > { %v1265_v60 = vld [vmem:[%s1513_s11 + $0xd0] ss:$8 sps:$4 sm:$0xff]   ;;  %v1267_v62 = vld [vmem:[%s1513_s11 + $0xe4] ss:$8 sps:$4 sm:$0xff]   ;;  %v1271_v0 = vld [vmem:[%s1513_s11 + $0xe0] ss:$8 sps:$4 sm:$0xff]  }
  0x4e   : > { %890 = vmatpush1.bf16.msra.mxu1 %v1211_v24  ;;  %933 = vmatpush1.bf16.msra.mxu0 %v1212_v25  ;;  %v1266_v61 = vld [vmem:[%s1513_s11 + $0x1d0] ss:$8 sps:$4 sm:$0xff]   ;;  %v1269_v63 = vld [vmem:[%s1513_s11 + $0x1e4] ss:$8 sps:$4 sm:$0xff]   ;;  %v1272_v1 = vld [vmem:[%s1513_s11 + $0x1e0] ss:$8 sps:$4 sm:$0xff]  }
  0x4f   : > { %891 = vmatprep.subr.bf16.mxu1 %v1213_v26  ;;  %934 = vmatprep.subr.bf16.mxu0 %v1215_v27  ;;  %v1273_v2 = vld [vmem:[%s1513_s11 + $0xf4] ss:$8 sps:$4 sm:$0xff]   ;;  %v477_v5 = vld [vmem:[%s1613_s0 + $0x20] sm:$0xff]  ;;  %v1277_v7 = vld [vmem:[%s1513_s11 + $0xf0] ss:$8 sps:$4 sm:$0xff]   ;;  %s1622_s26 = smov (!%p468_p10, %s1079_s26), 3 }
  0x50   : > { %v1275_v3 = vld [vmem:[%s1513_s11 + $0x1f4] ss:$8 sps:$4 sm:$0xff]   ;;  %v1278_v8 = vld [vmem:[%s1513_s11 + $0x1f0] ss:$8 sps:$4 sm:$0xff]   ;;  %v481_v10 = vpack.c.bf16 %v477_v5, %v473_v4  ;;  %v552_v13 = vshrl.u32 %v551_v12, 7  ;;  %s470_s30 = scalar_lea.vmem %s1615_s2, %s1622_s26  ;;  %s1078_s4 = sshll.u32 %s440_s28, 5 }
  0x51   : > { %v475_v6 = vld [vmem:[%s1613_s0 + $0x10] sm:$0xff]  ;;  %v549_v15 = vld [vmem:[%s470_s30] sm:$0x3]  ;;  %s465_s5 = scalar_lea.vmem [#allocation3], %s1078_s4  ;;  %s1150_s12 = sshll.u32 (%p1354_p5), %s1339_s15, 4 }
  0x52   : > { %892 = vmatpush1.bf16.msra.mxu1 %v1217_v28  ;;  %935 = vmatpush1.bf16.msra.mxu0 %v1218_v29  ;;  %v479_v9 = vld [vmem:[%s1613_s0 + $0x30] sm:$0xff]  ;;  %v553_v14 = vsub.s32 0, %v552_v13  ;;  %v557_v16 = vsub.s32 1, %v552_v13  ;;  %s980_s7 = scalar_lea.vmem (%p1354_p5), %s1616_s3, %s1150_s12 }
  0x53   : > { %893 = vmatprep.subr.bf16.mxu1 %v1219_v30  ;;  %936 = vmatprep.subr.bf16.mxu0 %v1221_v31  ;;  %v483_v11 = vpack.c.bf16 %v479_v9, %v475_v6 }
  0x54   : > { %v554_v17 = vrot.slane %v549_v15, %v553_v14  ;;  %v558_v18 = vrot.slane %v549_v15, %v557_v16 }
  0x56   : > { %894 = vmatpush1.bf16.msra.mxu1 %v1223_v32  ;;  %937 = vmatpush1.bf16.msra.mxu0 %v1224_v33 }
  0x57   : > { %895 = vmatprep.subr.bf16.mxu1 %v1225_v34  ;;  %938 = vmatprep.subr.bf16.mxu0 %v1227_v35 }
  0x5a   : > { %896 = vmatpush1.bf16.msra.mxu1 %v1229_v36  ;;  %939 = vmatpush1.bf16.msra.mxu0 %v1230_v37 }
  0x5b   : > { %897 = vmatprep.subr.bf16.mxu1 %v1231_v38  ;;  %940 = vmatprep.subr.bf16.mxu0 %v1233_v39 }
  0x5e   : > { %898 = vmatpush1.bf16.msra.mxu1 %v1235_v40  ;;  %941 = vmatpush1.bf16.msra.mxu0 %v1236_v41 }
  0x5f   : > { %899 = vmatprep.subr.bf16.mxu1 %v1237_v42  ;;  %942 = vmatprep.subr.bf16.mxu0 %v1239_v43 }
  0x62   : > { %900 = vmatpush1.bf16.msra.mxu1 %v1241_v44  ;;  %943 = vmatpush1.bf16.msra.mxu0 %v1242_v45 }
  0x63   : > { %901 = vmatprep.subr.bf16.mxu1 %v1243_v46  ;;  %944 = vmatprep.subr.bf16.mxu0 %v1245_v47 }
  0x66   : > { %902 = vmatpush1.bf16.msra.mxu1 %v1247_v48  ;;  %945 = vmatpush1.bf16.msra.mxu0 %v1248_v49 }
  0x67   : > { %903 = vmatprep.subr.bf16.mxu1 %v1249_v50  ;;  %946 = vmatprep.subr.bf16.mxu0 %v1251_v51 }
  0x6a   : > { %904 = vmatpush1.bf16.msra.mxu1 %v1253_v52  ;;  %947 = vmatpush1.bf16.msra.mxu0 %v1254_v53 }
  0x6b   : > { %905 = vmatprep.subr.bf16.mxu1 %v1255_v54  ;;  %948 = vmatprep.subr.bf16.mxu0 %v1257_v55 }
  0x6e   : > { %906 = vmatpush1.bf16.msra.mxu1 %v1259_v56  ;;  %949 = vmatpush1.bf16.msra.mxu0 %v1260_v57 }
  0x6f   : > { %907 = vmatprep.subr.bf16.mxu1 %v1261_v58  ;;  %950 = vmatprep.subr.bf16.mxu0 %v1263_v59 }
  0x72   : > { %908 = vmatpush1.bf16.msra.mxu1 %v1265_v60  ;;  %951 = vmatpush1.bf16.msra.mxu0 %v1266_v61 }
  0x73   : > { %909 = vmatprep.subr.bf16.mxu1 %v1267_v62  ;;  %952 = vmatprep.subr.bf16.mxu0 %v1269_v63 }
  0x76   : > { %910 = vmatpush1.bf16.msra.mxu1 %v1271_v0  ;;  %953 = vmatpush1.bf16.msra.mxu0 %v1272_v1 }
  0x77   : > { %911 = vmatprep.subr.bf16.mxu1 %v1273_v2  ;;  %954 = vmatprep.subr.bf16.mxu0 %v1275_v3 }
  0x7a   : > { %912 = vmatpush1.bf16.msra.mxu1 %v1277_v7  ;;  %955 = vmatpush1.bf16.msra.mxu0 %v1278_v8 }
  0x7d   : > { %914 = vmatmul.mubr.bf16.vlgmr.msra.gmra.mrb[0].mxu1 %v481_v10  ;;  %957 = vmatmul.mubr.bf16.vlgmr.msra.gmra.mrb[0].mxu0 %v483_v11 }
 0x150   : > { %v915_v19 = vpop.f32.mrb[0].mxu1  ;;  %v958_v20 = vpop.f32.mrb[0].mxu0 }
 0x151   : > { %v916_v21 = vadd.f32 %v915_v19, %v554_v17  ;;  %v917_v22 = vpop.f32.mrb[1].mxu1  ;;  %v960_v23 = vpop.f32.mrb[1].mxu0 }
 0x152   : > { %v918_v24 = vadd.f32 %v917_v22, %v558_v18  ;;  %v919_v25 = vpop.f32.mrb[2].mxu1  ;;  %v962_v26 = vpop.f32.mrb[2].mxu0  ;;  %977 = sbr.rel (!%p1354_p5) target bundleno = 353 (0x161), region = 74 }
 0x153   : > { %v959_v27 = vadd.f32 %v958_v20, %v916_v21  ;;  %v920_v28 = vadd.f32 %v919_v25, %v554_v17  ;;  %v921_v29 = vpop.f32.mrb[3].mxu1  ;;  %v964_v30 = vpop.f32.mrb[3].mxu0 }
 0x154   : > { %v961_v31 = vadd.f32 %v960_v23, %v918_v24  ;;  %v922_v32 = vadd.f32 %v921_v29, %v558_v18 }
 0x155   : > { %967 = vst [vmem:[%s465_s5] sm:$0xff] %v959_v27  ;;  %v963_v33 = vadd.f32 %v962_v26, %v920_v28 }
 0x156   : > { %968 = vst [vmem:[%s465_s5 + $0x8] sm:$0xff] %v961_v31  ;;  %v965_v34 = vadd.f32 %v964_v30, %v922_v32 }
 0x157   : > { %969 = vst [vmem:[%s465_s5 + $0x10] sm:$0xff] %v963_v33 }
 0x158   : > { %970 = vst [vmem:[%s465_s5 + $0x18] sm:$0xff] %v965_v34 }
 0x15c   : > { %v993_v35 = vld [vmem:[%s465_s5] sm:$0xff] }
 0x15d   : > { %v995_v36 = vld [vmem:[%s465_s5 + $0x8] sm:$0xff]  ;;  %994 = vst [vmem:[%s980_s7] sm:$0xff] %v993_v35 }
 0x15e   : > { %v997_v37 = vld [vmem:[%s465_s5 + $0x10] sm:$0xff]  ;;  %996 = vst [vmem:[%s980_s7 + $0x8] sm:$0xff] %v995_v36 }
 0x15f   : > { %v999_v38 = vld [vmem:[%s465_s5 + $0x18] sm:$0xff]  ;;  %998 = vst [vmem:[%s980_s7 + $0x20] sm:$0xff] %v997_v37 }
 0x160   : > { %1000 = vst [vmem:[%s980_s7 + $0x28] sm:$0xff] %v999_v38 }
 0x161 PF: > { %p10_p11 = scmp.ge.s32.totalorder %s1342_s16, 4   ;;  %s1618_s12 = smov %s1297_s13 }
 0x162   : > { %s1619_s13 = smov %s1352_s19  ;;  %s1620_s14 = smov %s1342_s16 }
 0x163   :  { %12 = sbr.rel (!%p10_p11) target bundleno = 2 (0x2), region = 131 }

// kernel: transformer_forward.27
= control target key start
LH: loop header
LB: loop body
LE: loop exit
PB: predicated region body
PF: predicated region fallthrough
CT: control target
= control target key end

     0   :  { %s2754_s12 = smov 0   ;;  %s2756_s13 = smov 0   ;;  %s3474_s0 = inlined_call_operand.vmem [shape: f32[16,512], index: 0, kind: input, shape index: {}]   ;;  %s3475_s1 = inlined_call_operand.vmem [shape: bf16[512,1536], index: 1, kind: input, shape index: {}]   ;;  %s3476_s2 = inlined_call_operand.vmem [shape: f32[1,1536], index: 2, kind: input, shape index: {}]   ;;  %s3477_s3 = inlined_call_operand.vmem [shape: f32[16,1536], index: 3, kind: output, shape index: {}]  }
   0x1   :  { %s2758_s14 = smov 0  }
   0x2 LB: > { %s2770_s15 = sadd.s32 4294967295, %s2732_s14   ;;  %s2773_s16 = sadd.s32 1, %s2732_s14   ;;  %s2732_s14 = sphi %s2758_s14, %s3481_s14   ;;  %s2728_s13 = sphi %s2756_s13, %s3480_s13   ;;  %s2724_s12 = sphi %s2754_s12, %s3479_s12  }
   0x3   : > { %s38_s17 = ssub.s32 %s2732_s14, %s2773_s16  ;;  %s41_s18 = sadd.s32 1, %s2728_s13 }
   0x4   : > { %p39_p0 = scmp.eq.s32.totalorder %s38_s17, 0  ;;  %p48_p1 = scmp.ne.s32.totalorder %s2728_s13, %s2724_s12 }
   0x5   : > { %p49_p2 = scmp.eq.s32.totalorder %s2732_s14, 0  ;;  %p104_p3 = scmp.eq.s32.totalorder %s2770_s15, 1 }
   0x6   : > { %s2783_s19 = scalar_select %p39_p0, %s2728_s13, %s41_s18  }
   0x7   : > { %p50_p4 = por %p49_p2, %p48_p1  ;;  %p2785_p5 = por %p104_p3, %p48_p1 }
   0x8   : > { %p2171_p6 = scmp.ge.s32.totalorder %s2732_s14, 2 }
   0xa   : > { %129 = sbr.rel (%p2171_p6) target bundleno = 118 (0x76), region = 20 }
  0x11   : > { %132 = sbr.rel (!%p50_p4) target bundleno = 118 (0x76), region = 24  ;;  %s134_s21 = sand.u32 (%p50_p4), 1, %s2728_s13  }
  0x12   : > { %s2369_s22 = smul.u32 (%p50_p4), 24, %s2732_s14 }
  0x13   : > { %s2395_s23 = smul.u32 (%p50_p4), 1536, %s134_s21 }
  0x14   : > { %s2795_s26 = scalar_lea.vmem (%p50_p4), %s3475_s1, %s2369_s22 }
  0x15   : > { %v152_v0 = vld [vmem:[%s2795_s26] sm:$0xff] (%p50_p4)  ;;  %v154_v1 = vld [vmem:[%s2795_s26 + $0x8] sm:$0xff] (%p50_p4)  ;;  %v156_v2 = vld [vmem:[%s2795_s26 + $0x10] sm:$0xff] (%p50_p4)  ;;  %s2800_s27 = scalar_lea.vmem (%p50_p4), [#allocation2], %s2395_s23 }
  0x16   : > { %153 = vst [vmem:[%s2800_s27] sm:$0xff] (%p50_p4), %v152_v0  ;;  %155 = vst [vmem:[%s2800_s27 + $0x8] sm:$0xff] (%p50_p4), %v154_v1  ;;  %v158_v3 = vld [vmem:[%s2795_s26 + $0x30] sm:$0xff] (%p50_p4)  ;;  %v160_v4 = vld [vmem:[%s2795_s26 + $0x38] sm:$0xff] (%p50_p4) }
  0x17   : > { %157 = vst [vmem:[%s2800_s27 + $0x10] sm:$0xff] (%p50_p4), %v156_v2  ;;  %v162_v5 = vld [vmem:[%s2795_s26 + $0x40] sm:$0xff] (%p50_p4)  ;;  %159 = vst [vmem:[%s2800_s27 + $0x18] sm:$0xff] (%p50_p4), %v158_v3  ;;  %v166_v7 = vld [vmem:[%s2795_s26 + $0x68] sm:$0xff] (%p50_p4) }
  0x18   : > { %161 = vst [vmem:[%s2800_s27 + $0x20] sm:$0xff] %v160_v4  ;;  %163 = vst [vmem:[%s2800_s27 + $0x28] sm:$0xff] %v162_v5  ;;  %v164_v6 = vld [vmem:[%s2795_s26 + $0x60] sm:$0xff]  ;;  %v168_v8 = vld [vmem:[%s2795_s26 + $0x70] sm:$0xff] }
  0x19   : > { %165 = vst [vmem:[%s2800_s27 + $0x30] sm:$0xff] %v164_v6  ;;  %167 = vst [vmem:[%s2800_s27 + $0x38] sm:$0xff] %v166_v7  ;;  %v170_v9 = vld [vmem:[%s2795_s26 + $0x90] sm:$0xff]  ;;  %v172_v10 = vld [vmem:[%s2795_s26 + $0x98] sm:$0xff] }
  0x1a   : > { %169 = vst [vmem:[%s2800_s27 + $0x40] sm:$0xff] %v168_v8  ;;  %v174_v11 = vld [vmem:[%s2795_s26 + $0xa0] sm:$0xff]  ;;  %171 = vst [vmem:[%s2800_s27 + $0x48] sm:$0xff] %v170_v9  ;;  %v178_v13 = vld [vmem:[%s2795_s26 + $0xc8] sm:$0xff] }
  0x1b   : > { %173 = vst [vmem:[%s2800_s27 + $0x50] sm:$0xff] %v172_v10  ;;  %175 = vst [vmem:[%s2800_s27 + $0x58] sm:$0xff] %v174_v11  ;;  %v176_v12 = vld [vmem:[%s2795_s26 + $0xc0] sm:$0xff]  ;;  %v180_v14 = vld [vmem:[%s2795_s26 + $0xd0] sm:$0xff] }
  0x1c   : > { %177 = vst [vmem:[%s2800_s27 + $0x60] sm:$0xff] %v176_v12  ;;  %179 = vst [vmem:[%s2800_s27 + $0x68] sm:$0xff] %v178_v13  ;;  %v182_v15 = vld [vmem:[%s2795_s26 + $0xf0] sm:$0xff]  ;;  %v184_v16 = vld [vmem:[%s2795_s26 + $0xf8] sm:$0xff] }
  0x1d   : > { %181 = vst [vmem:[%s2800_s27 + $0x70] sm:$0xff] %v180_v14  ;;  %v186_v17 = vld [vmem:[%s2795_s26 + $0x100] sm:$0xff]  ;;  %183 = vst [vmem:[%s2800_s27 + $0x78] sm:$0xff] %v182_v15  ;;  %v190_v19 = vld [vmem:[%s2795_s26 + $0x128] sm:$0xff] }
  0x1e   : > { %185 = vst [vmem:[%s2800_s27 + $0x80] sm:$0xff] %v184_v16  ;;  %187 = vst [vmem:[%s2800_s27 + $0x88] sm:$0xff] %v186_v17  ;;  %v188_v18 = vld [vmem:[%s2795_s26 + $0x120] sm:$0xff]  ;;  %v192_v20 = vld [vmem:[%s2795_s26 + $0x130] sm:$0xff] }
  0x1f   : > { %189 = vst [vmem:[%s2800_s27 + $0x90] sm:$0xff] %v188_v18  ;;  %191 = vst [vmem:[%s2800_s27 + $0x98] sm:$0xff] %v190_v19  ;;  %v194_v21 = vld [vmem:[%s2795_s26 + $0x150] sm:$0xff]  ;;  %v196_v22 = vld [vmem:[%s2795_s26 + $0x158] sm:$0xff] }
  0x20   : > { %193 = vst [vmem:[%s2800_s27 + $0xa0] sm:$0xff] %v192_v20  ;;  %v198_v23 = vld [vmem:[%s2795_s26 + $0x160] sm:$0xff]  ;;  %195 = vst [vmem:[%s2800_s27 + $0xa8] sm:$0xff] %v194_v21  ;;  %v202_v25 = vld [vmem:[%s2795_s26 + $0x188] sm:$0xff] }
  0x21   : > { %197 = vst [vmem:[%s2800_s27 + $0xb0] sm:$0xff] %v196_v22  ;;  %199 = vst [vmem:[%s2800_s27 + $0xb8] sm:$0xff] %v198_v23  ;;  %v200_v24 = vld [vmem:[%s2795_s26 + $0x180] sm:$0xff]  ;;  %v204_v26 = vld [vmem:[%s2795_s26 + $0x190] sm:$0xff] }
  0x22   : > { %201 = vst [vmem:[%s2800_s27 + $0xc0] sm:$0xff] %v200_v24  ;;  %203 = vst [vmem:[%s2800_s27 + $0xc8] sm:$0xff] %v202_v25  ;;  %v206_v27 = vld [vmem:[%s2795_s26 + $0x1b0] sm:$0xff]  ;;  %v208_v28 = vld [vmem:[%s2795_s26 + $0x1b8] sm:$0xff] }
  0x23   : > { %205 = vst [vmem:[%s2800_s27 + $0xd0] sm:$0xff] %v204_v26  ;;  %v210_v29 = vld [vmem:[%s2795_s26 + $0x1c0] sm:$0xff]  ;;  %207 = vst [vmem:[%s2800_s27 + $0xd8] sm:$0xff] %v206_v27  ;;  %v214_v31 = vld [vmem:[%s2795_s26 + $0x1e8] sm:$0xff] }
  0x24   : > { %209 = vst [vmem:[%s2800_s27 + $0xe0] sm:$0xff] %v208_v28  ;;  %211 = vst [vmem:[%s2800_s27 + $0xe8] sm:$0xff] %v210_v29  ;;  %v212_v30 = vld [vmem:[%s2795_s26 + $0x1e0] sm:$0xff]  ;;  %v216_v32 = vld [vmem:[%s2795_s26 + $0x1f0] sm:$0xff] }
  0x25   : > { %213 = vst [vmem:[%s2800_s27 + $0xf0] sm:$0xff] %v212_v30  ;;  %215 = vst [vmem:[%s2800_s27 + $0xf8] sm:$0xff] %v214_v31  ;;  %v218_v33 = vld [vmem:[%s2795_s26 + $0x210] sm:$0xff]  ;;  %v220_v34 = vld [vmem:[%s2795_s26 + $0x218] sm:$0xff] }
  0x26   : > { %217 = vst [vmem:[%s2800_s27 + $0x100] sm:$0xff] %v216_v32  ;;  %v222_v35 = vld [vmem:[%s2795_s26 + $0x220] sm:$0xff]  ;;  %219 = vst [vmem:[%s2800_s27 + $0x108] sm:$0xff] %v218_v33  ;;  %v226_v37 = vld [vmem:[%s2795_s26 + $0x248] sm:$0xff] }
  0x27   : > { %221 = vst [vmem:[%s2800_s27 + $0x110] sm:$0xff] %v220_v34  ;;  %223 = vst [vmem:[%s2800_s27 + $0x118] sm:$0xff] %v222_v35  ;;  %v224_v36 = vld [vmem:[%s2795_s26 + $0x240] sm:$0xff]  ;;  %v228_v38 = vld [vmem:[%s2795_s26 + $0x250] sm:$0xff] }
  0x28   : > { %225 = vst [vmem:[%s2800_s27 + $0x120] sm:$0xff] %v224_v36  ;;  %227 = vst [vmem:[%s2800_s27 + $0x128] sm:$0xff] %v226_v37  ;;  %v230_v39 = vld [vmem:[%s2795_s26 + $0x270] sm:$0xff]  ;;  %v232_v40 = vld [vmem:[%s2795_s26 + $0x278] sm:$0xff] }
  0x29   : > { %229 = vst [vmem:[%s2800_s27 + $0x130] sm:$0xff] %v228_v38  ;;  %v234_v41 = vld [vmem:[%s2795_s26 + $0x280] sm:$0xff]  ;;  %231 = vst [vmem:[%s2800_s27 + $0x138] sm:$0xff] %v230_v39  ;;  %v238_v43 = vld [vmem:[%s2795_s26 + $0x2a8] sm:$0xff] }
  0x2a   : > { %233 = vst [vmem:[%s2800_s27 + $0x140] sm:$0xff] %v232_v40  ;;  %235 = vst [vmem:[%s2800_s27 + $0x148] sm:$0xff] %v234_v41  ;;  %v236_v42 = vld [vmem:[%s2795_s26 + $0x2a0] sm:$0xff]  ;;  %v240_v44 = vld [vmem:[%s2795_s26 + $0x2b0] sm:$0xff] }
  0x2b   : > { %237 = vst [vmem:[%s2800_s27 + $0x150] sm:$0xff] %v236_v42  ;;  %239 = vst [vmem:[%s2800_s27 + $0x158] sm:$0xff] %v238_v43  ;;  %v242_v45 = vld [vmem:[%s2795_s26 + $0x2d0] sm:$0xff]  ;;  %v244_v46 = vld [vmem:[%s2795_s26 + $0x2d8] sm:$0xff] }
  0x2c   : > { %241 = vst [vmem:[%s2800_s27 + $0x160] sm:$0xff] %v240_v44  ;;  %v246_v47 = vld [vmem:[%s2795_s26 + $0x2e0] sm:$0xff]  ;;  %243 = vst [vmem:[%s2800_s27 + $0x168] sm:$0xff] %v242_v45  ;;  %v250_v49 = vld [vmem:[%s2795_s26 + $0x308] sm:$0xff] }
  0x2d   : > { %245 = vst [vmem:[%s2800_s27 + $0x170] sm:$0xff] %v244_v46  ;;  %247 = vst [vmem:[%s2800_s27 + $0x178] sm:$0xff] %v246_v47  ;;  %v248_v48 = vld [vmem:[%s2795_s26 + $0x300] sm:$0xff]  ;;  %v252_v50 = vld [vmem:[%s2795_s26 + $0x310] sm:$0xff] }
  0x2e   : > { %249 = vst [vmem:[%s2800_s27 + $0x180] sm:$0xff] %v248_v48  ;;  %251 = vst [vmem:[%s2800_s27 + $0x188] sm:$0xff] %v250_v49  ;;  %v254_v51 = vld [vmem:[%s2795_s26 + $0x330] sm:$0xff]  ;;  %v256_v52 = vld [vmem:[%s2795_s26 + $0x338] sm:$0xff] }
  0x2f   : > { %253 = vst [vmem:[%s2800_s27 + $0x190] sm:$0xff] %v252_v50  ;;  %v258_v53 = vld [vmem:[%s2795_s26 + $0x340] sm:$0xff]  ;;  %255 = vst [vmem:[%s2800_s27 + $0x198] sm:$0xff] %v254_v51  ;;  %v262_v55 = vld [vmem:[%s2795_s26 + $0x368] sm:$0xff] }
  0x30   : > { %257 = vst [vmem:[%s2800_s27 + $0x1a0] sm:$0xff] %v256_v52  ;;  %259 = vst [vmem:[%s2800_s27 + $0x1a8] sm:$0xff] %v258_v53  ;;  %v260_v54 = vld [vmem:[%s2795_s26 + $0x360] sm:$0xff]  ;;  %v264_v56 = vld [vmem:[%s2795_s26 + $0x370] sm:$0xff] }
  0x31   : > { %261 = vst [vmem:[%s2800_s27 + $0x1b0] sm:$0xff] %v260_v54  ;;  %263 = vst [vmem:[%s2800_s27 + $0x1b8] sm:$0xff] %v262_v55  ;;  %v266_v57 = vld [vmem:[%s2795_s26 + $0x390] sm:$0xff]  ;;  %v268_v58 = vld [vmem:[%s2795_s26 + $0x398] sm:$0xff] }
  0x32   : > { %265 = vst [vmem:[%s2800_s27 + $0x1c0] sm:$0xff] %v264_v56  ;;  %v270_v59 = vld [vmem:[%s2795_s26 + $0x3a0] sm:$0xff]  ;;  %267 = vst [vmem:[%s2800_s27 + $0x1c8] sm:$0xff] %v266_v57  ;;  %v274_v61 = vld [vmem:[%s2795_s26 + $0x3c8] sm:$0xff] }
  0x33   : > { %269 = vst [vmem:[%s2800_s27 + $0x1d0] sm:$0xff] %v268_v58  ;;  %271 = vst [vmem:[%s2800_s27 + $0x1d8] sm:$0xff] %v270_v59  ;;  %v272_v60 = vld [vmem:[%s2795_s26 + $0x3c0] sm:$0xff]  ;;  %v276_v62 = vld [vmem:[%s2795_s26 + $0x3d0] sm:$0xff] }
  0x34   : > { %273 = vst [vmem:[%s2800_s27 + $0x1e0] sm:$0xff] %v272_v60  ;;  %275 = vst [vmem:[%s2800_s27 + $0x1e8] sm:$0xff] %v274_v61  ;;  %v278_v63 = vld [vmem:[%s2795_s26 + $0x3f0] sm:$0xff]  ;;  %v280_v0 = vld [vmem:[%s2795_s26 + $0x3f8] sm:$0xff] }
  0x35   : > { %277 = vst [vmem:[%s2800_s27 + $0x1f0] sm:$0xff] %v276_v62  ;;  %v282_v1 = vld [vmem:[%s2795_s26 + $0x400] sm:$0xff]  ;;  %279 = vst [vmem:[%s2800_s27 + $0x1f8] sm:$0xff] %v278_v63  ;;  %v286_v3 = vld [vmem:[%s2795_s26 + $0x428] sm:$0xff] }
  0x36   : > { %281 = vst [vmem:[%s2800_s27 + $0x200] sm:$0xff] %v280_v0  ;;  %283 = vst [vmem:[%s2800_s27 + $0x208] sm:$0xff] %v282_v1  ;;  %v284_v2 = vld [vmem:[%s2795_s26 + $0x420] sm:$0xff]  ;;  %v288_v4 = vld [vmem:[%s2795_s26 + $0x430] sm:$0xff] }
  0x37   : > { %285 = vst [vmem:[%s2800_s27 + $0x210] sm:$0xff] %v284_v2  ;;  %287 = vst [vmem:[%s2800_s27 + $0x218] sm:$0xff] %v286_v3  ;;  %v290_v5 = vld [vmem:[%s2795_s26 + $0x450] sm:$0xff]  ;;  %v292_v6 = vld [vmem:[%s2795_s26 + $0x458] sm:$0xff] }
  0x38   : > { %289 = vst [vmem:[%s2800_s27 + $0x220] sm:$0xff] %v288_v4  ;;  %v294_v7 = vld [vmem:[%s2795_s26 + $0x460] sm:$0xff]  ;;  %291 = vst [vmem:[%s2800_s27 + $0x228] sm:$0xff] %v290_v5  ;;  %v298_v9 = vld [vmem:[%s2795_s26 + $0x488] sm:$0xff] }
  0x39   : > { %293 = vst [vmem:[%s2800_s27 + $0x230] sm:$0xff] %v292_v6  ;;  %295 = vst [vmem:[%s2800_s27 + $0x238] sm:$0xff] %v294_v7  ;;  %v296_v8 = vld [vmem:[%s2795_s26 + $0x480] sm:$0xff]  ;;  %v300_v10 = vld [vmem:[%s2795_s26 + $0x490] sm:$0xff] }
  0x3a   : > { %297 = vst [vmem:[%s2800_s27 + $0x240] sm:$0xff] %v296_v8  ;;  %299 = vst [vmem:[%s2800_s27 + $0x248] sm:$0xff] %v298_v9  ;;  %v302_v11 = vld [vmem:[%s2795_s26 + $0x4b0] sm:$0xff]  ;;  %v304_v12 = vld [vmem:[%s2795_s26 + $0x4b8] sm:$0xff] }
  0x3b   : > { %301 = vst [vmem:[%s2800_s27 + $0x250] sm:$0xff] %v300_v10  ;;  %v306_v13 = vld [vmem:[%s2795_s26 + $0x4c0] sm:$0xff]  ;;  %303 = vst [vmem:[%s2800_s27 + $0x258] sm:$0xff] %v302_v11  ;;  %v310_v15 = vld [vmem:[%s2795_s26 + $0x4e8] sm:$0xff] }
  0x3c   : > { %305 = vst [vmem:[%s2800_s27 + $0x260] sm:$0xff] %v304_v12  ;;  %307 = vst [vmem:[%s2800_s27 + $0x268] sm:$0xff] %v306_v13  ;;  %v308_v14 = vld [vmem:[%s2795_s26 + $0x4e0] sm:$0xff]  ;;  %v312_v16 = vld [vmem:[%s2795_s26 + $0x4f0] sm:$0xff] }
  0x3d   : > { %309 = vst [vmem:[%s2800_s27 + $0x270] sm:$0xff] %v308_v14  ;;  %311 = vst [vmem:[%s2800_s27 + $0x278] sm:$0xff] %v310_v15  ;;  %v314_v17 = vld [vmem:[%s2795_s26 + $0x510] sm:$0xff]  ;;  %v316_v18 = vld [vmem:[%s2795_s26 + $0x518] sm:$0xff] }
  0x3e   : > { %313 = vst [vmem:[%s2800_s27 + $0x280] sm:$0xff] %v312_v16  ;;  %v318_v19 = vld [vmem:[%s2795_s26 + $0x520] sm:$0xff]  ;;  %315 = vst [vmem:[%s2800_s27 + $0x288] sm:$0xff] %v314_v17  ;;  %v322_v21 = vld [vmem:[%s2795_s26 + $0x548] sm:$0xff] }
  0x3f   : > { %317 = vst [vmem:[%s2800_s27 + $0x290] sm:$0xff] %v316_v18  ;;  %319 = vst [vmem:[%s2800_s27 + $0x298] sm:$0xff] %v318_v19  ;;  %v320_v20 = vld [vmem:[%s2795_s26 + $0x540] sm:$0xff]  ;;  %v324_v22 = vld [vmem:[%s2795_s26 + $0x550] sm:$0xff] }
  0x40   : > { %321 = vst [vmem:[%s2800_s27 + $0x2a0] sm:$0xff] %v320_v20  ;;  %323 = vst [vmem:[%s2800_s27 + $0x2a8] sm:$0xff] %v322_v21  ;;  %v326_v23 = vld [vmem:[%s2795_s26 + $0x570] sm:$0xff]  ;;  %v328_v24 = vld [vmem:[%s2795_s26 + $0x578] sm:$0xff] }
  0x41   : > { %325 = vst [vmem:[%s2800_s27 + $0x2b0] sm:$0xff] %v324_v22  ;;  %v330_v25 = vld [vmem:[%s2795_s26 + $0x580] sm:$0xff]  ;;  %327 = vst [vmem:[%s2800_s27 + $0x2b8] sm:$0xff] %v326_v23  ;;  %v334_v27 = vld [vmem:[%s2795_s26 + $0x5a8] sm:$0xff] }
  0x42   : > { %329 = vst [vmem:[%s2800_s27 + $0x2c0] sm:$0xff] %v328_v24  ;;  %331 = vst [vmem:[%s2800_s27 + $0x2c8] sm:$0xff] %v330_v25  ;;  %v332_v26 = vld [vmem:[%s2795_s26 + $0x5a0] sm:$0xff]  ;;  %v336_v28 = vld [vmem:[%s2795_s26 + $0x5b0] sm:$0xff] }
  0x43   : > { %333 = vst [vmem:[%s2800_s27 + $0x2d0] sm:$0xff] %v332_v26  ;;  %335 = vst [vmem:[%s2800_s27 + $0x2d8] sm:$0xff] %v334_v27  ;;  %v338_v29 = vld [vmem:[%s2795_s26 + $0x5d0] sm:$0xff]  ;;  %v340_v30 = vld [vmem:[%s2795_s26 + $0x5d8] sm:$0xff] }
  0x44   : > { %337 = vst [vmem:[%s2800_s27 + $0x2e0] sm:$0xff] %v336_v28  ;;  %v342_v31 = vld [vmem:[%s2795_s26 + $0x5e0] sm:$0xff]  ;;  %339 = vst [vmem:[%s2800_s27 + $0x2e8] sm:$0xff] %v338_v29  ;;  %v346_v33 = vld [vmem:[%s2795_s26 + $0x608] sm:$0xff] }
  0x45   : > { %341 = vst [vmem:[%s2800_s27 + $0x2f0] sm:$0xff] %v340_v30  ;;  %343 = vst [vmem:[%s2800_s27 + $0x2f8] sm:$0xff] %v342_v31  ;;  %v344_v32 = vld [vmem:[%s2795_s26 + $0x600] sm:$0xff]  ;;  %v348_v34 = vld [vmem:[%s2795_s26 + $0x610] sm:$0xff] }
  0x46   : > { %345 = vst [vmem:[%s2800_s27 + $0x300] sm:$0xff] %v344_v32  ;;  %347 = vst [vmem:[%s2800_s27 + $0x308] sm:$0xff] %v346_v33  ;;  %v350_v35 = vld [vmem:[%s2795_s26 + $0x630] sm:$0xff]  ;;  %v352_v36 = vld [vmem:[%s2795_s26 + $0x638] sm:$0xff] }
  0x47   : > { %349 = vst [vmem:[%s2800_s27 + $0x310] sm:$0xff] %v348_v34  ;;  %v354_v37 = vld [vmem:[%s2795_s26 + $0x640] sm:$0xff]  ;;  %351 = vst [vmem:[%s2800_s27 + $0x318] sm:$0xff] %v350_v35  ;;  %v358_v39 = vld [vmem:[%s2795_s26 + $0x668] sm:$0xff] }
  0x48   : > { %353 = vst [vmem:[%s2800_s27 + $0x320] sm:$0xff] %v352_v36  ;;  %355 = vst [vmem:[%s2800_s27 + $0x328] sm:$0xff] %v354_v37  ;;  %v356_v38 = vld [vmem:[%s2795_s26 + $0x660] sm:$0xff]  ;;  %v360_v40 = vld [vmem:[%s2795_s26 + $0x670] sm:$0xff] }
  0x49   : > { %357 = vst [vmem:[%s2800_s27 + $0x330] sm:$0xff] %v356_v38  ;;  %359 = vst [vmem:[%s2800_s27 + $0x338] sm:$0xff] %v358_v39  ;;  %v362_v41 = vld [vmem:[%s2795_s26 + $0x690] sm:$0xff]  ;;  %v364_v42 = vld [vmem:[%s2795_s26 + $0x698] sm:$0xff] }
  0x4a   : > { %361 = vst [vmem:[%s2800_s27 + $0x340] sm:$0xff] %v360_v40  ;;  %v366_v43 = vld [vmem:[%s2795_s26 + $0x6a0] sm:$0xff]  ;;  %363 = vst [vmem:[%s2800_s27 + $0x348] sm:$0xff] %v362_v41  ;;  %v370_v45 = vld [vmem:[%s2795_s26 + $0x6c8] sm:$0xff] }
  0x4b   : > { %365 = vst [vmem:[%s2800_s27 + $0x350] sm:$0xff] %v364_v42  ;;  %367 = vst [vmem:[%s2800_s27 + $0x358] sm:$0xff] %v366_v43  ;;  %v368_v44 = vld [vmem:[%s2795_s26 + $0x6c0] sm:$0xff]  ;;  %v372_v46 = vld [vmem:[%s2795_s26 + $0x6d0] sm:$0xff] }
  0x4c   : > { %369 = vst [vmem:[%s2800_s27 + $0x360] sm:$0xff] %v368_v44  ;;  %371 = vst [vmem:[%s2800_s27 + $0x368] sm:$0xff] %v370_v45  ;;  %v374_v47 = vld [vmem:[%s2795_s26 + $0x6f0] sm:$0xff]  ;;  %v376_v48 = vld [vmem:[%s2795_s26 + $0x6f8] sm:$0xff] }
  0x4d   : > { %373 = vst [vmem:[%s2800_s27 + $0x370] sm:$0xff] %v372_v46  ;;  %v378_v49 = vld [vmem:[%s2795_s26 + $0x700] sm:$0xff]  ;;  %375 = vst [vmem:[%s2800_s27 + $0x378] sm:$0xff] %v374_v47  ;;  %v382_v51 = vld [vmem:[%s2795_s26 + $0x728] sm:$0xff] }
  0x4e   : > { %377 = vst [vmem:[%s2800_s27 + $0x380] sm:$0xff] %v376_v48  ;;  %379 = vst [vmem:[%s2800_s27 + $0x388] sm:$0xff] %v378_v49  ;;  %v380_v50 = vld [vmem:[%s2795_s26 + $0x720] sm:$0xff]  ;;  %v384_v52 = vld [vmem:[%s2795_s26 + $0x730] sm:$0xff] }
  0x4f   : > { %381 = vst [vmem:[%s2800_s27 + $0x390] sm:$0xff] %v380_v50  ;;  %383 = vst [vmem:[%s2800_s27 + $0x398] sm:$0xff] %v382_v51  ;;  %v386_v53 = vld [vmem:[%s2795_s26 + $0x750] sm:$0xff]  ;;  %v388_v54 = vld [vmem:[%s2795_s26 + $0x758] sm:$0xff] }
  0x50   : > { %385 = vst [vmem:[%s2800_s27 + $0x3a0] sm:$0xff] %v384_v52  ;;  %v390_v55 = vld [vmem:[%s2795_s26 + $0x760] sm:$0xff]  ;;  %387 = vst [vmem:[%s2800_s27 + $0x3a8] sm:$0xff] %v386_v53  ;;  %v394_v57 = vld [vmem:[%s2795_s26 + $0x788] sm:$0xff] }
  0x51   : > { %389 = vst [vmem:[%s2800_s27 + $0x3b0] sm:$0xff] %v388_v54  ;;  %391 = vst [vmem:[%s2800_s27 + $0x3b8] sm:$0xff] %v390_v55  ;;  %v392_v56 = vld [vmem:[%s2795_s26 + $0x780] sm:$0xff]  ;;  %v396_v58 = vld [vmem:[%s2795_s26 + $0x790] sm:$0xff] }
  0x52   : > { %393 = vst [vmem:[%s2800_s27 + $0x3c0] sm:$0xff] %v392_v56  ;;  %395 = vst [vmem:[%s2800_s27 + $0x3c8] sm:$0xff] %v394_v57  ;;  %v398_v59 = vld [vmem:[%s2795_s26 + $0x7b0] sm:$0xff]  ;;  %v400_v60 = vld [vmem:[%s2795_s26 + $0x7b8] sm:$0xff] }
  0x53   : > { %397 = vst [vmem:[%s2800_s27 + $0x3d0] sm:$0xff] %v396_v58  ;;  %v402_v61 = vld [vmem:[%s2795_s26 + $0x7c0] sm:$0xff]  ;;  %399 = vst [vmem:[%s2800_s27 + $0x3d8] sm:$0xff] %v398_v59  ;;  %v406_v63 = vld [vmem:[%s2795_s26 + $0x7e8] sm:$0xff] }
  0x54   : > { %401 = vst [vmem:[%s2800_s27 + $0x3e0] sm:$0xff] %v400_v60  ;;  %403 = vst [vmem:[%s2800_s27 + $0x3e8] sm:$0xff] %v402_v61  ;;  %v404_v62 = vld [vmem:[%s2795_s26 + $0x7e0] sm:$0xff]  ;;  %v408_v0 = vld [vmem:[%s2795_s26 + $0x7f0] sm:$0xff] }
  0x55   : > { %405 = vst [vmem:[%s2800_s27 + $0x3f0] sm:$0xff] %v404_v62  ;;  %407 = vst [vmem:[%s2800_s27 + $0x3f8] sm:$0xff] %v406_v63  ;;  %v410_v1 = vld [vmem:[%s2795_s26 + $0x810] sm:$0xff]  ;;  %v412_v2 = vld [vmem:[%s2795_s26 + $0x818] sm:$0xff] }
  0x56   : > { %409 = vst [vmem:[%s2800_s27 + $0x400] sm:$0xff] %v408_v0  ;;  %v414_v3 = vld [vmem:[%s2795_s26 + $0x820] sm:$0xff]  ;;  %411 = vst [vmem:[%s2800_s27 + $0x408] sm:$0xff] %v410_v1  ;;  %v418_v5 = vld [vmem:[%s2795_s26 + $0x848] sm:$0xff] }
  0x57   : > { %413 = vst [vmem:[%s2800_s27 + $0x410] sm:$0xff] %v412_v2  ;;  %415 = vst [vmem:[%s2800_s27 + $0x418] sm:$0xff] %v414_v3  ;;  %v416_v4 = vld [vmem:[%s2795_s26 + $0x840] sm:$0xff]  ;;  %v420_v6 = vld [vmem:[%s2795_s26 + $0x850] sm:$0xff] }
  0x58   : > { %417 = vst [vmem:[%s2800_s27 + $0x420] sm:$0xff] %v416_v4  ;;  %419 = vst [vmem:[%s2800_s27 + $0x428] sm:$0xff] %v418_v5  ;;  %v422_v7 = vld [vmem:[%s2795_s26 + $0x870] sm:$0xff]  ;;  %v424_v8 = vld [vmem:[%s2795_s26 + $0x878] sm:$0xff] }
  0x59   : > { %421 = vst [vmem:[%s2800_s27 + $0x430] sm:$0xff] %v420_v6  ;;  %v426_v9 = vld [vmem:[%s2795_s26 + $0x880] sm:$0xff]  ;;  %423 = vst [vmem:[%s2800_s27 + $0x438] sm:$0xff] %v422_v7  ;;  %v430_v11 = vld [vmem:[%s2795_s26 + $0x8a8] sm:$0xff] }
  0x5a   : > { %425 = vst [vmem:[%s2800_s27 + $0x440] sm:$0xff] %v424_v8  ;;  %427 = vst [vmem:[%s2800_s27 + $0x448] sm:$0xff] %v426_v9  ;;  %v428_v10 = vld [vmem:[%s2795_s26 + $0x8a0] sm:$0xff]  ;;  %v432_v12 = vld [vmem:[%s2795_s26 + $0x8b0] sm:$0xff] }
  0x5b   : > { %429 = vst [vmem:[%s2800_s27 + $0x450] sm:$0xff] %v428_v10  ;;  %431 = vst [vmem:[%s2800_s27 + $0x458] sm:$0xff] %v430_v11  ;;  %v434_v13 = vld [vmem:[%s2795_s26 + $0x8d0] sm:$0xff]  ;;  %v436_v14 = vld [vmem:[%s2795_s26 + $0x8d8] sm:$0xff] }
  0x5c   : > { %433 = vst [vmem:[%s2800_s27 + $0x460] sm:$0xff] %v432_v12  ;;  %v438_v15 = vld [vmem:[%s2795_s26 + $0x8e0] sm:$0xff]  ;;  %435 = vst [vmem:[%s2800_s27 + $0x468] sm:$0xff] %v434_v13  ;;  %v442_v17 = vld [vmem:[%s2795_s26 + $0x908] sm:$0xff] }
  0x5d   : > { %437 = vst [vmem:[%s2800_s27 + $0x470] sm:$0xff] %v436_v14  ;;  %439 = vst [vmem:[%s2800_s27 + $0x478] sm:$0xff] %v438_v15  ;;  %v440_v16 = vld [vmem:[%s2795_s26 + $0x900] sm:$0xff]  ;;  %v444_v18 = vld [vmem:[%s2795_s26 + $0x910] sm:$0xff] }
  0x5e   : > { %441 = vst [vmem:[%s2800_s27 + $0x480] sm:$0xff] %v440_v16  ;;  %443 = vst [vmem:[%s2800_s27 + $0x488] sm:$0xff] %v442_v17  ;;  %v446_v19 = vld [vmem:[%s2795_s26 + $0x930] sm:$0xff]  ;;  %v448_v20 = vld [vmem:[%s2795_s26 + $0x938] sm:$0xff] }
  0x5f   : > { %445 = vst [vmem:[%s2800_s27 + $0x490] sm:$0xff] %v444_v18  ;;  %v450_v21 = vld [vmem:[%s2795_s26 + $0x940] sm:$0xff]  ;;  %447 = vst [vmem:[%s2800_s27 + $0x498] sm:$0xff] %v446_v19  ;;  %v454_v23 = vld [vmem:[%s2795_s26 + $0x968] sm:$0xff] }
  0x60   : > { %449 = vst [vmem:[%s2800_s27 + $0x4a0] sm:$0xff] %v448_v20  ;;  %451 = vst [vmem:[%s2800_s27 + $0x4a8] sm:$0xff] %v450_v21  ;;  %v452_v22 = vld [vmem:[%s2795_s26 + $0x960] sm:$0xff]  ;;  %v456_v24 = vld [vmem:[%s2795_s26 + $0x970] sm:$0xff] }
  0x61   : > { %453 = vst [vmem:[%s2800_s27 + $0x4b0] sm:$0xff] %v452_v22  ;;  %455 = vst [vmem:[%s2800_s27 + $0x4b8] sm:$0xff] %v454_v23  ;;  %v458_v25 = vld [vmem:[%s2795_s26 + $0x990] sm:$0xff]  ;;  %v460_v26 = vld [vmem:[%s2795_s26 + $0x998] sm:$0xff] }
  0x62   : > { %457 = vst [vmem:[%s2800_s27 + $0x4c0] sm:$0xff] %v456_v24  ;;  %v462_v27 = vld [vmem:[%s2795_s26 + $0x9a0] sm:$0xff]  ;;  %459 = vst [vmem:[%s2800_s27 + $0x4c8] sm:$0xff] %v458_v25  ;;  %v466_v29 = vld [vmem:[%s2795_s26 + $0x9c8] sm:$0xff] }
  0x63   : > { %461 = vst [vmem:[%s2800_s27 + $0x4d0] sm:$0xff] %v460_v26  ;;  %463 = vst [vmem:[%s2800_s27 + $0x4d8] sm:$0xff] %v462_v27  ;;  %v464_v28 = vld [vmem:[%s2795_s26 + $0x9c0] sm:$0xff]  ;;  %v468_v30 = vld [vmem:[%s2795_s26 + $0x9d0] sm:$0xff] }
  0x64   : > { %465 = vst [vmem:[%s2800_s27 + $0x4e0] sm:$0xff] %v464_v28  ;;  %467 = vst [vmem:[%s2800_s27 + $0x4e8] sm:$0xff] %v466_v29  ;;  %v470_v31 = vld [vmem:[%s2795_s26 + $0x9f0] sm:$0xff]  ;;  %v472_v32 = vld [vmem:[%s2795_s26 + $0x9f8] sm:$0xff] }
  0x65   : > { %469 = vst [vmem:[%s2800_s27 + $0x4f0] sm:$0xff] %v468_v30  ;;  %v474_v33 = vld [vmem:[%s2795_s26 + $0xa00] sm:$0xff]  ;;  %471 = vst [vmem:[%s2800_s27 + $0x4f8] sm:$0xff] %v470_v31  ;;  %v478_v35 = vld [vmem:[%s2795_s26 + $0xa28] sm:$0xff] }
  0x66   : > { %473 = vst [vmem:[%s2800_s27 + $0x500] sm:$0xff] %v472_v32  ;;  %475 = vst [vmem:[%s2800_s27 + $0x508] sm:$0xff] %v474_v33  ;;  %v476_v34 = vld [vmem:[%s2795_s26 + $0xa20] sm:$0xff]  ;;  %v480_v36 = vld [vmem:[%s2795_s26 + $0xa30] sm:$0xff] }
  0x67   : > { %477 = vst [vmem:[%s2800_s27 + $0x510] sm:$0xff] %v476_v34  ;;  %479 = vst [vmem:[%s2800_s27 + $0x518] sm:$0xff] %v478_v35  ;;  %v482_v37 = vld [vmem:[%s2795_s26 + $0xa50] sm:$0xff]  ;;  %v484_v38 = vld [vmem:[%s2795_s26 + $0xa58] sm:$0xff] }
  0x68   : > { %481 = vst [vmem:[%s2800_s27 + $0x520] sm:$0xff] %v480_v36  ;;  %v486_v39 = vld [vmem:[%s2795_s26 + $0xa60] sm:$0xff]  ;;  %483 = vst [vmem:[%s2800_s27 + $0x528] sm:$0xff] %v482_v37  ;;  %v490_v41 = vld [vmem:[%s2795_s26 + $0xa88] sm:$0xff] }
  0x69   : > { %485 = vst [vmem:[%s2800_s27 + $0x530] sm:$0xff] %v484_v38  ;;  %487 = vst [vmem:[%s2800_s27 + $0x538] sm:$0xff] %v486_v39  ;;  %v488_v40 = vld [vmem:[%s2795_s26 + $0xa80] sm:$0xff]  ;;  %v492_v42 = vld [vmem:[%s2795_s26 + $0xa90] sm:$0xff] }
  0x6a   : > { %489 = vst [vmem:[%s2800_s27 + $0x540] sm:$0xff] %v488_v40  ;;  %491 = vst [vmem:[%s2800_s27 + $0x548] sm:$0xff] %v490_v41  ;;  %v494_v43 = vld [vmem:[%s2795_s26 + $0xab0] sm:$0xff]  ;;  %v496_v44 = vld [vmem:[%s2795_s26 + $0xab8] sm:$0xff] }
  0x6b   : > { %493 = vst [vmem:[%s2800_s27 + $0x550] sm:$0xff] %v492_v42  ;;  %v498_v45 = vld [vmem:[%s2795_s26 + $0xac0] sm:$0xff]  ;;  %495 = vst [vmem:[%s2800_s27 + $0x558] sm:$0xff] %v494_v43  ;;  %v502_v47 = vld [vmem:[%s2795_s26 + $0xae8] sm:$0xff] }
  0x6c   : > { %497 = vst [vmem:[%s2800_s27 + $0x560] sm:$0xff] %v496_v44  ;;  %499 = vst [vmem:[%s2800_s27 + $0x568] sm:$0xff] %v498_v45  ;;  %v500_v46 = vld [vmem:[%s2795_s26 + $0xae0] sm:$0xff]  ;;  %v504_v48 = vld [vmem:[%s2795_s26 + $0xaf0] sm:$0xff] }
  0x6d   : > { %501 = vst [vmem:[%s2800_s27 + $0x570] sm:$0xff] %v500_v46  ;;  %503 = vst [vmem:[%s2800_s27 + $0x578] sm:$0xff] %v502_v47  ;;  %v506_v49 = vld [vmem:[%s2795_s26 + $0xb10] sm:$0xff]  ;;  %v508_v50 = vld [vmem:[%s2795_s26 + $0xb18] sm:$0xff] }
  0x6e   : > { %505 = vst [vmem:[%s2800_s27 + $0x580] sm:$0xff] %v504_v48  ;;  %v510_v51 = vld [vmem:[%s2795_s26 + $0xb20] sm:$0xff]  ;;  %507 = vst [vmem:[%s2800_s27 + $0x588] sm:$0xff] %v506_v49  ;;  %v514_v53 = vld [vmem:[%s2795_s26 + $0xb48] sm:$0xff] }
  0x6f   : > { %509 = vst [vmem:[%s2800_s27 + $0x590] sm:$0xff] %v508_v50  ;;  %511 = vst [vmem:[%s2800_s27 + $0x598] sm:$0xff] %v510_v51  ;;  %v512_v52 = vld [vmem:[%s2795_s26 + $0xb40] sm:$0xff]  ;;  %v516_v54 = vld [vmem:[%s2795_s26 + $0xb50] sm:$0xff] }
  0x70   : > { %513 = vst [vmem:[%s2800_s27 + $0x5a0] sm:$0xff] %v512_v52  ;;  %515 = vst [vmem:[%s2800_s27 + $0x5a8] sm:$0xff] %v514_v53  ;;  %v518_v55 = vld [vmem:[%s2795_s26 + $0xb70] sm:$0xff]  ;;  %v520_v56 = vld [vmem:[%s2795_s26 + $0xb78] sm:$0xff] }
  0x71   : > { %517 = vst [vmem:[%s2800_s27 + $0x5b0] sm:$0xff] %v516_v54  ;;  %v522_v57 = vld [vmem:[%s2795_s26 + $0xb80] sm:$0xff]  ;;  %519 = vst [vmem:[%s2800_s27 + $0x5b8] sm:$0xff] %v518_v55  ;;  %v526_v59 = vld [vmem:[%s2795_s26 + $0xba8] sm:$0xff] }
  0x72   : > { %521 = vst [vmem:[%s2800_s27 + $0x5c0] sm:$0xff] %v520_v56  ;;  %523 = vst [vmem:[%s2800_s27 + $0x5c8] sm:$0xff] %v522_v57  ;;  %v524_v58 = vld [vmem:[%s2795_s26 + $0xba0] sm:$0xff]  ;;  %v528_v60 = vld [vmem:[%s2795_s26 + $0xbb0] sm:$0xff] }
  0x73   : > { %525 = vst [vmem:[%s2800_s27 + $0x5d0] sm:$0xff] %v524_v58  ;;  %527 = vst [vmem:[%s2800_s27 + $0x5d8] sm:$0xff] %v526_v59  ;;  %v530_v61 = vld [vmem:[%s2795_s26 + $0xbd0] sm:$0xff]  ;;  %v532_v62 = vld [vmem:[%s2795_s26 + $0xbd8] sm:$0xff] }
  0x74   : > { %529 = vst [vmem:[%s2800_s27 + $0x5e0] sm:$0xff] %v528_v60  ;;  %v534_v63 = vld [vmem:[%s2795_s26 + $0xbe0] sm:$0xff]  ;;  %531 = vst [vmem:[%s2800_s27 + $0x5e8] sm:$0xff] %v530_v61 }
  0x75   : > { %533 = vst [vmem:[%s2800_s27 + $0x5f0] sm:$0xff] %v532_v62  ;;  %535 = vst [vmem:[%s2800_s27 + $0x5f8] sm:$0xff] %v534_v63 }
  0x76 PF: > { %p2173_p7 = scmp.ge.s32.totalorder %s2732_s14, 1  ;;  %p548_p8 = scmp.lt.s32.totalorder %s2732_s14, 3 }
  0x78   : > { %p549_p9 = pnand %p2173_p7, %p548_p8 }
  0x79   : > { %s555_s28 = sand.u32 (!%p549_p9), 1, %s2724_s12   ;;  %v589_v0 = vld [vmem:[%s3474_s0 + $0x8] sm:$0xff] (!%p549_p9)  ;;  %v591_v2 = vld [vmem:[%s3474_s0 + $0x18] sm:$0xff] (!%p549_p9)  ;;  %s582_s26 = smul.u32 (!%p549_p9), 6, %s2770_s15 }
  0x7a   : > { %552 = sbr.rel (%p549_p9) target bundleno = 546 (0x222), region = 51  ;;  %v593_v1 = vld [vmem:[%s3474_s0 + $0x28] sm:$0xff] (!%p549_p9)  ;;  %v595_v4 = vld [vmem:[%s3474_s0 + $0x38] sm:$0xff] (!%p549_p9) }
  0x7b   : > { %s2396_s8 = smul.u32 (!%p549_p9), 1536, %s555_s28  ;;  %v3197_v3 = vpack.c.bf16 (!%p549_p9), %v593_v1, %v589_v0  ;;  %v3202_v5 = vpack.c.bf16 (!%p549_p9), %v595_v4, %v591_v2  ;;  %p583_p10 = scmp.lt.s32.totalorder (!%p549_p9), %s582_s26, 11 }
  0x7c   : > { %s2397_s4 = smul.u32 (!%p549_p9), 96, %s555_s28 }
  0x7d   : > { %1816 = vmatprep.mubr.bf16.mxu1 (!%p549_p9), %v3197_v3  ;;  %s3205_s11 = scalar_lea.vmem (!%p549_p9), [#allocation2], %s2396_s8  ;;  %1859 = vmatprep.mubr.bf16.mxu0 (!%p549_p9), %v3202_v5 }
  0x7e   : > { %v2422_v6 = vld [vmem:[%s3205_s11 + $0x4] ss:$24 sps:$4 sm:$0xff] (!%p549_p9)   ;;  %v2426_v8 = vld [vmem:[%s3205_s11] ss:$24 sps:$4 sm:$0xff] (!%p549_p9)   ;;  %v2428_v10 = vld [vmem:[%s3205_s11 + $0x34] ss:$24 sps:$4 sm:$0xff] (!%p549_p9)  }
  0x7f   : > { %v2424_v7 = vld [vmem:[%s3205_s11 + $0x304] ss:$24 sps:$4 sm:$0xff] (!%p549_p9)   ;;  %1784 = vmatprep.subr.bf16.mxu1 (!%p549_p9), %v2422_v6  ;;  %v2427_v9 = vld [vmem:[%s3205_s11 + $0x300] ss:$24 sps:$4 sm:$0xff] (!%p549_p9)   ;;  %v2430_v11 = vld [vmem:[%s3205_s11 + $0x334] ss:$24 sps:$4 sm:$0xff] (!%p549_p9)  }
  0x80   : > { %1827 = vmatprep.subr.bf16.mxu0 (!%p549_p9), %v2424_v7  ;;  %1785 = vmatpush1.bf16.msra.mxu1 (!%p549_p9), %v2426_v8  ;;  %v2432_v12 = vld [vmem:[%s3205_s11 + $0x30] ss:$24 sps:$4 sm:$0xff] (!%p549_p9)   ;;  %v2434_v14 = vld [vmem:[%s3205_s11 + $0x64] ss:$24 sps:$4 sm:$0xff] (!%p549_p9)   ;;  %v2438_v16 = vld [vmem:[%s3205_s11 + $0x60] ss:$24 sps:$4 sm:$0xff] (!%p549_p9)  }
  0x81   : > { %1828 = vmatpush1.bf16.msra.mxu0 %v2427_v9  ;;  %1786 = vmatprep.subr.bf16.mxu1 %v2428_v10  ;;  %v2433_v13 = vld [vmem:[%s3205_s11 + $0x330] ss:$24 sps:$4 sm:$0xff]   ;;  %v2436_v15 = vld [vmem:[%s3205_s11 + $0x364] ss:$24 sps:$4 sm:$0xff]   ;;  %v2439_v17 = vld [vmem:[%s3205_s11 + $0x360] ss:$24 sps:$4 sm:$0xff]  }
  0x82   : > { %1829 = vmatprep.subr.bf16.mxu0 %v2430_v11  ;;  %v2440_v18 = vld [vmem:[%s3205_s11 + $0x94] ss:$24 sps:$4 sm:$0xff]   ;;  %v2444_v20 = vld [vmem:[%s3205_s11 + $0x90] ss:$24 sps:$4 sm:$0xff]   ;;  %v2446_v22 = vld [vmem:[%s3205_s11 + $0xc4] ss:$24 sps:$4 sm:$0xff]  }
  0x83   : > { %v2442_v19 = vld [vmem:[%s3205_s11 + $0x394] ss:$24 sps:$4 sm:$0xff]   ;;  %v2445_v21 = vld [vmem:[%s3205_s11 + $0x390] ss:$24 sps:$4 sm:$0xff]   ;;  %v2448_v23 = vld [vmem:[%s3205_s11 + $0x3c4] ss:$24 sps:$4 sm:$0xff]  }
  0x84   : > { %1787 = vmatpush1.bf16.msra.mxu1 %v2432_v12  ;;  %v2450_v24 = vld [vmem:[%s3205_s11 + $0xc0] ss:$24 sps:$4 sm:$0xff]   ;;  %v2452_v26 = vld [vmem:[%s3205_s11 + $0xf4] ss:$24 sps:$4 sm:$0xff]   ;;  %v2456_v28 = vld [vmem:[%s3205_s11 + $0xf0] ss:$24 sps:$4 sm:$0xff]  }
  0x85   : > { %1830 = vmatpush1.bf16.msra.mxu0 %v2433_v13  ;;  %1788 = vmatprep.subr.bf16.mxu1 %v2434_v14  ;;  %v2451_v25 = vld [vmem:[%s3205_s11 + $0x3c0] ss:$24 sps:$4 sm:$0xff]   ;;  %v2454_v27 = vld [vmem:[%s3205_s11 + $0x3f4] ss:$24 sps:$4 sm:$0xff]   ;;  %v2457_v29 = vld [vmem:[%s3205_s11 + $0x3f0] ss:$24 sps:$4 sm:$0xff]  }
  0x86   : > { %1831 = vmatprep.subr.bf16.mxu0 %v2436_v15  ;;  %v2458_v30 = vld [vmem:[%s3205_s11 + $0x124] ss:$24 sps:$4 sm:$0xff]   ;;  %v2462_v32 = vld [vmem:[%s3205_s11 + $0x120] ss:$24 sps:$4 sm:$0xff]   ;;  %v2464_v34 = vld [vmem:[%s3205_s11 + $0x154] ss:$24 sps:$4 sm:$0xff]  }
  0x87   : > { %v2460_v31 = vld [vmem:[%s3205_s11 + $0x424] ss:$24 sps:$4 sm:$0xff]   ;;  %v2463_v33 = vld [vmem:[%s3205_s11 + $0x420] ss:$24 sps:$4 sm:$0xff]   ;;  %v2466_v35 = vld [vmem:[%s3205_s11 + $0x454] ss:$24 sps:$4 sm:$0xff]  }
  0x88   : > { %1789 = vmatpush1.bf16.msra.mxu1 %v2438_v16  ;;  %v2468_v36 = vld [vmem:[%s3205_s11 + $0x150] ss:$24 sps:$4 sm:$0xff]   ;;  %v2470_v38 = vld [vmem:[%s3205_s11 + $0x184] ss:$24 sps:$4 sm:$0xff]   ;;  %v2474_v40 = vld [vmem:[%s3205_s11 + $0x180] ss:$24 sps:$4 sm:$0xff]  }
  0x89   : > { %1832 = vmatpush1.bf16.msra.mxu0 %v2439_v17  ;;  %1790 = vmatprep.subr.bf16.mxu1 %v2440_v18  ;;  %v2469_v37 = vld [vmem:[%s3205_s11 + $0x450] ss:$24 sps:$4 sm:$0xff]   ;;  %v2472_v39 = vld [vmem:[%s3205_s11 + $0x484] ss:$24 sps:$4 sm:$0xff]   ;;  %v2475_v41 = vld [vmem:[%s3205_s11 + $0x480] ss:$24 sps:$4 sm:$0xff]  }
  0x8a   : > { %1833 = vmatprep.subr.bf16.mxu0 %v2442_v19  ;;  %v2476_v42 = vld [vmem:[%s3205_s11 + $0x1b4] ss:$24 sps:$4 sm:$0xff]   ;;  %v2480_v44 = vld [vmem:[%s3205_s11 + $0x1b0] ss:$24 sps:$4 sm:$0xff]   ;;  %v2482_v46 = vld [vmem:[%s3205_s11 + $0x1e4] ss:$24 sps:$4 sm:$0xff]  }
  0x8b   : > { %v2478_v43 = vld [vmem:[%s3205_s11 + $0x4b4] ss:$24 sps:$4 sm:$0xff]   ;;  %v2481_v45 = vld [vmem:[%s3205_s11 + $0x4b0] ss:$24 sps:$4 sm:$0xff]   ;;  %v2484_v47 = vld [vmem:[%s3205_s11 + $0x4e4] ss:$24 sps:$4 sm:$0xff]  }
  0x8c   : > { %1791 = vmatpush1.bf16.msra.mxu1 %v2444_v20  ;;  %v2486_v48 = vld [vmem:[%s3205_s11 + $0x1e0] ss:$24 sps:$4 sm:$0xff]   ;;  %v2488_v50 = vld [vmem:[%s3205_s11 + $0x214] ss:$24 sps:$4 sm:$0xff]   ;;  %v2492_v52 = vld [vmem:[%s3205_s11 + $0x210] ss:$24 sps:$4 sm:$0xff]  }
  0x8d   : > { %1834 = vmatpush1.bf16.msra.mxu0 %v2445_v21  ;;  %1792 = vmatprep.subr.bf16.mxu1 %v2446_v22  ;;  %v2487_v49 = vld [vmem:[%s3205_s11 + $0x4e0] ss:$24 sps:$4 sm:$0xff]   ;;  %v2490_v51 = vld [vmem:[%s3205_s11 + $0x514] ss:$24 sps:$4 sm:$0xff]   ;;  %v2493_v53 = vld [vmem:[%s3205_s11 + $0x510] ss:$24 sps:$4 sm:$0xff]  }
  0x8e   : > { %1835 = vmatprep.subr.bf16.mxu0 %v2448_v23  ;;  %v2494_v54 = vld [vmem:[%s3205_s11 + $0x244] ss:$24 sps:$4 sm:$0xff]   ;;  %v2498_v56 = vld [vmem:[%s3205_s11 + $0x240] ss:$24 sps:$4 sm:$0xff]   ;;  %v2500_v58 = vld [vmem:[%s3205_s11 + $0x274] ss:$24 sps:$4 sm:$0xff]  }
  0x8f   : > { %v2496_v55 = vld [vmem:[%s3205_s11 + $0x544] ss:$24 sps:$4 sm:$0xff]   ;;  %v2499_v57 = vld [vmem:[%s3205_s11 + $0x540] ss:$24 sps:$4 sm:$0xff]   ;;  %v2502_v59 = vld [vmem:[%s3205_s11 + $0x574] ss:$24 sps:$4 sm:$0xff]  }
  0x90   : > { %1793 = vmatpush1.bf16.msra.mxu1 %v2450_v24  ;;  %v2504_v60 = vld [vmem:[%s3205_s11 + $0x270] ss:$24 sps:$4 sm:$0xff]   ;;  %v2506_v62 = vld [vmem:[%s3205_s11 + $0x2a4] ss:$24 sps:$4 sm:$0xff]   ;;  %v2510_v0 = vld [vmem:[%s3205_s11 + $0x2a0] ss:$24 sps:$4 sm:$0xff]  }
  0x91   : > { %1836 = vmatpush1.bf16.msra.mxu0 %v2451_v25  ;;  %1794 = vmatprep.subr.bf16.mxu1 %v2452_v26  ;;  %v2505_v61 = vld [vmem:[%s3205_s11 + $0x570] ss:$24 sps:$4 sm:$0xff]   ;;  %v2508_v63 = vld [vmem:[%s3205_s11 + $0x5a4] ss:$24 sps:$4 sm:$0xff]   ;;  %v2511_v1 = vld [vmem:[%s3205_s11 + $0x5a0] ss:$24 sps:$4 sm:$0xff]  }
  0x92   : > { %1837 = vmatprep.subr.bf16.mxu0 %v2454_v27  ;;  %v2512_v2 = vld [vmem:[%s3205_s11 + $0x2d4] ss:$24 sps:$4 sm:$0xff]   ;;  %v588_v6 = vld [vmem:[%s3474_s0] sm:$0xff]  ;;  %v2516_v10 = vld [vmem:[%s3205_s11 + $0x2d0] ss:$24 sps:$4 sm:$0xff]   ;;  %s3483_s26 = smov (!%p583_p10, %s582_s26), 11 }
  0x93   : > { %v2514_v4 = vld [vmem:[%s3205_s11 + $0x5d4] ss:$24 sps:$4 sm:$0xff]   ;;  %v592_v7 = vld [vmem:[%s3474_s0 + $0x20] sm:$0xff]  ;;  %v2517_v11 = vld [vmem:[%s3205_s11 + $0x5d0] ss:$24 sps:$4 sm:$0xff]   ;;  %s585_s30 = scalar_lea.vmem %s3476_s2, %s3483_s26  ;;  %s3432_s5 = scalar_lea.vmem [#allocation3], %s2397_s4 }
  0x94   : > { %1795 = vmatpush1.bf16.msra.mxu1 %v2456_v28  ;;  %v590_v8 = vld [vmem:[%s3474_s0 + $0x10] sm:$0xff]  ;;  %v2520_v12 = vld [vmem:[%s3205_s11 + $0xc] ss:$24 sps:$4 sm:$0xff]   ;;  %v3286_v14 = vpack.c.bf16 %v592_v7, %v588_v6  ;;  %v2518_v16 = vld [vmem:[%s3205_s11 + $0x8] ss:$24 sps:$4 sm:$0xff]   ;;  %s2370_s12 = smul.u32 (%p2785_p5), 48, %s2770_s15 }
  0x95   : > { %1838 = vmatpush1.bf16.msra.mxu0 %v2457_v29  ;;  %1796 = vmatprep.subr.bf16.mxu1 %v2458_v30  ;;  %v594_v9 = vld [vmem:[%s3474_s0 + $0x30] sm:$0xff]  ;;  %v2529_v19 = vld [vmem:[%s3205_s11 + $0x44] ss:$24 sps:$4 sm:$0xff]   ;;  %v2527_v21 = vld [vmem:[%s3205_s11 + $0x40] ss:$24 sps:$4 sm:$0xff]  }
  0x96   : > { %1839 = vmatprep.subr.bf16.mxu0 %v2460_v31  ;;  %v2523_v13 = vld [vmem:[%s3205_s11 + $0x14] ss:$24 sps:$4 sm:$0xff]   ;;  %v3288_v15 = vpack.c.bf16 %v594_v9, %v590_v8  ;;  %v2521_v17 = vld [vmem:[%s3205_s11 + $0x10] ss:$24 sps:$4 sm:$0xff]   ;;  %v2541_v27 = vld [vmem:[%s3205_s11 + $0xa4] ss:$24 sps:$4 sm:$0xff]   ;;  %s2063_s6 = scalar_lea.vmem (%p2785_p5), %s3477_s3, %s2370_s12 }
  0x97   : > { %v2526_v18 = vld [vmem:[%s3205_s11 + $0x3c] ss:$24 sps:$4 sm:$0xff]   ;;  %v2524_v20 = vld [vmem:[%s3205_s11 + $0x38] ss:$24 sps:$4 sm:$0xff]   ;;  %v2532_v22 = vld [vmem:[%s3205_s11 + $0x6c] ss:$24 sps:$4 sm:$0xff]  }
  0x98   : > { %1797 = vmatpush1.bf16.msra.mxu1 %v2462_v32  ;;  %v2535_v23 = vld [vmem:[%s3205_s11 + $0x74] ss:$24 sps:$4 sm:$0xff]   ;;  %v2530_v24 = vld [vmem:[%s3205_s11 + $0x68] ss:$24 sps:$4 sm:$0xff]   ;;  %v2536_v28 = vld [vmem:[%s3205_s11 + $0x98] ss:$24 sps:$4 sm:$0xff]  }
  0x99   : > { %1840 = vmatpush1.bf16.msra.mxu0 %v2463_v33  ;;  %1798 = vmatprep.subr.bf16.mxu1 %v2464_v34  ;;  %v2533_v25 = vld [vmem:[%s3205_s11 + $0x70] ss:$24 sps:$4 sm:$0xff]   ;;  %v2538_v26 = vld [vmem:[%s3205_s11 + $0x9c] ss:$24 sps:$4 sm:$0xff]   ;;  %v2539_v29 = vld [vmem:[%s3205_s11 + $0xa0] ss:$24 sps:$4 sm:$0xff]  }
  0x9a   : > { %1841 = vmatprep.subr.bf16.mxu0 %v2466_v35  ;;  %v2547_v30 = vld [vmem:[%s3205_s11 + $0xd4] ss:$24 sps:$4 sm:$0xff]   ;;  %v2542_v31 = vld [vmem:[%s3205_s11 + $0xc8] ss:$24 sps:$4 sm:$0xff]   ;;  %v2553_v34 = vld [vmem:[%s3205_s11 + $0x104] ss:$24 sps:$4 sm:$0xff]  }
  0x9b   : > { %v2545_v32 = vld [vmem:[%s3205_s11 + $0xd0] ss:$24 sps:$4 sm:$0xff]   ;;  %v2550_v33 = vld [vmem:[%s3205_s11 + $0xfc] ss:$24 sps:$4 sm:$0xff]   ;;  %v2599_v6 = vld [vmem:[%s3205_s11 + $0x280] ss:$24 sps:$4 sm:$0xff]  }
  0x9c   : > { %1799 = vmatpush1.bf16.msra.mxu1 %v2468_v36  ;;  %v2548_v35 = vld [vmem:[%s3205_s11 + $0xf8] ss:$24 sps:$4 sm:$0xff]   ;;  %v2604_v7 = vld [vmem:[%s3205_s11 + $0x2ac] ss:$24 sps:$4 sm:$0xff]   ;;  %v2602_v9 = vld [vmem:[%s3205_s11 + $0x2a8] ss:$24 sps:$4 sm:$0xff]  }
  0x9d   : > { %1842 = vmatpush1.bf16.msra.mxu0 %v2469_v37  ;;  %1800 = vmatprep.subr.bf16.mxu1 %v2470_v38  ;;  %v2551_v36 = vld [vmem:[%s3205_s11 + $0x100] ss:$24 sps:$4 sm:$0xff]   ;;  %v2556_v37 = vld [vmem:[%s3205_s11 + $0x12c] ss:$24 sps:$4 sm:$0xff]  }
  0x9e   : > { %1843 = vmatprep.subr.bf16.mxu0 %v2472_v39  ;;  %v2559_v38 = vld [vmem:[%s3205_s11 + $0x134] ss:$24 sps:$4 sm:$0xff]   ;;  %v2554_v39 = vld [vmem:[%s3205_s11 + $0x128] ss:$24 sps:$4 sm:$0xff]  }
  0x9f   : > { %v2607_v8 = vld [vmem:[%s3205_s11 + $0x2b4] ss:$24 sps:$4 sm:$0xff]  }
  0xa0   : > { %1801 = vmatpush1.bf16.msra.mxu1 %v2474_v40  ;;  %v2557_v40 = vld [vmem:[%s3205_s11 + $0x130] ss:$24 sps:$4 sm:$0xff]  }
  0xa1   : > { %1844 = vmatpush1.bf16.msra.mxu0 %v2475_v41  ;;  %1802 = vmatprep.subr.bf16.mxu1 %v2476_v42  ;;  %v2562_v41 = vld [vmem:[%s3205_s11 + $0x15c] ss:$24 sps:$4 sm:$0xff]  }
  0xa2   : > { %1845 = vmatprep.subr.bf16.mxu0 %v2478_v43  ;;  %v2565_v42 = vld [vmem:[%s3205_s11 + $0x164] ss:$24 sps:$4 sm:$0xff]   ;;  %v2560_v43 = vld [vmem:[%s3205_s11 + $0x158] ss:$24 sps:$4 sm:$0xff]  }
  0xa4   : > { %1803 = vmatpush1.bf16.msra.mxu1 %v2480_v44  ;;  %v2563_v44 = vld [vmem:[%s3205_s11 + $0x160] ss:$24 sps:$4 sm:$0xff]  }
  0xa5   : > { %1846 = vmatpush1.bf16.msra.mxu0 %v2481_v45  ;;  %1804 = vmatprep.subr.bf16.mxu1 %v2482_v46  ;;  %v2568_v45 = vld [vmem:[%s3205_s11 + $0x18c] ss:$24 sps:$4 sm:$0xff]  }
  0xa6   : > { %1847 = vmatprep.subr.bf16.mxu0 %v2484_v47  ;;  %v2571_v46 = vld [vmem:[%s3205_s11 + $0x194] ss:$24 sps:$4 sm:$0xff]   ;;  %v2566_v47 = vld [vmem:[%s3205_s11 + $0x188] ss:$24 sps:$4 sm:$0xff]  }
  0xa8   : > { %1805 = vmatpush1.bf16.msra.mxu1 %v2486_v48  ;;  %v2569_v48 = vld [vmem:[%s3205_s11 + $0x190] ss:$24 sps:$4 sm:$0xff]  }
  0xa9   : > { %1848 = vmatpush1.bf16.msra.mxu0 %v2487_v49  ;;  %1806 = vmatprep.subr.bf16.mxu1 %v2488_v50  ;;  %v2574_v49 = vld [vmem:[%s3205_s11 + $0x1bc] ss:$24 sps:$4 sm:$0xff]  }
  0xaa   : > { %1849 = vmatprep.subr.bf16.mxu0 %v2490_v51  ;;  %v2577_v50 = vld [vmem:[%s3205_s11 + $0x1c4] ss:$24 sps:$4 sm:$0xff]   ;;  %v2572_v51 = vld [vmem:[%s3205_s11 + $0x1b8] ss:$24 sps:$4 sm:$0xff]  }
  0xac   : > { %1807 = vmatpush1.bf16.msra.mxu1 %v2492_v52  ;;  %v2575_v52 = vld [vmem:[%s3205_s11 + $0x1c0] ss:$24 sps:$4 sm:$0xff]  }
  0xad   : > { %1850 = vmatpush1.bf16.msra.mxu0 %v2493_v53  ;;  %1808 = vmatprep.subr.bf16.mxu1 %v2494_v54  ;;  %v2580_v53 = vld [vmem:[%s3205_s11 + $0x1ec] ss:$24 sps:$4 sm:$0xff]  }
  0xae   : > { %1851 = vmatprep.subr.bf16.mxu0 %v2496_v55  ;;  %v2583_v54 = vld [vmem:[%s3205_s11 + $0x1f4] ss:$24 sps:$4 sm:$0xff]   ;;  %v2578_v55 = vld [vmem:[%s3205_s11 + $0x1e8] ss:$24 sps:$4 sm:$0xff]  }
  0xb0   : > { %1809 = vmatpush1.bf16.msra.mxu1 %v2498_v56  ;;  %v2581_v56 = vld [vmem:[%s3205_s11 + $0x1f0] ss:$24 sps:$4 sm:$0xff]  }
  0xb1   : > { %1852 = vmatpush1.bf16.msra.mxu0 %v2499_v57  ;;  %1810 = vmatprep.subr.bf16.mxu1 %v2500_v58  ;;  %v2586_v57 = vld [vmem:[%s3205_s11 + $0x21c] ss:$24 sps:$4 sm:$0xff]  }
  0xb2   : > { %1853 = vmatprep.subr.bf16.mxu0 %v2502_v59  ;;  %v2589_v58 = vld [vmem:[%s3205_s11 + $0x224] ss:$24 sps:$4 sm:$0xff]   ;;  %v2584_v59 = vld [vmem:[%s3205_s11 + $0x218] ss:$24 sps:$4 sm:$0xff]  }
  0xb4   : > { %1811 = vmatpush1.bf16.msra.mxu1 %v2504_v60  ;;  %v2587_v60 = vld [vmem:[%s3205_s11 + $0x220] ss:$24 sps:$4 sm:$0xff]  }
  0xb5   : > { %1854 = vmatpush1.bf16.msra.mxu0 %v2505_v61  ;;  %1812 = vmatprep.subr.bf16.mxu1 %v2506_v62  ;;  %v2592_v61 = vld [vmem:[%s3205_s11 + $0x24c] ss:$24 sps:$4 sm:$0xff]  }
  0xb6   : > { %1855 = vmatprep.subr.bf16.mxu0 %v2508_v63  ;;  %v2595_v62 = vld [vmem:[%s3205_s11 + $0x254] ss:$24 sps:$4 sm:$0xff]   ;;  %v2590_v63 = vld [vmem:[%s3205_s11 + $0x248] ss:$24 sps:$4 sm:$0xff]  }
  0xb8   : > { %1813 = vmatpush1.bf16.msra.mxu1 %v2510_v0  ;;  %v2593_v0 = vld [vmem:[%s3205_s11 + $0x250] ss:$24 sps:$4 sm:$0xff]  }
  0xb9   : > { %1856 = vmatpush1.bf16.msra.mxu0 %v2511_v1  ;;  %1814 = vmatprep.subr.bf16.mxu1 %v2512_v2  ;;  %v2598_v1 = vld [vmem:[%s3205_s11 + $0x27c] ss:$24 sps:$4 sm:$0xff]  }
  0xba   : > { %1857 = vmatprep.subr.bf16.mxu0 %v2514_v4  ;;  %v2601_v2 = vld [vmem:[%s3205_s11 + $0x284] ss:$24 sps:$4 sm:$0xff]   ;;  %v2596_v4 = vld [vmem:[%s3205_s11 + $0x278] ss:$24 sps:$4 sm:$0xff]  }
  0xbc   : > { %1815 = vmatpush1.bf16.msra.mxu1 %v2516_v10  ;;  %v2605_v10 = vld [vmem:[%s3205_s11 + $0x2b0] ss:$24 sps:$4 sm:$0xff]  }
  0xbd   : > { %1858 = vmatpush1.bf16.msra.mxu0 %v2517_v11  ;;  %1870 = vmatprep.subr.bf16.mxu1 %v2520_v12  ;;  %v2610_v11 = vld [vmem:[%s3205_s11 + $0x2dc] ss:$24 sps:$4 sm:$0xff]  }
  0xbe   : > { %1956 = vmatprep.subr.bf16.mxu0 %v2523_v13  ;;  %v2613_v12 = vld [vmem:[%s3205_s11 + $0x2e4] ss:$24 sps:$4 sm:$0xff]   ;;  %v2608_v13 = vld [vmem:[%s3205_s11 + $0x2d8] ss:$24 sps:$4 sm:$0xff]  }
  0xbf   : > { %1817 = vmatmul.mubr.bf16.vlgmr.msra.gmra.mrb[0].mxu1 %v3286_v14 }
  0xc0   : > { %1860 = vmatmul.mubr.bf16.vlgmr.msra.gmra.mrb[0].mxu0 %v3288_v15  ;;  %1871 = vmatpush1.bf16.msra.mxu1 %v2518_v16  ;;  %v2611_v16 = vld [vmem:[%s3205_s11 + $0x2e0] ss:$24 sps:$4 sm:$0xff]  }
  0xc1   : > { %1957 = vmatpush1.bf16.msra.mxu0 %v2521_v17  ;;  %1872 = vmatprep.subr.bf16.mxu1 %v2526_v18  ;;  %v2616_v17 = vld [vmem:[%s3205_s11 + $0x30c] ss:$24 sps:$4 sm:$0xff]  }
  0xc2   : > { %1958 = vmatprep.subr.bf16.mxu0 %v2529_v19  ;;  %1902 = vmatprep.mubr.bf16.mxu1 %v3197_v3  ;;  %v2619_v18 = vld [vmem:[%s3205_s11 + $0x314] ss:$24 sps:$4 sm:$0xff]   ;;  %v2614_v19 = vld [vmem:[%s3205_s11 + $0x308] ss:$24 sps:$4 sm:$0xff]  }
  0xc3   : > { %1988 = vmatprep.mubr.bf16.mxu0 %v3197_v3  ;;  %v2544_v3 = vld [vmem:[%s3205_s11 + $0xcc] ss:$24 sps:$4 sm:$0xff]  }
  0xc4   : > { %1873 = vmatpush1.bf16.msra.mxu1 %v2524_v20  ;;  %v2617_v20 = vld [vmem:[%s3205_s11 + $0x310] ss:$24 sps:$4 sm:$0xff]  }
  0xc5   : > { %1959 = vmatpush1.bf16.msra.mxu0 %v2527_v21  ;;  %1874 = vmatprep.subr.bf16.mxu1 %v2532_v22  ;;  %v2622_v21 = vld [vmem:[%s3205_s11 + $0x33c] ss:$24 sps:$4 sm:$0xff]  }
  0xc6   : > { %1960 = vmatprep.subr.bf16.mxu0 %v2535_v23  ;;  %v2625_v22 = vld [vmem:[%s3205_s11 + $0x344] ss:$24 sps:$4 sm:$0xff]   ;;  %v2620_v23 = vld [vmem:[%s3205_s11 + $0x338] ss:$24 sps:$4 sm:$0xff]  }
  0xc8   : > { %1875 = vmatpush1.bf16.msra.mxu1 %v2530_v24  ;;  %v2623_v24 = vld [vmem:[%s3205_s11 + $0x340] ss:$24 sps:$4 sm:$0xff]  }
  0xc9   : > { %1961 = vmatpush1.bf16.msra.mxu0 %v2533_v25  ;;  %1876 = vmatprep.subr.bf16.mxu1 %v2538_v26  ;;  %v2628_v25 = vld [vmem:[%s3205_s11 + $0x36c] ss:$24 sps:$4 sm:$0xff]  }
  0xca   : > { %1962 = vmatprep.subr.bf16.mxu0 %v2541_v27  ;;  %v2631_v26 = vld [vmem:[%s3205_s11 + $0x374] ss:$24 sps:$4 sm:$0xff]   ;;  %v2629_v27 = vld [vmem:[%s3205_s11 + $0x370] ss:$24 sps:$4 sm:$0xff]  }
  0xcc   : > { %1877 = vmatpush1.bf16.msra.mxu1 %v2536_v28  ;;  %v2634_v28 = vld [vmem:[%s3205_s11 + $0x39c] ss:$24 sps:$4 sm:$0xff]  }
  0xcd   : > { %1963 = vmatpush1.bf16.msra.mxu0 %v2539_v29  ;;  %1878 = vmatprep.subr.bf16.mxu1 %v2544_v3  ;;  %v2637_v29 = vld [vmem:[%s3205_s11 + $0x3a4] ss:$24 sps:$4 sm:$0xff]   ;;  %v2632_v3 = vld [vmem:[%s3205_s11 + $0x398] ss:$24 sps:$4 sm:$0xff]  }
  0xce   : > { %1964 = vmatprep.subr.bf16.mxu0 %v2547_v30  ;;  %v2635_v30 = vld [vmem:[%s3205_s11 + $0x3a0] ss:$24 sps:$4 sm:$0xff]  }
  0xd0   : > { %1879 = vmatpush1.bf16.msra.mxu1 %v2542_v31  ;;  %v2643_v31 = vld [vmem:[%s3205_s11 + $0x3d4] ss:$24 sps:$4 sm:$0xff]  }
  0xd1   : > { %1965 = vmatpush1.bf16.msra.mxu0 %v2545_v32  ;;  %1880 = vmatprep.subr.bf16.mxu1 %v2550_v33  ;;  %v2638_v32 = vld [vmem:[%s3205_s11 + $0x3c8] ss:$24 sps:$4 sm:$0xff]  }
  0xd2   : > { %1966 = vmatprep.subr.bf16.mxu0 %v2553_v34  ;;  %v2641_v33 = vld [vmem:[%s3205_s11 + $0x3d0] ss:$24 sps:$4 sm:$0xff]   ;;  %v2646_v34 = vld [vmem:[%s3205_s11 + $0x3fc] ss:$24 sps:$4 sm:$0xff]  }
  0xd4   : > { %1881 = vmatpush1.bf16.msra.mxu1 %v2548_v35  ;;  %v2649_v35 = vld [vmem:[%s3205_s11 + $0x404] ss:$24 sps:$4 sm:$0xff]  }
  0xd5   : > { %1967 = vmatpush1.bf16.msra.mxu0 %v2551_v36  ;;  %1882 = vmatprep.subr.bf16.mxu1 %v2556_v37  ;;  %v2644_v36 = vld [vmem:[%s3205_s11 + $0x3f8] ss:$24 sps:$4 sm:$0xff]  }
  0xd6   : > { %1968 = vmatprep.subr.bf16.mxu0 %v2559_v38  ;;  %v2647_v37 = vld [vmem:[%s3205_s11 + $0x400] ss:$24 sps:$4 sm:$0xff]   ;;  %v2652_v38 = vld [vmem:[%s3205_s11 + $0x42c] ss:$24 sps:$4 sm:$0xff]  }
  0xd8   : > { %1883 = vmatpush1.bf16.msra.mxu1 %v2554_v39  ;;  %v2655_v39 = vld [vmem:[%s3205_s11 + $0x434] ss:$24 sps:$4 sm:$0xff]  }
  0xd9   : > { %1969 = vmatpush1.bf16.msra.mxu0 %v2557_v40  ;;  %1884 = vmatprep.subr.bf16.mxu1 %v2562_v41  ;;  %v2650_v40 = vld [vmem:[%s3205_s11 + $0x428] ss:$24 sps:$4 sm:$0xff]  }
  0xda   : > { %1970 = vmatprep.subr.bf16.mxu0 %v2565_v42  ;;  %v2653_v41 = vld [vmem:[%s3205_s11 + $0x430] ss:$24 sps:$4 sm:$0xff]   ;;  %v2658_v42 = vld [vmem:[%s3205_s11 + $0x45c] ss:$24 sps:$4 sm:$0xff]  }
  0xdc   : > { %1885 = vmatpush1.bf16.msra.mxu1 %v2560_v43  ;;  %v2661_v43 = vld [vmem:[%s3205_s11 + $0x464] ss:$24 sps:$4 sm:$0xff]  }
  0xdd   : > { %1971 = vmatpush1.bf16.msra.mxu0 %v2563_v44  ;;  %1886 = vmatprep.subr.bf16.mxu1 %v2568_v45  ;;  %v2656_v44 = vld [vmem:[%s3205_s11 + $0x458] ss:$24 sps:$4 sm:$0xff]  }
  0xde   : > { %1972 = vmatprep.subr.bf16.mxu0 %v2571_v46  ;;  %v2659_v45 = vld [vmem:[%s3205_s11 + $0x460] ss:$24 sps:$4 sm:$0xff]   ;;  %v2664_v46 = vld [vmem:[%s3205_s11 + $0x48c] ss:$24 sps:$4 sm:$0xff]  }
  0xe0   : > { %1887 = vmatpush1.bf16.msra.mxu1 %v2566_v47  ;;  %v2667_v47 = vld [vmem:[%s3205_s11 + $0x494] ss:$24 sps:$4 sm:$0xff]  }
  0xe1   : > { %1973 = vmatpush1.bf16.msra.mxu0 %v2569_v48  ;;  %1888 = vmatprep.subr.bf16.mxu1 %v2574_v49  ;;  %v2662_v48 = vld [vmem:[%s3205_s11 + $0x488] ss:$24 sps:$4 sm:$0xff]  }
  0xe2   : > { %1974 = vmatprep.subr.bf16.mxu0 %v2577_v50  ;;  %v2665_v49 = vld [vmem:[%s3205_s11 + $0x490] ss:$24 sps:$4 sm:$0xff]   ;;  %v2670_v50 = vld [vmem:[%s3205_s11 + $0x4bc] ss:$24 sps:$4 sm:$0xff]  }
  0xe4   : > { %1889 = vmatpush1.bf16.msra.mxu1 %v2572_v51  ;;  %v2673_v51 = vld [vmem:[%s3205_s11 + $0x4c4] ss:$24 sps:$4 sm:$0xff]  }
  0xe5   : > { %1975 = vmatpush1.bf16.msra.mxu0 %v2575_v52  ;;  %1890 = vmatprep.subr.bf16.mxu1 %v2580_v53  ;;  %v2668_v52 = vld [vmem:[%s3205_s11 + $0x4b8] ss:$24 sps:$4 sm:$0xff]  }
  0xe6   : > { %1976 = vmatprep.subr.bf16.mxu0 %v2583_v54  ;;  %v2671_v53 = vld [vmem:[%s3205_s11 + $0x4c0] ss:$24 sps:$4 sm:$0xff]   ;;  %v2676_v54 = vld [vmem:[%s3205_s11 + $0x4ec] ss:$24 sps:$4 sm:$0xff]  }
  0xe8   : > { %1891 = vmatpush1.bf16.msra.mxu1 %v2578_v55  ;;  %v2679_v55 = vld [vmem:[%s3205_s11 + $0x4f4] ss:$24 sps:$4 sm:$0xff]  }
  0xe9   : > { %1977 = vmatpush1.bf16.msra.mxu0 %v2581_v56  ;;  %1892 = vmatprep.subr.bf16.mxu1 %v2586_v57  ;;  %v2674_v56 = vld [vmem:[%s3205_s11 + $0x4e8] ss:$24 sps:$4 sm:$0xff]  }
  0xea   : > { %1978 = vmatprep.subr.bf16.mxu0 %v2589_v58  ;;  %v2677_v57 = vld [vmem:[%s3205_s11 + $0x4f0] ss:$24 sps:$4 sm:$0xff]   ;;  %v2682_v58 = vld [vmem:[%s3205_s11 + $0x51c] ss:$24 sps:$4 sm:$0xff]  }
  0xec   : > { %1893 = vmatpush1.bf16.msra.mxu1 %v2584_v59  ;;  %v2685_v59 = vld [vmem:[%s3205_s11 + $0x524] ss:$24 sps:$4 sm:$0xff]  }
  0xed   : > { %1979 = vmatpush1.bf16.msra.mxu0 %v2587_v60  ;;  %1894 = vmatprep.subr.bf16.mxu1 %v2592_v61  ;;  %v2680_v60 = vld [vmem:[%s3205_s11 + $0x518] ss:$24 sps:$4 sm:$0xff]  }
  0xee   : > { %1980 = vmatprep.subr.bf16.mxu0 %v2595_v62  ;;  %v2683_v61 = vld [vmem:[%s3205_s11 + $0x520] ss:$24 sps:$4 sm:$0xff]   ;;  %v2688_v62 = vld [vmem:[%s3205_s11 + $0x54c] ss:$24 sps:$4 sm:$0xff]  }
  0xf0   : > { %1895 = vmatpush1.bf16.msra.mxu1 %v2590_v63  ;;  %v2691_v63 = vld [vmem:[%s3205_s11 + $0x554] ss:$24 sps:$4 sm:$0xff]  }
  0xf1   : > { %1981 = vmatpush1.bf16.msra.mxu0 %v2593_v0  ;;  %1896 = vmatprep.subr.bf16.mxu1 %v2598_v1  ;;  %v2686_v0 = vld [vmem:[%s3205_s11 + $0x548] ss:$24 sps:$4 sm:$0xff]  }
  0xf2   : > { %1982 = vmatprep.subr.bf16.mxu0 %v2601_v2  ;;  %v2689_v1 = vld [vmem:[%s3205_s11 + $0x550] ss:$24 sps:$4 sm:$0xff]   ;;  %v2694_v2 = vld [vmem:[%s3205_s11 + $0x57c] ss:$24 sps:$4 sm:$0xff]  }
  0xf4   : > { %1897 = vmatpush1.bf16.msra.mxu1 %v2596_v4  ;;  %v2697_v4 = vld [vmem:[%s3205_s11 + $0x584] ss:$24 sps:$4 sm:$0xff]  }
  0xf5   : > { %1983 = vmatpush1.bf16.msra.mxu0 %v2599_v6  ;;  %1898 = vmatprep.subr.bf16.mxu1 %v2604_v7  ;;  %v2692_v6 = vld [vmem:[%s3205_s11 + $0x578] ss:$24 sps:$4 sm:$0xff]  }
  0xf6   : > { %1984 = vmatprep.subr.bf16.mxu0 %v2607_v8  ;;  %v2695_v7 = vld [vmem:[%s3205_s11 + $0x580] ss:$24 sps:$4 sm:$0xff]   ;;  %v2700_v8 = vld [vmem:[%s3205_s11 + $0x5ac] ss:$24 sps:$4 sm:$0xff]  }
  0xf8   : > { %1899 = vmatpush1.bf16.msra.mxu1 %v2602_v9  ;;  %v2703_v9 = vld [vmem:[%s3205_s11 + $0x5b4] ss:$24 sps:$4 sm:$0xff]  }
  0xf9   : > { %1985 = vmatpush1.bf16.msra.mxu0 %v2605_v10  ;;  %1900 = vmatprep.subr.bf16.mxu1 %v2610_v11  ;;  %v2698_v10 = vld [vmem:[%s3205_s11 + $0x5a8] ss:$24 sps:$4 sm:$0xff]  }
  0xfa   : > { %1986 = vmatprep.subr.bf16.mxu0 %v2613_v12  ;;  %v2701_v11 = vld [vmem:[%s3205_s11 + $0x5b0] ss:$24 sps:$4 sm:$0xff]   ;;  %v2706_v12 = vld [vmem:[%s3205_s11 + $0x5dc] ss:$24 sps:$4 sm:$0xff]  }
  0xfc   : > { %1901 = vmatpush1.bf16.msra.mxu1 %v2608_v13  ;;  %v2709_v13 = vld [vmem:[%s3205_s11 + $0x5e4] ss:$24 sps:$4 sm:$0xff]  }
  0xfd   : > { %1987 = vmatpush1.bf16.msra.mxu0 %v2611_v16  ;;  %1913 = vmatprep.subr.bf16.mxu1 %v2616_v17  ;;  %v2704_v16 = vld [vmem:[%s3205_s11 + $0x5d8] ss:$24 sps:$4 sm:$0xff]  }
  0xfe   : > { %1999 = vmatprep.subr.bf16.mxu0 %v2619_v18  ;;  %v2707_v17 = vld [vmem:[%s3205_s11 + $0x5e0] ss:$24 sps:$4 sm:$0xff]   ;;  %v794_v18 = vlaneseq }
  0xff   : > { %1903 = vmatmul.mubr.bf16.vlgmr.msra.gmra.mrb[4].mxu1 %v3286_v14 }
 0x100   : > { %1989 = vmatmul.mubr.bf16.vlgmr.msra.gmra.mrb[4].mxu0 %v3286_v14  ;;  %1914 = vmatpush1.bf16.msra.mxu1 %v2614_v19  ;;  %v2626_v14 = vld [vmem:[%s3205_s11 + $0x368] ss:$24 sps:$4 sm:$0xff]   ;;  %v795_v19 = vshrl.u32 %v794_v18, 7 }
 0x101   : > { %2000 = vmatpush1.bf16.msra.mxu0 %v2617_v20  ;;  %1915 = vmatprep.subr.bf16.mxu1 %v2622_v21  ;;  %v792_v21 = vld [vmem:[%s585_s30] sm:$0x3f] }
 0x102   : > { %2001 = vmatprep.subr.bf16.mxu0 %v2625_v22  ;;  %1945 = vmatprep.mubr.bf16.mxu1 %v3202_v5  ;;  %v796_v20 = vsub.s32 0, %v795_v19  ;;  %v800_v22 = vsub.s32 1, %v795_v19 }
 0x103   : > { %2031 = vmatprep.mubr.bf16.mxu0 %v3202_v5  ;;  %v2640_v5 = vld [vmem:[%s3205_s11 + $0x3cc] ss:$24 sps:$4 sm:$0xff]  }
 0x104   : > { %1916 = vmatpush1.bf16.msra.mxu1 %v2620_v23  ;;  %v797_v23 = vrot.slane %v792_v21, %v796_v20 }
 0x105   : > { %2002 = vmatpush1.bf16.msra.mxu0 %v2623_v24  ;;  %1917 = vmatprep.subr.bf16.mxu1 %v2628_v25  ;;  %v801_v24 = vrot.slane %v792_v21, %v800_v22 }
 0x106   : > { %2003 = vmatprep.subr.bf16.mxu0 %v2631_v26 }
 0x108   : > { %1918 = vmatpush1.bf16.msra.mxu1 %v2626_v14 }
 0x109   : > { %2004 = vmatpush1.bf16.msra.mxu0 %v2629_v27  ;;  %1919 = vmatprep.subr.bf16.mxu1 %v2634_v28 }
 0x10a   : > { %2005 = vmatprep.subr.bf16.mxu0 %v2637_v29 }
 0x10c   : > { %1920 = vmatpush1.bf16.msra.mxu1 %v2632_v3 }
 0x10d   : > { %2006 = vmatpush1.bf16.msra.mxu0 %v2635_v30  ;;  %1921 = vmatprep.subr.bf16.mxu1 %v2640_v5 }
 0x10e   : > { %2007 = vmatprep.subr.bf16.mxu0 %v2643_v31 }
 0x110   : > { %1922 = vmatpush1.bf16.msra.mxu1 %v2638_v32 }
 0x111   : > { %2008 = vmatpush1.bf16.msra.mxu0 %v2641_v33  ;;  %1923 = vmatprep.subr.bf16.mxu1 %v2646_v34 }
 0x112   : > { %2009 = vmatprep.subr.bf16.mxu0 %v2649_v35 }
 0x114   : > { %1924 = vmatpush1.bf16.msra.mxu1 %v2644_v36 }
 0x115   : > { %2010 = vmatpush1.bf16.msra.mxu0 %v2647_v37  ;;  %1925 = vmatprep.subr.bf16.mxu1 %v2652_v38  ;;  %v804_v37 = vsub.s32 2, %v795_v19  ;;  %v812_v38 = vsub.s32 4, %v795_v19 }
 0x116   : > { %2011 = vmatprep.subr.bf16.mxu0 %v2655_v39  ;;  %v808_v39 = vsub.s32 3, %v795_v19 }
 0x118   : > { %1926 = vmatpush1.bf16.msra.mxu1 %v2650_v40  ;;  %v816_v40 = vsub.s32 5, %v795_v19 }
 0x119   : > { %2012 = vmatpush1.bf16.msra.mxu0 %v2653_v41  ;;  %1927 = vmatprep.subr.bf16.mxu1 %v2658_v42  ;;  %v805_v41 = vrot.slane %v792_v21, %v804_v37  ;;  %v813_v42 = vrot.slane %v792_v21, %v812_v38 }
 0x11a   : > { %2013 = vmatprep.subr.bf16.mxu0 %v2661_v43  ;;  %v809_v43 = vrot.slane %v792_v21, %v808_v39 }
 0x11c   : > { %1928 = vmatpush1.bf16.msra.mxu1 %v2656_v44  ;;  %v817_v44 = vrot.slane %v792_v21, %v816_v40 }
 0x11d   : > { %2014 = vmatpush1.bf16.msra.mxu0 %v2659_v45  ;;  %1929 = vmatprep.subr.bf16.mxu1 %v2664_v46 }
 0x11e   : > { %2015 = vmatprep.subr.bf16.mxu0 %v2667_v47 }
 0x120   : > { %1930 = vmatpush1.bf16.msra.mxu1 %v2662_v48 }
 0x121   : > { %2016 = vmatpush1.bf16.msra.mxu0 %v2665_v49  ;;  %1931 = vmatprep.subr.bf16.mxu1 %v2670_v50 }
 0x122   : > { %2017 = vmatprep.subr.bf16.mxu0 %v2673_v51 }
 0x124   : > { %1932 = vmatpush1.bf16.msra.mxu1 %v2668_v52 }
 0x125   : > { %2018 = vmatpush1.bf16.msra.mxu0 %v2671_v53  ;;  %1933 = vmatprep.subr.bf16.mxu1 %v2676_v54 }
 0x126   : > { %2019 = vmatprep.subr.bf16.mxu0 %v2679_v55 }
 0x128   : > { %1934 = vmatpush1.bf16.msra.mxu1 %v2674_v56 }
 0x129   : > { %2020 = vmatpush1.bf16.msra.mxu0 %v2677_v57  ;;  %1935 = vmatprep.subr.bf16.mxu1 %v2682_v58 }
 0x12a   : > { %2021 = vmatprep.subr.bf16.mxu0 %v2685_v59 }
 0x12c   : > { %1936 = vmatpush1.bf16.msra.mxu1 %v2680_v60 }
 0x12d   : > { %2022 = vmatpush1.bf16.msra.mxu0 %v2683_v61  ;;  %1937 = vmatprep.subr.bf16.mxu1 %v2688_v62 }
 0x12e   : > { %2023 = vmatprep.subr.bf16.mxu0 %v2691_v63 }
 0x130   : > { %1938 = vmatpush1.bf16.msra.mxu1 %v2686_v0 }
 0x131   : > { %2024 = vmatpush1.bf16.msra.mxu0 %v2689_v1  ;;  %1939 = vmatprep.subr.bf16.mxu1 %v2694_v2 }
 0x132   : > { %2025 = vmatprep.subr.bf16.mxu0 %v2697_v4 }
 0x134   : > { %1940 = vmatpush1.bf16.msra.mxu1 %v2692_v6 }
 0x135   : > { %2026 = vmatpush1.bf16.msra.mxu0 %v2695_v7  ;;  %1941 = vmatprep.subr.bf16.mxu1 %v2700_v8 }
 0x136   : > { %2027 = vmatprep.subr.bf16.mxu0 %v2703_v9 }
 0x138   : > { %1942 = vmatpush1.bf16.msra.mxu1 %v2698_v10 }
 0x139   : > { %2028 = vmatpush1.bf16.msra.mxu0 %v2701_v11  ;;  %1943 = vmatprep.subr.bf16.mxu1 %v2706_v12 }
 0x13a   : > { %2029 = vmatprep.subr.bf16.mxu0 %v2709_v13 }
 0x13c   : > { %1944 = vmatpush1.bf16.msra.mxu1 %v2704_v16 }
 0x13d   : > { %2030 = vmatpush1.bf16.msra.mxu0 %v2707_v17 }
 0x13f   : > { %1946 = vmatmul.mubr.bf16.vlgmr.msra.gmra.mrb[4].mxu1 %v3288_v15 }
 0x140   : > { %2032 = vmatmul.mubr.bf16.vlgmr.msra.gmra.mrb[4].mxu0 %v3288_v15 }
 0x192   : > { %v1818_v25 = vpop.f32.mrb[0].mxu1 }
 0x193   : > { %v1861_v26 = vpop.f32.mrb[0].mxu0  ;;  %v1819_v14 = vadd.f32 %v1818_v25, %v797_v23  ;;  %v1820_v15 = vpop.f32.mrb[1].mxu1 }
 0x194   : > { %v1863_v27 = vpop.f32.mrb[1].mxu0  ;;  %v1821_v28 = vadd.f32 %v1820_v15, %v801_v24  ;;  %v1822_v29 = vpop.f32.mrb[2].mxu1 }
 0x195   : > { %v1865_v3 = vpop.f32.mrb[2].mxu0  ;;  %v1862_v30 = vadd.f32 %v1861_v26, %v1819_v14  ;;  %v1823_v5 = vadd.f32 %v1822_v29, %v797_v23  ;;  %v1824_v31 = vpop.f32.mrb[3].mxu1 }
 0x196   : > { %v1867_v32 = vpop.f32.mrb[3].mxu0  ;;  %v1864_v33 = vadd.f32 %v1863_v27, %v1821_v28  ;;  %v1825_v34 = vadd.f32 %v1824_v31, %v801_v24 }
 0x197   : > { %2042 = vst [vmem:[%s3432_s5] sm:$0xff] %v1862_v30  ;;  %v1866_v35 = vadd.f32 %v1865_v3, %v1823_v5 }
 0x198   : > { %2043 = vst [vmem:[%s3432_s5 + $0x8] sm:$0xff] %v1864_v33  ;;  %v1868_v36 = vadd.f32 %v1867_v32, %v1825_v34 }
 0x199   : > { %2048 = vst [vmem:[%s3432_s5 + $0x30] sm:$0xff] %v1866_v35 }
 0x19a   : > { %2049 = vst [vmem:[%s3432_s5 + $0x38] sm:$0xff] %v1868_v36 }
 0x19e   : > { %v2076_v61 = vld [vmem:[%s3432_s5] sm:$0xff] (%p2785_p5) }
 0x19f   : > { %v2078_v62 = vld [vmem:[%s3432_s5 + $0x8] sm:$0xff] (%p2785_p5)  ;;  %2077 = vst [vmem:[%s2063_s6] sm:$0xff] (%p2785_p5), %v2076_v61 }
 0x1a0   : > { %v2088_v4 = vld [vmem:[%s3432_s5 + $0x30] sm:$0xff] (%p2785_p5)  ;;  %2079 = vst [vmem:[%s2063_s6 + $0x8] sm:$0xff] (%p2785_p5), %v2078_v62 }
 0x1a1   : > { %v2090_v6 = vld [vmem:[%s3432_s5 + $0x38] sm:$0xff] (%p2785_p5)  ;;  %2089 = vst [vmem:[%s2063_s6 + $0x60] sm:$0xff] (%p2785_p5), %v2088_v4 }
 0x1a2   : > { %2091 = vst [vmem:[%s2063_s6 + $0x68] sm:$0xff] (%p2785_p5), %v2090_v6 }
 0x212   : > { %v1947_v45 = vpop.f32.mrb[4].mxu1 }
 0x213   : > { %v2033_v46 = vpop.f32.mrb[4].mxu0  ;;  %v2379_v47 = vadd.f32 %v1947_v45, %v805_v41  ;;  %v1949_v49 = vpop.f32.mrb[5].mxu1  ;;  %2060 = sbr.rel (!%p2785_p5) target bundleno = 546 (0x222), region = 59 }
 0x214   : > { %v2383_v48 = vadd.f32 %v2033_v46, %v813_v42  ;;  %v2035_v50 = vpop.f32.mrb[5].mxu0  ;;  %v2380_v51 = vadd.f32 %v1949_v49, %v809_v43  ;;  %v1951_v53 = vpop.f32.mrb[6].mxu1 }
 0x215   : > { %v2384_v52 = vadd.f32 %v2035_v50, %v817_v44  ;;  %v2037_v54 = vpop.f32.mrb[6].mxu0  ;;  %2044 = vst [vmem:[%s3432_s5 + $0x10] sm:$0xff] %v2379_v47  ;;  %v2381_v55 = vadd.f32 %v1951_v53, %v805_v41  ;;  %v1953_v57 = vpop.f32.mrb[7].mxu1 }
 0x216   : > { %2046 = vst [vmem:[%s3432_s5 + $0x20] sm:$0xff] %v2383_v48  ;;  %v2385_v56 = vadd.f32 %v2037_v54, %v813_v42  ;;  %v2039_v58 = vpop.f32.mrb[7].mxu0  ;;  %2045 = vst [vmem:[%s3432_s5 + $0x18] sm:$0xff] %v2380_v51  ;;  %v2382_v59 = vadd.f32 %v1953_v57, %v809_v43 }
 0x217   : > { %2047 = vst [vmem:[%s3432_s5 + $0x28] sm:$0xff] %v2384_v52  ;;  %v2386_v60 = vadd.f32 %v2039_v58, %v817_v44  ;;  %2050 = vst [vmem:[%s3432_s5 + $0x40] sm:$0xff] %v2381_v55 }
 0x218   : > { %2052 = vst [vmem:[%s3432_s5 + $0x50] sm:$0xff] %v2385_v56  ;;  %2051 = vst [vmem:[%s3432_s5 + $0x48] sm:$0xff] %v2382_v59 }
 0x219   : > { %2053 = vst [vmem:[%s3432_s5 + $0x58] sm:$0xff] %v2386_v60 }
 0x21c   : > { %v2080_v63 = vld [vmem:[%s3432_s5 + $0x10] sm:$0xff] }
 0x21d   : > { %v2082_v0 = vld [vmem:[%s3432_s5 + $0x18] sm:$0xff]  ;;  %v2084_v1 = vld [vmem:[%s3432_s5 + $0x20] sm:$0xff]  ;;  %2081 = vst [vmem:[%s2063_s6 + $0x10] sm:$0xff] %v2080_v63 }
 0x21e   : > { %v2086_v2 = vld [vmem:[%s3432_s5 + $0x28] sm:$0xff]  ;;  %v2092_v7 = vld [vmem:[%s3432_s5 + $0x40] sm:$0xff]  ;;  %2083 = vst [vmem:[%s2063_s6 + $0x18] sm:$0xff] %v2082_v0  ;;  %2085 = vst [vmem:[%s2063_s6 + $0x20] sm:$0xff] %v2084_v1 }
 0x21f   : > { %2087 = vst [vmem:[%s2063_s6 + $0x28] sm:$0xff] %v2086_v2  ;;  %2093 = vst [vmem:[%s2063_s6 + $0x70] sm:$0xff] %v2092_v7  ;;  %v2094_v8 = vld [vmem:[%s3432_s5 + $0x48] sm:$0xff]  ;;  %v2096_v9 = vld [vmem:[%s3432_s5 + $0x50] sm:$0xff] }
 0x220   : > { %v2098_v10 = vld [vmem:[%s3432_s5 + $0x58] sm:$0xff]  ;;  %2095 = vst [vmem:[%s2063_s6 + $0x78] sm:$0xff] %v2094_v8  ;;  %2097 = vst [vmem:[%s2063_s6 + $0x80] sm:$0xff] %v2096_v9 }
 0x221   : > { %2099 = vst [vmem:[%s2063_s6 + $0x88] sm:$0xff] %v2098_v10 }
 0x222 PF: > { %p10_p11 = scmp.ge.s32.totalorder %s2773_s16, 4   ;;  %s3479_s12 = smov %s2728_s13 }
 0x223   : > { %s3480_s13 = smov %s2783_s19  ;;  %s3481_s14 = smov %s2773_s16 }
 0x224   :  { %12 = sbr.rel (!%p10_p11) target bundleno = 2 (0x2), region = 116 }

// kernel: transformer_forward.40
= control target key start
LH: loop header
LB: loop body
LE: loop exit
PB: predicated region body
PF: predicated region fallthrough
CT: control target
= control target key end

     0   :  { %s1970_s12 = smov 0   ;;  %s1972_s13 = smov 0   ;;  %s2470_s0 = inlined_call_operand.vmem [shape: f32[16,512], index: 0, kind: input, shape index: {}]   ;;  %s2471_s1 = inlined_call_operand.vmem [shape: bf16[512,1024], index: 1, kind: input, shape index: {}]   ;;  %s2472_s2 = inlined_call_operand.vmem [shape: f32[1,1024], index: 2, kind: input, shape index: {}]   ;;  %s2473_s3 = inlined_call_operand.vmem [shape: f32[16,1024], index: 3, kind: output, shape index: {}]  }
   0x1   :  { %s1974_s14 = smov 0  }
   0x2 LB: > { %s1986_s15 = sadd.s32 4294967295, %s1948_s14   ;;  %s1989_s16 = sadd.s32 1, %s1948_s14   ;;  %s1948_s14 = sphi %s1974_s14, %s2477_s14   ;;  %s1944_s13 = sphi %s1972_s13, %s2476_s13   ;;  %s1940_s12 = sphi %s1970_s12, %s2475_s12  }
   0x3   : > { %s38_s17 = ssub.s32 %s1948_s14, %s1989_s16  ;;  %s41_s18 = sadd.s32 1, %s1944_s13 }
   0x4   : > { %p39_p0 = scmp.eq.s32.totalorder %s38_s17, 0  ;;  %p48_p1 = scmp.ne.s32.totalorder %s1944_s13, %s1940_s12 }
   0x5   : > { %p49_p2 = scmp.eq.s32.totalorder %s1948_s14, 0  ;;  %p104_p3 = scmp.eq.s32.totalorder %s1986_s15, 1 }
   0x6   : > { %s1999_s19 = scalar_select %p39_p0, %s1944_s13, %s41_s18  }
   0x7   : > { %p50_p4 = por %p49_p2, %p48_p1  ;;  %p2001_p5 = por %p104_p3, %p48_p1 }
   0x8   : > { %p1551_p6 = scmp.ge.s32.totalorder %s1948_s14, 2 }
   0xa   : > { %129 = sbr.rel (%p1551_p6) target bundleno = 85 (0x55), region = 20 }
  0x11   : > { %132 = sbr.rel (!%p50_p4) target bundleno = 85 (0x55), region = 24  ;;  %s134_s21 = sand.u32 (%p50_p4), 1, %s1944_s13  }
  0x12   : > { %s1692_s22 = sshll.u32 (%p50_p4), %s1948_s14, 4  ;;  %s1552_s23 = sshll.u32 (%p50_p4), %s134_s21, 10 }
  0x13   : > { %s2011_s26 = scalar_lea.vmem (%p50_p4), %s2471_s1, %s1692_s22  ;;  %s2016_s27 = scalar_lea.vmem (%p50_p4), [#allocation2], %s1552_s23 }
  0x14   : > { %v152_v0 = vld [vmem:[%s2011_s26] sm:$0xff] (%p50_p4)  ;;  %v154_v1 = vld [vmem:[%s2011_s26 + $0x8] sm:$0xff] (%p50_p4) }
  0x15   : > { %v156_v2 = vld [vmem:[%s2011_s26 + $0x20] sm:$0xff] (%p50_p4)  ;;  %153 = vst [vmem:[%s2016_s27] sm:$0xff] (%p50_p4), %v152_v0  ;;  %155 = vst [vmem:[%s2016_s27 + $0x8] sm:$0xff] (%p50_p4), %v154_v1  ;;  %v158_v3 = vld [vmem:[%s2011_s26 + $0x28] sm:$0xff] (%p50_p4) }
  0x16   : > { %157 = vst [vmem:[%s2016_s27 + $0x10] sm:$0xff] (%p50_p4), %v156_v2  ;;  %v160_v4 = vld [vmem:[%s2011_s26 + $0x40] sm:$0xff] (%p50_p4)  ;;  %v162_v5 = vld [vmem:[%s2011_s26 + $0x48] sm:$0xff] (%p50_p4)  ;;  %159 = vst [vmem:[%s2016_s27 + $0x18] sm:$0xff] (%p50_p4), %v158_v3 }
  0x17   : > { %161 = vst [vmem:[%s2016_s27 + $0x20] sm:$0xff] (%p50_p4), %v160_v4  ;;  %163 = vst [vmem:[%s2016_s27 + $0x28] sm:$0xff] (%p50_p4), %v162_v5  ;;  %v164_v6 = vld [vmem:[%s2011_s26 + $0x60] sm:$0xff] (%p50_p4)  ;;  %v166_v7 = vld [vmem:[%s2011_s26 + $0x68] sm:$0xff] (%p50_p4) }
  0x18   : > { %v168_v8 = vld [vmem:[%s2011_s26 + $0x80] sm:$0xff]  ;;  %165 = vst [vmem:[%s2016_s27 + $0x30] sm:$0xff] %v164_v6  ;;  %167 = vst [vmem:[%s2016_s27 + $0x38] sm:$0xff] %v166_v7  ;;  %v170_v9 = vld [vmem:[%s2011_s26 + $0x88] sm:$0xff] }
  0x19   : > { %169 = vst [vmem:[%s2016_s27 + $0x40] sm:$0xff] %v168_v8  ;;  %v172_v10 = vld [vmem:[%s2011_s26 + $0xa0] sm:$0xff]  ;;  %v174_v11 = vld [vmem:[%s2011_s26 + $0xa8] sm:$0xff]  ;;  %171 = vst [vmem:[%s2016_s27 + $0x48] sm:$0xff] %v170_v9 }
  0x1a   : > { %173 = vst [vmem:[%s2016_s27 + $0x50] sm:$0xff] %v172_v10  ;;  %175 = vst [vmem:[%s2016_s27 + $0x58] sm:$0xff] %v174_v11  ;;  %v176_v12 = vld [vmem:[%s2011_s26 + $0xc0] sm:$0xff]  ;;  %v178_v13 = vld [vmem:[%s2011_s26 + $0xc8] sm:$0xff] }
  0x1b   : > { %v180_v14 = vld [vmem:[%s2011_s26 + $0xe0] sm:$0xff]  ;;  %177 = vst [vmem:[%s2016_s27 + $0x60] sm:$0xff] %v176_v12  ;;  %179 = vst [vmem:[%s2016_s27 + $0x68] sm:$0xff] %v178_v13  ;;  %v182_v15 = vld [vmem:[%s2011_s26 + $0xe8] sm:$0xff] }
  0x1c   : > { %181 = vst [vmem:[%s2016_s27 + $0x70] sm:$0xff] %v180_v14  ;;  %v184_v16 = vld [vmem:[%s2011_s26 + $0x100] sm:$0xff]  ;;  %v186_v17 = vld [vmem:[%s2011_s26 + $0x108] sm:$0xff]  ;;  %183 = vst [vmem:[%s2016_s27 + $0x78] sm:$0xff] %v182_v15 }
  0x1d   : > { %185 = vst [vmem:[%s2016_s27 + $0x80] sm:$0xff] %v184_v16  ;;  %187 = vst [vmem:[%s2016_s27 + $0x88] sm:$0xff] %v186_v17  ;;  %v188_v18 = vld [vmem:[%s2011_s26 + $0x120] sm:$0xff]  ;;  %v190_v19 = vld [vmem:[%s2011_s26 + $0x128] sm:$0xff] }
  0x1e   : > { %v192_v20 = vld [vmem:[%s2011_s26 + $0x140] sm:$0xff]  ;;  %189 = vst [vmem:[%s2016_s27 + $0x90] sm:$0xff] %v188_v18  ;;  %191 = vst [vmem:[%s2016_s27 + $0x98] sm:$0xff] %v190_v19  ;;  %v194_v21 = vld [vmem:[%s2011_s26 + $0x148] sm:$0xff] }
  0x1f   : > { %193 = vst [vmem:[%s2016_s27 + $0xa0] sm:$0xff] %v192_v20  ;;  %v196_v22 = vld [vmem:[%s2011_s26 + $0x160] sm:$0xff]  ;;  %v198_v23 = vld [vmem:[%s2011_s26 + $0x168] sm:$0xff]  ;;  %195 = vst [vmem:[%s2016_s27 + $0xa8] sm:$0xff] %v194_v21 }
  0x20   : > { %197 = vst [vmem:[%s2016_s27 + $0xb0] sm:$0xff] %v196_v22  ;;  %199 = vst [vmem:[%s2016_s27 + $0xb8] sm:$0xff] %v198_v23  ;;  %v200_v24 = vld [vmem:[%s2011_s26 + $0x180] sm:$0xff]  ;;  %v202_v25 = vld [vmem:[%s2011_s26 + $0x188] sm:$0xff] }
  0x21   : > { %v204_v26 = vld [vmem:[%s2011_s26 + $0x1a0] sm:$0xff]  ;;  %201 = vst [vmem:[%s2016_s27 + $0xc0] sm:$0xff] %v200_v24  ;;  %203 = vst [vmem:[%s2016_s27 + $0xc8] sm:$0xff] %v202_v25  ;;  %v206_v27 = vld [vmem:[%s2011_s26 + $0x1a8] sm:$0xff] }
  0x22   : > { %205 = vst [vmem:[%s2016_s27 + $0xd0] sm:$0xff] %v204_v26  ;;  %v208_v28 = vld [vmem:[%s2011_s26 + $0x1c0] sm:$0xff]  ;;  %v210_v29 = vld [vmem:[%s2011_s26 + $0x1c8] sm:$0xff]  ;;  %207 = vst [vmem:[%s2016_s27 + $0xd8] sm:$0xff] %v206_v27 }
  0x23   : > { %209 = vst [vmem:[%s2016_s27 + $0xe0] sm:$0xff] %v208_v28  ;;  %211 = vst [vmem:[%s2016_s27 + $0xe8] sm:$0xff] %v210_v29  ;;  %v212_v30 = vld [vmem:[%s2011_s26 + $0x1e0] sm:$0xff]  ;;  %v214_v31 = vld [vmem:[%s2011_s26 + $0x1e8] sm:$0xff] }
  0x24   : > { %v216_v32 = vld [vmem:[%s2011_s26 + $0x200] sm:$0xff]  ;;  %213 = vst [vmem:[%s2016_s27 + $0xf0] sm:$0xff] %v212_v30  ;;  %215 = vst [vmem:[%s2016_s27 + $0xf8] sm:$0xff] %v214_v31  ;;  %v218_v33 = vld [vmem:[%s2011_s26 + $0x208] sm:$0xff] }
  0x25   : > { %217 = vst [vmem:[%s2016_s27 + $0x100] sm:$0xff] %v216_v32  ;;  %v220_v34 = vld [vmem:[%s2011_s26 + $0x220] sm:$0xff]  ;;  %v222_v35 = vld [vmem:[%s2011_s26 + $0x228] sm:$0xff]  ;;  %219 = vst [vmem:[%s2016_s27 + $0x108] sm:$0xff] %v218_v33 }
  0x26   : > { %221 = vst [vmem:[%s2016_s27 + $0x110] sm:$0xff] %v220_v34  ;;  %223 = vst [vmem:[%s2016_s27 + $0x118] sm:$0xff] %v222_v35  ;;  %v224_v36 = vld [vmem:[%s2011_s26 + $0x240] sm:$0xff]  ;;  %v226_v37 = vld [vmem:[%s2011_s26 + $0x248] sm:$0xff] }
  0x27   : > { %v228_v38 = vld [vmem:[%s2011_s26 + $0x260] sm:$0xff]  ;;  %225 = vst [vmem:[%s2016_s27 + $0x120] sm:$0xff] %v224_v36  ;;  %227 = vst [vmem:[%s2016_s27 + $0x128] sm:$0xff] %v226_v37  ;;  %v230_v39 = vld [vmem:[%s2011_s26 + $0x268] sm:$0xff] }
  0x28   : > { %229 = vst [vmem:[%s2016_s27 + $0x130] sm:$0xff] %v228_v38  ;;  %v232_v40 = vld [vmem:[%s2011_s26 + $0x280] sm:$0xff]  ;;  %v234_v41 = vld [vmem:[%s2011_s26 + $0x288] sm:$0xff]  ;;  %231 = vst [vmem:[%s2016_s27 + $0x138] sm:$0xff] %v230_v39 }
  0x29   : > { %233 = vst [vmem:[%s2016_s27 + $0x140] sm:$0xff] %v232_v40  ;;  %235 = vst [vmem:[%s2016_s27 + $0x148] sm:$0xff] %v234_v41  ;;  %v236_v42 = vld [vmem:[%s2011_s26 + $0x2a0] sm:$0xff]  ;;  %v238_v43 = vld [vmem:[%s2011_s26 + $0x2a8] sm:$0xff] }
  0x2a   : > { %v240_v44 = vld [vmem:[%s2011_s26 + $0x2c0] sm:$0xff]  ;;  %237 = vst [vmem:[%s2016_s27 + $0x150] sm:$0xff] %v236_v42  ;;  %239 = vst [vmem:[%s2016_s27 + $0x158] sm:$0xff] %v238_v43  ;;  %v242_v45 = vld [vmem:[%s2011_s26 + $0x2c8] sm:$0xff] }
  0x2b   : > { %241 = vst [vmem:[%s2016_s27 + $0x160] sm:$0xff] %v240_v44  ;;  %v244_v46 = vld [vmem:[%s2011_s26 + $0x2e0] sm:$0xff]  ;;  %v246_v47 = vld [vmem:[%s2011_s26 + $0x2e8] sm:$0xff]  ;;  %243 = vst [vmem:[%s2016_s27 + $0x168] sm:$0xff] %v242_v45 }
  0x2c   : > { %245 = vst [vmem:[%s2016_s27 + $0x170] sm:$0xff] %v244_v46  ;;  %247 = vst [vmem:[%s2016_s27 + $0x178] sm:$0xff] %v246_v47  ;;  %v248_v48 = vld [vmem:[%s2011_s26 + $0x300] sm:$0xff]  ;;  %v250_v49 = vld [vmem:[%s2011_s26 + $0x308] sm:$0xff] }
  0x2d   : > { %v252_v50 = vld [vmem:[%s2011_s26 + $0x320] sm:$0xff]  ;;  %249 = vst [vmem:[%s2016_s27 + $0x180] sm:$0xff] %v248_v48  ;;  %251 = vst [vmem:[%s2016_s27 + $0x188] sm:$0xff] %v250_v49  ;;  %v254_v51 = vld [vmem:[%s2011_s26 + $0x328] sm:$0xff] }
  0x2e   : > { %253 = vst [vmem:[%s2016_s27 + $0x190] sm:$0xff] %v252_v50  ;;  %v256_v52 = vld [vmem:[%s2011_s26 + $0x340] sm:$0xff]  ;;  %v258_v53 = vld [vmem:[%s2011_s26 + $0x348] sm:$0xff]  ;;  %255 = vst [vmem:[%s2016_s27 + $0x198] sm:$0xff] %v254_v51 }
  0x2f   : > { %257 = vst [vmem:[%s2016_s27 + $0x1a0] sm:$0xff] %v256_v52  ;;  %259 = vst [vmem:[%s2016_s27 + $0x1a8] sm:$0xff] %v258_v53  ;;  %v260_v54 = vld [vmem:[%s2011_s26 + $0x360] sm:$0xff]  ;;  %v262_v55 = vld [vmem:[%s2011_s26 + $0x368] sm:$0xff] }
  0x30   : > { %v264_v56 = vld [vmem:[%s2011_s26 + $0x380] sm:$0xff]  ;;  %261 = vst [vmem:[%s2016_s27 + $0x1b0] sm:$0xff] %v260_v54  ;;  %263 = vst [vmem:[%s2016_s27 + $0x1b8] sm:$0xff] %v262_v55  ;;  %v266_v57 = vld [vmem:[%s2011_s26 + $0x388] sm:$0xff] }
  0x31   : > { %265 = vst [vmem:[%s2016_s27 + $0x1c0] sm:$0xff] %v264_v56  ;;  %v268_v58 = vld [vmem:[%s2011_s26 + $0x3a0] sm:$0xff]  ;;  %v270_v59 = vld [vmem:[%s2011_s26 + $0x3a8] sm:$0xff]  ;;  %267 = vst [vmem:[%s2016_s27 + $0x1c8] sm:$0xff] %v266_v57 }
  0x32   : > { %269 = vst [vmem:[%s2016_s27 + $0x1d0] sm:$0xff] %v268_v58  ;;  %271 = vst [vmem:[%s2016_s27 + $0x1d8] sm:$0xff] %v270_v59  ;;  %v272_v60 = vld [vmem:[%s2011_s26 + $0x3c0] sm:$0xff]  ;;  %v274_v61 = vld [vmem:[%s2011_s26 + $0x3c8] sm:$0xff] }
  0x33   : > { %v276_v62 = vld [vmem:[%s2011_s26 + $0x3e0] sm:$0xff]  ;;  %273 = vst [vmem:[%s2016_s27 + $0x1e0] sm:$0xff] %v272_v60  ;;  %275 = vst [vmem:[%s2016_s27 + $0x1e8] sm:$0xff] %v274_v61  ;;  %v278_v63 = vld [vmem:[%s2011_s26 + $0x3e8] sm:$0xff] }
  0x34   : > { %277 = vst [vmem:[%s2016_s27 + $0x1f0] sm:$0xff] %v276_v62  ;;  %v280_v0 = vld [vmem:[%s2011_s26 + $0x400] sm:$0xff]  ;;  %v282_v1 = vld [vmem:[%s2011_s26 + $0x408] sm:$0xff]  ;;  %279 = vst [vmem:[%s2016_s27 + $0x1f8] sm:$0xff] %v278_v63 }
  0x35   : > { %281 = vst [vmem:[%s2016_s27 + $0x200] sm:$0xff] %v280_v0  ;;  %283 = vst [vmem:[%s2016_s27 + $0x208] sm:$0xff] %v282_v1  ;;  %v284_v2 = vld [vmem:[%s2011_s26 + $0x420] sm:$0xff]  ;;  %v286_v3 = vld [vmem:[%s2011_s26 + $0x428] sm:$0xff] }
  0x36   : > { %v288_v4 = vld [vmem:[%s2011_s26 + $0x440] sm:$0xff]  ;;  %285 = vst [vmem:[%s2016_s27 + $0x210] sm:$0xff] %v284_v2  ;;  %287 = vst [vmem:[%s2016_s27 + $0x218] sm:$0xff] %v286_v3  ;;  %v290_v5 = vld [vmem:[%s2011_s26 + $0x448] sm:$0xff] }
  0x37   : > { %289 = vst [vmem:[%s2016_s27 + $0x220] sm:$0xff] %v288_v4  ;;  %v292_v6 = vld [vmem:[%s2011_s26 + $0x460] sm:$0xff]  ;;  %v294_v7 = vld [vmem:[%s2011_s26 + $0x468] sm:$0xff]  ;;  %291 = vst [vmem:[%s2016_s27 + $0x228] sm:$0xff] %v290_v5 }
  0x38   : > { %293 = vst [vmem:[%s2016_s27 + $0x230] sm:$0xff] %v292_v6  ;;  %295 = vst [vmem:[%s2016_s27 + $0x238] sm:$0xff] %v294_v7  ;;  %v296_v8 = vld [vmem:[%s2011_s26 + $0x480] sm:$0xff]  ;;  %v298_v9 = vld [vmem:[%s2011_s26 + $0x488] sm:$0xff] }
  0x39   : > { %v300_v10 = vld [vmem:[%s2011_s26 + $0x4a0] sm:$0xff]  ;;  %297 = vst [vmem:[%s2016_s27 + $0x240] sm:$0xff] %v296_v8  ;;  %299 = vst [vmem:[%s2016_s27 + $0x248] sm:$0xff] %v298_v9  ;;  %v302_v11 = vld [vmem:[%s2011_s26 + $0x4a8] sm:$0xff] }
  0x3a   : > { %301 = vst [vmem:[%s2016_s27 + $0x250] sm:$0xff] %v300_v10  ;;  %v304_v12 = vld [vmem:[%s2011_s26 + $0x4c0] sm:$0xff]  ;;  %v306_v13 = vld [vmem:[%s2011_s26 + $0x4c8] sm:$0xff]  ;;  %303 = vst [vmem:[%s2016_s27 + $0x258] sm:$0xff] %v302_v11 }
  0x3b   : > { %305 = vst [vmem:[%s2016_s27 + $0x260] sm:$0xff] %v304_v12  ;;  %307 = vst [vmem:[%s2016_s27 + $0x268] sm:$0xff] %v306_v13  ;;  %v308_v14 = vld [vmem:[%s2011_s26 + $0x4e0] sm:$0xff]  ;;  %v310_v15 = vld [vmem:[%s2011_s26 + $0x4e8] sm:$0xff] }
  0x3c   : > { %v312_v16 = vld [vmem:[%s2011_s26 + $0x500] sm:$0xff]  ;;  %309 = vst [vmem:[%s2016_s27 + $0x270] sm:$0xff] %v308_v14  ;;  %311 = vst [vmem:[%s2016_s27 + $0x278] sm:$0xff] %v310_v15  ;;  %v314_v17 = vld [vmem:[%s2011_s26 + $0x508] sm:$0xff] }
  0x3d   : > { %313 = vst [vmem:[%s2016_s27 + $0x280] sm:$0xff] %v312_v16  ;;  %v316_v18 = vld [vmem:[%s2011_s26 + $0x520] sm:$0xff]  ;;  %v318_v19 = vld [vmem:[%s2011_s26 + $0x528] sm:$0xff]  ;;  %315 = vst [vmem:[%s2016_s27 + $0x288] sm:$0xff] %v314_v17 }
  0x3e   : > { %317 = vst [vmem:[%s2016_s27 + $0x290] sm:$0xff] %v316_v18  ;;  %319 = vst [vmem:[%s2016_s27 + $0x298] sm:$0xff] %v318_v19  ;;  %v320_v20 = vld [vmem:[%s2011_s26 + $0x540] sm:$0xff]  ;;  %v322_v21 = vld [vmem:[%s2011_s26 + $0x548] sm:$0xff] }
  0x3f   : > { %v324_v22 = vld [vmem:[%s2011_s26 + $0x560] sm:$0xff]  ;;  %321 = vst [vmem:[%s2016_s27 + $0x2a0] sm:$0xff] %v320_v20  ;;  %323 = vst [vmem:[%s2016_s27 + $0x2a8] sm:$0xff] %v322_v21  ;;  %v326_v23 = vld [vmem:[%s2011_s26 + $0x568] sm:$0xff] }
  0x40   : > { %325 = vst [vmem:[%s2016_s27 + $0x2b0] sm:$0xff] %v324_v22  ;;  %v328_v24 = vld [vmem:[%s2011_s26 + $0x580] sm:$0xff]  ;;  %v330_v25 = vld [vmem:[%s2011_s26 + $0x588] sm:$0xff]  ;;  %327 = vst [vmem:[%s2016_s27 + $0x2b8] sm:$0xff] %v326_v23 }
  0x41   : > { %329 = vst [vmem:[%s2016_s27 + $0x2c0] sm:$0xff] %v328_v24  ;;  %331 = vst [vmem:[%s2016_s27 + $0x2c8] sm:$0xff] %v330_v25  ;;  %v332_v26 = vld [vmem:[%s2011_s26 + $0x5a0] sm:$0xff]  ;;  %v334_v27 = vld [vmem:[%s2011_s26 + $0x5a8] sm:$0xff] }
  0x42   : > { %v336_v28 = vld [vmem:[%s2011_s26 + $0x5c0] sm:$0xff]  ;;  %333 = vst [vmem:[%s2016_s27 + $0x2d0] sm:$0xff] %v332_v26  ;;  %335 = vst [vmem:[%s2016_s27 + $0x2d8] sm:$0xff] %v334_v27  ;;  %v338_v29 = vld [vmem:[%s2011_s26 + $0x5c8] sm:$0xff] }
  0x43   : > { %337 = vst [vmem:[%s2016_s27 + $0x2e0] sm:$0xff] %v336_v28  ;;  %v340_v30 = vld [vmem:[%s2011_s26 + $0x5e0] sm:$0xff]  ;;  %v342_v31 = vld [vmem:[%s2011_s26 + $0x5e8] sm:$0xff]  ;;  %339 = vst [vmem:[%s2016_s27 + $0x2e8] sm:$0xff] %v338_v29 }
  0x44   : > { %341 = vst [vmem:[%s2016_s27 + $0x2f0] sm:$0xff] %v340_v30  ;;  %343 = vst [vmem:[%s2016_s27 + $0x2f8] sm:$0xff] %v342_v31  ;;  %v344_v32 = vld [vmem:[%s2011_s26 + $0x600] sm:$0xff]  ;;  %v346_v33 = vld [vmem:[%s2011_s26 + $0x608] sm:$0xff] }
  0x45   : > { %v348_v34 = vld [vmem:[%s2011_s26 + $0x620] sm:$0xff]  ;;  %345 = vst [vmem:[%s2016_s27 + $0x300] sm:$0xff] %v344_v32  ;;  %347 = vst [vmem:[%s2016_s27 + $0x308] sm:$0xff] %v346_v33  ;;  %v350_v35 = vld [vmem:[%s2011_s26 + $0x628] sm:$0xff] }
  0x46   : > { %349 = vst [vmem:[%s2016_s27 + $0x310] sm:$0xff] %v348_v34  ;;  %v352_v36 = vld [vmem:[%s2011_s26 + $0x640] sm:$0xff]  ;;  %v354_v37 = vld [vmem:[%s2011_s26 + $0x648] sm:$0xff]  ;;  %351 = vst [vmem:[%s2016_s27 + $0x318] sm:$0xff] %v350_v35 }
  0x47   : > { %353 = vst [vmem:[%s2016_s27 + $0x320] sm:$0xff] %v352_v36  ;;  %355 = vst [vmem:[%s2016_s27 + $0x328] sm:$0xff] %v354_v37  ;;  %v356_v38 = vld [vmem:[%s2011_s26 + $0x660] sm:$0xff]  ;;  %v358_v39 = vld [vmem:[%s2011_s26 + $0x668] sm:$0xff] }
  0x48   : > { %v360_v40 = vld [vmem:[%s2011_s26 + $0x680] sm:$0xff]  ;;  %357 = vst [vmem:[%s2016_s27 + $0x330] sm:$0xff] %v356_v38  ;;  %359 = vst [vmem:[%s2016_s27 + $0x338] sm:$0xff] %v358_v39  ;;  %v362_v41 = vld [vmem:[%s2011_s26 + $0x688] sm:$0xff] }
  0x49   : > { %361 = vst [vmem:[%s2016_s27 + $0x340] sm:$0xff] %v360_v40  ;;  %v364_v42 = vld [vmem:[%s2011_s26 + $0x6a0] sm:$0xff]  ;;  %v366_v43 = vld [vmem:[%s2011_s26 + $0x6a8] sm:$0xff]  ;;  %363 = vst [vmem:[%s2016_s27 + $0x348] sm:$0xff] %v362_v41 }
  0x4a   : > { %365 = vst [vmem:[%s2016_s27 + $0x350] sm:$0xff] %v364_v42  ;;  %367 = vst [vmem:[%s2016_s27 + $0x358] sm:$0xff] %v366_v43  ;;  %v368_v44 = vld [vmem:[%s2011_s26 + $0x6c0] sm:$0xff]  ;;  %v370_v45 = vld [vmem:[%s2011_s26 + $0x6c8] sm:$0xff] }
  0x4b   : > { %v372_v46 = vld [vmem:[%s2011_s26 + $0x6e0] sm:$0xff]  ;;  %369 = vst [vmem:[%s2016_s27 + $0x360] sm:$0xff] %v368_v44  ;;  %371 = vst [vmem:[%s2016_s27 + $0x368] sm:$0xff] %v370_v45  ;;  %v374_v47 = vld [vmem:[%s2011_s26 + $0x6e8] sm:$0xff] }
  0x4c   : > { %373 = vst [vmem:[%s2016_s27 + $0x370] sm:$0xff] %v372_v46  ;;  %v376_v48 = vld [vmem:[%s2011_s26 + $0x700] sm:$0xff]  ;;  %v378_v49 = vld [vmem:[%s2011_s26 + $0x708] sm:$0xff]  ;;  %375 = vst [vmem:[%s2016_s27 + $0x378] sm:$0xff] %v374_v47 }
  0x4d   : > { %377 = vst [vmem:[%s2016_s27 + $0x380] sm:$0xff] %v376_v48  ;;  %379 = vst [vmem:[%s2016_s27 + $0x388] sm:$0xff] %v378_v49  ;;  %v380_v50 = vld [vmem:[%s2011_s26 + $0x720] sm:$0xff]  ;;  %v382_v51 = vld [vmem:[%s2011_s26 + $0x728] sm:$0xff] }
  0x4e   : > { %v384_v52 = vld [vmem:[%s2011_s26 + $0x740] sm:$0xff]  ;;  %381 = vst [vmem:[%s2016_s27 + $0x390] sm:$0xff] %v380_v50  ;;  %383 = vst [vmem:[%s2016_s27 + $0x398] sm:$0xff] %v382_v51  ;;  %v386_v53 = vld [vmem:[%s2011_s26 + $0x748] sm:$0xff] }
  0x4f   : > { %385 = vst [vmem:[%s2016_s27 + $0x3a0] sm:$0xff] %v384_v52  ;;  %v388_v54 = vld [vmem:[%s2011_s26 + $0x760] sm:$0xff]  ;;  %v390_v55 = vld [vmem:[%s2011_s26 + $0x768] sm:$0xff]  ;;  %387 = vst [vmem:[%s2016_s27 + $0x3a8] sm:$0xff] %v386_v53 }
  0x50   : > { %389 = vst [vmem:[%s2016_s27 + $0x3b0] sm:$0xff] %v388_v54  ;;  %391 = vst [vmem:[%s2016_s27 + $0x3b8] sm:$0xff] %v390_v55  ;;  %v392_v56 = vld [vmem:[%s2011_s26 + $0x780] sm:$0xff]  ;;  %v394_v57 = vld [vmem:[%s2011_s26 + $0x788] sm:$0xff] }
  0x51   : > { %v396_v58 = vld [vmem:[%s2011_s26 + $0x7a0] sm:$0xff]  ;;  %393 = vst [vmem:[%s2016_s27 + $0x3c0] sm:$0xff] %v392_v56  ;;  %395 = vst [vmem:[%s2016_s27 + $0x3c8] sm:$0xff] %v394_v57  ;;  %v398_v59 = vld [vmem:[%s2011_s26 + $0x7a8] sm:$0xff] }
  0x52   : > { %397 = vst [vmem:[%s2016_s27 + $0x3d0] sm:$0xff] %v396_v58  ;;  %v400_v60 = vld [vmem:[%s2011_s26 + $0x7c0] sm:$0xff]  ;;  %v402_v61 = vld [vmem:[%s2011_s26 + $0x7c8] sm:$0xff]  ;;  %399 = vst [vmem:[%s2016_s27 + $0x3d8] sm:$0xff] %v398_v59 }
  0x53   : > { %401 = vst [vmem:[%s2016_s27 + $0x3e0] sm:$0xff] %v400_v60  ;;  %403 = vst [vmem:[%s2016_s27 + $0x3e8] sm:$0xff] %v402_v61  ;;  %v404_v62 = vld [vmem:[%s2011_s26 + $0x7e0] sm:$0xff]  ;;  %v406_v63 = vld [vmem:[%s2011_s26 + $0x7e8] sm:$0xff] }
  0x54   : > { %405 = vst [vmem:[%s2016_s27 + $0x3f0] sm:$0xff] %v404_v62  ;;  %407 = vst [vmem:[%s2016_s27 + $0x3f8] sm:$0xff] %v406_v63 }
  0x55 PF: > { %p1555_p7 = scmp.ge.s32.totalorder %s1948_s14, 1  ;;  %p420_p8 = scmp.lt.s32.totalorder %s1948_s14, 3 }
  0x57   : > { %p421_p9 = pnand %p1555_p7, %p420_p8 }
  0x58   : > { %s427_s28 = sand.u32 (!%p421_p9), 1, %s1940_s12   ;;  %v461_v0 = vld [vmem:[%s2470_s0 + $0x8] sm:$0xff] (!%p421_p9)  ;;  %s1558_s26 = sshll.u32 (!%p421_p9), %s1986_s15, 2 }
  0x59   : > { %424 = sbr.rel (%p421_p9) target bundleno = 447 (0x1bf), region = 51  ;;  %v465_v1 = vld [vmem:[%s2470_s0 + $0x28] sm:$0xff] (!%p421_p9)  ;;  %s1556_s6 = sshll.u32 (!%p421_p9), %s427_s28, 10 }
  0x5a   : > { %v469_v2 = vpack.c.bf16 (!%p421_p9), %v465_v1, %v461_v0  ;;  %s2282_s7 = scalar_lea.vmem (!%p421_p9), [#allocation2], %s1556_s6  ;;  %v460_v1 = vld [vmem:[%s2470_s0] sm:$0xff] (!%p421_p9)  ;;  %p455_p10 = scmp.lt.s32.totalorder (!%p421_p9), %s1558_s26, 7 }
  0x5b   : > { %v1734_v3 = vld [vmem:[%s2282_s7 + $0x4] ss:$16 sps:$4 sm:$0xff] (!%p421_p9)   ;;  %v1736_v4 = vld [vmem:[%s2282_s7 + $0xc] ss:$16 sps:$4 sm:$0xff] (!%p421_p9)   ;;  %v1738_v5 = vld [vmem:[%s2282_s7] ss:$16 sps:$4 sm:$0xff] (!%p421_p9)  }
  0x5c   : > { %1294 = vmatprep.mubr.bf16.mxu0 (!%p421_p9), %v469_v2  ;;  %1380 = vmatprep.mubr.bf16.mxu1 (!%p421_p9), %v469_v2  ;;  %v1739_v6 = vld [vmem:[%s2282_s7 + $0x8] ss:$16 sps:$4 sm:$0xff] (!%p421_p9)   ;;  %v1740_v7 = vld [vmem:[%s2282_s7 + $0x24] ss:$16 sps:$4 sm:$0xff] (!%p421_p9)   ;;  %v1742_v8 = vld [vmem:[%s2282_s7 + $0x2c] ss:$16 sps:$4 sm:$0xff] (!%p421_p9)  }
  0x5d   : > { %1262 = vmatprep.subr.bf16.mxu0 (!%p421_p9), %v1734_v3  ;;  %1348 = vmatprep.subr.bf16.mxu1 (!%p421_p9), %v1736_v4  ;;  %v1744_v9 = vld [vmem:[%s2282_s7 + $0x20] ss:$16 sps:$4 sm:$0xff] (!%p421_p9)   ;;  %v1745_v10 = vld [vmem:[%s2282_s7 + $0x28] ss:$16 sps:$4 sm:$0xff] (!%p421_p9)   ;;  %v1746_v11 = vld [vmem:[%s2282_s7 + $0x44] ss:$16 sps:$4 sm:$0xff] (!%p421_p9)  }
  0x5e   : > { %1263 = vmatpush1.bf16.msra.mxu0 (!%p421_p9), %v1738_v5  ;;  %1349 = vmatpush1.bf16.msra.mxu1 (!%p421_p9), %v1739_v6  ;;  %v1748_v12 = vld [vmem:[%s2282_s7 + $0x4c] ss:$16 sps:$4 sm:$0xff] (!%p421_p9)   ;;  %v1750_v13 = vld [vmem:[%s2282_s7 + $0x40] ss:$16 sps:$4 sm:$0xff] (!%p421_p9)   ;;  %v1751_v14 = vld [vmem:[%s2282_s7 + $0x48] ss:$16 sps:$4 sm:$0xff] (!%p421_p9)  }
  0x5f   : > { %1264 = vmatprep.subr.bf16.mxu0 (!%p421_p9), %v1740_v7  ;;  %1350 = vmatprep.subr.bf16.mxu1 (!%p421_p9), %v1742_v8  ;;  %v1752_v15 = vld [vmem:[%s2282_s7 + $0x64] ss:$16 sps:$4 sm:$0xff] (!%p421_p9)   ;;  %v1754_v16 = vld [vmem:[%s2282_s7 + $0x6c] ss:$16 sps:$4 sm:$0xff] (!%p421_p9)   ;;  %v1756_v17 = vld [vmem:[%s2282_s7 + $0x60] ss:$16 sps:$4 sm:$0xff] (!%p421_p9)  }
  0x60   : > { %v1757_v18 = vld [vmem:[%s2282_s7 + $0x68] ss:$16 sps:$4 sm:$0xff]   ;;  %v1758_v19 = vld [vmem:[%s2282_s7 + $0x84] ss:$16 sps:$4 sm:$0xff]   ;;  %v1760_v20 = vld [vmem:[%s2282_s7 + $0x8c] ss:$16 sps:$4 sm:$0xff]  }
  0x61   : > { %v1762_v21 = vld [vmem:[%s2282_s7 + $0x80] ss:$16 sps:$4 sm:$0xff]   ;;  %v1763_v22 = vld [vmem:[%s2282_s7 + $0x88] ss:$16 sps:$4 sm:$0xff]   ;;  %v1764_v23 = vld [vmem:[%s2282_s7 + $0xa4] ss:$16 sps:$4 sm:$0xff]  }
  0x62   : > { %1265 = vmatpush1.bf16.msra.mxu0 %v1744_v9  ;;  %1351 = vmatpush1.bf16.msra.mxu1 %v1745_v10  ;;  %v1766_v24 = vld [vmem:[%s2282_s7 + $0xac] ss:$16 sps:$4 sm:$0xff]   ;;  %v1768_v25 = vld [vmem:[%s2282_s7 + $0xa0] ss:$16 sps:$4 sm:$0xff]   ;;  %v1769_v26 = vld [vmem:[%s2282_s7 + $0xa8] ss:$16 sps:$4 sm:$0xff]  }
  0x63   : > { %1266 = vmatprep.subr.bf16.mxu0 %v1746_v11  ;;  %1352 = vmatprep.subr.bf16.mxu1 %v1748_v12  ;;  %v1770_v27 = vld [vmem:[%s2282_s7 + $0xc4] ss:$16 sps:$4 sm:$0xff]   ;;  %v1772_v28 = vld [vmem:[%s2282_s7 + $0xcc] ss:$16 sps:$4 sm:$0xff]   ;;  %v1774_v29 = vld [vmem:[%s2282_s7 + $0xc0] ss:$16 sps:$4 sm:$0xff]  }
  0x64   : > { %v1775_v30 = vld [vmem:[%s2282_s7 + $0xc8] ss:$16 sps:$4 sm:$0xff]   ;;  %v1776_v31 = vld [vmem:[%s2282_s7 + $0xe4] ss:$16 sps:$4 sm:$0xff]   ;;  %v1778_v32 = vld [vmem:[%s2282_s7 + $0xec] ss:$16 sps:$4 sm:$0xff]  }
  0x65   : > { %v1780_v33 = vld [vmem:[%s2282_s7 + $0xe0] ss:$16 sps:$4 sm:$0xff]   ;;  %v1781_v34 = vld [vmem:[%s2282_s7 + $0xe8] ss:$16 sps:$4 sm:$0xff]   ;;  %v1782_v35 = vld [vmem:[%s2282_s7 + $0x104] ss:$16 sps:$4 sm:$0xff]  }
  0x66   : > { %1267 = vmatpush1.bf16.msra.mxu0 %v1750_v13  ;;  %1353 = vmatpush1.bf16.msra.mxu1 %v1751_v14  ;;  %v1784_v36 = vld [vmem:[%s2282_s7 + $0x10c] ss:$16 sps:$4 sm:$0xff]   ;;  %v1786_v37 = vld [vmem:[%s2282_s7 + $0x100] ss:$16 sps:$4 sm:$0xff]   ;;  %v1787_v38 = vld [vmem:[%s2282_s7 + $0x108] ss:$16 sps:$4 sm:$0xff]  }
  0x67   : > { %1268 = vmatprep.subr.bf16.mxu0 %v1752_v15  ;;  %1354 = vmatprep.subr.bf16.mxu1 %v1754_v16  ;;  %v1788_v39 = vld [vmem:[%s2282_s7 + $0x124] ss:$16 sps:$4 sm:$0xff]   ;;  %v1790_v40 = vld [vmem:[%s2282_s7 + $0x12c] ss:$16 sps:$4 sm:$0xff]   ;;  %v1792_v41 = vld [vmem:[%s2282_s7 + $0x120] ss:$16 sps:$4 sm:$0xff]  }
  0x68   : > { %v1793_v42 = vld [vmem:[%s2282_s7 + $0x128] ss:$16 sps:$4 sm:$0xff]   ;;  %v1794_v43 = vld [vmem:[%s2282_s7 + $0x144] ss:$16 sps:$4 sm:$0xff]   ;;  %v1796_v44 = vld [vmem:[%s2282_s7 + $0x14c] ss:$16 sps:$4 sm:$0xff]  }
  0x69   : > { %v1798_v45 = vld [vmem:[%s2282_s7 + $0x140] ss:$16 sps:$4 sm:$0xff]   ;;  %v1799_v46 = vld [vmem:[%s2282_s7 + $0x148] ss:$16 sps:$4 sm:$0xff]   ;;  %v1800_v47 = vld [vmem:[%s2282_s7 + $0x164] ss:$16 sps:$4 sm:$0xff]  }
  0x6a   : > { %1269 = vmatpush1.bf16.msra.mxu0 %v1756_v17  ;;  %1355 = vmatpush1.bf16.msra.mxu1 %v1757_v18  ;;  %v1802_v48 = vld [vmem:[%s2282_s7 + $0x16c] ss:$16 sps:$4 sm:$0xff]   ;;  %v1804_v49 = vld [vmem:[%s2282_s7 + $0x160] ss:$16 sps:$4 sm:$0xff]   ;;  %v1805_v50 = vld [vmem:[%s2282_s7 + $0x168] ss:$16 sps:$4 sm:$0xff]  }
  0x6b   : > { %1270 = vmatprep.subr.bf16.mxu0 %v1758_v19  ;;  %1356 = vmatprep.subr.bf16.mxu1 %v1760_v20  ;;  %v1806_v51 = vld [vmem:[%s2282_s7 + $0x184] ss:$16 sps:$4 sm:$0xff]   ;;  %v1808_v52 = vld [vmem:[%s2282_s7 + $0x18c] ss:$16 sps:$4 sm:$0xff]   ;;  %v1810_v53 = vld [vmem:[%s2282_s7 + $0x180] ss:$16 sps:$4 sm:$0xff]  }
  0x6c   : > { %v1811_v54 = vld [vmem:[%s2282_s7 + $0x188] ss:$16 sps:$4 sm:$0xff]   ;;  %v1812_v55 = vld [vmem:[%s2282_s7 + $0x1a4] ss:$16 sps:$4 sm:$0xff]   ;;  %v1814_v56 = vld [vmem:[%s2282_s7 + $0x1ac] ss:$16 sps:$4 sm:$0xff]  }
  0x6d   : > { %v1816_v57 = vld [vmem:[%s2282_s7 + $0x1a0] ss:$16 sps:$4 sm:$0xff]   ;;  %v1817_v58 = vld [vmem:[%s2282_s7 + $0x1a8] ss:$16 sps:$4 sm:$0xff]   ;;  %v1818_v59 = vld [vmem:[%s2282_s7 + $0x1c4] ss:$16 sps:$4 sm:$0xff]  }
  0x6e   : > { %1271 = vmatpush1.bf16.msra.mxu0 %v1762_v21  ;;  %1357 = vmatpush1.bf16.msra.mxu1 %v1763_v22  ;;  %v1820_v60 = vld [vmem:[%s2282_s7 + $0x1cc] ss:$16 sps:$4 sm:$0xff]   ;;  %v1822_v61 = vld [vmem:[%s2282_s7 + $0x1c0] ss:$16 sps:$4 sm:$0xff]   ;;  %v1823_v62 = vld [vmem:[%s2282_s7 + $0x1c8] ss:$16 sps:$4 sm:$0xff]  }
  0x6f   : > { %1272 = vmatprep.subr.bf16.mxu0 %v1764_v23  ;;  %1358 = vmatprep.subr.bf16.mxu1 %v1766_v24  ;;  %v1824_v63 = vld [vmem:[%s2282_s7 + $0x1e4] ss:$16 sps:$4 sm:$0xff]   ;;  %v1826_v0 = vld [vmem:[%s2282_s7 + $0x1ec] ss:$16 sps:$4 sm:$0xff]   ;;  %v1828_v3 = vld [vmem:[%s2282_s7 + $0x1e0] ss:$16 sps:$4 sm:$0xff]  }
  0x70   : > { %v464_v2 = vld [vmem:[%s2470_s0 + $0x20] sm:$0xff]  ;;  %v1829_v4 = vld [vmem:[%s2282_s7 + $0x1e8] ss:$16 sps:$4 sm:$0xff]   ;;  %v1835_v6 = vld [vmem:[%s2282_s7 + $0x20c] ss:$16 sps:$4 sm:$0xff]   ;;  %s2479_s26 = smov (!%p455_p10, %s1558_s26), 7 }
  0x71   : > { %v1832_v5 = vld [vmem:[%s2282_s7 + $0x204] ss:$16 sps:$4 sm:$0xff]   ;;  %v463_v7 = vld [vmem:[%s2470_s0 + $0x18] sm:$0xff]  ;;  %v1830_v9 = vld [vmem:[%s2282_s7 + $0x200] ss:$16 sps:$4 sm:$0xff]   ;;  %v468_v11 = vpack.c.bf16 %v464_v2, %v460_v1  ;;  %s457_s30 = scalar_lea.vmem %s2472_s2, %s2479_s26  ;;  %s1557_s4 = sshll.u32 %s427_s28, 6 }
  0x72   : > { %1273 = vmatpush1.bf16.msra.mxu0 %v1768_v25  ;;  %1359 = vmatpush1.bf16.msra.mxu1 %v1769_v26  ;;  %v467_v8 = vld [vmem:[%s2470_s0 + $0x38] sm:$0xff]  ;;  %v1838_v12 = vld [vmem:[%s2282_s7 + $0x224] ss:$16 sps:$4 sm:$0xff]   ;;  %v1836_v15 = vld [vmem:[%s2282_s7 + $0x220] ss:$16 sps:$4 sm:$0xff]   ;;  %s2436_s5 = scalar_lea.vmem [#allocation3], %s1557_s4 }
  0x73   : > { %1274 = vmatprep.subr.bf16.mxu0 %v1770_v27  ;;  %1360 = vmatprep.subr.bf16.mxu1 %v1772_v28  ;;  %v1833_v10 = vld [vmem:[%s2282_s7 + $0x208] ss:$16 sps:$4 sm:$0xff]   ;;  %v1841_v13 = vld [vmem:[%s2282_s7 + $0x22c] ss:$16 sps:$4 sm:$0xff]   ;;  %v471_v14 = vpack.c.bf16 %v467_v8, %v463_v7  ;;  %v1844_v17 = vld [vmem:[%s2282_s7 + $0x244] ss:$16 sps:$4 sm:$0xff]  }
  0x74   : > { %v1839_v16 = vld [vmem:[%s2282_s7 + $0x228] ss:$16 sps:$4 sm:$0xff]   ;;  %v1847_v18 = vld [vmem:[%s2282_s7 + $0x24c] ss:$16 sps:$4 sm:$0xff]   ;;  %v1842_v19 = vld [vmem:[%s2282_s7 + $0x240] ss:$16 sps:$4 sm:$0xff]  }
  0x75   : > { %v1845_v20 = vld [vmem:[%s2282_s7 + $0x248] ss:$16 sps:$4 sm:$0xff]   ;;  %v1850_v21 = vld [vmem:[%s2282_s7 + $0x264] ss:$16 sps:$4 sm:$0xff]   ;;  %v1853_v22 = vld [vmem:[%s2282_s7 + $0x26c] ss:$16 sps:$4 sm:$0xff]  }
  0x76   : > { %1275 = vmatpush1.bf16.msra.mxu0 %v1774_v29  ;;  %1361 = vmatpush1.bf16.msra.mxu1 %v1775_v30  ;;  %v1848_v23 = vld [vmem:[%s2282_s7 + $0x260] ss:$16 sps:$4 sm:$0xff]   ;;  %v1851_v24 = vld [vmem:[%s2282_s7 + $0x268] ss:$16 sps:$4 sm:$0xff]   ;;  %v1856_v25 = vld [vmem:[%s2282_s7 + $0x284] ss:$16 sps:$4 sm:$0xff]  }
  0x77   : > { %1276 = vmatprep.subr.bf16.mxu0 %v1776_v31  ;;  %1362 = vmatprep.subr.bf16.mxu1 %v1778_v32  ;;  %v1859_v26 = vld [vmem:[%s2282_s7 + $0x28c] ss:$16 sps:$4 sm:$0xff]   ;;  %v1854_v27 = vld [vmem:[%s2282_s7 + $0x280] ss:$16 sps:$4 sm:$0xff]   ;;  %v1857_v28 = vld [vmem:[%s2282_s7 + $0x288] ss:$16 sps:$4 sm:$0xff]  }
  0x78   : > { %v1862_v29 = vld [vmem:[%s2282_s7 + $0x2a4] ss:$16 sps:$4 sm:$0xff]   ;;  %v1865_v30 = vld [vmem:[%s2282_s7 + $0x2ac] ss:$16 sps:$4 sm:$0xff]   ;;  %v1860_v31 = vld [vmem:[%s2282_s7 + $0x2a0] ss:$16 sps:$4 sm:$0xff]  }
  0x79   : > { %v1863_v32 = vld [vmem:[%s2282_s7 + $0x2a8] ss:$16 sps:$4 sm:$0xff]   ;;  %v1916_v1 = vld [vmem:[%s2282_s7 + $0x3c4] ss:$16 sps:$4 sm:$0xff]   ;;  %v1919_v2 = vld [vmem:[%s2282_s7 + $0x3cc] ss:$16 sps:$4 sm:$0xff]  }
  0x7a   : > { %1277 = vmatpush1.bf16.msra.mxu0 %v1780_v33  ;;  %1363 = vmatpush1.bf16.msra.mxu1 %v1781_v34  ;;  %v1868_v33 = vld [vmem:[%s2282_s7 + $0x2c4] ss:$16 sps:$4 sm:$0xff]   ;;  %v1871_v34 = vld [vmem:[%s2282_s7 + $0x2cc] ss:$16 sps:$4 sm:$0xff]   ;;  %v1920_v7 = vld [vmem:[%s2282_s7 + $0x3e0] ss:$16 sps:$4 sm:$0xff]  }
  0x7b   : > { %1278 = vmatprep.subr.bf16.mxu0 %v1782_v35  ;;  %1364 = vmatprep.subr.bf16.mxu1 %v1784_v36  ;;  %v1866_v35 = vld [vmem:[%s2282_s7 + $0x2c0] ss:$16 sps:$4 sm:$0xff]   ;;  %v1869_v36 = vld [vmem:[%s2282_s7 + $0x2c8] ss:$16 sps:$4 sm:$0xff]   ;;  %s1693_s12 = sshll.u32 (%p2001_p5), %s1986_s15, 5 }
  0x7c   : > { %v1923_v8 = vld [vmem:[%s2282_s7 + $0x3e8] ss:$16 sps:$4 sm:$0xff]  }
  0x7e   : > { %1279 = vmatpush1.bf16.msra.mxu0 %v1786_v37  ;;  %1365 = vmatpush1.bf16.msra.mxu1 %v1787_v38  ;;  %v1874_v37 = vld [vmem:[%s2282_s7 + $0x2e4] ss:$16 sps:$4 sm:$0xff]   ;;  %v1877_v38 = vld [vmem:[%s2282_s7 + $0x2ec] ss:$16 sps:$4 sm:$0xff]  }
  0x7f   : > { %1280 = vmatprep.subr.bf16.mxu0 %v1788_v39  ;;  %1366 = vmatprep.subr.bf16.mxu1 %v1790_v40  ;;  %v1872_v39 = vld [vmem:[%s2282_s7 + $0x2e0] ss:$16 sps:$4 sm:$0xff]   ;;  %v1875_v40 = vld [vmem:[%s2282_s7 + $0x2e8] ss:$16 sps:$4 sm:$0xff]  }
  0x82   : > { %1281 = vmatpush1.bf16.msra.mxu0 %v1792_v41  ;;  %1367 = vmatpush1.bf16.msra.mxu1 %v1793_v42  ;;  %v1880_v41 = vld [vmem:[%s2282_s7 + $0x304] ss:$16 sps:$4 sm:$0xff]   ;;  %v1883_v42 = vld [vmem:[%s2282_s7 + $0x30c] ss:$16 sps:$4 sm:$0xff]  }
  0x83   : > { %1282 = vmatprep.subr.bf16.mxu0 %v1794_v43  ;;  %1368 = vmatprep.subr.bf16.mxu1 %v1796_v44  ;;  %v1878_v43 = vld [vmem:[%s2282_s7 + $0x300] ss:$16 sps:$4 sm:$0xff]   ;;  %v1881_v44 = vld [vmem:[%s2282_s7 + $0x308] ss:$16 sps:$4 sm:$0xff]  }
  0x86   : > { %1283 = vmatpush1.bf16.msra.mxu0 %v1798_v45  ;;  %1369 = vmatpush1.bf16.msra.mxu1 %v1799_v46  ;;  %v1886_v45 = vld [vmem:[%s2282_s7 + $0x324] ss:$16 sps:$4 sm:$0xff]   ;;  %v1889_v46 = vld [vmem:[%s2282_s7 + $0x32c] ss:$16 sps:$4 sm:$0xff]  }
  0x87   : > { %1284 = vmatprep.subr.bf16.mxu0 %v1800_v47  ;;  %1370 = vmatprep.subr.bf16.mxu1 %v1802_v48  ;;  %v1884_v47 = vld [vmem:[%s2282_s7 + $0x320] ss:$16 sps:$4 sm:$0xff]   ;;  %v1887_v48 = vld [vmem:[%s2282_s7 + $0x328] ss:$16 sps:$4 sm:$0xff]  }
  0x8a   : > { %1285 = vmatpush1.bf16.msra.mxu0 %v1804_v49  ;;  %1371 = vmatpush1.bf16.msra.mxu1 %v1805_v50  ;;  %v1892_v49 = vld [vmem:[%s2282_s7 + $0x344] ss:$16 sps:$4 sm:$0xff]   ;;  %v1895_v50 = vld [vmem:[%s2282_s7 + $0x34c] ss:$16 sps:$4 sm:$0xff]  }
  0x8b   : > { %1286 = vmatprep.subr.bf16.mxu0 %v1806_v51  ;;  %1372 = vmatprep.subr.bf16.mxu1 %v1808_v52  ;;  %v1890_v51 = vld [vmem:[%s2282_s7 + $0x340] ss:$16 sps:$4 sm:$0xff]   ;;  %v1893_v52 = vld [vmem:[%s2282_s7 + $0x348] ss:$16 sps:$4 sm:$0xff]  }
  0x8e   : > { %1287 = vmatpush1.bf16.msra.mxu0 %v1810_v53  ;;  %1373 = vmatpush1.bf16.msra.mxu1 %v1811_v54  ;;  %v1898_v53 = vld [vmem:[%s2282_s7 + $0x364] ss:$16 sps:$4 sm:$0xff]   ;;  %v1901_v54 = vld [vmem:[%s2282_s7 + $0x36c] ss:$16 sps:$4 sm:$0xff]  }
  0x8f   : > { %1288 = vmatprep.subr.bf16.mxu0 %v1812_v55  ;;  %1374 = vmatprep.subr.bf16.mxu1 %v1814_v56  ;;  %v1896_v55 = vld [vmem:[%s2282_s7 + $0x360] ss:$16 sps:$4 sm:$0xff]   ;;  %v1899_v56 = vld [vmem:[%s2282_s7 + $0x368] ss:$16 sps:$4 sm:$0xff]  }
  0x92   : > { %1289 = vmatpush1.bf16.msra.mxu0 %v1816_v57  ;;  %1375 = vmatpush1.bf16.msra.mxu1 %v1817_v58  ;;  %v1904_v57 = vld [vmem:[%s2282_s7 + $0x384] ss:$16 sps:$4 sm:$0xff]   ;;  %v1907_v58 = vld [vmem:[%s2282_s7 + $0x38c] ss:$16 sps:$4 sm:$0xff]  }
  0x93   : > { %1290 = vmatprep.subr.bf16.mxu0 %v1818_v59  ;;  %1376 = vmatprep.subr.bf16.mxu1 %v1820_v60  ;;  %v1902_v59 = vld [vmem:[%s2282_s7 + $0x380] ss:$16 sps:$4 sm:$0xff]   ;;  %v1905_v60 = vld [vmem:[%s2282_s7 + $0x388] ss:$16 sps:$4 sm:$0xff]  }
  0x96   : > { %1291 = vmatpush1.bf16.msra.mxu0 %v1822_v61  ;;  %1377 = vmatpush1.bf16.msra.mxu1 %v1823_v62  ;;  %v1910_v61 = vld [vmem:[%s2282_s7 + $0x3a4] ss:$16 sps:$4 sm:$0xff]   ;;  %v1913_v62 = vld [vmem:[%s2282_s7 + $0x3ac] ss:$16 sps:$4 sm:$0xff]  }
  0x97   : > { %1292 = vmatprep.subr.bf16.mxu0 %v1824_v63  ;;  %1378 = vmatprep.subr.bf16.mxu1 %v1826_v0  ;;  %v1908_v63 = vld [vmem:[%s2282_s7 + $0x3a0] ss:$16 sps:$4 sm:$0xff]   ;;  %v1911_v0 = vld [vmem:[%s2282_s7 + $0x3a8] ss:$16 sps:$4 sm:$0xff]  }
  0x9a   : > { %1293 = vmatpush1.bf16.msra.mxu0 %v1828_v3  ;;  %1379 = vmatpush1.bf16.msra.mxu1 %v1829_v4  ;;  %v1914_v3 = vld [vmem:[%s2282_s7 + $0x3c0] ss:$16 sps:$4 sm:$0xff]   ;;  %v1917_v4 = vld [vmem:[%s2282_s7 + $0x3c8] ss:$16 sps:$4 sm:$0xff]  }
  0x9b   : > { %1305 = vmatprep.subr.bf16.mxu0 %v1832_v5  ;;  %1391 = vmatprep.subr.bf16.mxu1 %v1835_v6  ;;  %v1922_v5 = vld [vmem:[%s2282_s7 + $0x3e4] ss:$16 sps:$4 sm:$0xff]   ;;  %v1925_v6 = vld [vmem:[%s2282_s7 + $0x3ec] ss:$16 sps:$4 sm:$0xff]   ;;  %s1451_s7 = scalar_lea.vmem (%p2001_p5), %s2473_s3, %s1693_s12 }
  0x9d   : > { %1295 = vmatmul.mubr.bf16.vlgmr.msra.gmra.mrb[0].mxu0 %v468_v11  ;;  %1381 = vmatmul.mubr.bf16.vlgmr.msra.gmra.mrb[0].mxu1 %v468_v11 }
  0x9e   : > { %1306 = vmatpush1.bf16.msra.mxu0 %v1830_v9  ;;  %1392 = vmatpush1.bf16.msra.mxu1 %v1833_v10  ;;  %v462_v9 = vld [vmem:[%s2470_s0 + $0x10] sm:$0xff] }
  0x9f   : > { %1307 = vmatprep.subr.bf16.mxu0 %v1838_v12  ;;  %1393 = vmatprep.subr.bf16.mxu1 %v1841_v13  ;;  %v466_v10 = vld [vmem:[%s2470_s0 + $0x30] sm:$0xff]  ;;  %v602_v12 = vlaneseq }
  0xa0   : > { %1337 = vmatprep.mubr.bf16.mxu0 %v471_v14  ;;  %1423 = vmatprep.mubr.bf16.mxu1 %v471_v14  ;;  %v470_v11 = vpack.c.bf16 %v466_v10, %v462_v9 }
  0xa1   : > { %v603_v13 = vshrl.u32 %v602_v12, 7 }
  0xa2   : > { %1308 = vmatpush1.bf16.msra.mxu0 %v1836_v15  ;;  %1394 = vmatpush1.bf16.msra.mxu1 %v1839_v16  ;;  %v600_v16 = vld [vmem:[%s457_s30] sm:$0xf] }
  0xa3   : > { %1309 = vmatprep.subr.bf16.mxu0 %v1844_v17  ;;  %1395 = vmatprep.subr.bf16.mxu1 %v1847_v18  ;;  %v604_v14 = vsub.s32 0, %v603_v13  ;;  %v612_v15 = vsub.s32 2, %v603_v13  ;;  %v608_v17 = vsub.s32 1, %v603_v13  ;;  %v616_v18 = vsub.s32 3, %v603_v13 }
  0xa6   : > { %1310 = vmatpush1.bf16.msra.mxu0 %v1842_v19  ;;  %1396 = vmatpush1.bf16.msra.mxu1 %v1845_v20  ;;  %v605_v19 = vrot.slane %v600_v16, %v604_v14  ;;  %v613_v20 = vrot.slane %v600_v16, %v612_v15 }
  0xa7   : > { %1311 = vmatprep.subr.bf16.mxu0 %v1850_v21  ;;  %1397 = vmatprep.subr.bf16.mxu1 %v1853_v22  ;;  %v609_v21 = vrot.slane %v600_v16, %v608_v17  ;;  %v617_v22 = vrot.slane %v600_v16, %v616_v18 }
  0xaa   : > { %1312 = vmatpush1.bf16.msra.mxu0 %v1848_v23  ;;  %1398 = vmatpush1.bf16.msra.mxu1 %v1851_v24 }
  0xab   : > { %1313 = vmatprep.subr.bf16.mxu0 %v1856_v25  ;;  %1399 = vmatprep.subr.bf16.mxu1 %v1859_v26 }
  0xae   : > { %1314 = vmatpush1.bf16.msra.mxu0 %v1854_v27  ;;  %1400 = vmatpush1.bf16.msra.mxu1 %v1857_v28 }
  0xaf   : > { %1315 = vmatprep.subr.bf16.mxu0 %v1862_v29  ;;  %1401 = vmatprep.subr.bf16.mxu1 %v1865_v30 }
  0xb2   : > { %1316 = vmatpush1.bf16.msra.mxu0 %v1860_v31  ;;  %1402 = vmatpush1.bf16.msra.mxu1 %v1863_v32 }
  0xb3   : > { %1317 = vmatprep.subr.bf16.mxu0 %v1868_v33  ;;  %1403 = vmatprep.subr.bf16.mxu1 %v1871_v34 }
  0xb6   : > { %1318 = vmatpush1.bf16.msra.mxu0 %v1866_v35  ;;  %1404 = vmatpush1.bf16.msra.mxu1 %v1869_v36 }
  0xb7   : > { %1319 = vmatprep.subr.bf16.mxu0 %v1874_v37  ;;  %1405 = vmatprep.subr.bf16.mxu1 %v1877_v38 }
  0xba   : > { %1320 = vmatpush1.bf16.msra.mxu0 %v1872_v39  ;;  %1406 = vmatpush1.bf16.msra.mxu1 %v1875_v40 }
  0xbb   : > { %1321 = vmatprep.subr.bf16.mxu0 %v1880_v41  ;;  %1407 = vmatprep.subr.bf16.mxu1 %v1883_v42 }
  0xbe   : > { %1322 = vmatpush1.bf16.msra.mxu0 %v1878_v43  ;;  %1408 = vmatpush1.bf16.msra.mxu1 %v1881_v44 }
  0xbf   : > { %1323 = vmatprep.subr.bf16.mxu0 %v1886_v45  ;;  %1409 = vmatprep.subr.bf16.mxu1 %v1889_v46 }
  0xc2   : > { %1324 = vmatpush1.bf16.msra.mxu0 %v1884_v47  ;;  %1410 = vmatpush1.bf16.msra.mxu1 %v1887_v48 }
  0xc3   : > { %1325 = vmatprep.subr.bf16.mxu0 %v1892_v49  ;;  %1411 = vmatprep.subr.bf16.mxu1 %v1895_v50 }
  0xc6   : > { %1326 = vmatpush1.bf16.msra.mxu0 %v1890_v51  ;;  %1412 = vmatpush1.bf16.msra.mxu1 %v1893_v52 }
  0xc7   : > { %1327 = vmatprep.subr.bf16.mxu0 %v1898_v53  ;;  %1413 = vmatprep.subr.bf16.mxu1 %v1901_v54 }
  0xca   : > { %1328 = vmatpush1.bf16.msra.mxu0 %v1896_v55  ;;  %1414 = vmatpush1.bf16.msra.mxu1 %v1899_v56 }
  0xcb   : > { %1329 = vmatprep.subr.bf16.mxu0 %v1904_v57  ;;  %1415 = vmatprep.subr.bf16.mxu1 %v1907_v58 }
  0xce   : > { %1330 = vmatpush1.bf16.msra.mxu0 %v1902_v59  ;;  %1416 = vmatpush1.bf16.msra.mxu1 %v1905_v60 }
  0xcf   : > { %1331 = vmatprep.subr.bf16.mxu0 %v1910_v61  ;;  %1417 = vmatprep.subr.bf16.mxu1 %v1913_v62 }
  0xd2   : > { %1332 = vmatpush1.bf16.msra.mxu0 %v1908_v63  ;;  %1418 = vmatpush1.bf16.msra.mxu1 %v1911_v0 }
  0xd3   : > { %1333 = vmatprep.subr.bf16.mxu0 %v1916_v1  ;;  %1419 = vmatprep.subr.bf16.mxu1 %v1919_v2 }
  0xd6   : > { %1334 = vmatpush1.bf16.msra.mxu0 %v1914_v3  ;;  %1420 = vmatpush1.bf16.msra.mxu1 %v1917_v4 }
  0xd7   : > { %1335 = vmatprep.subr.bf16.mxu0 %v1922_v5  ;;  %1421 = vmatprep.subr.bf16.mxu1 %v1925_v6 }
  0xda   : > { %1336 = vmatpush1.bf16.msra.mxu0 %v1920_v7  ;;  %1422 = vmatpush1.bf16.msra.mxu1 %v1923_v8 }
  0xdd   : > { %1338 = vmatmul.mubr.bf16.vlgmr.msra.gmra.mrb[0].mxu0 %v470_v11  ;;  %1424 = vmatmul.mubr.bf16.vlgmr.msra.gmra.mrb[0].mxu1 %v470_v11 }
 0x1b0   : > { %v1339_v23 = vpop.f32.mrb[0].mxu0  ;;  %v1425_v24 = vpop.f32.mrb[0].mxu1  ;;  %1448 = sbr.rel (!%p2001_p5) target bundleno = 447 (0x1bf), region = 59 }
 0x1b1   : > { %v1694_v25 = vadd.f32 %v1339_v23, %v605_v19  ;;  %v1698_v26 = vadd.f32 %v1425_v24, %v613_v20  ;;  %v1341_v27 = vpop.f32.mrb[1].mxu0  ;;  %v1427_v28 = vpop.f32.mrb[1].mxu1 }
 0x1b2   : > { %v1695_v29 = vadd.f32 %v1341_v27, %v609_v21  ;;  %v1699_v30 = vadd.f32 %v1427_v28, %v617_v22  ;;  %v1343_v31 = vpop.f32.mrb[2].mxu0  ;;  %v1429_v32 = vpop.f32.mrb[2].mxu1 }
 0x1b3   : > { %1434 = vst [vmem:[%s2436_s5] sm:$0xff] %v1694_v25  ;;  %1436 = vst [vmem:[%s2436_s5 + $0x10] sm:$0xff] %v1698_v26  ;;  %v1696_v33 = vadd.f32 %v1343_v31, %v605_v19  ;;  %v1700_v34 = vadd.f32 %v1429_v32, %v613_v20  ;;  %v1345_v35 = vpop.f32.mrb[3].mxu0  ;;  %v1431_v36 = vpop.f32.mrb[3].mxu1 }
 0x1b4   : > { %1435 = vst [vmem:[%s2436_s5 + $0x8] sm:$0xff] %v1695_v29  ;;  %1437 = vst [vmem:[%s2436_s5 + $0x18] sm:$0xff] %v1699_v30  ;;  %v1697_v37 = vadd.f32 %v1345_v35, %v609_v21  ;;  %v1701_v38 = vadd.f32 %v1431_v36, %v617_v22 }
 0x1b5   : > { %1438 = vst [vmem:[%s2436_s5 + $0x20] sm:$0xff] %v1696_v33  ;;  %1440 = vst [vmem:[%s2436_s5 + $0x30] sm:$0xff] %v1700_v34 }
 0x1b6   : > { %1439 = vst [vmem:[%s2436_s5 + $0x28] sm:$0xff] %v1697_v37  ;;  %1441 = vst [vmem:[%s2436_s5 + $0x38] sm:$0xff] %v1701_v38 }
 0x1ba   : > { %v1464_v39 = vld [vmem:[%s2436_s5] sm:$0xff]  ;;  %v1468_v41 = vld [vmem:[%s2436_s5 + $0x10] sm:$0xff] }
 0x1bb   : > { %v1466_v40 = vld [vmem:[%s2436_s5 + $0x8] sm:$0xff]  ;;  %v1470_v42 = vld [vmem:[%s2436_s5 + $0x18] sm:$0xff]  ;;  %1465 = vst [vmem:[%s1451_s7] sm:$0xff] %v1464_v39  ;;  %1469 = vst [vmem:[%s1451_s7 + $0x10] sm:$0xff] %v1468_v41 }
 0x1bc   : > { %v1472_v43 = vld [vmem:[%s2436_s5 + $0x20] sm:$0xff]  ;;  %1467 = vst [vmem:[%s1451_s7 + $0x8] sm:$0xff] %v1466_v40  ;;  %1471 = vst [vmem:[%s1451_s7 + $0x18] sm:$0xff] %v1470_v42  ;;  %v1476_v45 = vld [vmem:[%s2436_s5 + $0x30] sm:$0xff] }
 0x1bd   : > { %v1474_v44 = vld [vmem:[%s2436_s5 + $0x28] sm:$0xff]  ;;  %1473 = vst [vmem:[%s1451_s7 + $0x40] sm:$0xff] %v1472_v43  ;;  %v1478_v46 = vld [vmem:[%s2436_s5 + $0x38] sm:$0xff]  ;;  %1477 = vst [vmem:[%s1451_s7 + $0x50] sm:$0xff] %v1476_v45 }
 0x1be   : > { %1475 = vst [vmem:[%s1451_s7 + $0x48] sm:$0xff] %v1474_v44  ;;  %1479 = vst [vmem:[%s1451_s7 + $0x58] sm:$0xff] %v1478_v46 }
 0x1bf PF: > { %p10_p11 = scmp.ge.s32.totalorder %s1989_s16, 4   ;;  %s2475_s12 = smov %s1944_s13 }
 0x1c0   : > { %s2476_s13 = smov %s1999_s19  ;;  %s2477_s14 = smov %s1989_s16 }
 0x1c1   :  { %12 = sbr.rel (!%p10_p11) target bundleno = 2 (0x2), region = 116 }

// kernel: transformer_forward.30
= control target key start
LH: loop header
LB: loop body
LE: loop exit
PB: predicated region body
PF: predicated region fallthrough
CT: control target
= control target key end

     0   :  { %s9939_s24 = smov 0   ;;  %s13311_s0 = inlined_call_operand.vmem [shape: f32[16,512], index: 0, kind: input, shape index: {}]   ;;  %s13312_s1 = inlined_call_operand.vmem [shape: bf16[512,2048], index: 1, kind: input, shape index: {}]   ;;  %s13313_s2 = inlined_call_operand.vmem [shape: f32[1,2048], index: 2, kind: input, shape index: {}]   ;;  %s13314_s3 = inlined_call_operand.vmem [shape: bf16[2048,512], index: 3, kind: input, shape index: {}]   ;;  %s13315_s4 = inlined_call_operand.vmem [shape: f32[1,512], index: 4, kind: input, shape index: {}]   ;;  %s13316_s5 = inlined_call_operand.vmem [shape: f32[1,512], index: 5, kind: input, shape index: {}]   ;;  %s13317_s6 = inlined_call_operand.vmem [shape: f32[1,512], index: 6, kind: input, shape index: {}]   ;;  %s13318_s7 = inlined_call_operand.vmem [shape: f32[16,512], index: 7, kind: output, shape index: {}]  }
   0x1 LB: > { %s8023_s25 = sadd.s32 4294967295, %s9897_s24   ;;  %p8027_p0 = scmp.ge.s32.totalorder %s9897_s24, 1  ;;  %s9897_s24 = sphi %s9939_s24, %s17_s24  }
   0x2   : > { %p237_p1 = scmp.lt.s32.totalorder %s9897_s24, 3 }
   0x4   : > { %p238_p2 = pnand %p8027_p0, %p237_p1 }
   0x5   : > { %v287_v0 = vld [vmem:[%s13312_s1] sm:$0xff] (!%p238_p2)  ;;  %v288_v2 = vld [vmem:[%s13312_s1 + $0x8] sm:$0xff] (!%p238_p2)  ;;  %p269_p3 = scmp.lt.s32.totalorder (!%p238_p2), %s8023_s25, 1 }
   0x6   : > { %241 = sbr.rel (%p238_p2) target bundleno = 1574 (0x626), region = 48  ;;  %v295_v1 = vld [vmem:[%s13312_s1 + $0x40] sm:$0xff] (!%p238_p2)  ;;  %v296_v4 = vld [vmem:[%s13312_s1 + $0x48] sm:$0xff] (!%p238_p2) }
   0x7   : > { %v8033_v3 = vcombine.high (!%p238_p2), %v287_v0, %v295_v1  ;;  %v8032_v5 = vcombine.low (!%p238_p2), %v287_v0, %v295_v1  ;;  %v303_v6 = vld [vmem:[%s13312_s1 + $0x80] sm:$0xff] (!%p238_p2)  ;;  %v8035_v8 = vcombine.high (!%p238_p2), %v288_v2, %v296_v4  ;;  %v8034_v9 = vcombine.low (!%p238_p2), %v288_v2, %v296_v4  ;;  %v304_v11 = vld [vmem:[%s13312_s1 + $0x88] sm:$0xff] (!%p238_p2) }
   0x8   : > { %v311_v7 = vld [vmem:[%s13312_s1 + $0xc0] sm:$0xff] (!%p238_p2)  ;;  %v312_v12 = vld [vmem:[%s13312_s1 + $0xc8] sm:$0xff] (!%p238_p2) }
   0x9   : > { %v8049_v10 = vcombine.high (!%p238_p2), %v303_v6, %v311_v7  ;;  %v319_v13 = vld [vmem:[%s13312_s1 + $0x100] sm:$0xff] (!%p238_p2)  ;;  %3443 = vmatprep.subr.bf16.mxu0 (!%p238_p2), %v8033_v3  ;;  %v8051_v14 = vcombine.high (!%p238_p2), %v304_v11, %v312_v12  ;;  %v320_v16 = vld [vmem:[%s13312_s1 + $0x108] sm:$0xff] (!%p238_p2)  ;;  %3525 = vmatprep.subr.bf16.mxu1 (!%p238_p2), %v8035_v8  ;;  %v8048_v18 = vcombine.low (!%p238_p2), %v303_v6, %v311_v7 }
   0xa   : > { %v327_v15 = vld [vmem:[%s13312_s1 + $0x140] sm:$0xff] (!%p238_p2)  ;;  %v328_v17 = vld [vmem:[%s13312_s1 + $0x148] sm:$0xff] (!%p238_p2)  ;;  %3444 = vmatpush1.bf16.msra.mxu0 (!%p238_p2), %v8032_v5  ;;  %3526 = vmatpush1.bf16.msra.mxu1 (!%p238_p2), %v8034_v9  ;;  %v8050_v19 = vcombine.low (!%p238_p2), %v304_v11, %v312_v12 }
   0xb   : > { %3445 = vmatprep.subr.bf16.mxu0 (!%p238_p2), %v8049_v10  ;;  %v8065_v20 = vcombine.high (!%p238_p2), %v319_v13, %v327_v15  ;;  %3527 = vmatprep.subr.bf16.mxu1 (!%p238_p2), %v8051_v14  ;;  %v8067_v21 = vcombine.high (!%p238_p2), %v320_v16, %v328_v17  ;;  %v335_v22 = vld [vmem:[%s13312_s1 + $0x180] sm:$0xff] (!%p238_p2)  ;;  %v336_v24 = vld [vmem:[%s13312_s1 + $0x188] sm:$0xff] (!%p238_p2)  ;;  %v8064_v26 = vcombine.low (!%p238_p2), %v319_v13, %v327_v15 }
   0xc   : > { %v343_v23 = vld [vmem:[%s13312_s1 + $0x1c0] sm:$0xff] (!%p238_p2)  ;;  %v344_v25 = vld [vmem:[%s13312_s1 + $0x1c8] sm:$0xff] (!%p238_p2)  ;;  %v8066_v27 = vcombine.low (!%p238_p2), %v320_v16, %v328_v17 }
   0xd   : > { %v8081_v28 = vcombine.high %v335_v22, %v343_v23  ;;  %v8083_v29 = vcombine.high %v336_v24, %v344_v25  ;;  %v351_v30 = vld [vmem:[%s13312_s1 + $0x200] sm:$0xff]  ;;  %v352_v32 = vld [vmem:[%s13312_s1 + $0x208] sm:$0xff]  ;;  %s13320_s25 = smov (!%p269_p3, %s8023_s25), 1  ;;  %v8080_v34 = vcombine.low %v335_v22, %v343_v23  ;;  %v8082_v35 = vcombine.low %v336_v24, %v344_v25 }
   0xe   : > { %3446 = vmatpush1.bf16.msra.mxu0 %v8048_v18  ;;  %3528 = vmatpush1.bf16.msra.mxu1 %v8050_v19  ;;  %v359_v31 = vld [vmem:[%s13312_s1 + $0x240] sm:$0xff]  ;;  %v360_v33 = vld [vmem:[%s13312_s1 + $0x248] sm:$0xff]  ;;  %s9058_s9 = sshll.u32 %s13320_s25, 5 }
   0xf   : > { %3447 = vmatprep.subr.bf16.mxu0 %v8065_v20  ;;  %3529 = vmatprep.subr.bf16.mxu1 %v8067_v21  ;;  %v8097_v36 = vcombine.high %v351_v30, %v359_v31  ;;  %v8099_v37 = vcombine.high %v352_v32, %v360_v33  ;;  %v367_v38 = vld [vmem:[%s13312_s1 + $0x280] sm:$0xff]  ;;  %v368_v40 = vld [vmem:[%s13312_s1 + $0x288] sm:$0xff]  ;;  %v8096_v42 = vcombine.low %v351_v30, %v359_v31  ;;  %s10037_s16 = scalar_lea.vmem %s13311_s0, %s9058_s9  ;;  %s278_s11 = scalar_lea.vmem %s13318_s7, %s9058_s9 }
  0x10   : > { %v375_v39 = vld [vmem:[%s13312_s1 + $0x2c0] sm:$0xff]  ;;  %v376_v41 = vld [vmem:[%s13312_s1 + $0x2c8] sm:$0xff]  ;;  %v8098_v43 = vcombine.low %v352_v32, %v360_v33 }
  0x11   : > { %v8113_v44 = vcombine.high %v367_v38, %v375_v39  ;;  %v8115_v45 = vcombine.high %v368_v40, %v376_v41  ;;  %v383_v46 = vld [vmem:[%s13312_s1 + $0x300] sm:$0xff]  ;;  %v384_v48 = vld [vmem:[%s13312_s1 + $0x308] sm:$0xff]  ;;  %v8112_v50 = vcombine.low %v367_v38, %v375_v39  ;;  %v8114_v51 = vcombine.low %v368_v40, %v376_v41 }
  0x12   : > { %3448 = vmatpush1.bf16.msra.mxu0 %v8064_v26  ;;  %3530 = vmatpush1.bf16.msra.mxu1 %v8066_v27  ;;  %v391_v47 = vld [vmem:[%s13312_s1 + $0x340] sm:$0xff]  ;;  %v392_v49 = vld [vmem:[%s13312_s1 + $0x348] sm:$0xff] }
  0x13   : > { %3449 = vmatprep.subr.bf16.mxu0 %v8081_v28  ;;  %3531 = vmatprep.subr.bf16.mxu1 %v8083_v29  ;;  %v8129_v52 = vcombine.high %v383_v46, %v391_v47  ;;  %v280_v53 = vld [vmem:[%s10037_s16 + $0x8] sm:$0xff]  ;;  %v8131_v54 = vcombine.high %v384_v48, %v392_v49  ;;  %v399_v55 = vld [vmem:[%s13312_s1 + $0x380] sm:$0xff]  ;;  %v8128_v60 = vcombine.low %v383_v46, %v391_v47 }
  0x14   : > { %v407_v56 = vld [vmem:[%s13312_s1 + $0x3c0] sm:$0xff]  ;;  %v10052_v57 = vpack.c.bf16 %v280_v53, %v280_v53  ;;  %v400_v58 = vld [vmem:[%s13312_s1 + $0x388] sm:$0xff]  ;;  %v8130_v61 = vcombine.low %v384_v48, %v392_v49 }
  0x15   : > { %v408_v59 = vld [vmem:[%s13312_s1 + $0x3c8] sm:$0xff]  ;;  %v8145_v62 = vcombine.high %v399_v55, %v407_v56  ;;  %v415_v0 = vld [vmem:[%s13312_s1 + $0x400] sm:$0xff]  ;;  %v8144_v4 = vcombine.low %v399_v55, %v407_v56 }
  0x16   : > { %3450 = vmatpush1.bf16.msra.mxu0 %v8080_v34  ;;  %3532 = vmatpush1.bf16.msra.mxu1 %v8082_v35  ;;  %v8147_v63 = vcombine.high %v400_v58, %v408_v59  ;;  %v423_v1 = vld [vmem:[%s13312_s1 + $0x440] sm:$0xff]  ;;  %v416_v2 = vld [vmem:[%s13312_s1 + $0x408] sm:$0xff]  ;;  %v8146_v5 = vcombine.low %v400_v58, %v408_v59 }
  0x17   : > { %3451 = vmatprep.subr.bf16.mxu0 %v8097_v36  ;;  %3533 = vmatprep.subr.bf16.mxu1 %v8099_v37  ;;  %v424_v3 = vld [vmem:[%s13312_s1 + $0x448] sm:$0xff]  ;;  %v8161_v6 = vcombine.high %v415_v0, %v423_v1  ;;  %v431_v8 = vld [vmem:[%s13312_s1 + $0x480] sm:$0xff]  ;;  %v8160_v12 = vcombine.low %v415_v0, %v423_v1 }
  0x18   : > { %3475 = vmatprep.mubr.bf16.mxu0 %v10052_v57  ;;  %3557 = vmatprep.mubr.bf16.mxu1 %v10052_v57  ;;  %v8163_v7 = vcombine.high %v416_v2, %v424_v3  ;;  %v439_v9 = vld [vmem:[%s13312_s1 + $0x4c0] sm:$0xff]  ;;  %v432_v10 = vld [vmem:[%s13312_s1 + $0x488] sm:$0xff]  ;;  %v8162_v13 = vcombine.low %v416_v2, %v424_v3 }
  0x19   : > { %v440_v11 = vld [vmem:[%s13312_s1 + $0x4c8] sm:$0xff]  ;;  %v8177_v14 = vcombine.high %v431_v8, %v439_v9  ;;  %v447_v16 = vld [vmem:[%s13312_s1 + $0x500] sm:$0xff]  ;;  %v8176_v20 = vcombine.low %v431_v8, %v439_v9 }
  0x1a   : > { %3452 = vmatpush1.bf16.msra.mxu0 %v8096_v42  ;;  %3534 = vmatpush1.bf16.msra.mxu1 %v8098_v43  ;;  %v8179_v15 = vcombine.high %v432_v10, %v440_v11  ;;  %v455_v17 = vld [vmem:[%s13312_s1 + $0x540] sm:$0xff]  ;;  %v448_v18 = vld [vmem:[%s13312_s1 + $0x508] sm:$0xff]  ;;  %v8178_v21 = vcombine.low %v432_v10, %v440_v11 }
  0x1b   : > { %3453 = vmatprep.subr.bf16.mxu0 %v8113_v44  ;;  %3535 = vmatprep.subr.bf16.mxu1 %v8115_v45  ;;  %v456_v19 = vld [vmem:[%s13312_s1 + $0x548] sm:$0xff]  ;;  %v8193_v22 = vcombine.high %v447_v16, %v455_v17  ;;  %v463_v24 = vld [vmem:[%s13312_s1 + $0x580] sm:$0xff]  ;;  %v8192_v28 = vcombine.low %v447_v16, %v455_v17 }
  0x1c   : > { %v8195_v23 = vcombine.high %v448_v18, %v456_v19  ;;  %v471_v25 = vld [vmem:[%s13312_s1 + $0x5c0] sm:$0xff]  ;;  %v464_v26 = vld [vmem:[%s13312_s1 + $0x588] sm:$0xff]  ;;  %v8194_v29 = vcombine.low %v448_v18, %v456_v19 }
  0x1d   : > { %v472_v27 = vld [vmem:[%s13312_s1 + $0x5c8] sm:$0xff]  ;;  %v8209_v30 = vcombine.high %v463_v24, %v471_v25  ;;  %v479_v32 = vld [vmem:[%s13312_s1 + $0x600] sm:$0xff]  ;;  %v8208_v36 = vcombine.low %v463_v24, %v471_v25 }
  0x1e   : > { %3454 = vmatpush1.bf16.msra.mxu0 %v8112_v50  ;;  %3536 = vmatpush1.bf16.msra.mxu1 %v8114_v51  ;;  %v8211_v31 = vcombine.high %v464_v26, %v472_v27  ;;  %v487_v33 = vld [vmem:[%s13312_s1 + $0x640] sm:$0xff]  ;;  %v480_v34 = vld [vmem:[%s13312_s1 + $0x608] sm:$0xff]  ;;  %v8210_v37 = vcombine.low %v464_v26, %v472_v27 }
  0x1f   : > { %3455 = vmatprep.subr.bf16.mxu0 %v8129_v52  ;;  %3537 = vmatprep.subr.bf16.mxu1 %v8131_v54  ;;  %v488_v35 = vld [vmem:[%s13312_s1 + $0x648] sm:$0xff]  ;;  %v8225_v38 = vcombine.high %v479_v32, %v487_v33  ;;  %v495_v40 = vld [vmem:[%s13312_s1 + $0x680] sm:$0xff]  ;;  %v8224_v44 = vcombine.low %v479_v32, %v487_v33 }
  0x20   : > { %v8227_v39 = vcombine.high %v480_v34, %v488_v35  ;;  %v503_v41 = vld [vmem:[%s13312_s1 + $0x6c0] sm:$0xff]  ;;  %v496_v42 = vld [vmem:[%s13312_s1 + $0x688] sm:$0xff]  ;;  %v8226_v45 = vcombine.low %v480_v34, %v488_v35 }
  0x21   : > { %v504_v43 = vld [vmem:[%s13312_s1 + $0x6c8] sm:$0xff]  ;;  %v8241_v46 = vcombine.high %v495_v40, %v503_v41  ;;  %v511_v48 = vld [vmem:[%s13312_s1 + $0x700] sm:$0xff]  ;;  %v8240_v52 = vcombine.low %v495_v40, %v503_v41 }
  0x22   : > { %3456 = vmatpush1.bf16.msra.mxu0 %v8128_v60  ;;  %3538 = vmatpush1.bf16.msra.mxu1 %v8130_v61  ;;  %v8243_v47 = vcombine.high %v496_v42, %v504_v43  ;;  %v519_v49 = vld [vmem:[%s13312_s1 + $0x740] sm:$0xff]  ;;  %v512_v50 = vld [vmem:[%s13312_s1 + $0x708] sm:$0xff]  ;;  %v8242_v53 = vcombine.low %v496_v42, %v504_v43 }
  0x23   : > { %3457 = vmatprep.subr.bf16.mxu0 %v8145_v62  ;;  %3539 = vmatprep.subr.bf16.mxu1 %v8147_v63  ;;  %v520_v51 = vld [vmem:[%s13312_s1 + $0x748] sm:$0xff]  ;;  %v8257_v54 = vcombine.high %v511_v48, %v519_v49  ;;  %v527_v56 = vld [vmem:[%s13312_s1 + $0x780] sm:$0xff]  ;;  %v8256_v61 = vcombine.low %v511_v48, %v519_v49 }
  0x24   : > { %v8259_v55 = vcombine.high %v512_v50, %v520_v51  ;;  %v535_v58 = vld [vmem:[%s13312_s1 + $0x7c0] sm:$0xff]  ;;  %v528_v59 = vld [vmem:[%s13312_s1 + $0x788] sm:$0xff]  ;;  %v8258_v62 = vcombine.low %v512_v50, %v520_v51 }
  0x25   : > { %v536_v60 = vld [vmem:[%s13312_s1 + $0x7c8] sm:$0xff]  ;;  %v8273_v63 = vcombine.high %v527_v56, %v535_v58  ;;  %v543_v1 = vld [vmem:[%s13312_s1 + $0x800] sm:$0xff] }
  0x26   : > { %3458 = vmatpush1.bf16.msra.mxu0 %v8144_v4  ;;  %3540 = vmatpush1.bf16.msra.mxu1 %v8146_v5  ;;  %v8275_v0 = vcombine.high %v528_v59, %v536_v60  ;;  %v551_v2 = vld [vmem:[%s13312_s1 + $0x840] sm:$0xff]  ;;  %v544_v3 = vld [vmem:[%s13312_s1 + $0x808] sm:$0xff]  ;;  %v8272_v5 = vcombine.low %v527_v56, %v535_v58 }
  0x27   : > { %3459 = vmatprep.subr.bf16.mxu0 %v8161_v6  ;;  %3541 = vmatprep.subr.bf16.mxu1 %v8163_v7  ;;  %v552_v4 = vld [vmem:[%s13312_s1 + $0x848] sm:$0xff]  ;;  %v279_v6 = vld [vmem:[%s10037_s16] sm:$0xff]  ;;  %v8274_v7 = vcombine.low %v528_v59, %v536_v60  ;;  %v8289_v8 = vcombine.high %v543_v1, %v551_v2  ;;  %v8288_v16 = vcombine.low %v543_v1, %v551_v2 }
  0x28   : > { %v8291_v9 = vcombine.high %v544_v3, %v552_v4  ;;  %v559_v10 = vld [vmem:[%s13312_s1 + $0x880] sm:$0xff]  ;;  %v8290_v17 = vcombine.low %v544_v3, %v552_v4  ;;  %v600_v32 = vld [vmem:[%s13312_s1 + $0x9c8] sm:$0xff] }
  0x29   : > { %v567_v11 = vld [vmem:[%s13312_s1 + $0x8c0] sm:$0xff]  ;;  %v616_v40 = vld [vmem:[%s13312_s1 + $0xa48] sm:$0xff] }
  0x2a   : > { %3460 = vmatpush1.bf16.msra.mxu0 %v8160_v12  ;;  %3542 = vmatpush1.bf16.msra.mxu1 %v8162_v13  ;;  %v10177_v12 = vpack.c.bf16 %v279_v6, %v279_v6  ;;  %v560_v13 = vld [vmem:[%s13312_s1 + $0x888] sm:$0xff]  ;;  %v8305_v18 = vcombine.high %v559_v10, %v567_v11  ;;  %v575_v19 = vld [vmem:[%s13312_s1 + $0x900] sm:$0xff]  ;;  %v8304_v25 = vcombine.low %v559_v10, %v567_v11 }
  0x2b   : > { %3461 = vmatprep.subr.bf16.mxu0 %v8177_v14  ;;  %3543 = vmatprep.subr.bf16.mxu1 %v8179_v15  ;;  %v568_v14 = vld [vmem:[%s13312_s1 + $0x8c8] sm:$0xff]  ;;  %v282_v15 = vld [vmem:[%s10037_s16 + $0x18] sm:$0xff]  ;;  %v679_v6 = vld [vmem:[%s13312_s1 + $0xc40] sm:$0xff] }
  0x2c   : > { %v10198_v24 = vpack.c.bf16 %v282_v15, %v282_v15  ;;  %v8306_v26 = vcombine.low %v560_v13, %v568_v14  ;;  %v632_v48 = vld [vmem:[%s13312_s1 + $0xac8] sm:$0xff]  ;;  %v695_v15 = vld [vmem:[%s13312_s1 + $0xcc0] sm:$0xff] }
  0x2d   : > { %v648_v56 = vld [vmem:[%s13312_s1 + $0xb48] sm:$0xff] }
  0x2e   : > { %3462 = vmatpush1.bf16.msra.mxu0 %v8176_v20  ;;  %3544 = vmatpush1.bf16.msra.mxu1 %v8178_v21  ;;  %v583_v20 = vld [vmem:[%s13312_s1 + $0x940] sm:$0xff]  ;;  %v8307_v21 = vcombine.high %v560_v13, %v568_v14  ;;  %v664_v1 = vld [vmem:[%s13312_s1 + $0xbc8] sm:$0xff] }
  0x2f   : > { %3463 = vmatprep.subr.bf16.mxu0 %v8193_v22  ;;  %3545 = vmatprep.subr.bf16.mxu1 %v8195_v23  ;;  %v576_v22 = vld [vmem:[%s13312_s1 + $0x908] sm:$0xff]  ;;  %v8321_v27 = vcombine.high %v575_v19, %v583_v20  ;;  %v8320_v33 = vcombine.low %v575_v19, %v583_v20  ;;  %v687_v14 = vld [vmem:[%s13312_s1 + $0xc80] sm:$0xff] }
  0x30   : > { %v584_v23 = vld [vmem:[%s13312_s1 + $0x948] sm:$0xff] }
  0x31   : > { %v8322_v34 = vcombine.low %v576_v22, %v584_v23 }
  0x32   : > { %3464 = vmatpush1.bf16.msra.mxu0 %v8192_v28  ;;  %3546 = vmatpush1.bf16.msra.mxu1 %v8194_v29  ;;  %v591_v28 = vld [vmem:[%s13312_s1 + $0x980] sm:$0xff] }
  0x33   : > { %3465 = vmatprep.subr.bf16.mxu0 %v8209_v30  ;;  %3547 = vmatprep.subr.bf16.mxu1 %v8211_v31  ;;  %v599_v29 = vld [vmem:[%s13312_s1 + $0x9c0] sm:$0xff]  ;;  %v592_v30 = vld [vmem:[%s13312_s1 + $0x988] sm:$0xff]  ;;  %v8323_v31 = vcombine.high %v576_v22, %v584_v23 }
  0x34   : > { %v8337_v35 = vcombine.high %v591_v28, %v599_v29  ;;  %v8336_v41 = vcombine.low %v591_v28, %v599_v29  ;;  %v8338_v42 = vcombine.low %v592_v30, %v600_v32  ;;  %v703_v22 = vld [vmem:[%s13312_s1 + $0xd00] sm:$0xff]  ;;  %v8432_v28 = vcombine.low %v687_v14, %v695_v15 }
  0x35   : > { %v711_v23 = vld [vmem:[%s13312_s1 + $0xd40] sm:$0xff] }
  0x36   : > { %3466 = vmatpush1.bf16.msra.mxu0 %v8208_v36  ;;  %3548 = vmatpush1.bf16.msra.mxu1 %v8210_v37  ;;  %v607_v36 = vld [vmem:[%s13312_s1 + $0xa00] sm:$0xff] }
  0x37   : > { %3467 = vmatprep.subr.bf16.mxu0 %v8225_v38  ;;  %3549 = vmatprep.subr.bf16.mxu1 %v8227_v39  ;;  %v615_v37 = vld [vmem:[%s13312_s1 + $0xa40] sm:$0xff]  ;;  %v608_v38 = vld [vmem:[%s13312_s1 + $0xa08] sm:$0xff]  ;;  %v8339_v39 = vcombine.high %v592_v30, %v600_v32  ;;  %v8449_v30 = vcombine.high %v703_v22, %v711_v23 }
  0x38   : > { %v8353_v43 = vcombine.high %v607_v36, %v615_v37  ;;  %v8352_v49 = vcombine.low %v607_v36, %v615_v37  ;;  %v8354_v50 = vcombine.low %v608_v38, %v616_v40  ;;  %v727_v32 = vld [vmem:[%s13312_s1 + $0xdc0] sm:$0xff]  ;;  %v8448_v36 = vcombine.low %v703_v22, %v711_v23  ;;  %v314_v22 = vld [vmem:[%s13312_s1 + $0xd8] sm:$0xff] }
  0x3a   : > { %3468 = vmatpush1.bf16.msra.mxu0 %v8224_v44  ;;  %3550 = vmatpush1.bf16.msra.mxu1 %v8226_v45  ;;  %v623_v44 = vld [vmem:[%s13312_s1 + $0xa80] sm:$0xff] }
  0x3b   : > { %3469 = vmatprep.subr.bf16.mxu0 %v8241_v46  ;;  %3551 = vmatprep.subr.bf16.mxu1 %v8243_v47  ;;  %v631_v45 = vld [vmem:[%s13312_s1 + $0xac0] sm:$0xff]  ;;  %v624_v46 = vld [vmem:[%s13312_s1 + $0xa88] sm:$0xff]  ;;  %v8355_v47 = vcombine.high %v608_v38, %v616_v40 }
  0x3c   : > { %v8369_v51 = vcombine.high %v623_v44, %v631_v45  ;;  %v8368_v58 = vcombine.low %v623_v44, %v631_v45  ;;  %v8370_v59 = vcombine.low %v624_v46, %v632_v48  ;;  %v743_v40 = vld [vmem:[%s13312_s1 + $0xe40] sm:$0xff] }
  0x3e   : > { %3470 = vmatpush1.bf16.msra.mxu0 %v8240_v52  ;;  %3552 = vmatpush1.bf16.msra.mxu1 %v8242_v53  ;;  %v639_v52 = vld [vmem:[%s13312_s1 + $0xb00] sm:$0xff] }
  0x3f   : > { %3471 = vmatprep.subr.bf16.mxu0 %v8257_v54  ;;  %3553 = vmatprep.subr.bf16.mxu1 %v8259_v55  ;;  %v647_v53 = vld [vmem:[%s13312_s1 + $0xb40] sm:$0xff]  ;;  %v640_v54 = vld [vmem:[%s13312_s1 + $0xb08] sm:$0xff]  ;;  %v8371_v55 = vcombine.high %v624_v46, %v632_v48 }
  0x40   : > { %v8385_v60 = vcombine.high %v639_v52, %v647_v53  ;;  %v8384_v2 = vcombine.low %v639_v52, %v647_v53  ;;  %v8386_v3 = vcombine.low %v640_v54, %v648_v56  ;;  %v759_v48 = vld [vmem:[%s13312_s1 + $0xec0] sm:$0xff] }
  0x42   : > { %3472 = vmatpush1.bf16.msra.mxu0 %v8256_v61  ;;  %3554 = vmatpush1.bf16.msra.mxu1 %v8258_v62  ;;  %v655_v61 = vld [vmem:[%s13312_s1 + $0xb80] sm:$0xff] }
  0x43   : > { %3473 = vmatprep.subr.bf16.mxu0 %v8273_v63  ;;  %3555 = vmatprep.subr.bf16.mxu1 %v8275_v0  ;;  %v663_v62 = vld [vmem:[%s13312_s1 + $0xbc0] sm:$0xff]  ;;  %v656_v63 = vld [vmem:[%s13312_s1 + $0xb88] sm:$0xff]  ;;  %v8387_v0 = vcombine.high %v640_v54, %v648_v56 }
  0x44   : > { %v8401_v4 = vcombine.high %v655_v61, %v663_v62  ;;  %v8400_v10 = vcombine.low %v655_v61, %v663_v62  ;;  %v8402_v11 = vcombine.low %v656_v63, %v664_v1  ;;  %v775_v56 = vld [vmem:[%s13312_s1 + $0xf40] sm:$0xff] }
  0x46   : > { %3474 = vmatpush1.bf16.msra.mxu0 %v8272_v5  ;;  %3556 = vmatpush1.bf16.msra.mxu1 %v8274_v7  ;;  %v671_v5 = vld [vmem:[%s13312_s1 + $0xc00] sm:$0xff]  ;;  %v672_v7 = vld [vmem:[%s13312_s1 + $0xc08] sm:$0xff] }
  0x47   : > { %3484 = vmatprep.subr.bf16.mxu0 %v8289_v8  ;;  %3566 = vmatprep.subr.bf16.mxu1 %v8291_v9  ;;  %v8403_v8 = vcombine.high %v656_v63, %v664_v1  ;;  %v680_v9 = vld [vmem:[%s13312_s1 + $0xc48] sm:$0xff]  ;;  %v8417_v13 = vcombine.high %v671_v5, %v679_v6  ;;  %v8416_v19 = vcombine.low %v671_v5, %v679_v6  ;;  %v791_v1 = vld [vmem:[%s13312_s1 + $0xfc0] sm:$0xff] }
  0x48   : > { %v8418_v20 = vcombine.low %v672_v7, %v680_v9 }
  0x49   : > { %3476 = vmatmul.mubr.bf16.vlgmr.msra.gmra.mrb[0].mxu0 %v10177_v12  ;;  %3558 = vmatmul.mubr.bf16.vlgmr.msra.gmra.mrb[0].mxu1 %v10177_v12 }
  0x4a   : > { %3485 = vmatpush1.bf16.msra.mxu0 %v8288_v16  ;;  %3567 = vmatpush1.bf16.msra.mxu1 %v8290_v17  ;;  %v688_v16 = vld [vmem:[%s13312_s1 + $0xc88] sm:$0xff]  ;;  %v8419_v17 = vcombine.high %v672_v7, %v680_v9  ;;  %v297_v9 = vld [vmem:[%s13312_s1 + $0x50] sm:$0xff] }
  0x4b   : > { %3486 = vmatprep.subr.bf16.mxu0 %v8305_v18  ;;  %3568 = vmatprep.subr.bf16.mxu1 %v8307_v21  ;;  %v696_v18 = vld [vmem:[%s13312_s1 + $0xcc8] sm:$0xff]  ;;  %v8433_v21 = vcombine.high %v687_v14, %v695_v15  ;;  %v298_v14 = vld [vmem:[%s13312_s1 + $0x58] sm:$0xff] }
  0x4c   : > { %3516 = vmatprep.mubr.bf16.mxu0 %v10198_v24  ;;  %3598 = vmatprep.mubr.bf16.mxu1 %v10198_v24  ;;  %v8434_v29 = vcombine.low %v688_v16, %v696_v18 }
  0x4e   : > { %3487 = vmatpush1.bf16.msra.mxu0 %v8304_v25  ;;  %3569 = vmatpush1.bf16.msra.mxu1 %v8306_v26  ;;  %v704_v25 = vld [vmem:[%s13312_s1 + $0xd08] sm:$0xff]  ;;  %v8435_v26 = vcombine.high %v688_v16, %v696_v18  ;;  %v305_v18 = vld [vmem:[%s13312_s1 + $0x90] sm:$0xff] }
  0x4f   : > { %3488 = vmatprep.subr.bf16.mxu0 %v8321_v27  ;;  %3570 = vmatprep.subr.bf16.mxu1 %v8323_v31  ;;  %v712_v27 = vld [vmem:[%s13312_s1 + $0xd48] sm:$0xff]  ;;  %v719_v31 = vld [vmem:[%s13312_s1 + $0xd80] sm:$0xff] }
  0x50   : > { %v8450_v37 = vcombine.low %v704_v25, %v712_v27  ;;  %v8465_v38 = vcombine.high %v719_v31, %v727_v32  ;;  %v8464_v44 = vcombine.low %v719_v31, %v727_v32  ;;  %v330_v32 = vld [vmem:[%s13312_s1 + $0x158] sm:$0xff] }
  0x52   : > { %3489 = vmatpush1.bf16.msra.mxu0 %v8320_v33  ;;  %3571 = vmatpush1.bf16.msra.mxu1 %v8322_v34  ;;  %v720_v33 = vld [vmem:[%s13312_s1 + $0xd88] sm:$0xff]  ;;  %v8451_v34 = vcombine.high %v704_v25, %v712_v27 }
  0x53   : > { %3490 = vmatprep.subr.bf16.mxu0 %v8337_v35  ;;  %3572 = vmatprep.subr.bf16.mxu1 %v8339_v39  ;;  %v728_v35 = vld [vmem:[%s13312_s1 + $0xdc8] sm:$0xff]  ;;  %v735_v39 = vld [vmem:[%s13312_s1 + $0xe00] sm:$0xff] }
  0x54   : > { %v8466_v45 = vcombine.low %v720_v33, %v728_v35  ;;  %v8481_v46 = vcombine.high %v735_v39, %v743_v40  ;;  %v8480_v52 = vcombine.low %v735_v39, %v743_v40  ;;  %v346_v40 = vld [vmem:[%s13312_s1 + $0x1d8] sm:$0xff] }
  0x56   : > { %3491 = vmatpush1.bf16.msra.mxu0 %v8336_v41  ;;  %3573 = vmatpush1.bf16.msra.mxu1 %v8338_v42  ;;  %v736_v41 = vld [vmem:[%s13312_s1 + $0xe08] sm:$0xff]  ;;  %v8467_v42 = vcombine.high %v720_v33, %v728_v35 }
  0x57   : > { %3492 = vmatprep.subr.bf16.mxu0 %v8353_v43  ;;  %3574 = vmatprep.subr.bf16.mxu1 %v8355_v47  ;;  %v744_v43 = vld [vmem:[%s13312_s1 + $0xe48] sm:$0xff]  ;;  %v751_v47 = vld [vmem:[%s13312_s1 + $0xe80] sm:$0xff] }
  0x58   : > { %v8482_v53 = vcombine.low %v736_v41, %v744_v43  ;;  %v8497_v54 = vcombine.high %v751_v47, %v759_v48  ;;  %v8496_v61 = vcombine.low %v751_v47, %v759_v48  ;;  %v362_v48 = vld [vmem:[%s13312_s1 + $0x258] sm:$0xff] }
  0x5a   : > { %3493 = vmatpush1.bf16.msra.mxu0 %v8352_v49  ;;  %3575 = vmatpush1.bf16.msra.mxu1 %v8354_v50  ;;  %v752_v49 = vld [vmem:[%s13312_s1 + $0xe88] sm:$0xff]  ;;  %v8483_v50 = vcombine.high %v736_v41, %v744_v43 }
  0x5b   : > { %3494 = vmatprep.subr.bf16.mxu0 %v8369_v51  ;;  %3576 = vmatprep.subr.bf16.mxu1 %v8371_v55  ;;  %v760_v51 = vld [vmem:[%s13312_s1 + $0xec8] sm:$0xff]  ;;  %v767_v55 = vld [vmem:[%s13312_s1 + $0xf00] sm:$0xff] }
  0x5c   : > { %v8498_v62 = vcombine.low %v752_v49, %v760_v51  ;;  %v8513_v63 = vcombine.high %v767_v55, %v775_v56  ;;  %v8512_v5 = vcombine.low %v767_v55, %v775_v56  ;;  %v378_v56 = vld [vmem:[%s13312_s1 + $0x2d8] sm:$0xff] }
  0x5e   : > { %3495 = vmatpush1.bf16.msra.mxu0 %v8368_v58  ;;  %3577 = vmatpush1.bf16.msra.mxu1 %v8370_v59  ;;  %v768_v58 = vld [vmem:[%s13312_s1 + $0xf08] sm:$0xff]  ;;  %v8499_v59 = vcombine.high %v752_v49, %v760_v51 }
  0x5f   : > { %3496 = vmatprep.subr.bf16.mxu0 %v8385_v60  ;;  %3578 = vmatprep.subr.bf16.mxu1 %v8387_v0  ;;  %v776_v60 = vld [vmem:[%s13312_s1 + $0xf48] sm:$0xff]  ;;  %v783_v0 = vld [vmem:[%s13312_s1 + $0xf80] sm:$0xff] }
  0x60   : > { %v8514_v6 = vcombine.low %v768_v58, %v776_v60  ;;  %v8529_v7 = vcombine.high %v783_v0, %v791_v1  ;;  %v8528_v15 = vcombine.low %v783_v0, %v791_v1  ;;  %v394_v1 = vld [vmem:[%s13312_s1 + $0x358] sm:$0xff] }
  0x62   : > { %3497 = vmatpush1.bf16.msra.mxu0 %v8384_v2  ;;  %3579 = vmatpush1.bf16.msra.mxu1 %v8386_v3  ;;  %v784_v2 = vld [vmem:[%s13312_s1 + $0xf88] sm:$0xff]  ;;  %v8515_v3 = vcombine.high %v768_v58, %v776_v60 }
  0x63   : > { %3498 = vmatprep.subr.bf16.mxu0 %v8401_v4  ;;  %3580 = vmatprep.subr.bf16.mxu1 %v8403_v8  ;;  %v792_v4 = vld [vmem:[%s13312_s1 + $0xfc8] sm:$0xff]  ;;  %v289_v8 = vld [vmem:[%s13312_s1 + $0x10] sm:$0xff] }
  0x64   : > { %v8530_v16 = vcombine.low %v784_v2, %v792_v4  ;;  %v8036_v25 = vcombine.low %v289_v8, %v297_v9 }
  0x66   : > { %3499 = vmatpush1.bf16.msra.mxu0 %v8400_v10  ;;  %3581 = vmatpush1.bf16.msra.mxu1 %v8402_v11  ;;  %v290_v10 = vld [vmem:[%s13312_s1 + $0x18] sm:$0xff]  ;;  %v8531_v11 = vcombine.high %v784_v2, %v792_v4 }
  0x67   : > { %3500 = vmatprep.subr.bf16.mxu0 %v8417_v13  ;;  %3582 = vmatprep.subr.bf16.mxu1 %v8419_v17  ;;  %v281_v13 = vld [vmem:[%s10037_s16 + $0x10] sm:$0xff]  ;;  %v8037_v17 = vcombine.high %v289_v8, %v297_v9  ;;  %v410_v9 = vld [vmem:[%s13312_s1 + $0x3d8] sm:$0xff] }
  0x68   : > { %v10385_v23 = vpack.c.bf16 %v281_v13, %v281_v13 }
  0x6a   : > { %3501 = vmatpush1.bf16.msra.mxu0 %v8416_v19  ;;  %3583 = vmatpush1.bf16.msra.mxu1 %v8418_v20  ;;  %v313_v19 = vld [vmem:[%s13312_s1 + $0xd0] sm:$0xff]  ;;  %v306_v20 = vld [vmem:[%s13312_s1 + $0x98] sm:$0xff] }
  0x6b   : > { %3502 = vmatprep.subr.bf16.mxu0 %v8433_v21  ;;  %3584 = vmatprep.subr.bf16.mxu1 %v8435_v26  ;;  %v8039_v21 = vcombine.high %v290_v10, %v298_v14  ;;  %v8038_v26 = vcombine.low %v290_v10, %v298_v14  ;;  %v8053_v27 = vcombine.high %v305_v18, %v313_v19  ;;  %v417_v14 = vld [vmem:[%s13312_s1 + $0x410] sm:$0xff] }
  0x6c   : > { %v8055_v31 = vcombine.high %v306_v20, %v314_v22  ;;  %v8052_v33 = vcombine.low %v305_v18, %v313_v19  ;;  %v426_v18 = vld [vmem:[%s13312_s1 + $0x458] sm:$0xff] }
  0x6e   : > { %3503 = vmatpush1.bf16.msra.mxu0 %v8432_v28  ;;  %3585 = vmatpush1.bf16.msra.mxu1 %v8434_v29  ;;  %v321_v28 = vld [vmem:[%s13312_s1 + $0x110] sm:$0xff] }
  0x6f   : > { %3504 = vmatprep.subr.bf16.mxu0 %v8449_v30  ;;  %3586 = vmatprep.subr.bf16.mxu1 %v8451_v34  ;;  %v329_v29 = vld [vmem:[%s13312_s1 + $0x150] sm:$0xff]  ;;  %v322_v30 = vld [vmem:[%s13312_s1 + $0x118] sm:$0xff]  ;;  %v8054_v34 = vcombine.low %v306_v20, %v314_v22 }
  0x70   : > { %v8069_v35 = vcombine.high %v321_v28, %v329_v29  ;;  %v8071_v39 = vcombine.high %v322_v30, %v330_v32  ;;  %v8068_v41 = vcombine.low %v321_v28, %v329_v29  ;;  %v433_v22 = vld [vmem:[%s13312_s1 + $0x490] sm:$0xff]  ;;  %v442_v28 = vld [vmem:[%s13312_s1 + $0x4d8] sm:$0xff] }
  0x72   : > { %3505 = vmatpush1.bf16.msra.mxu0 %v8448_v36  ;;  %3587 = vmatpush1.bf16.msra.mxu1 %v8450_v37  ;;  %v337_v36 = vld [vmem:[%s13312_s1 + $0x190] sm:$0xff] }
  0x73   : > { %3506 = vmatprep.subr.bf16.mxu0 %v8465_v38  ;;  %3588 = vmatprep.subr.bf16.mxu1 %v8467_v42  ;;  %v345_v37 = vld [vmem:[%s13312_s1 + $0x1d0] sm:$0xff]  ;;  %v338_v38 = vld [vmem:[%s13312_s1 + $0x198] sm:$0xff]  ;;  %v8070_v42 = vcombine.low %v322_v30, %v330_v32 }
  0x74   : > { %v8085_v43 = vcombine.high %v337_v36, %v345_v37  ;;  %v8087_v47 = vcombine.high %v338_v38, %v346_v40  ;;  %v8084_v49 = vcombine.low %v337_v36, %v345_v37  ;;  %v449_v32 = vld [vmem:[%s13312_s1 + $0x510] sm:$0xff]  ;;  %v458_v36 = vld [vmem:[%s13312_s1 + $0x558] sm:$0xff] }
  0x76   : > { %3507 = vmatpush1.bf16.msra.mxu0 %v8464_v44  ;;  %3589 = vmatpush1.bf16.msra.mxu1 %v8466_v45  ;;  %v353_v44 = vld [vmem:[%s13312_s1 + $0x210] sm:$0xff] }
  0x77   : > { %3508 = vmatprep.subr.bf16.mxu0 %v8481_v46  ;;  %3590 = vmatprep.subr.bf16.mxu1 %v8483_v50  ;;  %v361_v45 = vld [vmem:[%s13312_s1 + $0x250] sm:$0xff]  ;;  %v354_v46 = vld [vmem:[%s13312_s1 + $0x218] sm:$0xff]  ;;  %v8086_v50 = vcombine.low %v338_v38, %v346_v40 }
  0x78   : > { %v8101_v51 = vcombine.high %v353_v44, %v361_v45  ;;  %v8103_v55 = vcombine.high %v354_v46, %v362_v48  ;;  %v8100_v58 = vcombine.low %v353_v44, %v361_v45  ;;  %v465_v40 = vld [vmem:[%s13312_s1 + $0x590] sm:$0xff]  ;;  %v474_v44 = vld [vmem:[%s13312_s1 + $0x5d8] sm:$0xff] }
  0x7a   : > { %3509 = vmatpush1.bf16.msra.mxu0 %v8480_v52  ;;  %3591 = vmatpush1.bf16.msra.mxu1 %v8482_v53  ;;  %v369_v52 = vld [vmem:[%s13312_s1 + $0x290] sm:$0xff] }
  0x7b   : > { %3510 = vmatprep.subr.bf16.mxu0 %v8497_v54  ;;  %3592 = vmatprep.subr.bf16.mxu1 %v8499_v59  ;;  %v377_v53 = vld [vmem:[%s13312_s1 + $0x2d0] sm:$0xff]  ;;  %v370_v54 = vld [vmem:[%s13312_s1 + $0x298] sm:$0xff]  ;;  %v8102_v59 = vcombine.low %v354_v46, %v362_v48 }
  0x7c   : > { %v8117_v60 = vcombine.high %v369_v52, %v377_v53  ;;  %v8119_v0 = vcombine.high %v370_v54, %v378_v56  ;;  %v8116_v2 = vcombine.low %v369_v52, %v377_v53  ;;  %v481_v48 = vld [vmem:[%s13312_s1 + $0x610] sm:$0xff]  ;;  %v490_v52 = vld [vmem:[%s13312_s1 + $0x658] sm:$0xff] }
  0x7e   : > { %3511 = vmatpush1.bf16.msra.mxu0 %v8496_v61  ;;  %3593 = vmatpush1.bf16.msra.mxu1 %v8498_v62  ;;  %v385_v61 = vld [vmem:[%s13312_s1 + $0x310] sm:$0xff] }
  0x7f   : > { %3512 = vmatprep.subr.bf16.mxu0 %v8513_v63  ;;  %3594 = vmatprep.subr.bf16.mxu1 %v8515_v3  ;;  %v393_v62 = vld [vmem:[%s13312_s1 + $0x350] sm:$0xff]  ;;  %v386_v63 = vld [vmem:[%s13312_s1 + $0x318] sm:$0xff]  ;;  %v8118_v3 = vcombine.low %v370_v54, %v378_v56 }
  0x80   : > { %v8133_v4 = vcombine.high %v385_v61, %v393_v62  ;;  %v8135_v8 = vcombine.high %v386_v63, %v394_v1  ;;  %v8132_v10 = vcombine.low %v385_v61, %v393_v62  ;;  %v497_v56 = vld [vmem:[%s13312_s1 + $0x690] sm:$0xff]  ;;  %v506_v61 = vld [vmem:[%s13312_s1 + $0x6d8] sm:$0xff] }
  0x82   : > { %3513 = vmatpush1.bf16.msra.mxu0 %v8512_v5  ;;  %3595 = vmatpush1.bf16.msra.mxu1 %v8514_v6  ;;  %v401_v5 = vld [vmem:[%s13312_s1 + $0x390] sm:$0xff] }
  0x83   : > { %3514 = vmatprep.subr.bf16.mxu0 %v8529_v7  ;;  %3596 = vmatprep.subr.bf16.mxu1 %v8531_v11  ;;  %v409_v6 = vld [vmem:[%s13312_s1 + $0x3d0] sm:$0xff]  ;;  %v402_v7 = vld [vmem:[%s13312_s1 + $0x398] sm:$0xff]  ;;  %v8134_v11 = vcombine.low %v386_v63, %v394_v1 }
  0x84   : > { %v8149_v13 = vcombine.high %v401_v5, %v409_v6  ;;  %v8148_v19 = vcombine.low %v401_v5, %v409_v6  ;;  %v8150_v20 = vcombine.low %v402_v7, %v410_v9  ;;  %v513_v1 = vld [vmem:[%s13312_s1 + $0x710] sm:$0xff]  ;;  %v522_v5 = vld [vmem:[%s13312_s1 + $0x758] sm:$0xff] }
  0x86   : > { %3515 = vmatpush1.bf16.msra.mxu0 %v8528_v15  ;;  %3597 = vmatpush1.bf16.msra.mxu1 %v8530_v16  ;;  %v425_v15 = vld [vmem:[%s13312_s1 + $0x450] sm:$0xff]  ;;  %v418_v16 = vld [vmem:[%s13312_s1 + $0x418] sm:$0xff] }
  0x87   : > { %3607 = vmatprep.subr.bf16.mxu0 %v8037_v17  ;;  %3689 = vmatprep.subr.bf16.mxu1 %v8039_v21  ;;  %v8151_v17 = vcombine.high %v402_v7, %v410_v9  ;;  %v8165_v21 = vcombine.high %v417_v14, %v425_v15  ;;  %v8164_v29 = vcombine.low %v417_v14, %v425_v15  ;;  %v529_v9 = vld [vmem:[%s13312_s1 + $0x790] sm:$0xff]  ;;  %v538_v14 = vld [vmem:[%s13312_s1 + $0x7d8] sm:$0xff] }
  0x88   : > { %v8166_v30 = vcombine.low %v418_v16, %v426_v18 }
  0x89   : > { %3517 = vmatmul.mubr.bf16.vlgmr.msra.gmra.mrb[0].mxu0 %v10385_v23  ;;  %3599 = vmatmul.mubr.bf16.vlgmr.msra.gmra.mrb[0].mxu1 %v10385_v23 }
  0x8a   : > { %3608 = vmatpush1.bf16.msra.mxu0 %v8036_v25  ;;  %3690 = vmatpush1.bf16.msra.mxu1 %v8038_v26  ;;  %v441_v25 = vld [vmem:[%s13312_s1 + $0x4d0] sm:$0xff]  ;;  %v434_v26 = vld [vmem:[%s13312_s1 + $0x498] sm:$0xff] }
  0x8b   : > { %3609 = vmatprep.subr.bf16.mxu0 %v8053_v27  ;;  %3691 = vmatprep.subr.bf16.mxu1 %v8055_v31  ;;  %v8167_v27 = vcombine.high %v418_v16, %v426_v18  ;;  %v8181_v31 = vcombine.high %v433_v22, %v441_v25  ;;  %v8180_v37 = vcombine.low %v433_v22, %v441_v25  ;;  %v545_v18 = vld [vmem:[%s13312_s1 + $0x810] sm:$0xff]  ;;  %v554_v22 = vld [vmem:[%s13312_s1 + $0x858] sm:$0xff] }
  0x8c   : > { %3639 = vmatprep.mubr.bf16.mxu0 %v10052_v57  ;;  %3721 = vmatprep.mubr.bf16.mxu1 %v10052_v57  ;;  %v8182_v38 = vcombine.low %v434_v26, %v442_v28 }
  0x8e   : > { %3610 = vmatpush1.bf16.msra.mxu0 %v8052_v33  ;;  %3692 = vmatpush1.bf16.msra.mxu1 %v8054_v34  ;;  %v457_v33 = vld [vmem:[%s13312_s1 + $0x550] sm:$0xff]  ;;  %v450_v34 = vld [vmem:[%s13312_s1 + $0x518] sm:$0xff] }
  0x8f   : > { %3611 = vmatprep.subr.bf16.mxu0 %v8069_v35  ;;  %3693 = vmatprep.subr.bf16.mxu1 %v8071_v39  ;;  %v8183_v35 = vcombine.high %v434_v26, %v442_v28  ;;  %v8197_v39 = vcombine.high %v449_v32, %v457_v33  ;;  %v8196_v45 = vcombine.low %v449_v32, %v457_v33  ;;  %v561_v28 = vld [vmem:[%s13312_s1 + $0x890] sm:$0xff]  ;;  %v570_v32 = vld [vmem:[%s13312_s1 + $0x8d8] sm:$0xff] }
  0x90   : > { %v8198_v46 = vcombine.low %v450_v34, %v458_v36 }
  0x92   : > { %3612 = vmatpush1.bf16.msra.mxu0 %v8068_v41  ;;  %3694 = vmatpush1.bf16.msra.mxu1 %v8070_v42  ;;  %v473_v41 = vld [vmem:[%s13312_s1 + $0x5d0] sm:$0xff]  ;;  %v466_v42 = vld [vmem:[%s13312_s1 + $0x598] sm:$0xff] }
  0x93   : > { %3613 = vmatprep.subr.bf16.mxu0 %v8085_v43  ;;  %3695 = vmatprep.subr.bf16.mxu1 %v8087_v47  ;;  %v8199_v43 = vcombine.high %v450_v34, %v458_v36  ;;  %v8213_v47 = vcombine.high %v465_v40, %v473_v41  ;;  %v8212_v53 = vcombine.low %v465_v40, %v473_v41  ;;  %v577_v36 = vld [vmem:[%s13312_s1 + $0x910] sm:$0xff]  ;;  %v586_v40 = vld [vmem:[%s13312_s1 + $0x958] sm:$0xff] }
  0x94   : > { %v8214_v54 = vcombine.low %v466_v42, %v474_v44 }
  0x96   : > { %3614 = vmatpush1.bf16.msra.mxu0 %v8084_v49  ;;  %3696 = vmatpush1.bf16.msra.mxu1 %v8086_v50  ;;  %v489_v49 = vld [vmem:[%s13312_s1 + $0x650] sm:$0xff]  ;;  %v482_v50 = vld [vmem:[%s13312_s1 + $0x618] sm:$0xff] }
  0x97   : > { %3615 = vmatprep.subr.bf16.mxu0 %v8101_v51  ;;  %3697 = vmatprep.subr.bf16.mxu1 %v8103_v55  ;;  %v8215_v51 = vcombine.high %v466_v42, %v474_v44  ;;  %v8229_v55 = vcombine.high %v481_v48, %v489_v49  ;;  %v8228_v62 = vcombine.low %v481_v48, %v489_v49  ;;  %v593_v44 = vld [vmem:[%s13312_s1 + $0x990] sm:$0xff]  ;;  %v602_v48 = vld [vmem:[%s13312_s1 + $0x9d8] sm:$0xff] }
  0x98   : > { %v8230_v63 = vcombine.low %v482_v50, %v490_v52 }
  0x9a   : > { %3616 = vmatpush1.bf16.msra.mxu0 %v8100_v58  ;;  %3698 = vmatpush1.bf16.msra.mxu1 %v8102_v59  ;;  %v505_v58 = vld [vmem:[%s13312_s1 + $0x6d0] sm:$0xff]  ;;  %v498_v59 = vld [vmem:[%s13312_s1 + $0x698] sm:$0xff] }
  0x9b   : > { %3617 = vmatprep.subr.bf16.mxu0 %v8117_v60  ;;  %3699 = vmatprep.subr.bf16.mxu1 %v8119_v0  ;;  %v8231_v60 = vcombine.high %v482_v50, %v490_v52  ;;  %v8245_v0 = vcombine.high %v497_v56, %v505_v58  ;;  %v8244_v6 = vcombine.low %v497_v56, %v505_v58  ;;  %v609_v52 = vld [vmem:[%s13312_s1 + $0xa10] sm:$0xff]  ;;  %v618_v56 = vld [vmem:[%s13312_s1 + $0xa58] sm:$0xff] }
  0x9c   : > { %v8246_v7 = vcombine.low %v498_v59, %v506_v61 }
  0x9e   : > { %3618 = vmatpush1.bf16.msra.mxu0 %v8116_v2  ;;  %3700 = vmatpush1.bf16.msra.mxu1 %v8118_v3  ;;  %v521_v2 = vld [vmem:[%s13312_s1 + $0x750] sm:$0xff]  ;;  %v514_v3 = vld [vmem:[%s13312_s1 + $0x718] sm:$0xff] }
  0x9f   : > { %3619 = vmatprep.subr.bf16.mxu0 %v8133_v4  ;;  %3701 = vmatprep.subr.bf16.mxu1 %v8135_v8  ;;  %v8247_v4 = vcombine.high %v498_v59, %v506_v61  ;;  %v8261_v8 = vcombine.high %v513_v1, %v521_v2  ;;  %v8260_v15 = vcombine.low %v513_v1, %v521_v2  ;;  %v625_v61 = vld [vmem:[%s13312_s1 + $0xa90] sm:$0xff]  ;;  %v634_v1 = vld [vmem:[%s13312_s1 + $0xad8] sm:$0xff] }
  0xa0   : > { %v8262_v16 = vcombine.low %v514_v3, %v522_v5 }
  0xa2   : > { %3620 = vmatpush1.bf16.msra.mxu0 %v8132_v10  ;;  %3702 = vmatpush1.bf16.msra.mxu1 %v8134_v11  ;;  %v537_v10 = vld [vmem:[%s13312_s1 + $0x7d0] sm:$0xff]  ;;  %v530_v11 = vld [vmem:[%s13312_s1 + $0x798] sm:$0xff] }
  0xa3   : > { %3621 = vmatprep.subr.bf16.mxu0 %v8149_v13  ;;  %3703 = vmatprep.subr.bf16.mxu1 %v8151_v17  ;;  %v8263_v13 = vcombine.high %v514_v3, %v522_v5  ;;  %v8277_v17 = vcombine.high %v529_v9, %v537_v10  ;;  %v8276_v25 = vcombine.low %v529_v9, %v537_v10  ;;  %v641_v5 = vld [vmem:[%s13312_s1 + $0xb10] sm:$0xff]  ;;  %v650_v9 = vld [vmem:[%s13312_s1 + $0xb58] sm:$0xff] }
  0xa4   : > { %v8278_v26 = vcombine.low %v530_v11, %v538_v14 }
  0xa6   : > { %3622 = vmatpush1.bf16.msra.mxu0 %v8148_v19  ;;  %3704 = vmatpush1.bf16.msra.mxu1 %v8150_v20  ;;  %v553_v19 = vld [vmem:[%s13312_s1 + $0x850] sm:$0xff]  ;;  %v546_v20 = vld [vmem:[%s13312_s1 + $0x818] sm:$0xff] }
  0xa7   : > { %3623 = vmatprep.subr.bf16.mxu0 %v8165_v21  ;;  %3705 = vmatprep.subr.bf16.mxu1 %v8167_v27  ;;  %v8279_v21 = vcombine.high %v530_v11, %v538_v14  ;;  %v8293_v27 = vcombine.high %v545_v18, %v553_v19  ;;  %v8292_v33 = vcombine.low %v545_v18, %v553_v19  ;;  %v657_v14 = vld [vmem:[%s13312_s1 + $0xb90] sm:$0xff]  ;;  %v666_v18 = vld [vmem:[%s13312_s1 + $0xbd8] sm:$0xff] }
  0xa8   : > { %v8294_v34 = vcombine.low %v546_v20, %v554_v22 }
  0xaa   : > { %3624 = vmatpush1.bf16.msra.mxu0 %v8164_v29  ;;  %3706 = vmatpush1.bf16.msra.mxu1 %v8166_v30  ;;  %v569_v29 = vld [vmem:[%s13312_s1 + $0x8d0] sm:$0xff]  ;;  %v562_v30 = vld [vmem:[%s13312_s1 + $0x898] sm:$0xff] }
  0xab   : > { %3625 = vmatprep.subr.bf16.mxu0 %v8181_v31  ;;  %3707 = vmatprep.subr.bf16.mxu1 %v8183_v35  ;;  %v8295_v31 = vcombine.high %v546_v20, %v554_v22  ;;  %v8309_v35 = vcombine.high %v561_v28, %v569_v29  ;;  %v8308_v41 = vcombine.low %v561_v28, %v569_v29  ;;  %v673_v22 = vld [vmem:[%s13312_s1 + $0xc10] sm:$0xff]  ;;  %v682_v28 = vld [vmem:[%s13312_s1 + $0xc58] sm:$0xff] }
  0xac   : > { %v8310_v42 = vcombine.low %v562_v30, %v570_v32 }
  0xae   : > { %3626 = vmatpush1.bf16.msra.mxu0 %v8180_v37  ;;  %3708 = vmatpush1.bf16.msra.mxu1 %v8182_v38  ;;  %v585_v37 = vld [vmem:[%s13312_s1 + $0x950] sm:$0xff]  ;;  %v578_v38 = vld [vmem:[%s13312_s1 + $0x918] sm:$0xff] }
  0xaf   : > { %3627 = vmatprep.subr.bf16.mxu0 %v8197_v39  ;;  %3709 = vmatprep.subr.bf16.mxu1 %v8199_v43  ;;  %v8311_v39 = vcombine.high %v562_v30, %v570_v32  ;;  %v8325_v43 = vcombine.high %v577_v36, %v585_v37  ;;  %v8324_v49 = vcombine.low %v577_v36, %v585_v37  ;;  %v689_v32 = vld [vmem:[%s13312_s1 + $0xc90] sm:$0xff]  ;;  %v698_v36 = vld [vmem:[%s13312_s1 + $0xcd8] sm:$0xff] }
  0xb0   : > { %v8326_v50 = vcombine.low %v578_v38, %v586_v40 }
  0xb2   : > { %3628 = vmatpush1.bf16.msra.mxu0 %v8196_v45  ;;  %3710 = vmatpush1.bf16.msra.mxu1 %v8198_v46  ;;  %v601_v45 = vld [vmem:[%s13312_s1 + $0x9d0] sm:$0xff]  ;;  %v594_v46 = vld [vmem:[%s13312_s1 + $0x998] sm:$0xff] }
  0xb3   : > { %3629 = vmatprep.subr.bf16.mxu0 %v8213_v47  ;;  %3711 = vmatprep.subr.bf16.mxu1 %v8215_v51  ;;  %v8327_v47 = vcombine.high %v578_v38, %v586_v40  ;;  %v8341_v51 = vcombine.high %v593_v44, %v601_v45  ;;  %v8340_v58 = vcombine.low %v593_v44, %v601_v45  ;;  %v705_v40 = vld [vmem:[%s13312_s1 + $0xd10] sm:$0xff]  ;;  %v714_v44 = vld [vmem:[%s13312_s1 + $0xd58] sm:$0xff] }
  0xb4   : > { %v8342_v59 = vcombine.low %v594_v46, %v602_v48 }
  0xb6   : > { %3630 = vmatpush1.bf16.msra.mxu0 %v8212_v53  ;;  %3712 = vmatpush1.bf16.msra.mxu1 %v8214_v54  ;;  %v617_v53 = vld [vmem:[%s13312_s1 + $0xa50] sm:$0xff]  ;;  %v610_v54 = vld [vmem:[%s13312_s1 + $0xa18] sm:$0xff] }
  0xb7   : > { %3631 = vmatprep.subr.bf16.mxu0 %v8229_v55  ;;  %3713 = vmatprep.subr.bf16.mxu1 %v8231_v60  ;;  %v8343_v55 = vcombine.high %v594_v46, %v602_v48  ;;  %v8357_v60 = vcombine.high %v609_v52, %v617_v53  ;;  %v8356_v2 = vcombine.low %v609_v52, %v617_v53  ;;  %v721_v48 = vld [vmem:[%s13312_s1 + $0xd90] sm:$0xff]  ;;  %v730_v52 = vld [vmem:[%s13312_s1 + $0xdd8] sm:$0xff] }
  0xb8   : > { %v8358_v3 = vcombine.low %v610_v54, %v618_v56 }
  0xba   : > { %3632 = vmatpush1.bf16.msra.mxu0 %v8228_v62  ;;  %3714 = vmatpush1.bf16.msra.mxu1 %v8230_v63  ;;  %v633_v62 = vld [vmem:[%s13312_s1 + $0xad0] sm:$0xff]  ;;  %v626_v63 = vld [vmem:[%s13312_s1 + $0xa98] sm:$0xff] }
  0xbb   : > { %3633 = vmatprep.subr.bf16.mxu0 %v8245_v0  ;;  %3715 = vmatprep.subr.bf16.mxu1 %v8247_v4  ;;  %v8359_v0 = vcombine.high %v610_v54, %v618_v56  ;;  %v8373_v4 = vcombine.high %v625_v61, %v633_v62  ;;  %v8372_v10 = vcombine.low %v625_v61, %v633_v62  ;;  %v737_v56 = vld [vmem:[%s13312_s1 + $0xe10] sm:$0xff]  ;;  %v746_v61 = vld [vmem:[%s13312_s1 + $0xe58] sm:$0xff] }
  0xbc   : > { %v8374_v11 = vcombine.low %v626_v63, %v634_v1 }
  0xbe   : > { %3634 = vmatpush1.bf16.msra.mxu0 %v8244_v6  ;;  %3716 = vmatpush1.bf16.msra.mxu1 %v8246_v7  ;;  %v649_v6 = vld [vmem:[%s13312_s1 + $0xb50] sm:$0xff]  ;;  %v642_v7 = vld [vmem:[%s13312_s1 + $0xb18] sm:$0xff] }
  0xbf   : > { %3635 = vmatprep.subr.bf16.mxu0 %v8261_v8  ;;  %3717 = vmatprep.subr.bf16.mxu1 %v8263_v13  ;;  %v8375_v8 = vcombine.high %v626_v63, %v634_v1  ;;  %v8389_v13 = vcombine.high %v641_v5, %v649_v6  ;;  %v8388_v19 = vcombine.low %v641_v5, %v649_v6  ;;  %v753_v1 = vld [vmem:[%s13312_s1 + $0xe90] sm:$0xff]  ;;  %v762_v5 = vld [vmem:[%s13312_s1 + $0xed8] sm:$0xff] }
  0xc0   : > { %v8390_v20 = vcombine.low %v642_v7, %v650_v9 }
  0xc2   : > { %3636 = vmatpush1.bf16.msra.mxu0 %v8260_v15  ;;  %3718 = vmatpush1.bf16.msra.mxu1 %v8262_v16  ;;  %v665_v15 = vld [vmem:[%s13312_s1 + $0xbd0] sm:$0xff]  ;;  %v8391_v16 = vcombine.high %v642_v7, %v650_v9 }
  0xc3   : > { %3637 = vmatprep.subr.bf16.mxu0 %v8277_v17  ;;  %3719 = vmatprep.subr.bf16.mxu1 %v8279_v21  ;;  %v658_v17 = vld [vmem:[%s13312_s1 + $0xb98] sm:$0xff]  ;;  %v8405_v21 = vcombine.high %v657_v14, %v665_v15  ;;  %v8404_v29 = vcombine.low %v657_v14, %v665_v15  ;;  %v769_v9 = vld [vmem:[%s13312_s1 + $0xf10] sm:$0xff] }
  0xc4   : > { %v8406_v30 = vcombine.low %v658_v17, %v666_v18  ;;  %v778_v14 = vld [vmem:[%s13312_s1 + $0xf58] sm:$0xff] }
  0xc6   : > { %3638 = vmatpush1.bf16.msra.mxu0 %v8276_v25  ;;  %3720 = vmatpush1.bf16.msra.mxu1 %v8278_v26  ;;  %v8407_v25 = vcombine.high %v658_v17, %v666_v18  ;;  %v681_v26 = vld [vmem:[%s13312_s1 + $0xc50] sm:$0xff] }
  0xc7   : > { %3648 = vmatprep.subr.bf16.mxu0 %v8293_v27  ;;  %3730 = vmatprep.subr.bf16.mxu1 %v8295_v31  ;;  %v674_v27 = vld [vmem:[%s13312_s1 + $0xc18] sm:$0xff]  ;;  %v8421_v31 = vcombine.high %v673_v22, %v681_v26  ;;  %v8420_v37 = vcombine.low %v673_v22, %v681_v26  ;;  %v785_v18 = vld [vmem:[%s13312_s1 + $0xf90] sm:$0xff] }
  0xc8   : > { %v8422_v38 = vcombine.low %v674_v27, %v682_v28  ;;  %v794_v22 = vld [vmem:[%s13312_s1 + $0xfd8] sm:$0xff] }
  0xc9   : > { %3640 = vmatmul.mubr.bf16.vlgmr.msra.gmra.mrb[4].mxu0 %v10177_v12  ;;  %3722 = vmatmul.mubr.bf16.vlgmr.msra.gmra.mrb[4].mxu1 %v10177_v12 }
  0xca   : > { %3649 = vmatpush1.bf16.msra.mxu0 %v8292_v33  ;;  %3731 = vmatpush1.bf16.msra.mxu1 %v8294_v34  ;;  %v697_v33 = vld [vmem:[%s13312_s1 + $0xcd0] sm:$0xff]  ;;  %v690_v34 = vld [vmem:[%s13312_s1 + $0xc98] sm:$0xff] }
  0xcb   : > { %3650 = vmatprep.subr.bf16.mxu0 %v8309_v35  ;;  %3732 = vmatprep.subr.bf16.mxu1 %v8311_v39  ;;  %v8423_v35 = vcombine.high %v674_v27, %v682_v28  ;;  %v8437_v39 = vcombine.high %v689_v32, %v697_v33  ;;  %v8436_v45 = vcombine.low %v689_v32, %v697_v33  ;;  %v291_v28 = vld [vmem:[%s13312_s1 + $0x20] sm:$0xff]  ;;  %v300_v32 = vld [vmem:[%s13312_s1 + $0x68] sm:$0xff] }
  0xcc   : > { %3680 = vmatprep.mubr.bf16.mxu0 %v10198_v24  ;;  %3762 = vmatprep.mubr.bf16.mxu1 %v10198_v24  ;;  %v8438_v46 = vcombine.low %v690_v34, %v698_v36 }
  0xce   : > { %3651 = vmatpush1.bf16.msra.mxu0 %v8308_v41  ;;  %3733 = vmatpush1.bf16.msra.mxu1 %v8310_v42  ;;  %v713_v41 = vld [vmem:[%s13312_s1 + $0xd50] sm:$0xff]  ;;  %v706_v42 = vld [vmem:[%s13312_s1 + $0xd18] sm:$0xff] }
  0xcf   : > { %3652 = vmatprep.subr.bf16.mxu0 %v8325_v43  ;;  %3734 = vmatprep.subr.bf16.mxu1 %v8327_v47  ;;  %v8439_v43 = vcombine.high %v690_v34, %v698_v36  ;;  %v8453_v47 = vcombine.high %v705_v40, %v713_v41  ;;  %v8452_v53 = vcombine.low %v705_v40, %v713_v41  ;;  %v307_v36 = vld [vmem:[%s13312_s1 + $0xa0] sm:$0xff]  ;;  %v316_v40 = vld [vmem:[%s13312_s1 + $0xe8] sm:$0xff] }
  0xd0   : > { %v8454_v54 = vcombine.low %v706_v42, %v714_v44 }
  0xd2   : > { %3653 = vmatpush1.bf16.msra.mxu0 %v8324_v49  ;;  %3735 = vmatpush1.bf16.msra.mxu1 %v8326_v50  ;;  %v729_v49 = vld [vmem:[%s13312_s1 + $0xdd0] sm:$0xff]  ;;  %v722_v50 = vld [vmem:[%s13312_s1 + $0xd98] sm:$0xff] }
  0xd3   : > { %3654 = vmatprep.subr.bf16.mxu0 %v8341_v51  ;;  %3736 = vmatprep.subr.bf16.mxu1 %v8343_v55  ;;  %v8455_v51 = vcombine.high %v706_v42, %v714_v44  ;;  %v8469_v55 = vcombine.high %v721_v48, %v729_v49  ;;  %v8468_v62 = vcombine.low %v721_v48, %v729_v49  ;;  %v323_v44 = vld [vmem:[%s13312_s1 + $0x120] sm:$0xff]  ;;  %v332_v48 = vld [vmem:[%s13312_s1 + $0x168] sm:$0xff] }
  0xd4   : > { %v8470_v63 = vcombine.low %v722_v50, %v730_v52 }
  0xd6   : > { %3655 = vmatpush1.bf16.msra.mxu0 %v8340_v58  ;;  %3737 = vmatpush1.bf16.msra.mxu1 %v8342_v59  ;;  %v745_v58 = vld [vmem:[%s13312_s1 + $0xe50] sm:$0xff]  ;;  %v738_v59 = vld [vmem:[%s13312_s1 + $0xe18] sm:$0xff] }
  0xd7   : > { %3656 = vmatprep.subr.bf16.mxu0 %v8357_v60  ;;  %3738 = vmatprep.subr.bf16.mxu1 %v8359_v0  ;;  %v8471_v60 = vcombine.high %v722_v50, %v730_v52  ;;  %v8485_v0 = vcombine.high %v737_v56, %v745_v58  ;;  %v8484_v6 = vcombine.low %v737_v56, %v745_v58  ;;  %v339_v52 = vld [vmem:[%s13312_s1 + $0x1a0] sm:$0xff]  ;;  %v348_v56 = vld [vmem:[%s13312_s1 + $0x1e8] sm:$0xff] }
  0xd8   : > { %v8486_v7 = vcombine.low %v738_v59, %v746_v61 }
  0xda   : > { %3657 = vmatpush1.bf16.msra.mxu0 %v8356_v2  ;;  %3739 = vmatpush1.bf16.msra.mxu1 %v8358_v3  ;;  %v761_v2 = vld [vmem:[%s13312_s1 + $0xed0] sm:$0xff]  ;;  %v754_v3 = vld [vmem:[%s13312_s1 + $0xe98] sm:$0xff] }
  0xdb   : > { %3658 = vmatprep.subr.bf16.mxu0 %v8373_v4  ;;  %3740 = vmatprep.subr.bf16.mxu1 %v8375_v8  ;;  %v8487_v4 = vcombine.high %v738_v59, %v746_v61  ;;  %v8501_v8 = vcombine.high %v753_v1, %v761_v2  ;;  %v8500_v15 = vcombine.low %v753_v1, %v761_v2  ;;  %v355_v61 = vld [vmem:[%s13312_s1 + $0x220] sm:$0xff]  ;;  %v364_v1 = vld [vmem:[%s13312_s1 + $0x268] sm:$0xff] }
  0xde   : > { %3659 = vmatpush1.bf16.msra.mxu0 %v8372_v10  ;;  %3741 = vmatpush1.bf16.msra.mxu1 %v8374_v11  ;;  %v777_v10 = vld [vmem:[%s13312_s1 + $0xf50] sm:$0xff]  ;;  %v770_v11 = vld [vmem:[%s13312_s1 + $0xf18] sm:$0xff] }
  0xdf   : > { %3660 = vmatprep.subr.bf16.mxu0 %v8389_v13  ;;  %3742 = vmatprep.subr.bf16.mxu1 %v8391_v16  ;;  %v8503_v13 = vcombine.high %v754_v3, %v762_v5  ;;  %v8502_v16 = vcombine.low %v754_v3, %v762_v5  ;;  %v8517_v17 = vcombine.high %v769_v9, %v777_v10  ;;  %v371_v5 = vld [vmem:[%s13312_s1 + $0x2a0] sm:$0xff] }
  0xe0   : > { %v8518_v26 = vcombine.low %v770_v11, %v778_v14 }
  0xe2   : > { %3661 = vmatpush1.bf16.msra.mxu0 %v8388_v19  ;;  %3743 = vmatpush1.bf16.msra.mxu1 %v8390_v20  ;;  %v793_v19 = vld [vmem:[%s13312_s1 + $0xfd0] sm:$0xff]  ;;  %v786_v20 = vld [vmem:[%s13312_s1 + $0xf98] sm:$0xff] }
  0xe3   : > { %3662 = vmatprep.subr.bf16.mxu0 %v8405_v21  ;;  %3744 = vmatprep.subr.bf16.mxu1 %v8407_v25  ;;  %v8519_v21 = vcombine.high %v770_v11, %v778_v14  ;;  %v8516_v25 = vcombine.low %v769_v9, %v777_v10  ;;  %v8533_v27 = vcombine.high %v785_v18, %v793_v19  ;;  %v380_v9 = vld [vmem:[%s13312_s1 + $0x2e8] sm:$0xff]  ;;  %v387_v14 = vld [vmem:[%s13312_s1 + $0x320] sm:$0xff] }
  0xe4   : > { %v8532_v33 = vcombine.low %v785_v18, %v793_v19  ;;  %v8534_v34 = vcombine.low %v786_v20, %v794_v22  ;;  %v396_v18 = vld [vmem:[%s13312_s1 + $0x368] sm:$0xff] }
  0xe6   : > { %3663 = vmatpush1.bf16.msra.mxu0 %v8404_v29  ;;  %3745 = vmatpush1.bf16.msra.mxu1 %v8406_v30  ;;  %v299_v29 = vld [vmem:[%s13312_s1 + $0x60] sm:$0xff]  ;;  %v292_v30 = vld [vmem:[%s13312_s1 + $0x28] sm:$0xff] }
  0xe7   : > { %3664 = vmatprep.subr.bf16.mxu0 %v8421_v31  ;;  %3746 = vmatprep.subr.bf16.mxu1 %v8423_v35  ;;  %v8535_v31 = vcombine.high %v786_v20, %v794_v22  ;;  %v8041_v35 = vcombine.high %v291_v28, %v299_v29  ;;  %v8040_v41 = vcombine.low %v291_v28, %v299_v29  ;;  %v403_v22 = vld [vmem:[%s13312_s1 + $0x3a0] sm:$0xff]  ;;  %v412_v28 = vld [vmem:[%s13312_s1 + $0x3e8] sm:$0xff] }
  0xe8   : > { %v8042_v42 = vcombine.low %v292_v30, %v300_v32 }
  0xea   : > { %3665 = vmatpush1.bf16.msra.mxu0 %v8420_v37  ;;  %3747 = vmatpush1.bf16.msra.mxu1 %v8422_v38  ;;  %v315_v37 = vld [vmem:[%s13312_s1 + $0xe0] sm:$0xff]  ;;  %v308_v38 = vld [vmem:[%s13312_s1 + $0xa8] sm:$0xff] }
  0xeb   : > { %3666 = vmatprep.subr.bf16.mxu0 %v8437_v39  ;;  %3748 = vmatprep.subr.bf16.mxu1 %v8439_v43  ;;  %v8043_v39 = vcombine.high %v292_v30, %v300_v32  ;;  %v8057_v43 = vcombine.high %v307_v36, %v315_v37  ;;  %v8056_v49 = vcombine.low %v307_v36, %v315_v37  ;;  %v419_v32 = vld [vmem:[%s13312_s1 + $0x420] sm:$0xff]  ;;  %v428_v36 = vld [vmem:[%s13312_s1 + $0x468] sm:$0xff] }
  0xec   : > { %v8058_v50 = vcombine.low %v308_v38, %v316_v40 }
  0xee   : > { %3667 = vmatpush1.bf16.msra.mxu0 %v8436_v45  ;;  %3749 = vmatpush1.bf16.msra.mxu1 %v8438_v46  ;;  %v331_v45 = vld [vmem:[%s13312_s1 + $0x160] sm:$0xff]  ;;  %v324_v46 = vld [vmem:[%s13312_s1 + $0x128] sm:$0xff] }
  0xef   : > { %3668 = vmatprep.subr.bf16.mxu0 %v8453_v47  ;;  %3750 = vmatprep.subr.bf16.mxu1 %v8455_v51  ;;  %v8059_v47 = vcombine.high %v308_v38, %v316_v40  ;;  %v8073_v51 = vcombine.high %v323_v44, %v331_v45  ;;  %v8072_v58 = vcombine.low %v323_v44, %v331_v45  ;;  %v435_v40 = vld [vmem:[%s13312_s1 + $0x4a0] sm:$0xff]  ;;  %v444_v44 = vld [vmem:[%s13312_s1 + $0x4e8] sm:$0xff] }
  0xf0   : > { %v8074_v59 = vcombine.low %v324_v46, %v332_v48 }
  0xf2   : > { %3669 = vmatpush1.bf16.msra.mxu0 %v8452_v53  ;;  %3751 = vmatpush1.bf16.msra.mxu1 %v8454_v54  ;;  %v347_v53 = vld [vmem:[%s13312_s1 + $0x1e0] sm:$0xff]  ;;  %v340_v54 = vld [vmem:[%s13312_s1 + $0x1a8] sm:$0xff] }
  0xf3   : > { %3670 = vmatprep.subr.bf16.mxu0 %v8469_v55  ;;  %3752 = vmatprep.subr.bf16.mxu1 %v8471_v60  ;;  %v8075_v55 = vcombine.high %v324_v46, %v332_v48  ;;  %v8089_v60 = vcombine.high %v339_v52, %v347_v53  ;;  %v8088_v2 = vcombine.low %v339_v52, %v347_v53  ;;  %v451_v48 = vld [vmem:[%s13312_s1 + $0x520] sm:$0xff]  ;;  %v460_v52 = vld [vmem:[%s13312_s1 + $0x568] sm:$0xff] }
  0xf4   : > { %v8090_v3 = vcombine.low %v340_v54, %v348_v56 }
  0xf6   : > { %3671 = vmatpush1.bf16.msra.mxu0 %v8468_v62  ;;  %3753 = vmatpush1.bf16.msra.mxu1 %v8470_v63  ;;  %v363_v62 = vld [vmem:[%s13312_s1 + $0x260] sm:$0xff]  ;;  %v356_v63 = vld [vmem:[%s13312_s1 + $0x228] sm:$0xff] }
  0xf7   : > { %3672 = vmatprep.subr.bf16.mxu0 %v8485_v0  ;;  %3754 = vmatprep.subr.bf16.mxu1 %v8487_v4  ;;  %v8091_v0 = vcombine.high %v340_v54, %v348_v56  ;;  %v8105_v4 = vcombine.high %v355_v61, %v363_v62  ;;  %v8104_v10 = vcombine.low %v355_v61, %v363_v62  ;;  %v467_v56 = vld [vmem:[%s13312_s1 + $0x5a0] sm:$0xff]  ;;  %v476_v61 = vld [vmem:[%s13312_s1 + $0x5e8] sm:$0xff] }
  0xf8   : > { %v8106_v11 = vcombine.low %v356_v63, %v364_v1 }
  0xfa   : > { %3673 = vmatpush1.bf16.msra.mxu0 %v8484_v6  ;;  %3755 = vmatpush1.bf16.msra.mxu1 %v8486_v7  ;;  %v379_v6 = vld [vmem:[%s13312_s1 + $0x2e0] sm:$0xff]  ;;  %v372_v7 = vld [vmem:[%s13312_s1 + $0x2a8] sm:$0xff] }
  0xfb   : > { %3674 = vmatprep.subr.bf16.mxu0 %v8501_v8  ;;  %3756 = vmatprep.subr.bf16.mxu1 %v8503_v13  ;;  %v8107_v8 = vcombine.high %v356_v63, %v364_v1  ;;  %v8121_v13 = vcombine.high %v371_v5, %v379_v6  ;;  %v8120_v19 = vcombine.low %v371_v5, %v379_v6  ;;  %v483_v1 = vld [vmem:[%s13312_s1 + $0x620] sm:$0xff]  ;;  %v492_v5 = vld [vmem:[%s13312_s1 + $0x668] sm:$0xff] }
  0xfc   : > { %v8122_v20 = vcombine.low %v372_v7, %v380_v9 }
  0xfe   : > { %3675 = vmatpush1.bf16.msra.mxu0 %v8500_v15  ;;  %3757 = vmatpush1.bf16.msra.mxu1 %v8502_v16  ;;  %v395_v15 = vld [vmem:[%s13312_s1 + $0x360] sm:$0xff]  ;;  %v388_v16 = vld [vmem:[%s13312_s1 + $0x328] sm:$0xff] }
  0xff   : > { %3676 = vmatprep.subr.bf16.mxu0 %v8517_v17  ;;  %3758 = vmatprep.subr.bf16.mxu1 %v8519_v21  ;;  %v8123_v17 = vcombine.high %v372_v7, %v380_v9  ;;  %v8137_v21 = vcombine.high %v387_v14, %v395_v15  ;;  %v8136_v29 = vcombine.low %v387_v14, %v395_v15  ;;  %v499_v9 = vld [vmem:[%s13312_s1 + $0x6a0] sm:$0xff]  ;;  %v508_v14 = vld [vmem:[%s13312_s1 + $0x6e8] sm:$0xff] }
 0x100   : > { %v8138_v30 = vcombine.low %v388_v16, %v396_v18 }
 0x102   : > { %3677 = vmatpush1.bf16.msra.mxu0 %v8516_v25  ;;  %3759 = vmatpush1.bf16.msra.mxu1 %v8518_v26  ;;  %v411_v25 = vld [vmem:[%s13312_s1 + $0x3e0] sm:$0xff]  ;;  %v404_v26 = vld [vmem:[%s13312_s1 + $0x3a8] sm:$0xff] }
 0x103   : > { %3678 = vmatprep.subr.bf16.mxu0 %v8533_v27  ;;  %3760 = vmatprep.subr.bf16.mxu1 %v8535_v31  ;;  %v8139_v27 = vcombine.high %v388_v16, %v396_v18  ;;  %v8153_v31 = vcombine.high %v403_v22, %v411_v25  ;;  %v8152_v37 = vcombine.low %v403_v22, %v411_v25  ;;  %v515_v18 = vld [vmem:[%s13312_s1 + $0x720] sm:$0xff]  ;;  %v524_v22 = vld [vmem:[%s13312_s1 + $0x768] sm:$0xff] }
 0x104   : > { %v8154_v38 = vcombine.low %v404_v26, %v412_v28 }
 0x106   : > { %3679 = vmatpush1.bf16.msra.mxu0 %v8532_v33  ;;  %3761 = vmatpush1.bf16.msra.mxu1 %v8534_v34  ;;  %v427_v33 = vld [vmem:[%s13312_s1 + $0x460] sm:$0xff]  ;;  %v420_v34 = vld [vmem:[%s13312_s1 + $0x428] sm:$0xff] }
 0x107   : > { %3771 = vmatprep.subr.bf16.mxu0 %v8041_v35  ;;  %3853 = vmatprep.subr.bf16.mxu1 %v8043_v39  ;;  %v8155_v35 = vcombine.high %v404_v26, %v412_v28  ;;  %v8169_v39 = vcombine.high %v419_v32, %v427_v33  ;;  %v8168_v45 = vcombine.low %v419_v32, %v427_v33  ;;  %v531_v28 = vld [vmem:[%s13312_s1 + $0x7a0] sm:$0xff]  ;;  %v540_v32 = vld [vmem:[%s13312_s1 + $0x7e8] sm:$0xff] }
 0x108   : > { %v8170_v46 = vcombine.low %v420_v34, %v428_v36 }
 0x109   : > { %3681 = vmatmul.mubr.bf16.vlgmr.msra.gmra.mrb[4].mxu0 %v10385_v23  ;;  %3763 = vmatmul.mubr.bf16.vlgmr.msra.gmra.mrb[4].mxu1 %v10385_v23 }
 0x10a   : > { %3772 = vmatpush1.bf16.msra.mxu0 %v8040_v41  ;;  %3854 = vmatpush1.bf16.msra.mxu1 %v8042_v42  ;;  %v443_v41 = vld [vmem:[%s13312_s1 + $0x4e0] sm:$0xff]  ;;  %v436_v42 = vld [vmem:[%s13312_s1 + $0x4a8] sm:$0xff] }
 0x10b   : > { %3773 = vmatprep.subr.bf16.mxu0 %v8057_v43  ;;  %3855 = vmatprep.subr.bf16.mxu1 %v8059_v47  ;;  %v8171_v43 = vcombine.high %v420_v34, %v428_v36  ;;  %v8185_v47 = vcombine.high %v435_v40, %v443_v41  ;;  %v8184_v53 = vcombine.low %v435_v40, %v443_v41  ;;  %v547_v36 = vld [vmem:[%s13312_s1 + $0x820] sm:$0xff]  ;;  %v556_v40 = vld [vmem:[%s13312_s1 + $0x868] sm:$0xff] }
 0x10c   : > { %3803 = vmatprep.mubr.bf16.mxu0 %v10052_v57  ;;  %3885 = vmatprep.mubr.bf16.mxu1 %v10052_v57  ;;  %v8186_v54 = vcombine.low %v436_v42, %v444_v44 }
 0x10e   : > { %3774 = vmatpush1.bf16.msra.mxu0 %v8056_v49  ;;  %3856 = vmatpush1.bf16.msra.mxu1 %v8058_v50  ;;  %v459_v49 = vld [vmem:[%s13312_s1 + $0x560] sm:$0xff]  ;;  %v452_v50 = vld [vmem:[%s13312_s1 + $0x528] sm:$0xff] }
 0x10f   : > { %3775 = vmatprep.subr.bf16.mxu0 %v8073_v51  ;;  %3857 = vmatprep.subr.bf16.mxu1 %v8075_v55  ;;  %v8187_v51 = vcombine.high %v436_v42, %v444_v44  ;;  %v8201_v55 = vcombine.high %v451_v48, %v459_v49  ;;  %v8200_v62 = vcombine.low %v451_v48, %v459_v49  ;;  %v563_v44 = vld [vmem:[%s13312_s1 + $0x8a0] sm:$0xff]  ;;  %v572_v48 = vld [vmem:[%s13312_s1 + $0x8e8] sm:$0xff] }
 0x110   : > { %v8202_v63 = vcombine.low %v452_v50, %v460_v52 }
 0x112   : > { %3776 = vmatpush1.bf16.msra.mxu0 %v8072_v58  ;;  %3858 = vmatpush1.bf16.msra.mxu1 %v8074_v59  ;;  %v475_v58 = vld [vmem:[%s13312_s1 + $0x5e0] sm:$0xff]  ;;  %v468_v59 = vld [vmem:[%s13312_s1 + $0x5a8] sm:$0xff] }
 0x113   : > { %3777 = vmatprep.subr.bf16.mxu0 %v8089_v60  ;;  %3859 = vmatprep.subr.bf16.mxu1 %v8091_v0  ;;  %v8203_v60 = vcombine.high %v452_v50, %v460_v52  ;;  %v8217_v0 = vcombine.high %v467_v56, %v475_v58  ;;  %v8216_v6 = vcombine.low %v467_v56, %v475_v58  ;;  %v579_v52 = vld [vmem:[%s13312_s1 + $0x920] sm:$0xff]  ;;  %v588_v56 = vld [vmem:[%s13312_s1 + $0x968] sm:$0xff] }
 0x114   : > { %v8218_v7 = vcombine.low %v468_v59, %v476_v61 }
 0x116   : > { %3778 = vmatpush1.bf16.msra.mxu0 %v8088_v2  ;;  %3860 = vmatpush1.bf16.msra.mxu1 %v8090_v3  ;;  %v491_v2 = vld [vmem:[%s13312_s1 + $0x660] sm:$0xff]  ;;  %v484_v3 = vld [vmem:[%s13312_s1 + $0x628] sm:$0xff] }
 0x117   : > { %3779 = vmatprep.subr.bf16.mxu0 %v8105_v4  ;;  %3861 = vmatprep.subr.bf16.mxu1 %v8107_v8  ;;  %v8219_v4 = vcombine.high %v468_v59, %v476_v61  ;;  %v8233_v8 = vcombine.high %v483_v1, %v491_v2  ;;  %v8232_v15 = vcombine.low %v483_v1, %v491_v2  ;;  %v604_v1 = vld [vmem:[%s13312_s1 + $0x9e8] sm:$0xff] }
 0x118   : > { %v8234_v16 = vcombine.low %v484_v3, %v492_v5 }
 0x11a   : > { %3780 = vmatpush1.bf16.msra.mxu0 %v8104_v10  ;;  %3862 = vmatpush1.bf16.msra.mxu1 %v8106_v11  ;;  %v507_v10 = vld [vmem:[%s13312_s1 + $0x6e0] sm:$0xff]  ;;  %v500_v11 = vld [vmem:[%s13312_s1 + $0x6a8] sm:$0xff] }
 0x11b   : > { %3781 = vmatprep.subr.bf16.mxu0 %v8121_v13  ;;  %3863 = vmatprep.subr.bf16.mxu1 %v8123_v17  ;;  %v8235_v13 = vcombine.high %v484_v3, %v492_v5  ;;  %v8249_v17 = vcombine.high %v499_v9, %v507_v10  ;;  %v8248_v25 = vcombine.low %v499_v9, %v507_v10  ;;  %v620_v9 = vld [vmem:[%s13312_s1 + $0xa68] sm:$0xff] }
 0x11c   : > { %v8250_v26 = vcombine.low %v500_v11, %v508_v14 }
 0x11e   : > { %3782 = vmatpush1.bf16.msra.mxu0 %v8120_v19  ;;  %3864 = vmatpush1.bf16.msra.mxu1 %v8122_v20  ;;  %v523_v19 = vld [vmem:[%s13312_s1 + $0x760] sm:$0xff]  ;;  %v516_v20 = vld [vmem:[%s13312_s1 + $0x728] sm:$0xff] }
 0x11f   : > { %3783 = vmatprep.subr.bf16.mxu0 %v8137_v21  ;;  %3865 = vmatprep.subr.bf16.mxu1 %v8139_v27  ;;  %v8251_v21 = vcombine.high %v500_v11, %v508_v14  ;;  %v8265_v27 = vcombine.high %v515_v18, %v523_v19  ;;  %v8264_v33 = vcombine.low %v515_v18, %v523_v19  ;;  %v636_v18 = vld [vmem:[%s13312_s1 + $0xae8] sm:$0xff] }
 0x120   : > { %v8266_v34 = vcombine.low %v516_v20, %v524_v22 }
 0x122   : > { %3784 = vmatpush1.bf16.msra.mxu0 %v8136_v29  ;;  %3866 = vmatpush1.bf16.msra.mxu1 %v8138_v30  ;;  %v539_v29 = vld [vmem:[%s13312_s1 + $0x7e0] sm:$0xff]  ;;  %v532_v30 = vld [vmem:[%s13312_s1 + $0x7a8] sm:$0xff] }
 0x123   : > { %3785 = vmatprep.subr.bf16.mxu0 %v8153_v31  ;;  %3867 = vmatprep.subr.bf16.mxu1 %v8155_v35  ;;  %v8267_v31 = vcombine.high %v516_v20, %v524_v22  ;;  %v8281_v35 = vcombine.high %v531_v28, %v539_v29  ;;  %v8280_v41 = vcombine.low %v531_v28, %v539_v29  ;;  %v652_v28 = vld [vmem:[%s13312_s1 + $0xb68] sm:$0xff] }
 0x124   : > { %v8282_v42 = vcombine.low %v532_v30, %v540_v32 }
 0x126   : > { %3786 = vmatpush1.bf16.msra.mxu0 %v8152_v37  ;;  %3868 = vmatpush1.bf16.msra.mxu1 %v8154_v38  ;;  %v555_v37 = vld [vmem:[%s13312_s1 + $0x860] sm:$0xff]  ;;  %v548_v38 = vld [vmem:[%s13312_s1 + $0x828] sm:$0xff] }
 0x127   : > { %3787 = vmatprep.subr.bf16.mxu0 %v8169_v39  ;;  %3869 = vmatprep.subr.bf16.mxu1 %v8171_v43  ;;  %v8283_v39 = vcombine.high %v532_v30, %v540_v32  ;;  %v8297_v43 = vcombine.high %v547_v36, %v555_v37  ;;  %v8296_v49 = vcombine.low %v547_v36, %v555_v37 }
 0x128   : > { %v8298_v50 = vcombine.low %v548_v38, %v556_v40 }
 0x12a   : > { %3788 = vmatpush1.bf16.msra.mxu0 %v8168_v45  ;;  %3870 = vmatpush1.bf16.msra.mxu1 %v8170_v46  ;;  %v571_v45 = vld [vmem:[%s13312_s1 + $0x8e0] sm:$0xff]  ;;  %v564_v46 = vld [vmem:[%s13312_s1 + $0x8a8] sm:$0xff] }
 0x12b   : > { %3789 = vmatprep.subr.bf16.mxu0 %v8185_v47  ;;  %3871 = vmatprep.subr.bf16.mxu1 %v8187_v51  ;;  %v8299_v47 = vcombine.high %v548_v38, %v556_v40  ;;  %v8313_v51 = vcombine.high %v563_v44, %v571_v45  ;;  %v8312_v58 = vcombine.low %v563_v44, %v571_v45  ;;  %v660_v38 = vld [vmem:[%s13312_s1 + $0xba8] sm:$0xff] }
 0x12c   : > { %v8314_v59 = vcombine.low %v564_v46, %v572_v48 }
 0x12e   : > { %3790 = vmatpush1.bf16.msra.mxu0 %v8184_v53  ;;  %3872 = vmatpush1.bf16.msra.mxu1 %v8186_v54  ;;  %v587_v53 = vld [vmem:[%s13312_s1 + $0x960] sm:$0xff]  ;;  %v8315_v54 = vcombine.high %v564_v46, %v572_v48 }
 0x12f   : > { %3791 = vmatprep.subr.bf16.mxu0 %v8201_v55  ;;  %3873 = vmatprep.subr.bf16.mxu1 %v8203_v60  ;;  %v580_v55 = vld [vmem:[%s13312_s1 + $0x928] sm:$0xff]  ;;  %v8329_v60 = vcombine.high %v579_v52, %v587_v53  ;;  %v8328_v2 = vcombine.low %v579_v52, %v587_v53 }
 0x130   : > { %v8331_v61 = vcombine.high %v580_v55, %v588_v56  ;;  %v8330_v3 = vcombine.low %v580_v55, %v588_v56  ;;  %v684_v52 = vld [vmem:[%s13312_s1 + $0xc68] sm:$0xff] }
 0x132   : > { %3792 = vmatpush1.bf16.msra.mxu0 %v8200_v62  ;;  %3874 = vmatpush1.bf16.msra.mxu1 %v8202_v63  ;;  %v595_v62 = vld [vmem:[%s13312_s1 + $0x9a0] sm:$0xff] }
 0x133   : > { %3793 = vmatprep.subr.bf16.mxu0 %v8217_v0  ;;  %3875 = vmatprep.subr.bf16.mxu1 %v8219_v4  ;;  %v603_v63 = vld [vmem:[%s13312_s1 + $0x9e0] sm:$0xff]  ;;  %v596_v0 = vld [vmem:[%s13312_s1 + $0x9a8] sm:$0xff] }
 0x134   : > { %v8345_v4 = vcombine.high %v595_v62, %v603_v63  ;;  %v8347_v5 = vcombine.high %v596_v0, %v604_v1  ;;  %v8344_v10 = vcombine.low %v595_v62, %v603_v63  ;;  %v8346_v11 = vcombine.low %v596_v0, %v604_v1 }
 0x136   : > { %3794 = vmatpush1.bf16.msra.mxu0 %v8216_v6  ;;  %3876 = vmatpush1.bf16.msra.mxu1 %v8218_v7  ;;  %v611_v6 = vld [vmem:[%s13312_s1 + $0xa20] sm:$0xff] }
 0x137   : > { %3795 = vmatprep.subr.bf16.mxu0 %v8233_v8  ;;  %3877 = vmatprep.subr.bf16.mxu1 %v8235_v13  ;;  %v619_v7 = vld [vmem:[%s13312_s1 + $0xa60] sm:$0xff]  ;;  %v612_v8 = vld [vmem:[%s13312_s1 + $0xa28] sm:$0xff] }
 0x138   : > { %v8361_v13 = vcombine.high %v611_v6, %v619_v7  ;;  %v8363_v14 = vcombine.high %v612_v8, %v620_v9  ;;  %v8360_v19 = vcombine.low %v611_v6, %v619_v7  ;;  %v8362_v20 = vcombine.low %v612_v8, %v620_v9 }
 0x13a   : > { %3796 = vmatpush1.bf16.msra.mxu0 %v8232_v15  ;;  %3878 = vmatpush1.bf16.msra.mxu1 %v8234_v16  ;;  %v627_v15 = vld [vmem:[%s13312_s1 + $0xaa0] sm:$0xff] }
 0x13b   : > { %3797 = vmatprep.subr.bf16.mxu0 %v8249_v17  ;;  %3879 = vmatprep.subr.bf16.mxu1 %v8251_v21  ;;  %v635_v16 = vld [vmem:[%s13312_s1 + $0xae0] sm:$0xff]  ;;  %v628_v17 = vld [vmem:[%s13312_s1 + $0xaa8] sm:$0xff] }
 0x13c   : > { %v8377_v21 = vcombine.high %v627_v15, %v635_v16  ;;  %v8379_v22 = vcombine.high %v628_v17, %v636_v18  ;;  %v8376_v29 = vcombine.low %v627_v15, %v635_v16  ;;  %v8378_v30 = vcombine.low %v628_v17, %v636_v18 }
 0x13e   : > { %3798 = vmatpush1.bf16.msra.mxu0 %v8248_v25  ;;  %3880 = vmatpush1.bf16.msra.mxu1 %v8250_v26  ;;  %v643_v25 = vld [vmem:[%s13312_s1 + $0xb20] sm:$0xff] }
 0x13f   : > { %3799 = vmatprep.subr.bf16.mxu0 %v8265_v27  ;;  %3881 = vmatprep.subr.bf16.mxu1 %v8267_v31  ;;  %v651_v26 = vld [vmem:[%s13312_s1 + $0xb60] sm:$0xff]  ;;  %v644_v27 = vld [vmem:[%s13312_s1 + $0xb28] sm:$0xff] }
 0x140   : > { %v8393_v31 = vcombine.high %v643_v25, %v651_v26  ;;  %v8394_v45 = vcombine.low %v644_v27, %v652_v28 }
 0x142   : > { %3800 = vmatpush1.bf16.msra.mxu0 %v8264_v33  ;;  %3882 = vmatpush1.bf16.msra.mxu1 %v8266_v34  ;;  %v8395_v33 = vcombine.high %v644_v27, %v652_v28  ;;  %v659_v34 = vld [vmem:[%s13312_s1 + $0xba0] sm:$0xff] }
 0x143   : > { %3801 = vmatprep.subr.bf16.mxu0 %v8281_v35  ;;  %3883 = vmatprep.subr.bf16.mxu1 %v8283_v39  ;;  %v667_v35 = vld [vmem:[%s13312_s1 + $0xbe0] sm:$0xff]  ;;  %v668_v39 = vld [vmem:[%s13312_s1 + $0xbe8] sm:$0xff] }
 0x144   : > { %v8409_v46 = vcombine.high %v659_v34, %v667_v35  ;;  %v8411_v48 = vcombine.high %v660_v38, %v668_v39  ;;  %v8408_v53 = vcombine.low %v659_v34, %v667_v35 }
 0x146   : > { %3802 = vmatpush1.bf16.msra.mxu0 %v8280_v41  ;;  %3884 = vmatpush1.bf16.msra.mxu1 %v8282_v42  ;;  %v8392_v42 = vcombine.low %v643_v25, %v651_v26 }
 0x147   : > { %3812 = vmatprep.subr.bf16.mxu0 %v8297_v43  ;;  %3894 = vmatprep.subr.bf16.mxu1 %v8299_v47 }
 0x149   : > { %3804 = vmatmul.mubr.bf16.vlgmr.msra.gmra.mrb[8].mxu0 %v10177_v12  ;;  %3886 = vmatmul.mubr.bf16.vlgmr.msra.gmra.mrb[8].mxu1 %v10177_v12 }
 0x14a   : > { %3813 = vmatpush1.bf16.msra.mxu0 %v8296_v49  ;;  %3895 = vmatpush1.bf16.msra.mxu1 %v8298_v50  ;;  %v675_v49 = vld [vmem:[%s13312_s1 + $0xc20] sm:$0xff] }
 0x14b   : > { %3814 = vmatprep.subr.bf16.mxu0 %v8313_v51  ;;  %3896 = vmatprep.subr.bf16.mxu1 %v8315_v54  ;;  %v683_v50 = vld [vmem:[%s13312_s1 + $0xc60] sm:$0xff]  ;;  %v676_v51 = vld [vmem:[%s13312_s1 + $0xc28] sm:$0xff]  ;;  %v8410_v54 = vcombine.low %v660_v38, %v668_v39 }
 0x14c   : > { %3844 = vmatprep.mubr.bf16.mxu0 %v10198_v24  ;;  %3926 = vmatprep.mubr.bf16.mxu1 %v10198_v24  ;;  %v8425_v55 = vcombine.high %v675_v49, %v683_v50  ;;  %v8427_v56 = vcombine.high %v676_v51, %v684_v52  ;;  %v8424_v62 = vcombine.low %v675_v49, %v683_v50  ;;  %v787_v49 = vld [vmem:[%s13312_s1 + $0xfa0] sm:$0xff] }
 0x14d   : > { %v8426_v63 = vcombine.low %v676_v51, %v684_v52  ;;  %v795_v50 = vld [vmem:[%s13312_s1 + $0xfe0] sm:$0xff]  ;;  %v788_v51 = vld [vmem:[%s13312_s1 + $0xfa8] sm:$0xff] }
 0x14e   : > { %3815 = vmatpush1.bf16.msra.mxu0 %v8312_v58  ;;  %3897 = vmatpush1.bf16.msra.mxu1 %v8314_v59  ;;  %v691_v58 = vld [vmem:[%s13312_s1 + $0xca0] sm:$0xff]  ;;  %v796_v52 = vld [vmem:[%s13312_s1 + $0xfe8] sm:$0xff] }
 0x14f   : > { %3816 = vmatprep.subr.bf16.mxu0 %v8329_v60  ;;  %3898 = vmatprep.subr.bf16.mxu1 %v8331_v61  ;;  %v699_v59 = vld [vmem:[%s13312_s1 + $0xce0] sm:$0xff]  ;;  %v692_v60 = vld [vmem:[%s13312_s1 + $0xca8] sm:$0xff] }
 0x150   : > { %v700_v61 = vld [vmem:[%s13312_s1 + $0xce8] sm:$0xff]  ;;  %v8441_v0 = vcombine.high %v691_v58, %v699_v59  ;;  %v8440_v6 = vcombine.low %v691_v58, %v699_v59  ;;  %v293_v58 = vld [vmem:[%s13312_s1 + $0x30] sm:$0xff] }
 0x151   : > { %v8443_v1 = vcombine.high %v692_v60, %v700_v61  ;;  %v8442_v7 = vcombine.low %v692_v60, %v700_v61  ;;  %v301_v59 = vld [vmem:[%s13312_s1 + $0x70] sm:$0xff]  ;;  %v294_v60 = vld [vmem:[%s13312_s1 + $0x38] sm:$0xff] }
 0x152   : > { %3817 = vmatpush1.bf16.msra.mxu0 %v8328_v2  ;;  %3899 = vmatpush1.bf16.msra.mxu1 %v8330_v3  ;;  %v707_v2 = vld [vmem:[%s13312_s1 + $0xd20] sm:$0xff]  ;;  %v302_v61 = vld [vmem:[%s13312_s1 + $0x78] sm:$0xff] }
 0x153   : > { %3818 = vmatprep.subr.bf16.mxu0 %v8345_v4  ;;  %3900 = vmatprep.subr.bf16.mxu1 %v8347_v5  ;;  %v715_v3 = vld [vmem:[%s13312_s1 + $0xd60] sm:$0xff]  ;;  %v708_v4 = vld [vmem:[%s13312_s1 + $0xd28] sm:$0xff] }
 0x154   : > { %v716_v5 = vld [vmem:[%s13312_s1 + $0xd68] sm:$0xff]  ;;  %v8457_v8 = vcombine.high %v707_v2, %v715_v3  ;;  %v8456_v15 = vcombine.low %v707_v2, %v715_v3  ;;  %v309_v2 = vld [vmem:[%s13312_s1 + $0xb0] sm:$0xff] }
 0x155   : > { %v8459_v9 = vcombine.high %v708_v4, %v716_v5  ;;  %v8458_v16 = vcombine.low %v708_v4, %v716_v5  ;;  %v317_v3 = vld [vmem:[%s13312_s1 + $0xf0] sm:$0xff]  ;;  %v310_v4 = vld [vmem:[%s13312_s1 + $0xb8] sm:$0xff] }
 0x156   : > { %3819 = vmatpush1.bf16.msra.mxu0 %v8344_v10  ;;  %3901 = vmatpush1.bf16.msra.mxu1 %v8346_v11  ;;  %v723_v10 = vld [vmem:[%s13312_s1 + $0xda0] sm:$0xff]  ;;  %v318_v5 = vld [vmem:[%s13312_s1 + $0xf8] sm:$0xff] }
 0x157   : > { %3820 = vmatprep.subr.bf16.mxu0 %v8361_v13  ;;  %3902 = vmatprep.subr.bf16.mxu1 %v8363_v14  ;;  %v731_v11 = vld [vmem:[%s13312_s1 + $0xde0] sm:$0xff]  ;;  %v724_v13 = vld [vmem:[%s13312_s1 + $0xda8] sm:$0xff] }
 0x158   : > { %v732_v14 = vld [vmem:[%s13312_s1 + $0xde8] sm:$0xff]  ;;  %v8473_v17 = vcombine.high %v723_v10, %v731_v11  ;;  %v8472_v25 = vcombine.low %v723_v10, %v731_v11  ;;  %v325_v10 = vld [vmem:[%s13312_s1 + $0x130] sm:$0xff] }
 0x159   : > { %v8475_v18 = vcombine.high %v724_v13, %v732_v14  ;;  %v8474_v26 = vcombine.low %v724_v13, %v732_v14  ;;  %v333_v11 = vld [vmem:[%s13312_s1 + $0x170] sm:$0xff]  ;;  %v326_v13 = vld [vmem:[%s13312_s1 + $0x138] sm:$0xff] }
 0x15a   : > { %3821 = vmatpush1.bf16.msra.mxu0 %v8360_v19  ;;  %3903 = vmatpush1.bf16.msra.mxu1 %v8362_v20  ;;  %v739_v19 = vld [vmem:[%s13312_s1 + $0xe20] sm:$0xff]  ;;  %v334_v14 = vld [vmem:[%s13312_s1 + $0x178] sm:$0xff] }
 0x15b   : > { %3822 = vmatprep.subr.bf16.mxu0 %v8377_v21  ;;  %3904 = vmatprep.subr.bf16.mxu1 %v8379_v22  ;;  %v747_v20 = vld [vmem:[%s13312_s1 + $0xe60] sm:$0xff]  ;;  %v740_v21 = vld [vmem:[%s13312_s1 + $0xe28] sm:$0xff] }
 0x15c   : > { %v11039_v32 = vpop.f32.mrb[0].mxu0  ;;  %v11047_v36 = vpop.f32.mrb[0].mxu1  ;;  %v748_v22 = vld [vmem:[%s13312_s1 + $0xe68] sm:$0xff]  ;;  %v8489_v27 = vcombine.high %v739_v19, %v747_v20  ;;  %v8488_v34 = vcombine.low %v739_v19, %v747_v20  ;;  %v341_v19 = vld [vmem:[%s13312_s1 + $0x1b0] sm:$0xff] }
 0x15d   : > { %v11049_v37 = vpop.f32.mrb[1].mxu0  ;;  %v11057_v40 = vpop.f32.mrb[1].mxu1  ;;  %v8491_v28 = vcombine.high %v740_v21, %v748_v22  ;;  %v8490_v35 = vcombine.low %v740_v21, %v748_v22  ;;  %v349_v20 = vld [vmem:[%s13312_s1 + $0x1f0] sm:$0xff]  ;;  %v342_v21 = vld [vmem:[%s13312_s1 + $0x1b8] sm:$0xff] }
 0x15e   : > { %v3522_v41 = vpop.f32.mrb[2].mxu0  ;;  %3823 = vmatpush1.bf16.msra.mxu0 %v8376_v29  ;;  %v3604_v43 = vpop.f32.mrb[2].mxu1  ;;  %3905 = vmatpush1.bf16.msra.mxu1 %v8378_v30  ;;  %v755_v29 = vld [vmem:[%s13312_s1 + $0xea0] sm:$0xff]  ;;  %v350_v22 = vld [vmem:[%s13312_s1 + $0x1f8] sm:$0xff] }
 0x15f   : > { %v3523_v44 = vpop.f32.mrb[3].mxu0  ;;  %3824 = vmatprep.subr.bf16.mxu0 %v8393_v31  ;;  %v3605_v47 = vpop.f32.mrb[3].mxu1  ;;  %3906 = vmatprep.subr.bf16.mxu1 %v8395_v33  ;;  %v763_v30 = vld [vmem:[%s13312_s1 + $0xee0] sm:$0xff]  ;;  %v756_v31 = vld [vmem:[%s13312_s1 + $0xea8] sm:$0xff] }
 0x160   : > { %v764_v33 = vld [vmem:[%s13312_s1 + $0xee8] sm:$0xff]  ;;  %v8505_v38 = vcombine.high %v755_v29, %v763_v30  ;;  %v771_v41 = vld [vmem:[%s13312_s1 + $0xf20] sm:$0xff] }
 0x161   : > { %v8507_v39 = vcombine.high %v756_v31, %v764_v33  ;;  %v772_v43 = vld [vmem:[%s13312_s1 + $0xf28] sm:$0xff] }
 0x162   : > { %3825 = vmatpush1.bf16.msra.mxu0 %v8392_v42  ;;  %3907 = vmatpush1.bf16.msra.mxu1 %v8394_v45  ;;  %v779_v42 = vld [vmem:[%s13312_s1 + $0xf60] sm:$0xff]  ;;  %v780_v44 = vld [vmem:[%s13312_s1 + $0xf68] sm:$0xff]  ;;  %v8504_v45 = vcombine.low %v755_v29, %v763_v30  ;;  %v357_v29 = vld [vmem:[%s13312_s1 + $0x230] sm:$0xff] }
 0x163   : > { %3826 = vmatprep.subr.bf16.mxu0 %v8409_v46  ;;  %3908 = vmatprep.subr.bf16.mxu1 %v8411_v48  ;;  %v8506_v46 = vcombine.low %v756_v31, %v764_v33  ;;  %v8521_v47 = vcombine.high %v771_v41, %v779_v42  ;;  %v8523_v48 = vcombine.high %v772_v43, %v780_v44  ;;  %v365_v30 = vld [vmem:[%s13312_s1 + $0x270] sm:$0xff]  ;;  %v366_v31 = vld [vmem:[%s13312_s1 + $0x278] sm:$0xff] }
 0x164   : > { %v8092_v33 = vcombine.low %v341_v19, %v349_v20 }
 0x166   : > { %3827 = vmatpush1.bf16.msra.mxu0 %v8408_v53  ;;  %3909 = vmatpush1.bf16.msra.mxu1 %v8410_v54  ;;  %v8520_v53 = vcombine.low %v771_v41, %v779_v42  ;;  %v8522_v54 = vcombine.low %v772_v43, %v780_v44  ;;  %v381_v41 = vld [vmem:[%s13312_s1 + $0x2f0] sm:$0xff]  ;;  %v374_v42 = vld [vmem:[%s13312_s1 + $0x2b8] sm:$0xff]  ;;  %v8108_v44 = vcombine.low %v357_v29, %v365_v30 }
 0x167   : > { %3828 = vmatprep.subr.bf16.mxu0 %v8425_v55  ;;  %3910 = vmatprep.subr.bf16.mxu1 %v8427_v56  ;;  %v8537_v55 = vcombine.high %v787_v49, %v795_v50  ;;  %v8539_v56 = vcombine.high %v788_v51, %v796_v52  ;;  %v382_v43 = vld [vmem:[%s13312_s1 + $0x2f8] sm:$0xff] }
 0x16a   : > { %3829 = vmatpush1.bf16.msra.mxu0 %v8424_v62  ;;  %3911 = vmatpush1.bf16.msra.mxu1 %v8426_v63  ;;  %v8536_v62 = vcombine.low %v787_v49, %v795_v50  ;;  %v8538_v63 = vcombine.low %v788_v51, %v796_v52  ;;  %v397_v49 = vld [vmem:[%s13312_s1 + $0x370] sm:$0xff]  ;;  %v390_v50 = vld [vmem:[%s13312_s1 + $0x338] sm:$0xff] }
 0x16b   : > { %3830 = vmatprep.subr.bf16.mxu0 %v8441_v0  ;;  %3912 = vmatprep.subr.bf16.mxu1 %v8443_v1  ;;  %v8045_v0 = vcombine.high %v293_v58, %v301_v59  ;;  %v8047_v1 = vcombine.high %v294_v60, %v302_v61  ;;  %v398_v51 = vld [vmem:[%s13312_s1 + $0x378] sm:$0xff] }
 0x16e   : > { %3831 = vmatpush1.bf16.msra.mxu0 %v8440_v6  ;;  %3913 = vmatpush1.bf16.msra.mxu1 %v8442_v7  ;;  %v8044_v6 = vcombine.low %v293_v58, %v301_v59  ;;  %v8046_v7 = vcombine.low %v294_v60, %v302_v61  ;;  %v413_v58 = vld [vmem:[%s13312_s1 + $0x3f0] sm:$0xff]  ;;  %v406_v59 = vld [vmem:[%s13312_s1 + $0x3b8] sm:$0xff] }
 0x16f   : > { %3832 = vmatprep.subr.bf16.mxu0 %v8457_v8  ;;  %3914 = vmatprep.subr.bf16.mxu1 %v8459_v9  ;;  %v8061_v8 = vcombine.high %v309_v2, %v317_v3  ;;  %v8063_v9 = vcombine.high %v310_v4, %v318_v5  ;;  %v414_v60 = vld [vmem:[%s13312_s1 + $0x3f8] sm:$0xff] }
 0x172   : > { %3833 = vmatpush1.bf16.msra.mxu0 %v8456_v15  ;;  %3915 = vmatpush1.bf16.msra.mxu1 %v8458_v16  ;;  %v8060_v15 = vcombine.low %v309_v2, %v317_v3  ;;  %v8062_v16 = vcombine.low %v310_v4, %v318_v5  ;;  %v429_v2 = vld [vmem:[%s13312_s1 + $0x470] sm:$0xff]  ;;  %v422_v3 = vld [vmem:[%s13312_s1 + $0x438] sm:$0xff] }
 0x173   : > { %3834 = vmatprep.subr.bf16.mxu0 %v8473_v17  ;;  %3916 = vmatprep.subr.bf16.mxu1 %v8475_v18  ;;  %v8077_v17 = vcombine.high %v325_v10, %v333_v11  ;;  %v8079_v18 = vcombine.high %v326_v13, %v334_v14  ;;  %v430_v4 = vld [vmem:[%s13312_s1 + $0x478] sm:$0xff] }
 0x176   : > { %3835 = vmatpush1.bf16.msra.mxu0 %v8472_v25  ;;  %3917 = vmatpush1.bf16.msra.mxu1 %v8474_v26  ;;  %v8076_v25 = vcombine.low %v325_v10, %v333_v11  ;;  %v8078_v26 = vcombine.low %v326_v13, %v334_v14  ;;  %v445_v10 = vld [vmem:[%s13312_s1 + $0x4f0] sm:$0xff]  ;;  %v438_v11 = vld [vmem:[%s13312_s1 + $0x4b8] sm:$0xff] }
 0x177   : > { %3836 = vmatprep.subr.bf16.mxu0 %v8489_v27  ;;  %3918 = vmatprep.subr.bf16.mxu1 %v8491_v28  ;;  %v8093_v27 = vcombine.high %v341_v19, %v349_v20  ;;  %v8095_v28 = vcombine.high %v342_v21, %v350_v22  ;;  %v446_v13 = vld [vmem:[%s13312_s1 + $0x4f8] sm:$0xff]  ;;  %v461_v19 = vld [vmem:[%s13312_s1 + $0x570] sm:$0xff] }
 0x178   : > { %v454_v20 = vld [vmem:[%s13312_s1 + $0x538] sm:$0xff] }
 0x17a   : > { %3837 = vmatpush1.bf16.msra.mxu0 %v8488_v34  ;;  %3919 = vmatpush1.bf16.msra.mxu1 %v8490_v35  ;;  %v8094_v34 = vcombine.low %v342_v21, %v350_v22  ;;  %v8109_v35 = vcombine.high %v357_v29, %v365_v30  ;;  %v462_v21 = vld [vmem:[%s13312_s1 + $0x578] sm:$0xff]  ;;  %v477_v29 = vld [vmem:[%s13312_s1 + $0x5f0] sm:$0xff] }
 0x17b   : > { %3838 = vmatprep.subr.bf16.mxu0 %v8505_v38  ;;  %3920 = vmatprep.subr.bf16.mxu1 %v8507_v39  ;;  %v373_v39 = vld [vmem:[%s13312_s1 + $0x2b0] sm:$0xff]  ;;  %v470_v30 = vld [vmem:[%s13312_s1 + $0x5b8] sm:$0xff] }
 0x17c   : > { %v8124_v52 = vcombine.low %v373_v39, %v381_v41 }
 0x17e   : > { %3839 = vmatpush1.bf16.msra.mxu0 %v8504_v45  ;;  %3921 = vmatpush1.bf16.msra.mxu1 %v8506_v46  ;;  %v8125_v46 = vcombine.high %v373_v39, %v381_v41  ;;  %v493_v39 = vld [vmem:[%s13312_s1 + $0x670] sm:$0xff]  ;;  %v486_v41 = vld [vmem:[%s13312_s1 + $0x638] sm:$0xff] }
 0x17f   : > { %3840 = vmatprep.subr.bf16.mxu0 %v8521_v47  ;;  %3922 = vmatprep.subr.bf16.mxu1 %v8523_v48  ;;  %v8127_v47 = vcombine.high %v374_v42, %v382_v43  ;;  %v389_v48 = vld [vmem:[%s13312_s1 + $0x330] sm:$0xff] }
 0x180   : > { %v8140_v61 = vcombine.low %v389_v48, %v397_v49 }
 0x182   : > { %3841 = vmatpush1.bf16.msra.mxu0 %v8520_v53  ;;  %3923 = vmatpush1.bf16.msra.mxu1 %v8522_v54  ;;  %v8126_v53 = vcombine.low %v374_v42, %v382_v43  ;;  %v8141_v54 = vcombine.high %v389_v48, %v397_v49  ;;  %v494_v42 = vld [vmem:[%s13312_s1 + $0x678] sm:$0xff]  ;;  %v509_v48 = vld [vmem:[%s13312_s1 + $0x6f0] sm:$0xff] }
 0x183   : > { %3842 = vmatprep.subr.bf16.mxu0 %v8537_v55  ;;  %3924 = vmatprep.subr.bf16.mxu1 %v8539_v56  ;;  %v8143_v55 = vcombine.high %v390_v50, %v398_v51  ;;  %v405_v56 = vld [vmem:[%s13312_s1 + $0x3b0] sm:$0xff]  ;;  %v502_v49 = vld [vmem:[%s13312_s1 + $0x6b8] sm:$0xff] }
 0x184   : > { %v8156_v5 = vcombine.low %v405_v56, %v413_v58 }
 0x186   : > { %3843 = vmatpush1.bf16.msra.mxu0 %v8536_v62  ;;  %3925 = vmatpush1.bf16.msra.mxu1 %v8538_v63  ;;  %v8142_v62 = vcombine.low %v390_v50, %v398_v51  ;;  %v8157_v63 = vcombine.high %v405_v56, %v413_v58  ;;  %v510_v50 = vld [vmem:[%s13312_s1 + $0x6f8] sm:$0xff]  ;;  %v525_v56 = vld [vmem:[%s13312_s1 + $0x770] sm:$0xff] }
 0x187   : > { %3935 = vmatprep.subr.bf16.mxu0 %v8045_v0  ;;  %4017 = vmatprep.subr.bf16.mxu1 %v8047_v1  ;;  %v8159_v0 = vcombine.high %v406_v59, %v414_v60  ;;  %v421_v1 = vld [vmem:[%s13312_s1 + $0x430] sm:$0xff]  ;;  %v518_v58 = vld [vmem:[%s13312_s1 + $0x738] sm:$0xff] }
 0x188   : > { %v8172_v14 = vcombine.low %v421_v1, %v429_v2 }
 0x189   : > { %3845 = vmatmul.mubr.bf16.vlgmr.msra.gmra.mrb[8].mxu0 %v10385_v23  ;;  %3927 = vmatmul.mubr.bf16.vlgmr.msra.gmra.mrb[8].mxu1 %v10385_v23 }
 0x18a   : > { %3936 = vmatpush1.bf16.msra.mxu0 %v8044_v6  ;;  %4018 = vmatpush1.bf16.msra.mxu1 %v8046_v7  ;;  %v8158_v6 = vcombine.low %v406_v59, %v414_v60  ;;  %v8173_v7 = vcombine.high %v421_v1, %v429_v2  ;;  %v526_v59 = vld [vmem:[%s13312_s1 + $0x778] sm:$0xff]  ;;  %v541_v1 = vld [vmem:[%s13312_s1 + $0x7f0] sm:$0xff] }
 0x18b   : > { %3937 = vmatprep.subr.bf16.mxu0 %v8061_v8  ;;  %4019 = vmatprep.subr.bf16.mxu1 %v8063_v9  ;;  %v8175_v8 = vcombine.high %v422_v3, %v430_v4  ;;  %v437_v9 = vld [vmem:[%s13312_s1 + $0x4b0] sm:$0xff]  ;;  %v534_v2 = vld [vmem:[%s13312_s1 + $0x7b8] sm:$0xff] }
 0x18c   : > { %3967 = vmatprep.mubr.bf16.mxu0 %v10052_v57  ;;  %4049 = vmatprep.mubr.bf16.mxu1 %v10052_v57  ;;  %v358_v57 = vld [vmem:[%s13312_s1 + $0x238] sm:$0xff]  ;;  %v8188_v22 = vcombine.low %v437_v9, %v445_v10 }
 0x18d   : > { %v8111_v38 = vcombine.high %v358_v57, %v366_v31  ;;  %v8110_v45 = vcombine.low %v358_v57, %v366_v31  ;;  %v478_v57 = vld [vmem:[%s13312_s1 + $0x5f8] sm:$0xff] }
 0x18e   : > { %3938 = vmatpush1.bf16.msra.mxu0 %v8060_v15  ;;  %4020 = vmatpush1.bf16.msra.mxu1 %v8062_v16  ;;  %v8174_v15 = vcombine.low %v422_v3, %v430_v4  ;;  %v8189_v16 = vcombine.high %v437_v9, %v445_v10  ;;  %v542_v3 = vld [vmem:[%s13312_s1 + $0x7f8] sm:$0xff]  ;;  %v557_v9 = vld [vmem:[%s13312_s1 + $0x870] sm:$0xff] }
 0x18f   : > { %3939 = vmatprep.subr.bf16.mxu0 %v8077_v17  ;;  %4021 = vmatprep.subr.bf16.mxu1 %v8079_v18  ;;  %v8191_v17 = vcombine.high %v438_v11, %v446_v13  ;;  %v453_v18 = vld [vmem:[%s13312_s1 + $0x530] sm:$0xff]  ;;  %v550_v10 = vld [vmem:[%s13312_s1 + $0x838] sm:$0xff] }
 0x190   : > { %v8204_v31 = vcombine.low %v453_v18, %v461_v19 }
 0x192   : > { %3940 = vmatpush1.bf16.msra.mxu0 %v8076_v25  ;;  %4022 = vmatpush1.bf16.msra.mxu1 %v8078_v26  ;;  %v8190_v25 = vcombine.low %v438_v11, %v446_v13  ;;  %v8205_v26 = vcombine.high %v453_v18, %v461_v19  ;;  %v558_v11 = vld [vmem:[%s13312_s1 + $0x878] sm:$0xff]  ;;  %v573_v18 = vld [vmem:[%s13312_s1 + $0x8f0] sm:$0xff] }
 0x193   : > { %3941 = vmatprep.subr.bf16.mxu0 %v8093_v27  ;;  %4023 = vmatprep.subr.bf16.mxu1 %v8095_v28  ;;  %v8207_v27 = vcombine.high %v454_v20, %v462_v21  ;;  %v469_v28 = vld [vmem:[%s13312_s1 + $0x5b0] sm:$0xff]  ;;  %v566_v19 = vld [vmem:[%s13312_s1 + $0x8b8] sm:$0xff] }
 0x194   : > { %v8220_v43 = vcombine.low %v469_v28, %v477_v29 }
 0x196   : > { %3942 = vmatpush1.bf16.msra.mxu0 %v8092_v33  ;;  %4024 = vmatpush1.bf16.msra.mxu1 %v8094_v34  ;;  %v8206_v33 = vcombine.low %v454_v20, %v462_v21  ;;  %v8221_v34 = vcombine.high %v469_v28, %v477_v29  ;;  %v574_v20 = vld [vmem:[%s13312_s1 + $0x8f8] sm:$0xff]  ;;  %v589_v28 = vld [vmem:[%s13312_s1 + $0x970] sm:$0xff] }
 0x197   : > { %3943 = vmatprep.subr.bf16.mxu0 %v8109_v35  ;;  %4025 = vmatprep.subr.bf16.mxu1 %v8111_v38  ;;  %v8223_v35 = vcombine.high %v470_v30, %v478_v57  ;;  %v485_v38 = vld [vmem:[%s13312_s1 + $0x630] sm:$0xff]  ;;  %v582_v29 = vld [vmem:[%s13312_s1 + $0x938] sm:$0xff] }
 0x198   : > { %v8236_v51 = vcombine.low %v485_v38, %v493_v39 }
 0x19a   : > { %3944 = vmatpush1.bf16.msra.mxu0 %v8108_v44  ;;  %4026 = vmatpush1.bf16.msra.mxu1 %v8110_v45  ;;  %v8222_v44 = vcombine.low %v470_v30, %v478_v57  ;;  %v8237_v45 = vcombine.high %v485_v38, %v493_v39  ;;  %v590_v30 = vld [vmem:[%s13312_s1 + $0x978] sm:$0xff]  ;;  %v605_v38 = vld [vmem:[%s13312_s1 + $0x9f0] sm:$0xff] }
 0x19b   : > { %3945 = vmatprep.subr.bf16.mxu0 %v8125_v46  ;;  %4027 = vmatprep.subr.bf16.mxu1 %v8127_v47  ;;  %v8239_v46 = vcombine.high %v486_v41, %v494_v42  ;;  %v501_v47 = vld [vmem:[%s13312_s1 + $0x6b0] sm:$0xff]  ;;  %v606_v39 = vld [vmem:[%s13312_s1 + $0x9f8] sm:$0xff] }
 0x19c   : > { %v8252_v60 = vcombine.low %v501_v47, %v509_v48 }
 0x19e   : > { %3946 = vmatpush1.bf16.msra.mxu0 %v8124_v52  ;;  %4028 = vmatpush1.bf16.msra.mxu1 %v8126_v53  ;;  %v8238_v52 = vcombine.low %v486_v41, %v494_v42  ;;  %v8253_v53 = vcombine.high %v501_v47, %v509_v48  ;;  %v8334_v42 = vcombine.low %v582_v29, %v590_v30  ;;  %v622_v47 = vld [vmem:[%s13312_s1 + $0xa78] sm:$0xff] }
 0x19f   : > { %3947 = vmatprep.subr.bf16.mxu0 %v8141_v54  ;;  %4029 = vmatprep.subr.bf16.mxu1 %v8143_v55  ;;  %v8255_v54 = vcombine.high %v502_v49, %v510_v50  ;;  %v517_v55 = vld [vmem:[%s13312_s1 + $0x730] sm:$0xff] }
 0x1a0   : > { %v8268_v4 = vcombine.low %v517_v55, %v525_v56 }
 0x1a2   : > { %3948 = vmatpush1.bf16.msra.mxu0 %v8140_v61  ;;  %4030 = vmatpush1.bf16.msra.mxu1 %v8142_v62  ;;  %v8254_v61 = vcombine.low %v502_v49, %v510_v50  ;;  %v8269_v62 = vcombine.high %v517_v55, %v525_v56  ;;  %v638_v55 = vld [vmem:[%s13312_s1 + $0xaf8] sm:$0xff] }
 0x1a3   : > { %3949 = vmatprep.subr.bf16.mxu0 %v8157_v63  ;;  %4031 = vmatprep.subr.bf16.mxu1 %v8159_v0  ;;  %v8271_v63 = vcombine.high %v518_v58, %v526_v59  ;;  %v533_v0 = vld [vmem:[%s13312_s1 + $0x7b0] sm:$0xff] }
 0x1a4   : > { %v8284_v13 = vcombine.low %v533_v0, %v541_v1 }
 0x1a6   : > { %3950 = vmatpush1.bf16.msra.mxu0 %v8156_v5  ;;  %4032 = vmatpush1.bf16.msra.mxu1 %v8158_v6  ;;  %v8270_v5 = vcombine.low %v518_v58, %v526_v59  ;;  %v8285_v6 = vcombine.high %v533_v0, %v541_v1  ;;  %v654_v0 = vld [vmem:[%s13312_s1 + $0xb78] sm:$0xff] }
 0x1a7   : > { %3951 = vmatprep.subr.bf16.mxu0 %v8173_v7  ;;  %4033 = vmatprep.subr.bf16.mxu1 %v8175_v8  ;;  %v8287_v7 = vcombine.high %v534_v2, %v542_v3  ;;  %v549_v8 = vld [vmem:[%s13312_s1 + $0x830] sm:$0xff] }
 0x1a8   : > { %v8300_v21 = vcombine.low %v549_v8, %v557_v9 }
 0x1aa   : > { %3952 = vmatpush1.bf16.msra.mxu0 %v8172_v14  ;;  %4034 = vmatpush1.bf16.msra.mxu1 %v8174_v15  ;;  %v8286_v14 = vcombine.low %v534_v2, %v542_v3  ;;  %v8301_v15 = vcombine.high %v549_v8, %v557_v9 }
 0x1ab   : > { %3953 = vmatprep.subr.bf16.mxu0 %v8189_v16  ;;  %4035 = vmatprep.subr.bf16.mxu1 %v8191_v17  ;;  %v8303_v16 = vcombine.high %v550_v10, %v558_v11  ;;  %v565_v17 = vld [vmem:[%s13312_s1 + $0x8b0] sm:$0xff] }
 0x1ac   : > { %v8316_v57 = vcombine.low %v565_v17, %v573_v18 }
 0x1ae   : > { %3954 = vmatpush1.bf16.msra.mxu0 %v8188_v22  ;;  %4036 = vmatpush1.bf16.msra.mxu1 %v8190_v25  ;;  %v8302_v22 = vcombine.low %v550_v10, %v558_v11  ;;  %v8317_v25 = vcombine.high %v565_v17, %v573_v18  ;;  %v662_v10 = vld [vmem:[%s13312_s1 + $0xbb8] sm:$0xff] }
 0x1af   : > { %3955 = vmatprep.subr.bf16.mxu0 %v8205_v26  ;;  %4037 = vmatprep.subr.bf16.mxu1 %v8207_v27  ;;  %v8319_v26 = vcombine.high %v566_v19, %v574_v20  ;;  %v581_v27 = vld [vmem:[%s13312_s1 + $0x930] sm:$0xff]  ;;  %v670_v11 = vld [vmem:[%s13312_s1 + $0xbf8] sm:$0xff] }
 0x1b0   : > { %v8332_v41 = vcombine.low %v581_v27, %v589_v28 }
 0x1b2   : > { %3956 = vmatpush1.bf16.msra.mxu0 %v8204_v31  ;;  %4038 = vmatpush1.bf16.msra.mxu1 %v8206_v33  ;;  %v8318_v31 = vcombine.low %v566_v19, %v574_v20  ;;  %v8333_v33 = vcombine.high %v581_v27, %v589_v28  ;;  %v686_v27 = vld [vmem:[%s13312_s1 + $0xc78] sm:$0xff] }
 0x1b3   : > { %3957 = vmatprep.subr.bf16.mxu0 %v8221_v34  ;;  %4039 = vmatprep.subr.bf16.mxu1 %v8223_v35  ;;  %v8335_v34 = vcombine.high %v582_v29, %v590_v30  ;;  %v597_v35 = vld [vmem:[%s13312_s1 + $0x9b0] sm:$0xff]  ;;  %v8414_v29 = vcombine.low %v662_v10, %v670_v11 }
 0x1b4   : > { %v8348_v48 = vcombine.low %v597_v35, %v605_v38 }
 0x1b6   : > { %3958 = vmatpush1.bf16.msra.mxu0 %v8220_v43  ;;  %4040 = vmatpush1.bf16.msra.mxu1 %v8222_v44  ;;  %v8349_v43 = vcombine.high %v597_v35, %v605_v38  ;;  %v702_v35 = vld [vmem:[%s13312_s1 + $0xcf8] sm:$0xff] }
 0x1b7   : > { %3959 = vmatprep.subr.bf16.mxu0 %v8237_v45  ;;  %4041 = vmatprep.subr.bf16.mxu1 %v8239_v46  ;;  %v613_v45 = vld [vmem:[%s13312_s1 + $0xa30] sm:$0xff] }
 0x1b8   : > { %v621_v46 = vld [vmem:[%s13312_s1 + $0xa70] sm:$0xff] }
 0x1b9   : > { %v8365_v50 = vcombine.high %v613_v45, %v621_v46  ;;  %v8364_v56 = vcombine.low %v613_v45, %v621_v46  ;;  %v718_v45 = vld [vmem:[%s13312_s1 + $0xd78] sm:$0xff] }
 0x1ba   : > { %3960 = vmatpush1.bf16.msra.mxu0 %v8236_v51  ;;  %4042 = vmatpush1.bf16.msra.mxu1 %v8238_v52  ;;  %v629_v52 = vld [vmem:[%s13312_s1 + $0xab0] sm:$0xff] }
 0x1bb   : > { %3961 = vmatprep.subr.bf16.mxu0 %v8253_v53  ;;  %4043 = vmatprep.subr.bf16.mxu1 %v8255_v54  ;;  %v637_v53 = vld [vmem:[%s13312_s1 + $0xaf0] sm:$0xff]  ;;  %v630_v54 = vld [vmem:[%s13312_s1 + $0xab8] sm:$0xff] }
 0x1bc   : > { %v8381_v59 = vcombine.high %v629_v52, %v637_v53  ;;  %v8380_v1 = vcombine.low %v629_v52, %v637_v53  ;;  %v8382_v2 = vcombine.low %v630_v54, %v638_v55  ;;  %v734_v52 = vld [vmem:[%s13312_s1 + $0xdf8] sm:$0xff] }
 0x1be   : > { %3962 = vmatpush1.bf16.msra.mxu0 %v8252_v60  ;;  %4044 = vmatpush1.bf16.msra.mxu1 %v8254_v61  ;;  %v8383_v60 = vcombine.high %v630_v54, %v638_v55  ;;  %v645_v61 = vld [vmem:[%s13312_s1 + $0xb30] sm:$0xff] }
 0x1bf   : > { %3963 = vmatprep.subr.bf16.mxu0 %v8269_v62  ;;  %4045 = vmatprep.subr.bf16.mxu1 %v8271_v63  ;;  %v653_v62 = vld [vmem:[%s13312_s1 + $0xb70] sm:$0xff]  ;;  %v646_v63 = vld [vmem:[%s13312_s1 + $0xb38] sm:$0xff] }
 0x1c0   : > { %v8397_v3 = vcombine.high %v645_v61, %v653_v62  ;;  %v8398_v18 = vcombine.low %v646_v63, %v654_v0 }
 0x1c2   : > { %3964 = vmatpush1.bf16.msra.mxu0 %v8268_v4  ;;  %4046 = vmatpush1.bf16.msra.mxu1 %v8270_v5  ;;  %v8399_v5 = vcombine.high %v646_v63, %v654_v0 }
 0x1c3   : > { %3965 = vmatprep.subr.bf16.mxu0 %v8285_v6  ;;  %4047 = vmatprep.subr.bf16.mxu1 %v8287_v7  ;;  %v661_v6 = vld [vmem:[%s13312_s1 + $0xbb0] sm:$0xff] }
 0x1c4   : > { %v669_v7 = vld [vmem:[%s13312_s1 + $0xbf0] sm:$0xff] }
 0x1c5   : > { %v8413_v19 = vcombine.high %v661_v6, %v669_v7  ;;  %v8412_v28 = vcombine.low %v661_v6, %v669_v7  ;;  %v758_v7 = vld [vmem:[%s13312_s1 + $0xeb8] sm:$0xff] }
 0x1c6   : > { %3966 = vmatpush1.bf16.msra.mxu0 %v8284_v13  ;;  %4048 = vmatpush1.bf16.msra.mxu1 %v8286_v14 }
 0x1c7   : > { %3976 = vmatprep.subr.bf16.mxu0 %v8301_v15  ;;  %4058 = vmatprep.subr.bf16.mxu1 %v8303_v16  ;;  %v8396_v15 = vcombine.low %v645_v61, %v653_v62  ;;  %v742_v61 = vld [vmem:[%s13312_s1 + $0xe38] sm:$0xff] }
 0x1c8   : > { %v750_v62 = vld [vmem:[%s13312_s1 + $0xe78] sm:$0xff] }
 0x1c9   : > { %3968 = vmatmul.mubr.bf16.vlgmr.msra.gmra.mrb[12].mxu0 %v10177_v12  ;;  %4050 = vmatmul.mubr.bf16.vlgmr.msra.gmra.mrb[12].mxu1 %v10177_v12  ;;  %v598_v12 = vld [vmem:[%s13312_s1 + $0x9b8] sm:$0xff] }
 0x1ca   : > { %3977 = vmatpush1.bf16.msra.mxu0 %v8300_v21  ;;  %4059 = vmatpush1.bf16.msra.mxu1 %v8302_v22  ;;  %v8351_v44 = vcombine.high %v598_v12, %v606_v39  ;;  %v8350_v49 = vcombine.low %v598_v12, %v606_v39  ;;  %v8415_v21 = vcombine.high %v662_v10, %v670_v11  ;;  %v677_v22 = vld [vmem:[%s13312_s1 + $0xc30] sm:$0xff]  ;;  %v766_v10 = vld [vmem:[%s13312_s1 + $0xef8] sm:$0xff] }
 0x1cb   : > { %3978 = vmatprep.subr.bf16.mxu0 %v8317_v25  ;;  %4060 = vmatprep.subr.bf16.mxu1 %v8319_v26  ;;  %v685_v25 = vld [vmem:[%s13312_s1 + $0xc70] sm:$0xff]  ;;  %v678_v26 = vld [vmem:[%s13312_s1 + $0xc38] sm:$0xff] }
 0x1cc   : > { %4008 = vmatprep.mubr.bf16.mxu0 %v10198_v24  ;;  %4090 = vmatprep.mubr.bf16.mxu1 %v10198_v24  ;;  %v614_v24 = vld [vmem:[%s13312_s1 + $0xa38] sm:$0xff]  ;;  %v8429_v30 = vcombine.high %v677_v22, %v685_v25  ;;  %v8428_v38 = vcombine.low %v677_v22, %v685_v25  ;;  %v8430_v12 = vcombine.low %v678_v26, %v686_v27  ;;  %v11551_v22 = vld [vmem:[%s13313_s2] sm:$0xff] }
 0x1cd   : > { %v8367_v51 = vcombine.high %v614_v24, %v622_v47  ;;  %v8366_v58 = vcombine.low %v614_v24, %v622_v47 }
 0x1ce   : > { %3979 = vmatpush1.bf16.msra.mxu0 %v8316_v57  ;;  %4061 = vmatpush1.bf16.msra.mxu1 %v8318_v31  ;;  %v8431_v57 = vcombine.high %v678_v26, %v686_v27  ;;  %v693_v31 = vld [vmem:[%s13312_s1 + $0xcb0] sm:$0xff]  ;;  %v8510_v27 = vcombine.low %v758_v7, %v766_v10 }
 0x1cf   : > { %3980 = vmatprep.subr.bf16.mxu0 %v8333_v33  ;;  %4062 = vmatprep.subr.bf16.mxu1 %v8335_v34  ;;  %v701_v33 = vld [vmem:[%s13312_s1 + $0xcf0] sm:$0xff]  ;;  %v694_v34 = vld [vmem:[%s13312_s1 + $0xcb8] sm:$0xff] }
 0x1d0   : > { %v8445_v39 = vcombine.high %v693_v31, %v701_v33  ;;  %v8444_v46 = vcombine.low %v693_v31, %v701_v33  ;;  %v8446_v24 = vcombine.low %v694_v34, %v702_v35  ;;  %v790_v33 = vld [vmem:[%s13312_s1 + $0xfb8] sm:$0xff] }
 0x1d2   : > { %3981 = vmatpush1.bf16.msra.mxu0 %v8332_v41  ;;  %4063 = vmatpush1.bf16.msra.mxu1 %v8334_v42  ;;  %v8447_v41 = vcombine.high %v694_v34, %v702_v35  ;;  %v709_v42 = vld [vmem:[%s13312_s1 + $0xd30] sm:$0xff]  ;;  %v798_v34 = vld [vmem:[%s13312_s1 + $0xff8] sm:$0xff] }
 0x1d3   : > { %3982 = vmatprep.subr.bf16.mxu0 %v8349_v43  ;;  %4064 = vmatprep.subr.bf16.mxu1 %v8351_v44  ;;  %v717_v43 = vld [vmem:[%s13312_s1 + $0xd70] sm:$0xff]  ;;  %v710_v44 = vld [vmem:[%s13312_s1 + $0xd38] sm:$0xff] }
 0x1d4   : > { %v8461_v47 = vcombine.high %v709_v42, %v717_v43  ;;  %v8460_v53 = vcombine.low %v709_v42, %v717_v43  ;;  %v8462_v54 = vcombine.low %v710_v44, %v718_v45 }
 0x1d6   : > { %3983 = vmatpush1.bf16.msra.mxu0 %v8348_v48  ;;  %4065 = vmatpush1.bf16.msra.mxu1 %v8350_v49  ;;  %v8463_v48 = vcombine.high %v710_v44, %v718_v45  ;;  %v725_v49 = vld [vmem:[%s13312_s1 + $0xdb0] sm:$0xff]  ;;  %v8542_v45 = vcombine.low %v790_v33, %v798_v34 }
 0x1d7   : > { %3984 = vmatprep.subr.bf16.mxu0 %v8365_v50  ;;  %4066 = vmatprep.subr.bf16.mxu1 %v8367_v51  ;;  %v733_v50 = vld [vmem:[%s13312_s1 + $0xdf0] sm:$0xff]  ;;  %v726_v51 = vld [vmem:[%s13312_s1 + $0xdb8] sm:$0xff] }
 0x1d8   : > { %v8477_v55 = vcombine.high %v725_v49, %v733_v50  ;;  %v8476_v63 = vcombine.low %v725_v49, %v733_v50  ;;  %v8478_v0 = vcombine.low %v726_v51, %v734_v52  ;;  %v9124_v49 = vld [vmem:[%s13314_s3 + $0x24] ss:$16 sps:$4 sm:$0xff]  }
 0x1da   : > { %3985 = vmatpush1.bf16.msra.mxu0 %v8364_v56  ;;  %4067 = vmatpush1.bf16.msra.mxu1 %v8366_v58  ;;  %v8479_v56 = vcombine.high %v726_v51, %v734_v52  ;;  %v741_v58 = vld [vmem:[%s13312_s1 + $0xe30] sm:$0xff] }
 0x1db   : > { %3986 = vmatprep.subr.bf16.mxu0 %v8381_v59  ;;  %4068 = vmatprep.subr.bf16.mxu1 %v8383_v60  ;;  %v749_v59 = vld [vmem:[%s13312_s1 + $0xe70] sm:$0xff]  ;;  %v803_v60 = vlaneseq }
 0x1dc   : > { %v11439_v4 = vpop.f32.mrb[4].mxu0  ;;  %v11447_v8 = vpop.f32.mrb[4].mxu1  ;;  %v8492_v11 = vcombine.low %v741_v58, %v749_v59  ;;  %v9127_v51 = vld [vmem:[%s13314_s3 + $0x224] ss:$16 sps:$4 sm:$0xff]  }
 0x1dd   : > { %v11449_v9 = vpop.f32.mrb[5].mxu0  ;;  %v11457_v13 = vpop.f32.mrb[5].mxu1  ;;  %v11525_v6 = vshrl.u32 %v803_v60, 7  ;;  %v9139_v60 = vld [vmem:[%s13314_s3 + $0x264] ss:$16 sps:$4 sm:$0xff]  }
 0x1de   : > { %v3686_v14 = vpop.f32.mrb[6].mxu0  ;;  %3987 = vmatpush1.bf16.msra.mxu0 %v8380_v1  ;;  %v3768_v16 = vpop.f32.mrb[6].mxu1  ;;  %4069 = vmatpush1.bf16.msra.mxu1 %v8382_v2  ;;  %v8493_v1 = vcombine.high %v741_v58, %v749_v59  ;;  %v8495_v2 = vcombine.high %v742_v61, %v750_v62  ;;  %v9131_v58 = vld [vmem:[%s13314_s3 + $0x240] ss:$16 sps:$4 sm:$0xff]   ;;  %v9136_v59 = vld [vmem:[%s13314_s3 + $0x64] ss:$16 sps:$4 sm:$0xff]  }
 0x1df   : > { %v3687_v17 = vpop.f32.mrb[7].mxu0  ;;  %3988 = vmatprep.subr.bf16.mxu0 %v8397_v3  ;;  %v3769_v20 = vpop.f32.mrb[7].mxu1  ;;  %4070 = vmatprep.subr.bf16.mxu1 %v8399_v5  ;;  %v757_v3 = vld [vmem:[%s13312_s1 + $0xeb0] sm:$0xff]  ;;  %v8494_v14 = vcombine.low %v742_v61, %v750_v62  ;;  %v8511_v16 = vcombine.high %v758_v7, %v766_v10  ;;  %v11554_v25 = vsub.s32 3, %v11525_v6 }
 0x1e0   : > { %v765_v5 = vld [vmem:[%s13312_s1 + $0xef0] sm:$0xff]  ;;  %v774_v20 = vld [vmem:[%s13312_s1 + $0xf38] sm:$0xff] }
 0x1e1   : > { %v773_v17 = vld [vmem:[%s13312_s1 + $0xf30] sm:$0xff]  ;;  %v8508_v26 = vcombine.low %v757_v3, %v765_v5  ;;  %v818_v35 = vrot.slane %v11551_v22, %v11554_v25 }
 0x1e2   : > { %3989 = vmatpush1.bf16.msra.mxu0 %v8396_v15  ;;  %4071 = vmatpush1.bf16.msra.mxu1 %v8398_v18  ;;  %v8509_v15 = vcombine.high %v757_v3, %v765_v5  ;;  %v781_v18 = vld [vmem:[%s13312_s1 + $0xf70] sm:$0xff] }
 0x1e3   : > { %3990 = vmatprep.subr.bf16.mxu0 %v8413_v19  ;;  %4072 = vmatprep.subr.bf16.mxu1 %v8415_v21  ;;  %v11540_v19 = vsub.s32 1, %v11525_v6  ;;  %v782_v21 = vld [vmem:[%s13312_s1 + $0xf78] sm:$0xff]  ;;  %v9063_v43 = vadd.f32 %v11057_v40, %v818_v35  ;;  %v9119_v40 = vld [vmem:[%s13314_s3 + $0x200] ss:$16 sps:$4 sm:$0xff]   ;;  %v9148_v3 = vld [vmem:[%s13314_s3 + $0xa4] ss:$16 sps:$4 sm:$0xff]  }
 0x1e4   : > { %v9134_v61 = vld [vmem:[%s13314_s3 + $0x60] ss:$16 sps:$4 sm:$0xff]   ;;  %v9151_v5 = vld [vmem:[%s13314_s3 + $0x2a4] ss:$16 sps:$4 sm:$0xff]  }
 0x1e5   : > { %v810_v31 = vrot.slane %v11551_v22, %v11540_v19  ;;  %v9137_v62 = vld [vmem:[%s13314_s3 + $0x260] ss:$16 sps:$4 sm:$0xff]   ;;  %v9181_v35 = vld [vmem:[%s13314_s3 + $0x344] ss:$16 sps:$4 sm:$0xff]  }
 0x1e6   : > { %3991 = vmatpush1.bf16.msra.mxu0 %v8412_v28  ;;  %4073 = vmatpush1.bf16.msra.mxu1 %v8414_v29  ;;  %v8525_v28 = vcombine.high %v773_v17, %v781_v18  ;;  %v8527_v29 = vcombine.high %v774_v20, %v782_v21  ;;  %v9146_v7 = vld [vmem:[%s13314_s3 + $0xa0] ss:$16 sps:$4 sm:$0xff]  }
 0x1e7   : > { %3992 = vmatprep.subr.bf16.mxu0 %v8429_v30  ;;  %4074 = vmatprep.subr.bf16.mxu1 %v8431_v57  ;;  %v789_v30 = vld [vmem:[%s13312_s1 + $0xfb0] sm:$0xff]  ;;  %v9061_v42 = vadd.f32 %v11049_v37, %v810_v31 }
 0x1e8   : > { %v797_v57 = vld [vmem:[%s13312_s1 + $0xff0] sm:$0xff] }
 0x1e9   : > { %v8540_v44 = vcombine.low %v789_v30, %v797_v57  ;;  %v9116_v37 = vld [vmem:[%s13314_s3] ss:$16 sps:$4 sm:$0xff]  }
 0x1ea   : > { %3993 = vmatpush1.bf16.msra.mxu0 %v8428_v38  ;;  %4075 = vmatpush1.bf16.msra.mxu1 %v8430_v12  ;;  %v8524_v38 = vcombine.low %v773_v17, %v781_v18  ;;  %v8526_v12 = vcombine.low %v774_v20, %v782_v21  ;;  %v9149_v10 = vld [vmem:[%s13314_s3 + $0x2a0] ss:$16 sps:$4 sm:$0xff]   ;;  %v9160_v17 = vld [vmem:[%s13314_s3 + $0xe4] ss:$16 sps:$4 sm:$0xff]  }
 0x1eb   : > { %3994 = vmatprep.subr.bf16.mxu0 %v8445_v39  ;;  %4076 = vmatprep.subr.bf16.mxu1 %v8447_v41  ;;  %v8541_v39 = vcombine.high %v789_v30, %v797_v57  ;;  %v8543_v41 = vcombine.high %v790_v33, %v798_v34  ;;  %v9163_v18 = vld [vmem:[%s13314_s3 + $0x2e4] ss:$16 sps:$4 sm:$0xff]   ;;  %v9158_v20 = vld [vmem:[%s13314_s3 + $0xe0] ss:$16 sps:$4 sm:$0xff]  }
 0x1ec   : > { %v9161_v21 = vld [vmem:[%s13314_s3 + $0x2e0] ss:$16 sps:$4 sm:$0xff]   ;;  %v9172_v30 = vld [vmem:[%s13314_s3 + $0x124] ss:$16 sps:$4 sm:$0xff]  }
 0x1ed   : > { %v9175_v57 = vld [vmem:[%s13314_s3 + $0x324] ss:$16 sps:$4 sm:$0xff]   ;;  %v9170_v31 = vld [vmem:[%s13314_s3 + $0x120] ss:$16 sps:$4 sm:$0xff]  }
 0x1ee   : > { %3995 = vmatpush1.bf16.msra.mxu0 %v8444_v46  ;;  %4077 = vmatpush1.bf16.msra.mxu1 %v8446_v24  ;;  %v9118_v46 = vld [vmem:[%s13314_s3 + $0x4] ss:$16 sps:$4 sm:$0xff]   ;;  %v9173_v33 = vld [vmem:[%s13314_s3 + $0x320] ss:$16 sps:$4 sm:$0xff]  }
 0x1ef   : > { %3996 = vmatprep.subr.bf16.mxu0 %v8461_v47  ;;  %4078 = vmatprep.subr.bf16.mxu1 %v8463_v48  ;;  %v9121_v24 = vld [vmem:[%s13314_s3 + $0x204] ss:$16 sps:$4 sm:$0xff]   ;;  %v4100_v47 = vmax.f32 %v9061_v42, 0.0  ;;  %v4102_v48 = vmax.f32 %v9063_v43, 0.0  ;;  %v9182_v42 = vld [vmem:[%s13314_s3 + $0x160] ss:$16 sps:$4 sm:$0xff]  }
 0x1f0   : > { %v9178_v34 = vld [vmem:[%s13314_s3 + $0x144] ss:$16 sps:$4 sm:$0xff]   ;;  %v9185_v43 = vld [vmem:[%s13314_s3 + $0x360] ss:$16 sps:$4 sm:$0xff]  }
 0x1f1   : > { %v11589_v50 = vpack.c.bf16 %v4100_v47, %v4100_v47  ;;  %v11595_v52 = vpack.c.bf16 %v4102_v48, %v4102_v48  ;;  %v9191_v47 = vld [vmem:[%s13314_s3 + $0x380] ss:$16 sps:$4 sm:$0xff]   ;;  %v9196_v48 = vld [vmem:[%s13314_s3 + $0x1a4] ss:$16 sps:$4 sm:$0xff]  }
 0x1f2   : > { %3997 = vmatpush1.bf16.msra.mxu0 %v8460_v53  ;;  %4079 = vmatpush1.bf16.msra.mxu1 %v8462_v54  ;;  %v9122_v53 = vld [vmem:[%s13314_s3 + $0x20] ss:$16 sps:$4 sm:$0xff]  }
 0x1f3   : > { %3998 = vmatprep.subr.bf16.mxu0 %v8477_v55  ;;  %4080 = vmatprep.subr.bf16.mxu1 %v8479_v56  ;;  %v9125_v54 = vld [vmem:[%s13314_s3 + $0x220] ss:$16 sps:$4 sm:$0xff]   ;;  %v9130_v55 = vld [vmem:[%s13314_s3 + $0x44] ss:$16 sps:$4 sm:$0xff]  }
 0x1f4   : > { %v9128_v56 = vld [vmem:[%s13314_s3 + $0x40] ss:$16 sps:$4 sm:$0xff]  }
 0x1f6   : > { %3999 = vmatpush1.bf16.msra.mxu0 %v8476_v63  ;;  %4081 = vmatpush1.bf16.msra.mxu1 %v8478_v0  ;;  %v9142_v63 = vld [vmem:[%s13314_s3 + $0x84] ss:$16 sps:$4 sm:$0xff]  }
 0x1f7   : > { %4000 = vmatprep.subr.bf16.mxu0 %v8493_v1  ;;  %4082 = vmatprep.subr.bf16.mxu1 %v8495_v2  ;;  %v9145_v0 = vld [vmem:[%s13314_s3 + $0x284] ss:$16 sps:$4 sm:$0xff]   ;;  %v9140_v1 = vld [vmem:[%s13314_s3 + $0x80] ss:$16 sps:$4 sm:$0xff]  }
 0x1f8   : > { %v9143_v2 = vld [vmem:[%s13314_s3 + $0x280] ss:$16 sps:$4 sm:$0xff]  }
 0x1fa   : > { %4001 = vmatpush1.bf16.msra.mxu0 %v8492_v11  ;;  %4083 = vmatpush1.bf16.msra.mxu1 %v8494_v14  ;;  %v9154_v11 = vld [vmem:[%s13314_s3 + $0xc4] ss:$16 sps:$4 sm:$0xff]  }
 0x1fb   : > { %4002 = vmatprep.subr.bf16.mxu0 %v8509_v15  ;;  %4084 = vmatprep.subr.bf16.mxu1 %v8511_v16  ;;  %v9157_v14 = vld [vmem:[%s13314_s3 + $0x2c4] ss:$16 sps:$4 sm:$0xff]   ;;  %v9152_v15 = vld [vmem:[%s13314_s3 + $0xc0] ss:$16 sps:$4 sm:$0xff]  }
 0x1fc   : > { %v9155_v16 = vld [vmem:[%s13314_s3 + $0x2c0] ss:$16 sps:$4 sm:$0xff]  }
 0x1fe   : > { %4003 = vmatpush1.bf16.msra.mxu0 %v8508_v26  ;;  %4085 = vmatpush1.bf16.msra.mxu1 %v8510_v27  ;;  %v9166_v26 = vld [vmem:[%s13314_s3 + $0x104] ss:$16 sps:$4 sm:$0xff]  }
 0x1ff   : > { %4004 = vmatprep.subr.bf16.mxu0 %v8525_v28  ;;  %4086 = vmatprep.subr.bf16.mxu1 %v8527_v29  ;;  %v9169_v27 = vld [vmem:[%s13314_s3 + $0x304] ss:$16 sps:$4 sm:$0xff]   ;;  %v9164_v28 = vld [vmem:[%s13314_s3 + $0x100] ss:$16 sps:$4 sm:$0xff]  }
 0x200   : > { %v9167_v29 = vld [vmem:[%s13314_s3 + $0x300] ss:$16 sps:$4 sm:$0xff]  }
 0x202   : > { %4005 = vmatpush1.bf16.msra.mxu0 %v8524_v38  ;;  %4087 = vmatpush1.bf16.msra.mxu1 %v8526_v12  ;;  %v9176_v38 = vld [vmem:[%s13314_s3 + $0x140] ss:$16 sps:$4 sm:$0xff]  }
 0x203   : > { %4006 = vmatprep.subr.bf16.mxu0 %v8541_v39  ;;  %4088 = vmatprep.subr.bf16.mxu1 %v8543_v41  ;;  %v9179_v12 = vld [vmem:[%s13314_s3 + $0x340] ss:$16 sps:$4 sm:$0xff]   ;;  %v9184_v39 = vld [vmem:[%s13314_s3 + $0x164] ss:$16 sps:$4 sm:$0xff]  }
 0x204   : > { %v9187_v41 = vld [vmem:[%s13314_s3 + $0x364] ss:$16 sps:$4 sm:$0xff]  }
 0x206   : > { %4007 = vmatpush1.bf16.msra.mxu0 %v8540_v44  ;;  %4089 = vmatpush1.bf16.msra.mxu1 %v8542_v45  ;;  %v9190_v44 = vld [vmem:[%s13314_s3 + $0x184] ss:$16 sps:$4 sm:$0xff]  }
 0x207   : > { %7225 = vmatprep.subr.bf16.mxu0 %v9118_v46  ;;  %7266 = vmatprep.subr.bf16.mxu1 %v9121_v24  ;;  %v9193_v45 = vld [vmem:[%s13314_s3 + $0x384] ss:$16 sps:$4 sm:$0xff]   ;;  %v9188_v46 = vld [vmem:[%s13314_s3 + $0x180] ss:$16 sps:$4 sm:$0xff]   ;;  %v11736_v24 = vsub.s32 0, %v11525_v6 }
 0x209   : > { %4009 = vmatmul.mubr.bf16.vlgmr.msra.gmra.mrb[12].mxu0 %v10385_v23  ;;  %4091 = vmatmul.mubr.bf16.vlgmr.msra.gmra.mrb[12].mxu1 %v10385_v23  ;;  %v9133_v23 = vld [vmem:[%s13314_s3 + $0x244] ss:$16 sps:$4 sm:$0xff]  }
 0x20a   : > { %7226 = vmatpush1.bf16.msra.mxu0 %v9116_v37  ;;  %7257 = vmatprep.mubr.bf16.mxu0 %v11589_v50  ;;  %v11745_v37 = vsub.s32 2, %v11525_v6 }
 0x20b   : > { %7267 = vmatpush1.bf16.msra.mxu1 %v9119_v40  ;;  %7298 = vmatprep.mubr.bf16.mxu1 %v11595_v52  ;;  %v9199_v40 = vld [vmem:[%s13314_s3 + $0x3a4] ss:$16 sps:$4 sm:$0xff]  }
 0x20c   : > { %7227 = vmatprep.subr.bf16.mxu0 %v9124_v49  ;;  %7268 = vmatprep.subr.bf16.mxu1 %v9127_v51  ;;  %v825_v49 = vsub.s32 5, %v11525_v6  ;;  %v833_v51 = vsub.s32 7, %v11525_v6 }
 0x20e   : > { %7228 = vmatpush1.bf16.msra.mxu0 %v9122_v53  ;;  %v9194_v53 = vld [vmem:[%s13314_s3 + $0x1a0] ss:$16 sps:$4 sm:$0xff]  }
 0x20f   : > { %7269 = vmatpush1.bf16.msra.mxu1 %v9125_v54  ;;  %7229 = vmatprep.subr.bf16.mxu0 %v9130_v55  ;;  %v806_v54 = vrot.slane %v11551_v22, %v11736_v24  ;;  %v9197_v55 = vld [vmem:[%s13314_s3 + $0x3a0] ss:$16 sps:$4 sm:$0xff]  }
 0x210   : > { %7270 = vmatprep.subr.bf16.mxu1 %v9133_v23  ;;  %v9202_v23 = vld [vmem:[%s13314_s3 + $0x1c4] ss:$16 sps:$4 sm:$0xff]  }
 0x212   : > { %7230 = vmatpush1.bf16.msra.mxu0 %v9128_v56  ;;  %v814_v56 = vrot.slane %v11551_v22, %v11745_v37 }
 0x213   : > { %7271 = vmatpush1.bf16.msra.mxu1 %v9131_v58  ;;  %7231 = vmatprep.subr.bf16.mxu0 %v9136_v59  ;;  %v9205_v58 = vld [vmem:[%s13314_s3 + $0x3c4] ss:$16 sps:$4 sm:$0xff]   ;;  %v826_v59 = vrot.slane %v11551_v22, %v825_v49 }
 0x214   : > { %7272 = vmatprep.subr.bf16.mxu1 %v9139_v60  ;;  %v834_v60 = vrot.slane %v11551_v22, %v833_v51 }
 0x216   : > { %7232 = vmatpush1.bf16.msra.mxu0 %v9134_v61  ;;  %v9200_v61 = vld [vmem:[%s13314_s3 + $0x1c0] ss:$16 sps:$4 sm:$0xff]  }
 0x217   : > { %7273 = vmatpush1.bf16.msra.mxu1 %v9137_v62  ;;  %7233 = vmatprep.subr.bf16.mxu0 %v9142_v63  ;;  %v9060_v62 = vadd.f32 %v11039_v32, %v806_v54  ;;  %v9203_v63 = vld [vmem:[%s13314_s3 + $0x3c0] ss:$16 sps:$4 sm:$0xff]   ;;  %v9067_v32 = vadd.f32 %v11457_v13, %v834_v60 }
 0x218   : > { %7274 = vmatprep.subr.bf16.mxu1 %v9145_v0  ;;  %v9208_v0 = vld [vmem:[%s13314_s3 + $0x1e4] ss:$16 sps:$4 sm:$0xff]  }
 0x21a   : > { %7234 = vmatpush1.bf16.msra.mxu0 %v9140_v1  ;;  %v9062_v1 = vadd.f32 %v11047_v36, %v814_v56  ;;  %v9209_v36 = vld [vmem:[%s13314_s3 + $0x3e0] ss:$16 sps:$4 sm:$0xff]  }
 0x21b   : > { %7275 = vmatpush1.bf16.msra.mxu1 %v9143_v2  ;;  %7235 = vmatprep.subr.bf16.mxu0 %v9148_v3  ;;  %v9211_v2 = vld [vmem:[%s13314_s3 + $0x3e4] ss:$16 sps:$4 sm:$0xff]   ;;  %v9065_v3 = vadd.f32 %v11449_v9, %v826_v59 }
 0x21c   : > { %7276 = vmatprep.subr.bf16.mxu1 %v9151_v5  ;;  %v9206_v5 = vld [vmem:[%s13314_s3 + $0x1e0] ss:$16 sps:$4 sm:$0xff]   ;;  %v9217_v9 = vld [vmem:[%s13314_s3 + $0x604] ss:$16 sps:$4 sm:$0xff]  }
 0x21d   : > { %v4104_v13 = vmax.f32 %v9065_v3, 0.0  ;;  %v9262_v3 = vld [vmem:[%s13314_s3 + $0x504] ss:$16 sps:$4 sm:$0xff]  }
 0x21e   : > { %7236 = vmatpush1.bf16.msra.mxu0 %v9146_v7  ;;  %v4099_v7 = vmax.f32 %v9060_v62, 0.0  ;;  %v9256_v62 = vld [vmem:[%s13314_s3 + $0x4e4] ss:$16 sps:$4 sm:$0xff]  }
 0x21f   : > { %7277 = vmatpush1.bf16.msra.mxu1 %v9149_v10  ;;  %7237 = vmatprep.subr.bf16.mxu0 %v9154_v11  ;;  %v9214_v10 = vld [vmem:[%s13314_s3 + $0x404] ss:$16 sps:$4 sm:$0xff]   ;;  %v4101_v11 = vmax.f32 %v9062_v1, 0.0  ;;  %v9254_v1 = vld [vmem:[%s13314_s3 + $0x4e0] ss:$16 sps:$4 sm:$0xff]  }
 0x220   : > { %7278 = vmatprep.subr.bf16.mxu1 %v9157_v14  ;;  %v4106_v14 = vmax.f32 %v9067_v32, 0.0  ;;  %v9265_v32 = vld [vmem:[%s13314_s3 + $0x704] ss:$16 sps:$4 sm:$0xff]  }
 0x222   : > { %7238 = vmatpush1.bf16.msra.mxu0 %v9152_v15  ;;  %v9212_v15 = vld [vmem:[%s13314_s3 + $0x400] ss:$16 sps:$4 sm:$0xff]  }
 0x223   : > { %7279 = vmatpush1.bf16.msra.mxu1 %v9155_v16  ;;  %7239 = vmatprep.subr.bf16.mxu0 %v9160_v17  ;;  %v11805_v16 = vpack.c.bf16 %v4099_v7, %v4099_v7  ;;  %v9215_v17 = vld [vmem:[%s13314_s3 + $0x600] ss:$16 sps:$4 sm:$0xff]  }
 0x224   : > { %7280 = vmatprep.subr.bf16.mxu1 %v9163_v18  ;;  %v11810_v18 = vpack.c.bf16 %v4101_v11, %v4101_v11  ;;  %v9263_v7 = vld [vmem:[%s13314_s3 + $0x700] ss:$16 sps:$4 sm:$0xff]  }
 0x225   : > { %v9266_v11 = vld [vmem:[%s13314_s3 + $0x520] ss:$16 sps:$4 sm:$0xff]  }
 0x226   : > { %7240 = vmatpush1.bf16.msra.mxu0 %v9158_v20  ;;  %v9220_v20 = vld [vmem:[%s13314_s3 + $0x424] ss:$16 sps:$4 sm:$0xff]  }
 0x227   : > { %7281 = vmatpush1.bf16.msra.mxu1 %v9161_v21  ;;  %7241 = vmatprep.subr.bf16.mxu0 %v9166_v26  ;;  %v11815_v21 = vpack.c.bf16 %v4104_v13, %v4104_v13  ;;  %v9223_v26 = vld [vmem:[%s13314_s3 + $0x624] ss:$16 sps:$4 sm:$0xff]  }
 0x228   : > { %7282 = vmatprep.subr.bf16.mxu1 %v9169_v27  ;;  %v11821_v27 = vpack.c.bf16 %v4106_v14, %v4106_v14  ;;  %v9274_v13 = vld [vmem:[%s13314_s3 + $0x544] ss:$16 sps:$4 sm:$0xff]  }
 0x229   : > { %v9277_v14 = vld [vmem:[%s13314_s3 + $0x744] ss:$16 sps:$4 sm:$0xff]  }
 0x22a   : > { %7242 = vmatpush1.bf16.msra.mxu0 %v9164_v28  ;;  %v9218_v28 = vld [vmem:[%s13314_s3 + $0x420] ss:$16 sps:$4 sm:$0xff]  }
 0x22b   : > { %7283 = vmatpush1.bf16.msra.mxu1 %v9167_v29  ;;  %7243 = vmatprep.subr.bf16.mxu0 %v9172_v30  ;;  %v9221_v29 = vld [vmem:[%s13314_s3 + $0x620] ss:$16 sps:$4 sm:$0xff]   ;;  %v9226_v30 = vld [vmem:[%s13314_s3 + $0x444] ss:$16 sps:$4 sm:$0xff]  }
 0x22c   : > { %7284 = vmatprep.subr.bf16.mxu1 %v9175_v57  ;;  %v9229_v57 = vld [vmem:[%s13314_s3 + $0x644] ss:$16 sps:$4 sm:$0xff]  }
 0x22e   : > { %7244 = vmatpush1.bf16.msra.mxu0 %v9170_v31  ;;  %v9224_v31 = vld [vmem:[%s13314_s3 + $0x440] ss:$16 sps:$4 sm:$0xff]  }
 0x22f   : > { %7285 = vmatpush1.bf16.msra.mxu1 %v9173_v33  ;;  %7245 = vmatprep.subr.bf16.mxu0 %v9178_v34  ;;  %v9227_v33 = vld [vmem:[%s13314_s3 + $0x640] ss:$16 sps:$4 sm:$0xff]   ;;  %v9232_v34 = vld [vmem:[%s13314_s3 + $0x464] ss:$16 sps:$4 sm:$0xff]  }
 0x230   : > { %7286 = vmatprep.subr.bf16.mxu1 %v9181_v35  ;;  %v9235_v35 = vld [vmem:[%s13314_s3 + $0x664] ss:$16 sps:$4 sm:$0xff]  }
 0x232   : > { %7246 = vmatpush1.bf16.msra.mxu0 %v9176_v38  ;;  %v9230_v38 = vld [vmem:[%s13314_s3 + $0x460] ss:$16 sps:$4 sm:$0xff]  }
 0x233   : > { %7287 = vmatpush1.bf16.msra.mxu1 %v9179_v12  ;;  %7247 = vmatprep.subr.bf16.mxu0 %v9184_v39  ;;  %v9233_v12 = vld [vmem:[%s13314_s3 + $0x660] ss:$16 sps:$4 sm:$0xff]   ;;  %v9238_v39 = vld [vmem:[%s13314_s3 + $0x484] ss:$16 sps:$4 sm:$0xff]  }
 0x234   : > { %7288 = vmatprep.subr.bf16.mxu1 %v9187_v41  ;;  %v9241_v41 = vld [vmem:[%s13314_s3 + $0x684] ss:$16 sps:$4 sm:$0xff]  }
 0x236   : > { %7248 = vmatpush1.bf16.msra.mxu0 %v9182_v42  ;;  %v9236_v42 = vld [vmem:[%s13314_s3 + $0x480] ss:$16 sps:$4 sm:$0xff]  }
 0x237   : > { %7289 = vmatpush1.bf16.msra.mxu1 %v9185_v43  ;;  %7249 = vmatprep.subr.bf16.mxu0 %v9190_v44  ;;  %v9239_v43 = vld [vmem:[%s13314_s3 + $0x680] ss:$16 sps:$4 sm:$0xff]   ;;  %v9244_v44 = vld [vmem:[%s13314_s3 + $0x4a4] ss:$16 sps:$4 sm:$0xff]  }
 0x238   : > { %7290 = vmatprep.subr.bf16.mxu1 %v9193_v45  ;;  %v9247_v45 = vld [vmem:[%s13314_s3 + $0x6a4] ss:$16 sps:$4 sm:$0xff]  }
 0x23a   : > { %7250 = vmatpush1.bf16.msra.mxu0 %v9188_v46  ;;  %v9242_v46 = vld [vmem:[%s13314_s3 + $0x4a0] ss:$16 sps:$4 sm:$0xff]  }
 0x23b   : > { %7291 = vmatpush1.bf16.msra.mxu1 %v9191_v47  ;;  %7251 = vmatprep.subr.bf16.mxu0 %v9196_v48  ;;  %v9245_v47 = vld [vmem:[%s13314_s3 + $0x6a0] ss:$16 sps:$4 sm:$0xff]   ;;  %v9250_v48 = vld [vmem:[%s13314_s3 + $0x4c4] ss:$16 sps:$4 sm:$0xff]  }
 0x23c   : > { %7292 = vmatprep.subr.bf16.mxu1 %v9199_v40 }
 0x23e   : > { %7252 = vmatpush1.bf16.msra.mxu0 %v9194_v53  ;;  %v9253_v53 = vld [vmem:[%s13314_s3 + $0x6c4] ss:$16 sps:$4 sm:$0xff]  }
 0x23f   : > { %7293 = vmatpush1.bf16.msra.mxu1 %v9197_v55  ;;  %7253 = vmatprep.subr.bf16.mxu0 %v9202_v23 }
 0x240   : > { %7294 = vmatprep.subr.bf16.mxu1 %v9205_v58  ;;  %v9248_v58 = vld [vmem:[%s13314_s3 + $0x4c0] ss:$16 sps:$4 sm:$0xff]  }
 0x242   : > { %7254 = vmatpush1.bf16.msra.mxu0 %v9200_v61  ;;  %v9251_v61 = vld [vmem:[%s13314_s3 + $0x6c0] ss:$16 sps:$4 sm:$0xff]  }
 0x243   : > { %7295 = vmatpush1.bf16.msra.mxu1 %v9203_v63  ;;  %7255 = vmatprep.subr.bf16.mxu0 %v9208_v0  ;;  %v9259_v0 = vld [vmem:[%s13314_s3 + $0x6e4] ss:$16 sps:$4 sm:$0xff]  }
 0x244   : > { %7296 = vmatprep.subr.bf16.mxu1 %v9211_v2  ;;  %v9257_v2 = vld [vmem:[%s13314_s3 + $0x6e0] ss:$16 sps:$4 sm:$0xff]  }
 0x246   : > { %7256 = vmatpush1.bf16.msra.mxu0 %v9206_v5  ;;  %v9260_v5 = vld [vmem:[%s13314_s3 + $0x500] ss:$16 sps:$4 sm:$0xff]  }
 0x247   : > { %7297 = vmatpush1.bf16.msra.mxu1 %v9209_v36  ;;  %7307 = vmatprep.subr.bf16.mxu0 %v9214_v10  ;;  %v9268_v36 = vld [vmem:[%s13314_s3 + $0x524] ss:$16 sps:$4 sm:$0xff]  }
 0x248   : > { %7348 = vmatprep.subr.bf16.mxu1 %v9217_v9  ;;  %v9271_v10 = vld [vmem:[%s13314_s3 + $0x724] ss:$16 sps:$4 sm:$0xff]   ;;  %v9269_v9 = vld [vmem:[%s13314_s3 + $0x720] ss:$16 sps:$4 sm:$0xff]  }
 0x249   : > { %7258 = vmatmul.mubr.bf16.vlgmr.msra.gmra.mrb[16].mxu0 %v11805_v16 }
 0x24a   : > { %7299 = vmatmul.mubr.bf16.vlgmr.msra.gmra.mrb[16].mxu1 %v11810_v18  ;;  %7308 = vmatpush1.bf16.msra.mxu0 %v9212_v15  ;;  %v9272_v15 = vld [vmem:[%s13314_s3 + $0x540] ss:$16 sps:$4 sm:$0xff]  }
 0x24b   : > { %7339 = vmatprep.mubr.bf16.mxu0 %v11815_v21  ;;  %7349 = vmatpush1.bf16.msra.mxu1 %v9215_v17  ;;  %v9275_v17 = vld [vmem:[%s13314_s3 + $0x740] ss:$16 sps:$4 sm:$0xff]  }
 0x24c   : > { %7380 = vmatprep.mubr.bf16.mxu1 %v11821_v27  ;;  %7309 = vmatprep.subr.bf16.mxu0 %v9220_v20  ;;  %v9280_v20 = vld [vmem:[%s13314_s3 + $0x564] ss:$16 sps:$4 sm:$0xff]  }
 0x24d   : > { %7350 = vmatprep.subr.bf16.mxu1 %v9223_v26  ;;  %v9283_v26 = vld [vmem:[%s13314_s3 + $0x764] ss:$16 sps:$4 sm:$0xff]  }
 0x24e   : > { %7310 = vmatpush1.bf16.msra.mxu0 %v9218_v28  ;;  %v9278_v28 = vld [vmem:[%s13314_s3 + $0x560] ss:$16 sps:$4 sm:$0xff]  }
 0x24f   : > { %7351 = vmatpush1.bf16.msra.mxu1 %v9221_v29  ;;  %7311 = vmatprep.subr.bf16.mxu0 %v9226_v30  ;;  %v9281_v29 = vld [vmem:[%s13314_s3 + $0x760] ss:$16 sps:$4 sm:$0xff]   ;;  %v9286_v30 = vld [vmem:[%s13314_s3 + $0x584] ss:$16 sps:$4 sm:$0xff]  }
 0x250   : > { %7352 = vmatprep.subr.bf16.mxu1 %v9229_v57  ;;  %v9289_v57 = vld [vmem:[%s13314_s3 + $0x784] ss:$16 sps:$4 sm:$0xff]  }
 0x252   : > { %7312 = vmatpush1.bf16.msra.mxu0 %v9224_v31  ;;  %v9284_v31 = vld [vmem:[%s13314_s3 + $0x580] ss:$16 sps:$4 sm:$0xff]  }
 0x253   : > { %7353 = vmatpush1.bf16.msra.mxu1 %v9227_v33  ;;  %7313 = vmatprep.subr.bf16.mxu0 %v9232_v34  ;;  %v821_v33 = vsub.s32 4, %v11525_v6  ;;  %v9287_v34 = vld [vmem:[%s13314_s3 + $0x780] ss:$16 sps:$4 sm:$0xff]  }
 0x254   : > { %7354 = vmatprep.subr.bf16.mxu1 %v9235_v35  ;;  %v9292_v35 = vld [vmem:[%s13314_s3 + $0x5a4] ss:$16 sps:$4 sm:$0xff]  }
 0x256   : > { %7314 = vmatpush1.bf16.msra.mxu0 %v9230_v38  ;;  %v829_v38 = vsub.s32 6, %v11525_v6  ;;  %v9491_v6 = vld [vmem:[%s13314_s3 + $0xfc0] ss:$16 sps:$4 sm:$0xff]  }
 0x257   : > { %7355 = vmatpush1.bf16.msra.mxu1 %v9233_v12  ;;  %7315 = vmatprep.subr.bf16.mxu0 %v9238_v39  ;;  %v9295_v12 = vld [vmem:[%s13314_s3 + $0x7a4] ss:$16 sps:$4 sm:$0xff]   ;;  %v11983_v39 = vld [vmem:[%s13313_s2 + $0x8] sm:$0xff] }
 0x258   : > { %7356 = vmatprep.subr.bf16.mxu1 %v9241_v41  ;;  %v9290_v41 = vld [vmem:[%s13314_s3 + $0x5a0] ss:$16 sps:$4 sm:$0xff]  }
 0x25a   : > { %7316 = vmatpush1.bf16.msra.mxu0 %v9236_v42  ;;  %v822_v42 = vrot.slane %v11551_v22, %v821_v33 }
 0x25b   : > { %7357 = vmatpush1.bf16.msra.mxu1 %v9239_v43  ;;  %7317 = vmatprep.subr.bf16.mxu0 %v9244_v44  ;;  %v9293_v43 = vld [vmem:[%s13314_s3 + $0x7a0] ss:$16 sps:$4 sm:$0xff]   ;;  %v9298_v44 = vld [vmem:[%s13314_s3 + $0x5c4] ss:$16 sps:$4 sm:$0xff]  }
 0x25c   : > { %v11883_v40 = vpop.f32.mrb[8].mxu0  ;;  %7358 = vmatprep.subr.bf16.mxu1 %v9247_v45  ;;  %v11888_v54 = vpop.f32.mrb[8].mxu1  ;;  %v830_v45 = vrot.slane %v11551_v22, %v829_v38  ;;  %v9299_v22 = vld [vmem:[%s13314_s3 + $0x7c0] ss:$16 sps:$4 sm:$0xff]  }
 0x25d   : > { %v11890_v55 = vpop.f32.mrb[9].mxu0  ;;  %v11892_v23 = vpop.f32.mrb[9].mxu1 }
 0x25e   : > { %v3850_v56 = vpop.f32.mrb[10].mxu0  ;;  %7318 = vmatpush1.bf16.msra.mxu0 %v9242_v46  ;;  %v3932_v59 = vpop.f32.mrb[10].mxu1  ;;  %v9301_v46 = vld [vmem:[%s13314_s3 + $0x7c4] ss:$16 sps:$4 sm:$0xff]  }
 0x25f   : > { %7359 = vmatpush1.bf16.msra.mxu1 %v9245_v47  ;;  %v3851_v60 = vpop.f32.mrb[11].mxu0  ;;  %7319 = vmatprep.subr.bf16.mxu0 %v9250_v48  ;;  %v3933_v63 = vpop.f32.mrb[11].mxu1  ;;  %v842_v47 = vrot.slane %v11983_v39, %v11540_v19  ;;  %v850_v48 = vrot.slane %v11983_v39, %v11554_v25  ;;  %v9064_v56 = vadd.f32 %v11439_v4, %v822_v42  ;;  %v9343_v42 = vld [vmem:[%s13314_s3 + $0xaa4] ss:$16 sps:$4 sm:$0xff]  }
 0x260   : > { %7360 = vmatprep.subr.bf16.mxu1 %v9253_v53  ;;  %v9296_v53 = vld [vmem:[%s13314_s3 + $0x5c0] ss:$16 sps:$4 sm:$0xff]   ;;  %v9066_v59 = vadd.f32 %v11447_v8, %v830_v45  ;;  %v9307_v60 = vld [vmem:[%s13314_s3 + $0x7e4] ss:$16 sps:$4 sm:$0xff]  }
 0x261   : > { %v9071_v4 = vadd.f32 %v11892_v23, %v850_v48  ;;  %v4103_v63 = vmax.f32 %v9064_v56, 0.0  ;;  %v9305_v8 = vld [vmem:[%s13314_s3 + $0x7e0] ss:$16 sps:$4 sm:$0xff]   ;;  %v9346_v45 = vld [vmem:[%s13314_s3 + $0x8c4] ss:$16 sps:$4 sm:$0xff]  }
 0x262   : > { %7320 = vmatpush1.bf16.msra.mxu0 %v9248_v58  ;;  %v9304_v58 = vld [vmem:[%s13314_s3 + $0x5e4] ss:$16 sps:$4 sm:$0xff]   ;;  %v9347_v48 = vld [vmem:[%s13314_s3 + $0xac0] ss:$16 sps:$4 sm:$0xff]  }
 0x263   : > { %7361 = vmatpush1.bf16.msra.mxu1 %v9251_v61  ;;  %7321 = vmatprep.subr.bf16.mxu0 %v9256_v62  ;;  %v9069_v61 = vadd.f32 %v11890_v55, %v842_v47  ;;  %v9302_v62 = vld [vmem:[%s13314_s3 + $0x5e0] ss:$16 sps:$4 sm:$0xff]   ;;  %v9313_v55 = vld [vmem:[%s13314_s3 + $0xa04] ss:$16 sps:$4 sm:$0xff]  }
 0x264   : > { %7362 = vmatprep.subr.bf16.mxu1 %v9259_v0  ;;  %v9310_v0 = vld [vmem:[%s13314_s3 + $0x804] ss:$16 sps:$4 sm:$0xff]   ;;  %v9344_v47 = vld [vmem:[%s13314_s3 + $0x8c0] ss:$16 sps:$4 sm:$0xff]  }
 0x265   : > { %v4108_v23 = vmax.f32 %v9069_v61, 0.0  ;;  %v9355_v56 = vld [vmem:[%s13314_s3 + $0xae4] ss:$16 sps:$4 sm:$0xff]   ;;  %v9356_v61 = vld [vmem:[%s13314_s3 + $0x900] ss:$16 sps:$4 sm:$0xff]  }
 0x266   : > { %7322 = vmatpush1.bf16.msra.mxu0 %v9254_v1  ;;  %v4105_v1 = vmax.f32 %v9066_v59, 0.0  ;;  %v9358_v59 = vld [vmem:[%s13314_s3 + $0x904] ss:$16 sps:$4 sm:$0xff]  }
 0x267   : > { %7363 = vmatpush1.bf16.msra.mxu1 %v9257_v2  ;;  %7323 = vmatprep.subr.bf16.mxu0 %v9262_v3  ;;  %v4110_v2 = vmax.f32 %v9071_v4, 0.0  ;;  %v9308_v3 = vld [vmem:[%s13314_s3 + $0x800] ss:$16 sps:$4 sm:$0xff]  }
 0x268   : > { %7364 = vmatprep.subr.bf16.mxu1 %v9265_v32  ;;  %v12038_v32 = vpack.c.bf16 %v4103_v63, %v4103_v63  ;;  %v9359_v4 = vld [vmem:[%s13314_s3 + $0xb00] ss:$16 sps:$4 sm:$0xff]   ;;  %v9367_v63 = vld [vmem:[%s13314_s3 + $0xb24] ss:$16 sps:$4 sm:$0xff]  }
 0x26a   : > { %7324 = vmatpush1.bf16.msra.mxu0 %v9260_v5  ;;  %v9311_v5 = vld [vmem:[%s13314_s3 + $0xa00] ss:$16 sps:$4 sm:$0xff]  }
 0x26b   : > { %7365 = vmatpush1.bf16.msra.mxu1 %v9263_v7  ;;  %7325 = vmatprep.subr.bf16.mxu0 %v9268_v36  ;;  %v12043_v7 = vpack.c.bf16 %v4105_v1, %v4105_v1  ;;  %v9316_v36 = vld [vmem:[%s13314_s3 + $0x824] ss:$16 sps:$4 sm:$0xff]  }
 0x26c   : > { %7366 = vmatprep.subr.bf16.mxu1 %v9271_v10  ;;  %v12048_v10 = vpack.c.bf16 %v4108_v23, %v4108_v23  ;;  %v9370_v1 = vld [vmem:[%s13314_s3 + $0x944] ss:$16 sps:$4 sm:$0xff]   ;;  %v9368_v23 = vld [vmem:[%s13314_s3 + $0x940] ss:$16 sps:$4 sm:$0xff]  }
 0x26e   : > { %7326 = vmatpush1.bf16.msra.mxu0 %v9266_v11  ;;  %v9319_v11 = vld [vmem:[%s13314_s3 + $0xa24] ss:$16 sps:$4 sm:$0xff]  }
 0x26f   : > { %7367 = vmatpush1.bf16.msra.mxu1 %v9269_v9  ;;  %7327 = vmatprep.subr.bf16.mxu0 %v9274_v13  ;;  %v12054_v9 = vpack.c.bf16 %v4110_v2, %v4110_v2  ;;  %v9314_v13 = vld [vmem:[%s13314_s3 + $0x820] ss:$16 sps:$4 sm:$0xff]  }
 0x270   : > { %7368 = vmatprep.subr.bf16.mxu1 %v9277_v14  ;;  %v9317_v14 = vld [vmem:[%s13314_s3 + $0xa20] ss:$16 sps:$4 sm:$0xff]  }
 0x271   : > { %v9371_v2 = vld [vmem:[%s13314_s3 + $0xb40] ss:$16 sps:$4 sm:$0xff]  }
 0x272   : > { %7328 = vmatpush1.bf16.msra.mxu0 %v9272_v15  ;;  %v9322_v15 = vld [vmem:[%s13314_s3 + $0x844] ss:$16 sps:$4 sm:$0xff]  }
 0x273   : > { %7369 = vmatpush1.bf16.msra.mxu1 %v9275_v17  ;;  %7329 = vmatprep.subr.bf16.mxu0 %v9280_v20  ;;  %v9325_v17 = vld [vmem:[%s13314_s3 + $0xa44] ss:$16 sps:$4 sm:$0xff]   ;;  %v9320_v20 = vld [vmem:[%s13314_s3 + $0x840] ss:$16 sps:$4 sm:$0xff]  }
 0x274   : > { %7370 = vmatprep.subr.bf16.mxu1 %v9283_v26  ;;  %v9323_v26 = vld [vmem:[%s13314_s3 + $0xa40] ss:$16 sps:$4 sm:$0xff]  }
 0x276   : > { %7330 = vmatpush1.bf16.msra.mxu0 %v9278_v28  ;;  %v9328_v28 = vld [vmem:[%s13314_s3 + $0x864] ss:$16 sps:$4 sm:$0xff]  }
 0x277   : > { %7371 = vmatpush1.bf16.msra.mxu1 %v9281_v29  ;;  %7331 = vmatprep.subr.bf16.mxu0 %v9286_v30  ;;  %v9331_v29 = vld [vmem:[%s13314_s3 + $0xa64] ss:$16 sps:$4 sm:$0xff]   ;;  %v9326_v30 = vld [vmem:[%s13314_s3 + $0x860] ss:$16 sps:$4 sm:$0xff]  }
 0x278   : > { %7372 = vmatprep.subr.bf16.mxu1 %v9289_v57  ;;  %v9329_v57 = vld [vmem:[%s13314_s3 + $0xa60] ss:$16 sps:$4 sm:$0xff]  }
 0x27a   : > { %7332 = vmatpush1.bf16.msra.mxu0 %v9284_v31  ;;  %v9334_v31 = vld [vmem:[%s13314_s3 + $0x884] ss:$16 sps:$4 sm:$0xff]  }
 0x27b   : > { %7373 = vmatpush1.bf16.msra.mxu1 %v9287_v34  ;;  %7333 = vmatprep.subr.bf16.mxu0 %v9292_v35  ;;  %v9337_v34 = vld [vmem:[%s13314_s3 + $0xa84] ss:$16 sps:$4 sm:$0xff]   ;;  %v9332_v35 = vld [vmem:[%s13314_s3 + $0x880] ss:$16 sps:$4 sm:$0xff]  }
 0x27c   : > { %7374 = vmatprep.subr.bf16.mxu1 %v9295_v12  ;;  %v9335_v12 = vld [vmem:[%s13314_s3 + $0xa80] ss:$16 sps:$4 sm:$0xff]  }
 0x27e   : > { %7334 = vmatpush1.bf16.msra.mxu0 %v9290_v41  ;;  %v9340_v41 = vld [vmem:[%s13314_s3 + $0x8a4] ss:$16 sps:$4 sm:$0xff]  }
 0x27f   : > { %7375 = vmatpush1.bf16.msra.mxu1 %v9293_v43  ;;  %7335 = vmatprep.subr.bf16.mxu0 %v9298_v44  ;;  %v9338_v43 = vld [vmem:[%s13314_s3 + $0x8a0] ss:$16 sps:$4 sm:$0xff]  }
 0x280   : > { %7376 = vmatprep.subr.bf16.mxu1 %v9301_v46  ;;  %v9341_v44 = vld [vmem:[%s13314_s3 + $0xaa0] ss:$16 sps:$4 sm:$0xff]   ;;  %v9349_v46 = vld [vmem:[%s13314_s3 + $0xac4] ss:$16 sps:$4 sm:$0xff]  }
 0x282   : > { %7336 = vmatpush1.bf16.msra.mxu0 %v9296_v53  ;;  %v9352_v53 = vld [vmem:[%s13314_s3 + $0x8e4] ss:$16 sps:$4 sm:$0xff]  }
 0x283   : > { %7377 = vmatpush1.bf16.msra.mxu1 %v9299_v22  ;;  %7337 = vmatprep.subr.bf16.mxu0 %v9304_v58  ;;  %v9350_v22 = vld [vmem:[%s13314_s3 + $0x8e0] ss:$16 sps:$4 sm:$0xff]  }
 0x284   : > { %7378 = vmatprep.subr.bf16.mxu1 %v9307_v60  ;;  %v9353_v58 = vld [vmem:[%s13314_s3 + $0xae0] ss:$16 sps:$4 sm:$0xff]   ;;  %v9361_v60 = vld [vmem:[%s13314_s3 + $0xb04] ss:$16 sps:$4 sm:$0xff]  }
 0x286   : > { %7338 = vmatpush1.bf16.msra.mxu0 %v9302_v62  ;;  %v9364_v62 = vld [vmem:[%s13314_s3 + $0x924] ss:$16 sps:$4 sm:$0xff]  }
 0x287   : > { %7379 = vmatpush1.bf16.msra.mxu1 %v9305_v8  ;;  %7389 = vmatprep.subr.bf16.mxu0 %v9310_v0  ;;  %v9362_v8 = vld [vmem:[%s13314_s3 + $0x920] ss:$16 sps:$4 sm:$0xff]  }
 0x288   : > { %7430 = vmatprep.subr.bf16.mxu1 %v9313_v55  ;;  %v9365_v0 = vld [vmem:[%s13314_s3 + $0xb20] ss:$16 sps:$4 sm:$0xff]   ;;  %v9373_v55 = vld [vmem:[%s13314_s3 + $0xb44] ss:$16 sps:$4 sm:$0xff]  }
 0x289   : > { %7340 = vmatmul.mubr.bf16.vlgmr.msra.gmra.mrb[20].mxu0 %v12038_v32 }
 0x28a   : > { %7381 = vmatmul.mubr.bf16.vlgmr.msra.gmra.mrb[20].mxu1 %v12043_v7  ;;  %7390 = vmatpush1.bf16.msra.mxu0 %v9308_v3  ;;  %v9376_v3 = vld [vmem:[%s13314_s3 + $0x964] ss:$16 sps:$4 sm:$0xff]  }
 0x28b   : > { %7421 = vmatprep.mubr.bf16.mxu0 %v12048_v10  ;;  %7431 = vmatpush1.bf16.msra.mxu1 %v9311_v5  ;;  %v9379_v5 = vld [vmem:[%s13314_s3 + $0xb64] ss:$16 sps:$4 sm:$0xff]  }
 0x28c   : > { %7462 = vmatprep.mubr.bf16.mxu1 %v12054_v9  ;;  %7391 = vmatprep.subr.bf16.mxu0 %v9316_v36  ;;  %v9374_v36 = vld [vmem:[%s13314_s3 + $0x960] ss:$16 sps:$4 sm:$0xff]  }
 0x28d   : > { %7432 = vmatprep.subr.bf16.mxu1 %v9319_v11  ;;  %v9377_v11 = vld [vmem:[%s13314_s3 + $0xb60] ss:$16 sps:$4 sm:$0xff]  }
 0x28e   : > { %7392 = vmatpush1.bf16.msra.mxu0 %v9314_v13  ;;  %v9382_v13 = vld [vmem:[%s13314_s3 + $0x984] ss:$16 sps:$4 sm:$0xff]  }
 0x28f   : > { %7433 = vmatpush1.bf16.msra.mxu1 %v9317_v14  ;;  %7393 = vmatprep.subr.bf16.mxu0 %v9322_v15  ;;  %v9385_v14 = vld [vmem:[%s13314_s3 + $0xb84] ss:$16 sps:$4 sm:$0xff]   ;;  %v9380_v15 = vld [vmem:[%s13314_s3 + $0x980] ss:$16 sps:$4 sm:$0xff]  }
 0x290   : > { %7434 = vmatprep.subr.bf16.mxu1 %v9325_v17  ;;  %v9383_v17 = vld [vmem:[%s13314_s3 + $0xb80] ss:$16 sps:$4 sm:$0xff]  }
 0x292   : > { %7394 = vmatpush1.bf16.msra.mxu0 %v9320_v20  ;;  %v9388_v20 = vld [vmem:[%s13314_s3 + $0x9a4] ss:$16 sps:$4 sm:$0xff]  }
 0x293   : > { %7435 = vmatpush1.bf16.msra.mxu1 %v9323_v26  ;;  %7395 = vmatprep.subr.bf16.mxu0 %v9328_v28  ;;  %v9391_v26 = vld [vmem:[%s13314_s3 + $0xba4] ss:$16 sps:$4 sm:$0xff]   ;;  %v9386_v28 = vld [vmem:[%s13314_s3 + $0x9a0] ss:$16 sps:$4 sm:$0xff]  }
 0x294   : > { %7436 = vmatprep.subr.bf16.mxu1 %v9331_v29  ;;  %v838_v29 = vrot.slane %v11983_v39, %v11736_v24 }
 0x296   : > { %7396 = vmatpush1.bf16.msra.mxu0 %v9326_v30  ;;  %v9389_v30 = vld [vmem:[%s13314_s3 + $0xba0] ss:$16 sps:$4 sm:$0xff]  }
 0x297   : > { %7437 = vmatpush1.bf16.msra.mxu1 %v9329_v57  ;;  %7397 = vmatprep.subr.bf16.mxu0 %v9334_v31  ;;  %v9394_v57 = vld [vmem:[%s13314_s3 + $0x9c4] ss:$16 sps:$4 sm:$0xff]   ;;  %v846_v31 = vrot.slane %v11983_v39, %v11745_v37 }
 0x298   : > { %7438 = vmatprep.subr.bf16.mxu1 %v9337_v34  ;;  %v9397_v34 = vld [vmem:[%s13314_s3 + $0xbc4] ss:$16 sps:$4 sm:$0xff]  }
 0x29a   : > { %7398 = vmatpush1.bf16.msra.mxu0 %v9332_v35  ;;  %v9392_v35 = vld [vmem:[%s13314_s3 + $0x9c0] ss:$16 sps:$4 sm:$0xff]  }
 0x29b   : > { %7439 = vmatpush1.bf16.msra.mxu1 %v9335_v12  ;;  %7399 = vmatprep.subr.bf16.mxu0 %v9340_v41  ;;  %v9068_v12 = vadd.f32 %v11883_v40, %v838_v29  ;;  %v9395_v41 = vld [vmem:[%s13314_s3 + $0xbc0] ss:$16 sps:$4 sm:$0xff]  }
 0x29c   : > { %7440 = vmatprep.subr.bf16.mxu1 %v9343_v42  ;;  %v9400_v42 = vld [vmem:[%s13314_s3 + $0x9e4] ss:$16 sps:$4 sm:$0xff]   ;;  %v9398_v40 = vld [vmem:[%s13314_s3 + $0x9e0] ss:$16 sps:$4 sm:$0xff]  }
 0x29e   : > { %7400 = vmatpush1.bf16.msra.mxu0 %v9338_v43  ;;  %v9070_v43 = vadd.f32 %v11888_v54, %v846_v31  ;;  %v9406_v54 = vld [vmem:[%s13314_s3 + $0xc04] ss:$16 sps:$4 sm:$0xff]  }
 0x29f   : > { %7441 = vmatpush1.bf16.msra.mxu1 %v9341_v44  ;;  %7401 = vmatprep.subr.bf16.mxu0 %v9346_v45  ;;  %v9403_v44 = vld [vmem:[%s13314_s3 + $0xbe4] ss:$16 sps:$4 sm:$0xff]   ;;  %v4107_v45 = vmax.f32 %v9068_v12, 0.0 }
 0x2a0   : > { %7442 = vmatprep.subr.bf16.mxu1 %v9349_v46  ;;  %v9401_v46 = vld [vmem:[%s13314_s3 + $0xbe0] ss:$16 sps:$4 sm:$0xff]  }
 0x2a2   : > { %7402 = vmatpush1.bf16.msra.mxu0 %v9344_v47  ;;  %v4109_v47 = vmax.f32 %v9070_v43, 0.0  ;;  %v9443_v43 = vld [vmem:[%s13314_s3 + $0xec0] ss:$16 sps:$4 sm:$0xff]  }
 0x2a3   : > { %7443 = vmatpush1.bf16.msra.mxu1 %v9347_v48  ;;  %7403 = vmatprep.subr.bf16.mxu0 %v9352_v53  ;;  %v9409_v48 = vld [vmem:[%s13314_s3 + $0xe04] ss:$16 sps:$4 sm:$0xff]   ;;  %v9404_v53 = vld [vmem:[%s13314_s3 + $0xc00] ss:$16 sps:$4 sm:$0xff]  }
 0x2a4   : > { %7444 = vmatprep.subr.bf16.mxu1 %v9355_v56  ;;  %v12248_v56 = vpack.c.bf16 %v4107_v45, %v4107_v45 }
 0x2a6   : > { %7404 = vmatpush1.bf16.msra.mxu0 %v9350_v22  ;;  %v9407_v22 = vld [vmem:[%s13314_s3 + $0xe00] ss:$16 sps:$4 sm:$0xff]  }
 0x2a7   : > { %7445 = vmatpush1.bf16.msra.mxu1 %v9353_v58  ;;  %7405 = vmatprep.subr.bf16.mxu0 %v9358_v59  ;;  %v9412_v58 = vld [vmem:[%s13314_s3 + $0xc24] ss:$16 sps:$4 sm:$0xff]   ;;  %v12256_v59 = vpack.c.bf16 %v4109_v47, %v4109_v47 }
 0x2a8   : > { %7446 = vmatprep.subr.bf16.mxu1 %v9361_v60  ;;  %v9415_v60 = vld [vmem:[%s13314_s3 + $0xe24] ss:$16 sps:$4 sm:$0xff]  }
 0x2aa   : > { %7406 = vmatpush1.bf16.msra.mxu0 %v9356_v61  ;;  %v9410_v61 = vld [vmem:[%s13314_s3 + $0xc20] ss:$16 sps:$4 sm:$0xff]  }
 0x2ab   : > { %7447 = vmatpush1.bf16.msra.mxu1 %v9359_v4  ;;  %7407 = vmatprep.subr.bf16.mxu0 %v9364_v62  ;;  %v9413_v4 = vld [vmem:[%s13314_s3 + $0xe20] ss:$16 sps:$4 sm:$0xff]   ;;  %v9418_v62 = vld [vmem:[%s13314_s3 + $0xc44] ss:$16 sps:$4 sm:$0xff]  }
 0x2ac   : > { %7448 = vmatprep.subr.bf16.mxu1 %v9367_v63  ;;  %v9421_v63 = vld [vmem:[%s13314_s3 + $0xe44] ss:$16 sps:$4 sm:$0xff]  }
 0x2ae   : > { %7408 = vmatpush1.bf16.msra.mxu0 %v9362_v8  ;;  %v9416_v8 = vld [vmem:[%s13314_s3 + $0xc40] ss:$16 sps:$4 sm:$0xff]  }
 0x2af   : > { %7449 = vmatpush1.bf16.msra.mxu1 %v9365_v0  ;;  %7409 = vmatprep.subr.bf16.mxu0 %v9370_v1  ;;  %v9419_v0 = vld [vmem:[%s13314_s3 + $0xe40] ss:$16 sps:$4 sm:$0xff]   ;;  %v9424_v1 = vld [vmem:[%s13314_s3 + $0xc64] ss:$16 sps:$4 sm:$0xff]  }
 0x2b0   : > { %7450 = vmatprep.subr.bf16.mxu1 %v9373_v55  ;;  %v9427_v55 = vld [vmem:[%s13314_s3 + $0xe64] ss:$16 sps:$4 sm:$0xff]  }
 0x2b2   : > { %7410 = vmatpush1.bf16.msra.mxu0 %v9368_v23  ;;  %v9422_v23 = vld [vmem:[%s13314_s3 + $0xc60] ss:$16 sps:$4 sm:$0xff]  }
 0x2b3   : > { %7451 = vmatpush1.bf16.msra.mxu1 %v9371_v2  ;;  %7411 = vmatprep.subr.bf16.mxu0 %v9376_v3  ;;  %v9425_v2 = vld [vmem:[%s13314_s3 + $0xe60] ss:$16 sps:$4 sm:$0xff]   ;;  %v9430_v3 = vld [vmem:[%s13314_s3 + $0xc84] ss:$16 sps:$4 sm:$0xff]  }
 0x2b4   : > { %7452 = vmatprep.subr.bf16.mxu1 %v9379_v5  ;;  %v9433_v5 = vld [vmem:[%s13314_s3 + $0xe84] ss:$16 sps:$4 sm:$0xff]  }
 0x2b6   : > { %7412 = vmatpush1.bf16.msra.mxu0 %v9374_v36  ;;  %v9428_v36 = vld [vmem:[%s13314_s3 + $0xc80] ss:$16 sps:$4 sm:$0xff]  }
 0x2b7   : > { %7453 = vmatpush1.bf16.msra.mxu1 %v9377_v11  ;;  %7413 = vmatprep.subr.bf16.mxu0 %v9382_v13  ;;  %v9431_v11 = vld [vmem:[%s13314_s3 + $0xe80] ss:$16 sps:$4 sm:$0xff]   ;;  %v9436_v13 = vld [vmem:[%s13314_s3 + $0xca4] ss:$16 sps:$4 sm:$0xff]  }
 0x2b8   : > { %7454 = vmatprep.subr.bf16.mxu1 %v9385_v14  ;;  %v9439_v14 = vld [vmem:[%s13314_s3 + $0xea4] ss:$16 sps:$4 sm:$0xff]  }
 0x2ba   : > { %7414 = vmatpush1.bf16.msra.mxu0 %v9380_v15  ;;  %v858_v15 = vrot.slane %v11983_v39, %v825_v49  ;;  %v9445_v49 = vld [vmem:[%s13314_s3 + $0xec4] ss:$16 sps:$4 sm:$0xff]  }
 0x2bb   : > { %7455 = vmatpush1.bf16.msra.mxu1 %v9383_v17  ;;  %7415 = vmatprep.subr.bf16.mxu0 %v9388_v20  ;;  %v9434_v17 = vld [vmem:[%s13314_s3 + $0xca0] ss:$16 sps:$4 sm:$0xff]   ;;  %v866_v20 = vrot.slane %v11983_v39, %v833_v51 }
 0x2bc   : > { %7456 = vmatprep.subr.bf16.mxu1 %v9391_v26  ;;  %v9437_v26 = vld [vmem:[%s13314_s3 + $0xea0] ss:$16 sps:$4 sm:$0xff]  }
 0x2be   : > { %7416 = vmatpush1.bf16.msra.mxu0 %v9386_v28  ;;  %v9442_v28 = vld [vmem:[%s13314_s3 + $0xcc4] ss:$16 sps:$4 sm:$0xff]  }
 0x2bf   : > { %7457 = vmatpush1.bf16.msra.mxu1 %v9389_v30  ;;  %7417 = vmatprep.subr.bf16.mxu0 %v9394_v57 }
 0x2c0   : > { %7458 = vmatprep.subr.bf16.mxu1 %v9397_v34 }
 0x2c2   : > { %7418 = vmatpush1.bf16.msra.mxu0 %v9392_v35  ;;  %v9440_v35 = vld [vmem:[%s13314_s3 + $0xcc0] ss:$16 sps:$4 sm:$0xff]  }
 0x2c3   : > { %7459 = vmatpush1.bf16.msra.mxu1 %v9395_v41  ;;  %7419 = vmatprep.subr.bf16.mxu0 %v9400_v42 }
 0x2c4   : > { %7460 = vmatprep.subr.bf16.mxu1 %v9403_v44  ;;  %v9448_v44 = vld [vmem:[%s13314_s3 + $0xce4] ss:$16 sps:$4 sm:$0xff]  }
 0x2c6   : > { %7420 = vmatpush1.bf16.msra.mxu0 %v9398_v40 }
 0x2c7   : > { %7461 = vmatpush1.bf16.msra.mxu1 %v9401_v46  ;;  %7471 = vmatprep.subr.bf16.mxu0 %v9406_v54  ;;  %v9451_v46 = vld [vmem:[%s13314_s3 + $0xee4] ss:$16 sps:$4 sm:$0xff]  }
 0x2c8   : > { %7512 = vmatprep.subr.bf16.mxu1 %v9409_v48  ;;  %v9446_v48 = vld [vmem:[%s13314_s3 + $0xce0] ss:$16 sps:$4 sm:$0xff]  }
 0x2c9   : > { %7422 = vmatmul.mubr.bf16.vlgmr.msra.gmra.mrb[24].mxu0 %v12248_v56 }
 0x2ca   : > { %7463 = vmatmul.mubr.bf16.vlgmr.msra.gmra.mrb[24].mxu1 %v12256_v59  ;;  %7472 = vmatpush1.bf16.msra.mxu0 %v9404_v53 }
 0x2cb   : > { %7513 = vmatpush1.bf16.msra.mxu1 %v9407_v22  ;;  %7473 = vmatprep.subr.bf16.mxu0 %v9412_v58  ;;  %v9449_v22 = vld [vmem:[%s13314_s3 + $0xee0] ss:$16 sps:$4 sm:$0xff]   ;;  %v9454_v58 = vld [vmem:[%s13314_s3 + $0xd04] ss:$16 sps:$4 sm:$0xff]  }
 0x2cc   : > { %7514 = vmatprep.subr.bf16.mxu1 %v9415_v60  ;;  %v9457_v60 = vld [vmem:[%s13314_s3 + $0xf04] ss:$16 sps:$4 sm:$0xff]  }
 0x2ce   : > { %7474 = vmatpush1.bf16.msra.mxu0 %v9410_v61  ;;  %v9452_v61 = vld [vmem:[%s13314_s3 + $0xd00] ss:$16 sps:$4 sm:$0xff]  }
 0x2cf   : > { %7515 = vmatpush1.bf16.msra.mxu1 %v9413_v4  ;;  %7475 = vmatprep.subr.bf16.mxu0 %v9418_v62  ;;  %v9455_v4 = vld [vmem:[%s13314_s3 + $0xf00] ss:$16 sps:$4 sm:$0xff]   ;;  %v9460_v62 = vld [vmem:[%s13314_s3 + $0xd24] ss:$16 sps:$4 sm:$0xff]  }
 0x2d0   : > { %7516 = vmatprep.subr.bf16.mxu1 %v9421_v63  ;;  %v9463_v63 = vld [vmem:[%s13314_s3 + $0xf24] ss:$16 sps:$4 sm:$0xff]  }
 0x2d2   : > { %7476 = vmatpush1.bf16.msra.mxu0 %v9416_v8  ;;  %v9458_v8 = vld [vmem:[%s13314_s3 + $0xd20] ss:$16 sps:$4 sm:$0xff]  }
 0x2d3   : > { %7517 = vmatpush1.bf16.msra.mxu1 %v9419_v0  ;;  %7477 = vmatprep.subr.bf16.mxu0 %v9424_v1  ;;  %v9461_v0 = vld [vmem:[%s13314_s3 + $0xf20] ss:$16 sps:$4 sm:$0xff]   ;;  %v9466_v1 = vld [vmem:[%s13314_s3 + $0xd44] ss:$16 sps:$4 sm:$0xff]  }
 0x2d4   : > { %7518 = vmatprep.subr.bf16.mxu1 %v9427_v55  ;;  %v9469_v55 = vld [vmem:[%s13314_s3 + $0xf44] ss:$16 sps:$4 sm:$0xff]  }
 0x2d6   : > { %7478 = vmatpush1.bf16.msra.mxu0 %v9422_v23  ;;  %v9464_v23 = vld [vmem:[%s13314_s3 + $0xd40] ss:$16 sps:$4 sm:$0xff]  }
 0x2d7   : > { %7519 = vmatpush1.bf16.msra.mxu1 %v9425_v2  ;;  %7479 = vmatprep.subr.bf16.mxu0 %v9430_v3  ;;  %v9467_v2 = vld [vmem:[%s13314_s3 + $0xf40] ss:$16 sps:$4 sm:$0xff]   ;;  %v9472_v3 = vld [vmem:[%s13314_s3 + $0xd64] ss:$16 sps:$4 sm:$0xff]  }
 0x2d8   : > { %7520 = vmatprep.subr.bf16.mxu1 %v9433_v5  ;;  %v9475_v5 = vld [vmem:[%s13314_s3 + $0xf64] ss:$16 sps:$4 sm:$0xff]  }
 0x2da   : > { %7480 = vmatpush1.bf16.msra.mxu0 %v9428_v36  ;;  %v9470_v36 = vld [vmem:[%s13314_s3 + $0xd60] ss:$16 sps:$4 sm:$0xff]  }
 0x2db   : > { %7521 = vmatpush1.bf16.msra.mxu1 %v9431_v11  ;;  %7481 = vmatprep.subr.bf16.mxu0 %v9436_v13  ;;  %v9473_v11 = vld [vmem:[%s13314_s3 + $0xf60] ss:$16 sps:$4 sm:$0xff]   ;;  %v9478_v13 = vld [vmem:[%s13314_s3 + $0xd84] ss:$16 sps:$4 sm:$0xff]  }
 0x2dc   : > { %v12326_v29 = vpop.f32.mrb[12].mxu0  ;;  %7522 = vmatprep.subr.bf16.mxu1 %v9439_v14  ;;  %v12331_v30 = vpop.f32.mrb[12].mxu1  ;;  %v9481_v14 = vld [vmem:[%s13314_s3 + $0xf84] ss:$16 sps:$4 sm:$0xff]  }
 0x2dd   : > { %v4012_v57 = vpop.f32.mrb[13].mxu0  ;;  %v4094_v31 = vpop.f32.mrb[13].mxu1 }
 0x2de   : > { %v9073_v51 = vadd.f32 %v4012_v57, %v858_v15  ;;  %v4014_v34 = vpop.f32.mrb[14].mxu0  ;;  %7482 = vmatpush1.bf16.msra.mxu0 %v9434_v17  ;;  %v9075_v12 = vadd.f32 %v4094_v31, %v866_v20  ;;  %v4096_v41 = vpop.f32.mrb[14].mxu1  ;;  %v9476_v15 = vld [vmem:[%s13314_s3 + $0xd80] ss:$16 sps:$4 sm:$0xff]   ;;  %v9484_v20 = vld [vmem:[%s13314_s3 + $0xda4] ss:$16 sps:$4 sm:$0xff]   ;;  %v862_v31 = vrot.slane %v11983_v39, %v829_v38 }
 0x2df   : > { %7523 = vmatpush1.bf16.msra.mxu1 %v9437_v26  ;;  %v4015_v42 = vpop.f32.mrb[15].mxu0  ;;  %7483 = vmatprep.subr.bf16.mxu0 %v9442_v28  ;;  %v4097_v45 = vpop.f32.mrb[15].mxu1  ;;  %v9479_v17 = vld [vmem:[%s13314_s3 + $0xf80] ss:$16 sps:$4 sm:$0xff]   ;;  %v9487_v26 = vld [vmem:[%s13314_s3 + $0xfa4] ss:$16 sps:$4 sm:$0xff]  }
 0x2e0   : > { %v4112_v40 = vmax.f32 %v9073_v51, 0.0  ;;  %7524 = vmatprep.subr.bf16.mxu1 %v9445_v49  ;;  %v4114_v54 = vmax.f32 %v9075_v12, 0.0  ;;  %v9482_v28 = vld [vmem:[%s13314_s3 + $0xda0] ss:$16 sps:$4 sm:$0xff]   ;;  %v854_v49 = vrot.slane %v11983_v39, %v821_v33  ;;  %v9490_v51 = vld [vmem:[%s13314_s3 + $0xdc4] ss:$16 sps:$4 sm:$0xff]   ;;  %v9074_v39 = vadd.f32 %v12331_v30, %v862_v31 }
 0x2e1   : > { %v9485_v57 = vld [vmem:[%s13314_s3 + $0xfa0] ss:$16 sps:$4 sm:$0xff]   ;;  %v9493_v34 = vld [vmem:[%s13314_s3 + $0xfc4] ss:$16 sps:$4 sm:$0xff]   ;;  %v9502_v30 = vld [vmem:[%s13314_s3 + $0xc] ss:$16 sps:$4 sm:$0xff]  }
 0x2e2   : > { %v12345_v47 = vpack.c.bf16 %v4112_v40, %v4112_v40  ;;  %7484 = vmatpush1.bf16.msra.mxu0 %v9440_v35  ;;  %v12350_v53 = vpack.c.bf16 %v4114_v54, %v4114_v54  ;;  %v9488_v33 = vld [vmem:[%s13314_s3 + $0xdc0] ss:$16 sps:$4 sm:$0xff]   ;;  %v9072_v35 = vadd.f32 %v12326_v29, %v854_v49  ;;  %v9496_v38 = vld [vmem:[%s13314_s3 + $0xde4] ss:$16 sps:$4 sm:$0xff]   ;;  %v9500_v40 = vld [vmem:[%s13314_s3 + $0x8] ss:$16 sps:$4 sm:$0xff]  }
 0x2e3   : > { %7525 = vmatpush1.bf16.msra.mxu1 %v9443_v43  ;;  %7485 = vmatprep.subr.bf16.mxu0 %v9448_v44  ;;  %v9499_v12 = vld [vmem:[%s13314_s3 + $0xfe4] ss:$16 sps:$4 sm:$0xff]   ;;  %v9494_v29 = vld [vmem:[%s13314_s3 + $0xde0] ss:$16 sps:$4 sm:$0xff]   ;;  %v4113_v43 = vmax.f32 %v9074_v39, 0.0 }
 0x2e4   : > { %7503 = vmatprep.mubr.bf16.mxu0 %v12345_v47  ;;  %7526 = vmatprep.subr.bf16.mxu1 %v9451_v46  ;;  %v4111_v41 = vmax.f32 %v9072_v35, 0.0  ;;  %v9497_v42 = vld [vmem:[%s13314_s3 + $0xfe0] ss:$16 sps:$4 sm:$0xff]   ;;  %v9505_v44 = vld [vmem:[%s13314_s3 + $0x20c] ss:$16 sps:$4 sm:$0xff]  }
 0x2e5   : > { %7544 = vmatprep.mubr.bf16.mxu1 %v12350_v53  ;;  %v9503_v46 = vld [vmem:[%s13314_s3 + $0x208] ss:$16 sps:$4 sm:$0xff]   ;;  %v12475_v54 = vpack.c.bf16 %v4113_v43, %v4113_v43 }
 0x2e6   : > { %7486 = vmatpush1.bf16.msra.mxu0 %v9446_v48  ;;  %v12470_v45 = vpack.c.bf16 %v4111_v41, %v4111_v41  ;;  %v9508_v48 = vld [vmem:[%s13314_s3 + $0x2c] ss:$16 sps:$4 sm:$0xff]   ;;  %v9539_v39 = vld [vmem:[%s13314_s3 + $0x2c8] ss:$16 sps:$4 sm:$0xff]  }
 0x2e7   : > { %7527 = vmatpush1.bf16.msra.mxu1 %v9449_v22  ;;  %7487 = vmatprep.subr.bf16.mxu0 %v9454_v58  ;;  %v9511_v22 = vld [vmem:[%s13314_s3 + $0x22c] ss:$16 sps:$4 sm:$0xff]   ;;  %v9506_v58 = vld [vmem:[%s13314_s3 + $0x28] ss:$16 sps:$4 sm:$0xff]  }
 0x2e8   : > { %7528 = vmatprep.subr.bf16.mxu1 %v9457_v60  ;;  %v9509_v60 = vld [vmem:[%s13314_s3 + $0x228] ss:$16 sps:$4 sm:$0xff]  }
 0x2e9   : > { %v9545_v43 = vld [vmem:[%s13314_s3 + $0x2e8] ss:$16 sps:$4 sm:$0xff]  }
 0x2ea   : > { %7488 = vmatpush1.bf16.msra.mxu0 %v9452_v61  ;;  %v9514_v61 = vld [vmem:[%s13314_s3 + $0x4c] ss:$16 sps:$4 sm:$0xff]  }
 0x2eb   : > { %7529 = vmatpush1.bf16.msra.mxu1 %v9455_v4  ;;  %7489 = vmatprep.subr.bf16.mxu0 %v9460_v62  ;;  %v9517_v4 = vld [vmem:[%s13314_s3 + $0x24c] ss:$16 sps:$4 sm:$0xff]   ;;  %v9515_v62 = vld [vmem:[%s13314_s3 + $0x248] ss:$16 sps:$4 sm:$0xff]  }
 0x2ec   : > { %7530 = vmatprep.subr.bf16.mxu1 %v9463_v63  ;;  %v9523_v63 = vld [vmem:[%s13314_s3 + $0x26c] ss:$16 sps:$4 sm:$0xff]  }
 0x2ee   : > { %7490 = vmatpush1.bf16.msra.mxu0 %v9458_v8  ;;  %v9518_v8 = vld [vmem:[%s13314_s3 + $0x68] ss:$16 sps:$4 sm:$0xff]  }
 0x2ef   : > { %7531 = vmatpush1.bf16.msra.mxu1 %v9461_v0  ;;  %7491 = vmatprep.subr.bf16.mxu0 %v9466_v1  ;;  %v9521_v0 = vld [vmem:[%s13314_s3 + $0x268] ss:$16 sps:$4 sm:$0xff]   ;;  %v9526_v1 = vld [vmem:[%s13314_s3 + $0x8c] ss:$16 sps:$4 sm:$0xff]  }
 0x2f0   : > { %7532 = vmatprep.subr.bf16.mxu1 %v9469_v55  ;;  %v9529_v55 = vld [vmem:[%s13314_s3 + $0x28c] ss:$16 sps:$4 sm:$0xff]  }
 0x2f2   : > { %7492 = vmatpush1.bf16.msra.mxu0 %v9464_v23  ;;  %v9524_v23 = vld [vmem:[%s13314_s3 + $0x88] ss:$16 sps:$4 sm:$0xff]  }
 0x2f3   : > { %7533 = vmatpush1.bf16.msra.mxu1 %v9467_v2  ;;  %7493 = vmatprep.subr.bf16.mxu0 %v9472_v3  ;;  %v4643_v2 = vld [vmem:[%s13315_s4] sm:$0xf]  ;;  %v9527_v3 = vld [vmem:[%s13314_s3 + $0x288] ss:$16 sps:$4 sm:$0xff]  }
 0x2f4   : > { %7534 = vmatprep.subr.bf16.mxu1 %v9475_v5  ;;  %v9532_v5 = vld [vmem:[%s13314_s3 + $0xac] ss:$16 sps:$4 sm:$0xff]  }
 0x2f6   : > { %7494 = vmatpush1.bf16.msra.mxu0 %v9470_v36  ;;  %v9535_v36 = vld [vmem:[%s13314_s3 + $0x2ac] ss:$16 sps:$4 sm:$0xff]  }
 0x2f7   : > { %7535 = vmatpush1.bf16.msra.mxu1 %v9473_v11  ;;  %7495 = vmatprep.subr.bf16.mxu0 %v9478_v13  ;;  %v4648_v11 = vrot.slane %v4643_v2, %v11736_v24  ;;  %v4652_v13 = vrot.slane %v4643_v2, %v11540_v19  ;;  %v9572_v2 = vld [vmem:[%s13314_s3 + $0x188] ss:$16 sps:$4 sm:$0xff]  }
 0x2f8   : > { %7536 = vmatprep.subr.bf16.mxu1 %v9481_v14  ;;  %v9530_v14 = vld [vmem:[%s13314_s3 + $0xa8] ss:$16 sps:$4 sm:$0xff]  }
 0x2fa   : > { %7496 = vmatpush1.bf16.msra.mxu0 %v9476_v15  ;;  %v9533_v15 = vld [vmem:[%s13314_s3 + $0x2a8] ss:$16 sps:$4 sm:$0xff]  }
 0x2fb   : > { %7537 = vmatpush1.bf16.msra.mxu1 %v9479_v17  ;;  %7497 = vmatprep.subr.bf16.mxu0 %v9484_v20  ;;  %v9538_v17 = vld [vmem:[%s13314_s3 + $0xcc] ss:$16 sps:$4 sm:$0xff]  }
 0x2fc   : > { %7538 = vmatprep.subr.bf16.mxu1 %v9487_v26  ;;  %v9541_v26 = vld [vmem:[%s13314_s3 + $0x2cc] ss:$16 sps:$4 sm:$0xff]  }
 0x2fe   : > { %7498 = vmatpush1.bf16.msra.mxu0 %v9482_v28 }
 0x2ff   : > { %7539 = vmatpush1.bf16.msra.mxu1 %v9485_v57  ;;  %7499 = vmatprep.subr.bf16.mxu0 %v9490_v51 }
 0x300   : > { %7540 = vmatprep.subr.bf16.mxu1 %v9493_v34 }
 0x302   : > { %7500 = vmatpush1.bf16.msra.mxu0 %v9488_v33  ;;  %v9536_v33 = vld [vmem:[%s13314_s3 + $0xc8] ss:$16 sps:$4 sm:$0xff]  }
 0x303   : > { %7541 = vmatpush1.bf16.msra.mxu1 %v9491_v6  ;;  %7501 = vmatprep.subr.bf16.mxu0 %v9496_v38 }
 0x304   : > { %7542 = vmatprep.subr.bf16.mxu1 %v9499_v12  ;;  %v9544_v12 = vld [vmem:[%s13314_s3 + $0xec] ss:$16 sps:$4 sm:$0xff]  }
 0x306   : > { %7502 = vmatpush1.bf16.msra.mxu0 %v9494_v29 }
 0x307   : > { %7543 = vmatpush1.bf16.msra.mxu1 %v9497_v42  ;;  %7553 = vmatprep.subr.bf16.mxu0 %v9502_v30  ;;  %v9547_v42 = vld [vmem:[%s13314_s3 + $0x2ec] ss:$16 sps:$4 sm:$0xff]   ;;  %v9542_v30 = vld [vmem:[%s13314_s3 + $0xe8] ss:$16 sps:$4 sm:$0xff]  }
 0x308   : > { %7594 = vmatprep.subr.bf16.mxu1 %v9505_v44  ;;  %v9550_v44 = vld [vmem:[%s13314_s3 + $0x10c] ss:$16 sps:$4 sm:$0xff]  }
 0x309   : > { %7504 = vmatmul.mubr.bf16.vlgmr.msra.gmra.mrb[28].mxu0 %v12470_v45 }
 0x30a   : > { %7545 = vmatmul.mubr.bf16.vlgmr.msra.gmra.mrb[28].mxu1 %v12475_v54  ;;  %7554 = vmatpush1.bf16.msra.mxu0 %v9500_v40  ;;  %v9553_v40 = vld [vmem:[%s13314_s3 + $0x30c] ss:$16 sps:$4 sm:$0xff]  }
 0x30b   : > { %7585 = vmatprep.mubr.bf16.mxu0 %v11589_v50  ;;  %7595 = vmatpush1.bf16.msra.mxu1 %v9503_v46  ;;  %v9512_v50 = vld [vmem:[%s13314_s3 + $0x48] ss:$16 sps:$4 sm:$0xff]  }
 0x30c   : > { %7626 = vmatprep.mubr.bf16.mxu1 %v11595_v52  ;;  %7555 = vmatprep.subr.bf16.mxu0 %v9508_v48  ;;  %v9520_v52 = vld [vmem:[%s13314_s3 + $0x6c] ss:$16 sps:$4 sm:$0xff]   ;;  %v9548_v46 = vld [vmem:[%s13314_s3 + $0x108] ss:$16 sps:$4 sm:$0xff]  }
 0x30d   : > { %7596 = vmatprep.subr.bf16.mxu1 %v9511_v22  ;;  %v9551_v48 = vld [vmem:[%s13314_s3 + $0x308] ss:$16 sps:$4 sm:$0xff]   ;;  %v9556_v22 = vld [vmem:[%s13314_s3 + $0x12c] ss:$16 sps:$4 sm:$0xff]  }
 0x30e   : > { %7556 = vmatpush1.bf16.msra.mxu0 %v9506_v58  ;;  %v9559_v58 = vld [vmem:[%s13314_s3 + $0x32c] ss:$16 sps:$4 sm:$0xff]  }
 0x30f   : > { %7597 = vmatpush1.bf16.msra.mxu1 %v9509_v60  ;;  %7557 = vmatprep.subr.bf16.mxu0 %v9514_v61  ;;  %v9554_v60 = vld [vmem:[%s13314_s3 + $0x128] ss:$16 sps:$4 sm:$0xff]  }
 0x310   : > { %7598 = vmatprep.subr.bf16.mxu1 %v9517_v4  ;;  %v9557_v61 = vld [vmem:[%s13314_s3 + $0x328] ss:$16 sps:$4 sm:$0xff]   ;;  %v9562_v4 = vld [vmem:[%s13314_s3 + $0x14c] ss:$16 sps:$4 sm:$0xff]  }
 0x312   : > { %7558 = vmatpush1.bf16.msra.mxu0 %v9512_v50  ;;  %v9565_v50 = vld [vmem:[%s13314_s3 + $0x34c] ss:$16 sps:$4 sm:$0xff]  }
 0x313   : > { %7599 = vmatpush1.bf16.msra.mxu1 %v9515_v62  ;;  %7559 = vmatprep.subr.bf16.mxu0 %v9520_v52  ;;  %v9560_v62 = vld [vmem:[%s13314_s3 + $0x148] ss:$16 sps:$4 sm:$0xff]  }
 0x314   : > { %7600 = vmatprep.subr.bf16.mxu1 %v9523_v63  ;;  %v9563_v52 = vld [vmem:[%s13314_s3 + $0x348] ss:$16 sps:$4 sm:$0xff]   ;;  %v9568_v63 = vld [vmem:[%s13314_s3 + $0x16c] ss:$16 sps:$4 sm:$0xff]  }
 0x316   : > { %7560 = vmatpush1.bf16.msra.mxu0 %v9518_v8  ;;  %v9571_v8 = vld [vmem:[%s13314_s3 + $0x36c] ss:$16 sps:$4 sm:$0xff]  }
 0x317   : > { %7601 = vmatpush1.bf16.msra.mxu1 %v9521_v0  ;;  %7561 = vmatprep.subr.bf16.mxu0 %v9526_v1  ;;  %v9566_v0 = vld [vmem:[%s13314_s3 + $0x168] ss:$16 sps:$4 sm:$0xff]  }
 0x318   : > { %7602 = vmatprep.subr.bf16.mxu1 %v9529_v55  ;;  %v9569_v1 = vld [vmem:[%s13314_s3 + $0x368] ss:$16 sps:$4 sm:$0xff]   ;;  %v9574_v55 = vld [vmem:[%s13314_s3 + $0x18c] ss:$16 sps:$4 sm:$0xff]  }
 0x31a   : > { %7562 = vmatpush1.bf16.msra.mxu0 %v9524_v23  ;;  %v9577_v23 = vld [vmem:[%s13314_s3 + $0x38c] ss:$16 sps:$4 sm:$0xff]  }
 0x31b   : > { %7603 = vmatpush1.bf16.msra.mxu1 %v9527_v3  ;;  %7563 = vmatprep.subr.bf16.mxu0 %v9532_v5  ;;  %v9575_v3 = vld [vmem:[%s13314_s3 + $0x388] ss:$16 sps:$4 sm:$0xff]   ;;  %v9580_v5 = vld [vmem:[%s13314_s3 + $0x1ac] ss:$16 sps:$4 sm:$0xff]  }
 0x31c   : > { %v7259_v20 = vpop.f32.mrb[16].mxu0  ;;  %7604 = vmatprep.subr.bf16.mxu1 %v9535_v36  ;;  %v9583_v36 = vld [vmem:[%s13314_s3 + $0x3ac] ss:$16 sps:$4 sm:$0xff]  }
 0x31d   : > { %v7260_v28 = vadd.f32 %v7259_v20, %v4648_v11  ;;  %v7300_v49 = vpop.f32.mrb[16].mxu1  ;;  %v7261_v57 = vpop.f32.mrb[17].mxu0  ;;  %v9578_v11 = vld [vmem:[%s13314_s3 + $0x1a8] ss:$16 sps:$4 sm:$0xff]  }
 0x31e   : > { %v7262_v51 = vadd.f32 %v7261_v57, %v4652_v13  ;;  %v7302_v31 = vpop.f32.mrb[17].mxu1  ;;  %v7263_v34 = vpop.f32.mrb[18].mxu0  ;;  %7564 = vmatpush1.bf16.msra.mxu0 %v9530_v14  ;;  %v9581_v13 = vld [vmem:[%s13314_s3 + $0x3a8] ss:$16 sps:$4 sm:$0xff]   ;;  %v9586_v14 = vld [vmem:[%s13314_s3 + $0x1cc] ss:$16 sps:$4 sm:$0xff]  }
 0x31f   : > { %v12555_v35 = vadd.f32 %v7300_v49, %v7260_v28  ;;  %v7304_v6 = vpop.f32.mrb[18].mxu1  ;;  %7605 = vmatpush1.bf16.msra.mxu1 %v9533_v15  ;;  %v7264_v38 = vpop.f32.mrb[19].mxu0  ;;  %7565 = vmatprep.subr.bf16.mxu0 %v9538_v17  ;;  %v9589_v15 = vld [vmem:[%s13314_s3 + $0x3cc] ss:$16 sps:$4 sm:$0xff]   ;;  %v9584_v17 = vld [vmem:[%s13314_s3 + $0x1c8] ss:$16 sps:$4 sm:$0xff]  }
 0x320   : > { %v12563_v29 = vadd.f32 %v7302_v31, %v7262_v51  ;;  %v7305_v41 = vpop.f32.mrb[19].mxu1  ;;  %7606 = vmatprep.subr.bf16.mxu1 %v9541_v26  ;;  %v9587_v20 = vld [vmem:[%s13314_s3 + $0x3c8] ss:$16 sps:$4 sm:$0xff]   ;;  %v9592_v26 = vld [vmem:[%s13314_s3 + $0x1ec] ss:$16 sps:$4 sm:$0xff]  }
 0x321   : > { %v9595_v28 = vld [vmem:[%s13314_s3 + $0x3ec] ss:$16 sps:$4 sm:$0xff]   ;;  %v9590_v49 = vld [vmem:[%s13314_s3 + $0x1e8] ss:$16 sps:$4 sm:$0xff]  }
 0x322   : > { %7566 = vmatpush1.bf16.msra.mxu0 %v9536_v33  ;;  %v9593_v57 = vld [vmem:[%s13314_s3 + $0x3e8] ss:$16 sps:$4 sm:$0xff]   ;;  %v9598_v51 = vld [vmem:[%s13314_s3 + $0x40c] ss:$16 sps:$4 sm:$0xff]  }
 0x323   : > { %7607 = vmatpush1.bf16.msra.mxu1 %v9539_v39  ;;  %7567 = vmatprep.subr.bf16.mxu0 %v9544_v12  ;;  %v9601_v31 = vld [vmem:[%s13314_s3 + $0x60c] ss:$16 sps:$4 sm:$0xff]   ;;  %v9596_v34 = vld [vmem:[%s13314_s3 + $0x408] ss:$16 sps:$4 sm:$0xff]  }
 0x324   : > { %7608 = vmatprep.subr.bf16.mxu1 %v9547_v42  ;;  %v9599_v33 = vld [vmem:[%s13314_s3 + $0x608] ss:$16 sps:$4 sm:$0xff]   ;;  %v9604_v6 = vld [vmem:[%s13314_s3 + $0x42c] ss:$16 sps:$4 sm:$0xff]  }
 0x325   : > { %v9607_v38 = vld [vmem:[%s13314_s3 + $0x62c] ss:$16 sps:$4 sm:$0xff]   ;;  %v9602_v39 = vld [vmem:[%s13314_s3 + $0x428] ss:$16 sps:$4 sm:$0xff]  }
 0x326   : > { %7568 = vmatpush1.bf16.msra.mxu0 %v9542_v30  ;;  %v9605_v12 = vld [vmem:[%s13314_s3 + $0x628] ss:$16 sps:$4 sm:$0xff]   ;;  %v9619_v42 = vld [vmem:[%s13314_s3 + $0x66c] ss:$16 sps:$4 sm:$0xff]  }
 0x327   : > { %7609 = vmatpush1.bf16.msra.mxu1 %v9545_v43  ;;  %7569 = vmatprep.subr.bf16.mxu0 %v9550_v44  ;;  %v9611_v41 = vld [vmem:[%s13314_s3 + $0x648] ss:$16 sps:$4 sm:$0xff]   ;;  %v9622_v44 = vld [vmem:[%s13314_s3 + $0x48c] ss:$16 sps:$4 sm:$0xff]  }
 0x328   : > { %7610 = vmatprep.subr.bf16.mxu1 %v9553_v40  ;;  %v9614_v30 = vld [vmem:[%s13314_s3 + $0x468] ss:$16 sps:$4 sm:$0xff]   ;;  %v9625_v40 = vld [vmem:[%s13314_s3 + $0x68c] ss:$16 sps:$4 sm:$0xff]  }
 0x329   : > { %v9617_v43 = vld [vmem:[%s13314_s3 + $0x668] ss:$16 sps:$4 sm:$0xff]  }
 0x32a   : > { %7570 = vmatpush1.bf16.msra.mxu0 %v9548_v46  ;;  %v9620_v46 = vld [vmem:[%s13314_s3 + $0x488] ss:$16 sps:$4 sm:$0xff]  }
 0x32b   : > { %7611 = vmatpush1.bf16.msra.mxu1 %v9551_v48  ;;  %7571 = vmatprep.subr.bf16.mxu0 %v9556_v22  ;;  %v9623_v48 = vld [vmem:[%s13314_s3 + $0x688] ss:$16 sps:$4 sm:$0xff]   ;;  %v9628_v22 = vld [vmem:[%s13314_s3 + $0x4ac] ss:$16 sps:$4 sm:$0xff]  }
 0x32c   : > { %7612 = vmatprep.subr.bf16.mxu1 %v9559_v58  ;;  %v9631_v58 = vld [vmem:[%s13314_s3 + $0x6ac] ss:$16 sps:$4 sm:$0xff]  }
 0x32e   : > { %7572 = vmatpush1.bf16.msra.mxu0 %v9554_v60  ;;  %v9626_v60 = vld [vmem:[%s13314_s3 + $0x4a8] ss:$16 sps:$4 sm:$0xff]  }
 0x32f   : > { %7613 = vmatpush1.bf16.msra.mxu1 %v9557_v61  ;;  %7573 = vmatprep.subr.bf16.mxu0 %v9562_v4  ;;  %v9629_v61 = vld [vmem:[%s13314_s3 + $0x6a8] ss:$16 sps:$4 sm:$0xff]   ;;  %v9634_v4 = vld [vmem:[%s13314_s3 + $0x4cc] ss:$16 sps:$4 sm:$0xff]  }
 0x330   : > { %7614 = vmatprep.subr.bf16.mxu1 %v9565_v50 }
 0x332   : > { %7574 = vmatpush1.bf16.msra.mxu0 %v9560_v62  ;;  %v9637_v62 = vld [vmem:[%s13314_s3 + $0x6cc] ss:$16 sps:$4 sm:$0xff]  }
 0x333   : > { %7615 = vmatpush1.bf16.msra.mxu1 %v9563_v52  ;;  %7575 = vmatprep.subr.bf16.mxu0 %v9568_v63 }
 0x334   : > { %7616 = vmatprep.subr.bf16.mxu1 %v9571_v8 }
 0x336   : > { %7576 = vmatpush1.bf16.msra.mxu0 %v9566_v0 }
 0x337   : > { %7617 = vmatpush1.bf16.msra.mxu1 %v9569_v1  ;;  %7577 = vmatprep.subr.bf16.mxu0 %v9574_v55 }
 0x338   : > { %7618 = vmatprep.subr.bf16.mxu1 %v9577_v23  ;;  %v9632_v23 = vld [vmem:[%s13314_s3 + $0x4c8] ss:$16 sps:$4 sm:$0xff]  }
 0x33a   : > { %7578 = vmatpush1.bf16.msra.mxu0 %v9572_v2 }
 0x33b   : > { %7619 = vmatpush1.bf16.msra.mxu1 %v9575_v3  ;;  %7579 = vmatprep.subr.bf16.mxu0 %v9580_v5 }
 0x33c   : > { %7620 = vmatprep.subr.bf16.mxu1 %v9583_v36 }
 0x33e   : > { %7580 = vmatpush1.bf16.msra.mxu0 %v9578_v11 }
 0x33f   : > { %7621 = vmatpush1.bf16.msra.mxu1 %v9581_v13  ;;  %7581 = vmatprep.subr.bf16.mxu0 %v9586_v14  ;;  %v9643_v13 = vld [vmem:[%s13314_s3 + $0x6ec] ss:$16 sps:$4 sm:$0xff]   ;;  %v9638_v14 = vld [vmem:[%s13314_s3 + $0x4e8] ss:$16 sps:$4 sm:$0xff]  }
 0x340   : > { %7622 = vmatprep.subr.bf16.mxu1 %v9589_v15  ;;  %v9641_v15 = vld [vmem:[%s13314_s3 + $0x6e8] ss:$16 sps:$4 sm:$0xff]  }
 0x342   : > { %7582 = vmatpush1.bf16.msra.mxu0 %v9584_v17  ;;  %v9646_v17 = vld [vmem:[%s13314_s3 + $0x50c] ss:$16 sps:$4 sm:$0xff]  }
 0x343   : > { %7623 = vmatpush1.bf16.msra.mxu1 %v9587_v20  ;;  %7583 = vmatprep.subr.bf16.mxu0 %v9592_v26  ;;  %v9649_v20 = vld [vmem:[%s13314_s3 + $0x70c] ss:$16 sps:$4 sm:$0xff]   ;;  %v9644_v26 = vld [vmem:[%s13314_s3 + $0x508] ss:$16 sps:$4 sm:$0xff]  }
 0x344   : > { %7624 = vmatprep.subr.bf16.mxu1 %v9595_v28  ;;  %v9647_v28 = vld [vmem:[%s13314_s3 + $0x708] ss:$16 sps:$4 sm:$0xff]  }
 0x346   : > { %7584 = vmatpush1.bf16.msra.mxu0 %v9590_v49  ;;  %v9652_v49 = vld [vmem:[%s13314_s3 + $0x52c] ss:$16 sps:$4 sm:$0xff]  }
 0x347   : > { %7625 = vmatpush1.bf16.msra.mxu1 %v9593_v57  ;;  %7635 = vmatprep.subr.bf16.mxu0 %v9598_v51  ;;  %v9655_v57 = vld [vmem:[%s13314_s3 + $0x72c] ss:$16 sps:$4 sm:$0xff]   ;;  %v9650_v51 = vld [vmem:[%s13314_s3 + $0x528] ss:$16 sps:$4 sm:$0xff]  }
 0x348   : > { %7676 = vmatprep.subr.bf16.mxu1 %v9601_v31  ;;  %v9653_v31 = vld [vmem:[%s13314_s3 + $0x728] ss:$16 sps:$4 sm:$0xff]  }
 0x349   : > { %7586 = vmatmul.mubr.bf16.vlgmr.msra.gmra.mrb[32].mxu0 %v11805_v16  ;;  %v9610_v16 = vld [vmem:[%s13314_s3 + $0x44c] ss:$16 sps:$4 sm:$0xff]  }
 0x34a   : > { %7627 = vmatmul.mubr.bf16.vlgmr.msra.gmra.mrb[32].mxu1 %v11810_v18  ;;  %7636 = vmatpush1.bf16.msra.mxu0 %v9596_v34  ;;  %v9613_v18 = vld [vmem:[%s13314_s3 + $0x64c] ss:$16 sps:$4 sm:$0xff]  }
 0x34b   : > { %7667 = vmatprep.mubr.bf16.mxu0 %v11815_v21  ;;  %7677 = vmatpush1.bf16.msra.mxu1 %v9599_v33  ;;  %v9608_v21 = vld [vmem:[%s13314_s3 + $0x448] ss:$16 sps:$4 sm:$0xff]   ;;  %v9658_v34 = vld [vmem:[%s13314_s3 + $0x54c] ss:$16 sps:$4 sm:$0xff]  }
 0x34c   : > { %7708 = vmatprep.mubr.bf16.mxu1 %v11821_v27  ;;  %7637 = vmatprep.subr.bf16.mxu0 %v9604_v6  ;;  %v9616_v27 = vld [vmem:[%s13314_s3 + $0x46c] ss:$16 sps:$4 sm:$0xff]   ;;  %v9656_v6 = vld [vmem:[%s13314_s3 + $0x548] ss:$16 sps:$4 sm:$0xff]  }
 0x34d   : > { %7678 = vmatprep.subr.bf16.mxu1 %v9607_v38  ;;  %v9661_v33 = vld [vmem:[%s13314_s3 + $0x74c] ss:$16 sps:$4 sm:$0xff]   ;;  %v9659_v38 = vld [vmem:[%s13314_s3 + $0x748] ss:$16 sps:$4 sm:$0xff]  }
 0x34e   : > { %7638 = vmatpush1.bf16.msra.mxu0 %v9602_v39  ;;  %v9664_v39 = vld [vmem:[%s13314_s3 + $0x56c] ss:$16 sps:$4 sm:$0xff]  }
 0x34f   : > { %7679 = vmatpush1.bf16.msra.mxu1 %v9605_v12  ;;  %7639 = vmatprep.subr.bf16.mxu0 %v9610_v16  ;;  %v9667_v12 = vld [vmem:[%s13314_s3 + $0x76c] ss:$16 sps:$4 sm:$0xff]   ;;  %v9662_v16 = vld [vmem:[%s13314_s3 + $0x568] ss:$16 sps:$4 sm:$0xff]  }
 0x350   : > { %7680 = vmatprep.subr.bf16.mxu1 %v9613_v18  ;;  %v9665_v18 = vld [vmem:[%s13314_s3 + $0x768] ss:$16 sps:$4 sm:$0xff]  }
 0x352   : > { %7640 = vmatpush1.bf16.msra.mxu0 %v9608_v21  ;;  %v9670_v21 = vld [vmem:[%s13314_s3 + $0x58c] ss:$16 sps:$4 sm:$0xff]  }
 0x353   : > { %7681 = vmatpush1.bf16.msra.mxu1 %v9611_v41  ;;  %7641 = vmatprep.subr.bf16.mxu0 %v9616_v27  ;;  %v9673_v41 = vld [vmem:[%s13314_s3 + $0x78c] ss:$16 sps:$4 sm:$0xff]   ;;  %v9668_v27 = vld [vmem:[%s13314_s3 + $0x588] ss:$16 sps:$4 sm:$0xff]  }
 0x354   : > { %7682 = vmatprep.subr.bf16.mxu1 %v9619_v42  ;;  %v9671_v42 = vld [vmem:[%s13314_s3 + $0x788] ss:$16 sps:$4 sm:$0xff]  }
 0x356   : > { %7642 = vmatpush1.bf16.msra.mxu0 %v9614_v30  ;;  %v9676_v30 = vld [vmem:[%s13314_s3 + $0x5ac] ss:$16 sps:$4 sm:$0xff]  }
 0x357   : > { %7683 = vmatpush1.bf16.msra.mxu1 %v9617_v43  ;;  %7643 = vmatprep.subr.bf16.mxu0 %v9622_v44  ;;  %v9679_v43 = vld [vmem:[%s13314_s3 + $0x7ac] ss:$16 sps:$4 sm:$0xff]   ;;  %v9674_v44 = vld [vmem:[%s13314_s3 + $0x5a8] ss:$16 sps:$4 sm:$0xff]  }
 0x358   : > { %7684 = vmatprep.subr.bf16.mxu1 %v9625_v40  ;;  %v9677_v40 = vld [vmem:[%s13314_s3 + $0x7a8] ss:$16 sps:$4 sm:$0xff]  }
 0x35a   : > { %7644 = vmatpush1.bf16.msra.mxu0 %v9620_v46  ;;  %v9682_v46 = vld [vmem:[%s13314_s3 + $0x5cc] ss:$16 sps:$4 sm:$0xff]  }
 0x35b   : > { %7685 = vmatpush1.bf16.msra.mxu1 %v9623_v48  ;;  %7645 = vmatprep.subr.bf16.mxu0 %v9628_v22  ;;  %v9685_v48 = vld [vmem:[%s13314_s3 + $0x7cc] ss:$16 sps:$4 sm:$0xff]   ;;  %v9680_v22 = vld [vmem:[%s13314_s3 + $0x5c8] ss:$16 sps:$4 sm:$0xff]  }
 0x35c   : > { %v7341_v50 = vpop.f32.mrb[20].mxu0  ;;  %7686 = vmatprep.subr.bf16.mxu1 %v9631_v58  ;;  %v9683_v58 = vld [vmem:[%s13314_s3 + $0x7c8] ss:$16 sps:$4 sm:$0xff]  }
 0x35d   : > { %v7342_v52 = vadd.f32 %v7341_v50, %v12555_v35  ;;  %v7382_v63 = vpop.f32.mrb[20].mxu1  ;;  %v7343_v8 = vpop.f32.mrb[21].mxu0  ;;  %v9635_v35 = vld [vmem:[%s13314_s3 + $0x6c8] ss:$16 sps:$4 sm:$0xff]  }
 0x35e   : > { %v7344_v0 = vadd.f32 %v7343_v8, %v12563_v29  ;;  %v7384_v1 = vpop.f32.mrb[21].mxu1  ;;  %v7345_v55 = vpop.f32.mrb[22].mxu0  ;;  %7646 = vmatpush1.bf16.msra.mxu0 %v9626_v60  ;;  %v9640_v29 = vld [vmem:[%s13314_s3 + $0x4ec] ss:$16 sps:$4 sm:$0xff]   ;;  %v9689_v50 = vld [vmem:[%s13314_s3 + $0x7e8] ss:$16 sps:$4 sm:$0xff]  }
 0x35f   : > { %v12757_v2 = vadd.f32 %v7382_v63, %v7342_v52  ;;  %v7386_v3 = vpop.f32.mrb[22].mxu1  ;;  %7687 = vmatpush1.bf16.msra.mxu1 %v9629_v61  ;;  %v7346_v5 = vpop.f32.mrb[23].mxu0  ;;  %7647 = vmatprep.subr.bf16.mxu0 %v9634_v4  ;;  %v9688_v60 = vld [vmem:[%s13314_s3 + $0x5ec] ss:$16 sps:$4 sm:$0xff]   ;;  %v9686_v4 = vld [vmem:[%s13314_s3 + $0x5e8] ss:$16 sps:$4 sm:$0xff]  }
 0x360   : > { %v12765_v36 = vadd.f32 %v7384_v1, %v7344_v0  ;;  %v7387_v11 = vpop.f32.mrb[23].mxu1  ;;  %7688 = vmatprep.subr.bf16.mxu1 %v9637_v62  ;;  %v9691_v61 = vld [vmem:[%s13314_s3 + $0x7ec] ss:$16 sps:$4 sm:$0xff]   ;;  %v9692_v63 = vld [vmem:[%s13314_s3 + $0x808] ss:$16 sps:$4 sm:$0xff]  }
 0x361   : > { %v9694_v62 = vld [vmem:[%s13314_s3 + $0x80c] ss:$16 sps:$4 sm:$0xff]   ;;  %v9695_v8 = vld [vmem:[%s13314_s3 + $0xa08] ss:$16 sps:$4 sm:$0xff]  }
 0x362   : > { %7648 = vmatpush1.bf16.msra.mxu0 %v9632_v23  ;;  %v9697_v52 = vld [vmem:[%s13314_s3 + $0xa0c] ss:$16 sps:$4 sm:$0xff]   ;;  %v9698_v55 = vld [vmem:[%s13314_s3 + $0x828] ss:$16 sps:$4 sm:$0xff]  }
 0x363   : > { %7689 = vmatpush1.bf16.msra.mxu1 %v9635_v35  ;;  %7649 = vmatprep.subr.bf16.mxu0 %v9640_v29  ;;  %v9700_v0 = vld [vmem:[%s13314_s3 + $0x82c] ss:$16 sps:$4 sm:$0xff]   ;;  %v9701_v23 = vld [vmem:[%s13314_s3 + $0xa28] ss:$16 sps:$4 sm:$0xff]  }
 0x364   : > { %7690 = vmatprep.subr.bf16.mxu1 %v9643_v13  ;;  %v9703_v1 = vld [vmem:[%s13314_s3 + $0xa2c] ss:$16 sps:$4 sm:$0xff]   ;;  %v9707_v3 = vld [vmem:[%s13314_s3 + $0xa48] ss:$16 sps:$4 sm:$0xff]  }
 0x365   : > { %v9715_v5 = vld [vmem:[%s13314_s3 + $0xa6c] ss:$16 sps:$4 sm:$0xff]   ;;  %v9710_v35 = vld [vmem:[%s13314_s3 + $0x868] ss:$16 sps:$4 sm:$0xff]  }
 0x366   : > { %7650 = vmatpush1.bf16.msra.mxu0 %v9638_v14  ;;  %v9713_v29 = vld [vmem:[%s13314_s3 + $0xa68] ss:$16 sps:$4 sm:$0xff]   ;;  %v9718_v11 = vld [vmem:[%s13314_s3 + $0x88c] ss:$16 sps:$4 sm:$0xff]  }
 0x367   : > { %7691 = vmatpush1.bf16.msra.mxu1 %v9641_v15  ;;  %7651 = vmatprep.subr.bf16.mxu0 %v9646_v17  ;;  %v9721_v13 = vld [vmem:[%s13314_s3 + $0xa8c] ss:$16 sps:$4 sm:$0xff]   ;;  %v9716_v14 = vld [vmem:[%s13314_s3 + $0x888] ss:$16 sps:$4 sm:$0xff]  }
 0x368   : > { %7692 = vmatprep.subr.bf16.mxu1 %v9649_v20  ;;  %v9719_v15 = vld [vmem:[%s13314_s3 + $0xa88] ss:$16 sps:$4 sm:$0xff]   ;;  %v9724_v17 = vld [vmem:[%s13314_s3 + $0x8ac] ss:$16 sps:$4 sm:$0xff]  }
 0x369   : > { %v9727_v20 = vld [vmem:[%s13314_s3 + $0xaac] ss:$16 sps:$4 sm:$0xff]  }
 0x36a   : > { %7652 = vmatpush1.bf16.msra.mxu0 %v9644_v26  ;;  %v9722_v26 = vld [vmem:[%s13314_s3 + $0x8a8] ss:$16 sps:$4 sm:$0xff]  }
 0x36b   : > { %7693 = vmatpush1.bf16.msra.mxu1 %v9647_v28  ;;  %7653 = vmatprep.subr.bf16.mxu0 %v9652_v49  ;;  %v9725_v28 = vld [vmem:[%s13314_s3 + $0xaa8] ss:$16 sps:$4 sm:$0xff]   ;;  %v9730_v49 = vld [vmem:[%s13314_s3 + $0x8cc] ss:$16 sps:$4 sm:$0xff]  }
 0x36c   : > { %7694 = vmatprep.subr.bf16.mxu1 %v9655_v57 }
 0x36e   : > { %7654 = vmatpush1.bf16.msra.mxu0 %v9650_v51  ;;  %v9733_v51 = vld [vmem:[%s13314_s3 + $0xacc] ss:$16 sps:$4 sm:$0xff]  }
 0x36f   : > { %7695 = vmatpush1.bf16.msra.mxu1 %v9653_v31  ;;  %7655 = vmatprep.subr.bf16.mxu0 %v9658_v34 }
 0x370   : > { %7696 = vmatprep.subr.bf16.mxu1 %v9661_v33 }
 0x372   : > { %7656 = vmatpush1.bf16.msra.mxu0 %v9656_v6 }
 0x373   : > { %7697 = vmatpush1.bf16.msra.mxu1 %v9659_v38  ;;  %7657 = vmatprep.subr.bf16.mxu0 %v9664_v39 }
 0x374   : > { %7698 = vmatprep.subr.bf16.mxu1 %v9667_v12  ;;  %v9728_v12 = vld [vmem:[%s13314_s3 + $0x8c8] ss:$16 sps:$4 sm:$0xff]  }
 0x376   : > { %7658 = vmatpush1.bf16.msra.mxu0 %v9662_v16 }
 0x377   : > { %7699 = vmatpush1.bf16.msra.mxu1 %v9665_v18  ;;  %7659 = vmatprep.subr.bf16.mxu0 %v9670_v21 }
 0x378   : > { %7700 = vmatprep.subr.bf16.mxu1 %v9673_v41 }
 0x37a   : > { %7660 = vmatpush1.bf16.msra.mxu0 %v9668_v27 }
 0x37b   : > { %7701 = vmatpush1.bf16.msra.mxu1 %v9671_v42  ;;  %7661 = vmatprep.subr.bf16.mxu0 %v9676_v30  ;;  %v9739_v42 = vld [vmem:[%s13314_s3 + $0xaec] ss:$16 sps:$4 sm:$0xff]   ;;  %v9734_v30 = vld [vmem:[%s13314_s3 + $0x8e8] ss:$16 sps:$4 sm:$0xff]  }
 0x37c   : > { %7702 = vmatprep.subr.bf16.mxu1 %v9679_v43  ;;  %v9737_v43 = vld [vmem:[%s13314_s3 + $0xae8] ss:$16 sps:$4 sm:$0xff]  }
 0x37e   : > { %7662 = vmatpush1.bf16.msra.mxu0 %v9674_v44  ;;  %v9742_v44 = vld [vmem:[%s13314_s3 + $0x90c] ss:$16 sps:$4 sm:$0xff]  }
 0x37f   : > { %7703 = vmatpush1.bf16.msra.mxu1 %v9677_v40  ;;  %7663 = vmatprep.subr.bf16.mxu0 %v9682_v46  ;;  %v9745_v40 = vld [vmem:[%s13314_s3 + $0xb0c] ss:$16 sps:$4 sm:$0xff]   ;;  %v9740_v46 = vld [vmem:[%s13314_s3 + $0x908] ss:$16 sps:$4 sm:$0xff]  }
 0x380   : > { %7704 = vmatprep.subr.bf16.mxu1 %v9685_v48  ;;  %v9743_v48 = vld [vmem:[%s13314_s3 + $0xb08] ss:$16 sps:$4 sm:$0xff]  }
 0x382   : > { %7664 = vmatpush1.bf16.msra.mxu0 %v9680_v22  ;;  %v9748_v22 = vld [vmem:[%s13314_s3 + $0x92c] ss:$16 sps:$4 sm:$0xff]  }
 0x383   : > { %7705 = vmatpush1.bf16.msra.mxu1 %v9683_v58  ;;  %7665 = vmatprep.subr.bf16.mxu0 %v9688_v60  ;;  %v9751_v58 = vld [vmem:[%s13314_s3 + $0xb2c] ss:$16 sps:$4 sm:$0xff]   ;;  %v9746_v60 = vld [vmem:[%s13314_s3 + $0x928] ss:$16 sps:$4 sm:$0xff]  }
 0x384   : > { %7706 = vmatprep.subr.bf16.mxu1 %v9691_v61  ;;  %v9749_v61 = vld [vmem:[%s13314_s3 + $0xb28] ss:$16 sps:$4 sm:$0xff]  }
 0x386   : > { %7666 = vmatpush1.bf16.msra.mxu0 %v9686_v4  ;;  %v9754_v4 = vld [vmem:[%s13314_s3 + $0x94c] ss:$16 sps:$4 sm:$0xff]  }
 0x387   : > { %7707 = vmatpush1.bf16.msra.mxu1 %v9689_v50  ;;  %7717 = vmatprep.subr.bf16.mxu0 %v9694_v62  ;;  %v9757_v50 = vld [vmem:[%s13314_s3 + $0xb4c] ss:$16 sps:$4 sm:$0xff]   ;;  %v9752_v62 = vld [vmem:[%s13314_s3 + $0x948] ss:$16 sps:$4 sm:$0xff]  }
 0x388   : > { %7758 = vmatprep.subr.bf16.mxu1 %v9697_v52  ;;  %v9755_v52 = vld [vmem:[%s13314_s3 + $0xb48] ss:$16 sps:$4 sm:$0xff]  }
 0x389   : > { %7668 = vmatmul.mubr.bf16.vlgmr.msra.gmra.mrb[36].mxu0 %v12038_v32  ;;  %v9706_v32 = vld [vmem:[%s13314_s3 + $0x84c] ss:$16 sps:$4 sm:$0xff]  }
 0x38a   : > { %7709 = vmatmul.mubr.bf16.vlgmr.msra.gmra.mrb[36].mxu1 %v12043_v7  ;;  %7718 = vmatpush1.bf16.msra.mxu0 %v9692_v63  ;;  %v9709_v7 = vld [vmem:[%s13314_s3 + $0xa4c] ss:$16 sps:$4 sm:$0xff]  }
 0x38b   : > { %7749 = vmatprep.mubr.bf16.mxu0 %v12048_v10  ;;  %7759 = vmatpush1.bf16.msra.mxu1 %v9695_v8  ;;  %v9704_v10 = vld [vmem:[%s13314_s3 + $0x848] ss:$16 sps:$4 sm:$0xff]   ;;  %v9760_v63 = vld [vmem:[%s13314_s3 + $0x96c] ss:$16 sps:$4 sm:$0xff]  }
 0x38c   : > { %7790 = vmatprep.mubr.bf16.mxu1 %v12054_v9  ;;  %7719 = vmatprep.subr.bf16.mxu0 %v9700_v0  ;;  %v9712_v9 = vld [vmem:[%s13314_s3 + $0x86c] ss:$16 sps:$4 sm:$0xff]   ;;  %v9758_v0 = vld [vmem:[%s13314_s3 + $0x968] ss:$16 sps:$4 sm:$0xff]  }
 0x38d   : > { %7760 = vmatprep.subr.bf16.mxu1 %v9703_v1  ;;  %v9763_v8 = vld [vmem:[%s13314_s3 + $0xb6c] ss:$16 sps:$4 sm:$0xff]   ;;  %v9761_v1 = vld [vmem:[%s13314_s3 + $0xb68] ss:$16 sps:$4 sm:$0xff]  }
 0x38e   : > { %7720 = vmatpush1.bf16.msra.mxu0 %v9698_v55  ;;  %v9766_v55 = vld [vmem:[%s13314_s3 + $0x98c] ss:$16 sps:$4 sm:$0xff]  }
 0x38f   : > { %7761 = vmatpush1.bf16.msra.mxu1 %v9701_v23  ;;  %7721 = vmatprep.subr.bf16.mxu0 %v9706_v32  ;;  %v9769_v23 = vld [vmem:[%s13314_s3 + $0xb8c] ss:$16 sps:$4 sm:$0xff]   ;;  %v9764_v32 = vld [vmem:[%s13314_s3 + $0x988] ss:$16 sps:$4 sm:$0xff]  }
 0x390   : > { %7762 = vmatprep.subr.bf16.mxu1 %v9709_v7  ;;  %v9767_v7 = vld [vmem:[%s13314_s3 + $0xb88] ss:$16 sps:$4 sm:$0xff]  }
 0x392   : > { %7722 = vmatpush1.bf16.msra.mxu0 %v9704_v10  ;;  %v9772_v10 = vld [vmem:[%s13314_s3 + $0x9ac] ss:$16 sps:$4 sm:$0xff]  }
 0x393   : > { %7763 = vmatpush1.bf16.msra.mxu1 %v9707_v3  ;;  %7723 = vmatprep.subr.bf16.mxu0 %v9712_v9  ;;  %v9775_v3 = vld [vmem:[%s13314_s3 + $0xbac] ss:$16 sps:$4 sm:$0xff]   ;;  %v9770_v9 = vld [vmem:[%s13314_s3 + $0x9a8] ss:$16 sps:$4 sm:$0xff]  }
 0x394   : > { %7764 = vmatprep.subr.bf16.mxu1 %v9715_v5  ;;  %v9773_v5 = vld [vmem:[%s13314_s3 + $0xba8] ss:$16 sps:$4 sm:$0xff]  }
 0x396   : > { %7724 = vmatpush1.bf16.msra.mxu0 %v9710_v35  ;;  %v9778_v35 = vld [vmem:[%s13314_s3 + $0x9cc] ss:$16 sps:$4 sm:$0xff]  }
 0x397   : > { %7765 = vmatpush1.bf16.msra.mxu1 %v9713_v29  ;;  %7725 = vmatprep.subr.bf16.mxu0 %v9718_v11  ;;  %v9781_v29 = vld [vmem:[%s13314_s3 + $0xbcc] ss:$16 sps:$4 sm:$0xff]   ;;  %v9776_v11 = vld [vmem:[%s13314_s3 + $0x9c8] ss:$16 sps:$4 sm:$0xff]  }
 0x398   : > { %7766 = vmatprep.subr.bf16.mxu1 %v9721_v13  ;;  %v9779_v13 = vld [vmem:[%s13314_s3 + $0xbc8] ss:$16 sps:$4 sm:$0xff]  }
 0x39a   : > { %7726 = vmatpush1.bf16.msra.mxu0 %v9716_v14  ;;  %v9784_v14 = vld [vmem:[%s13314_s3 + $0x9ec] ss:$16 sps:$4 sm:$0xff]  }
 0x39b   : > { %7767 = vmatpush1.bf16.msra.mxu1 %v9719_v15  ;;  %7727 = vmatprep.subr.bf16.mxu0 %v9724_v17  ;;  %v9787_v15 = vld [vmem:[%s13314_s3 + $0xbec] ss:$16 sps:$4 sm:$0xff]   ;;  %v9782_v17 = vld [vmem:[%s13314_s3 + $0x9e8] ss:$16 sps:$4 sm:$0xff]  }
 0x39c   : > { %v7423_v57 = vpop.f32.mrb[24].mxu0  ;;  %7768 = vmatprep.subr.bf16.mxu1 %v9727_v20  ;;  %v9785_v20 = vld [vmem:[%s13314_s3 + $0xbe8] ss:$16 sps:$4 sm:$0xff]  }
 0x39d   : > { %v7424_v31 = vadd.f32 %v7423_v57, %v12757_v2  ;;  %v7464_v34 = vpop.f32.mrb[24].mxu1  ;;  %v7425_v33 = vpop.f32.mrb[25].mxu0  ;;  %v9731_v2 = vld [vmem:[%s13314_s3 + $0xac8] ss:$16 sps:$4 sm:$0xff]  }
 0x39e   : > { %v7426_v6 = vadd.f32 %v7425_v33, %v12765_v36  ;;  %v7466_v38 = vpop.f32.mrb[25].mxu1  ;;  %v7427_v39 = vpop.f32.mrb[26].mxu0  ;;  %7728 = vmatpush1.bf16.msra.mxu0 %v9722_v26  ;;  %v9736_v36 = vld [vmem:[%s13314_s3 + $0x8ec] ss:$16 sps:$4 sm:$0xff]   ;;  %v9791_v57 = vld [vmem:[%s13314_s3 + $0xe08] ss:$16 sps:$4 sm:$0xff]  }
 0x39f   : > { %v12959_v16 = vadd.f32 %v7464_v34, %v7424_v31  ;;  %v7468_v18 = vpop.f32.mrb[26].mxu1  ;;  %7769 = vmatpush1.bf16.msra.mxu1 %v9725_v28  ;;  %v7428_v21 = vpop.f32.mrb[27].mxu0  ;;  %7729 = vmatprep.subr.bf16.mxu0 %v9730_v49  ;;  %v9790_v26 = vld [vmem:[%s13314_s3 + $0xc0c] ss:$16 sps:$4 sm:$0xff]   ;;  %v9788_v49 = vld [vmem:[%s13314_s3 + $0xc08] ss:$16 sps:$4 sm:$0xff]  }
 0x3a0   : > { %v12967_v41 = vadd.f32 %v7466_v38, %v7426_v6  ;;  %v7469_v27 = vpop.f32.mrb[27].mxu1  ;;  %7770 = vmatprep.subr.bf16.mxu1 %v9733_v51  ;;  %v9793_v28 = vld [vmem:[%s13314_s3 + $0xe0c] ss:$16 sps:$4 sm:$0xff]   ;;  %v9794_v34 = vld [vmem:[%s13314_s3 + $0xc28] ss:$16 sps:$4 sm:$0xff]  }
 0x3a1   : > { %v9796_v51 = vld [vmem:[%s13314_s3 + $0xc2c] ss:$16 sps:$4 sm:$0xff]   ;;  %v9797_v33 = vld [vmem:[%s13314_s3 + $0xe28] ss:$16 sps:$4 sm:$0xff]  }
 0x3a2   : > { %7730 = vmatpush1.bf16.msra.mxu0 %v9728_v12  ;;  %v9799_v31 = vld [vmem:[%s13314_s3 + $0xe2c] ss:$16 sps:$4 sm:$0xff]   ;;  %v9803_v6 = vld [vmem:[%s13314_s3 + $0xe48] ss:$16 sps:$4 sm:$0xff]  }
 0x3a3   : > { %7771 = vmatpush1.bf16.msra.mxu1 %v9731_v2  ;;  %7731 = vmatprep.subr.bf16.mxu0 %v9736_v36  ;;  %v9811_v38 = vld [vmem:[%s13314_s3 + $0xe6c] ss:$16 sps:$4 sm:$0xff]   ;;  %v9806_v39 = vld [vmem:[%s13314_s3 + $0xc68] ss:$16 sps:$4 sm:$0xff]  }
 0x3a4   : > { %7772 = vmatprep.subr.bf16.mxu1 %v9739_v42  ;;  %v9809_v12 = vld [vmem:[%s13314_s3 + $0xe68] ss:$16 sps:$4 sm:$0xff]   ;;  %v9814_v18 = vld [vmem:[%s13314_s3 + $0xc8c] ss:$16 sps:$4 sm:$0xff]  }
 0x3a5   : > { %v9817_v21 = vld [vmem:[%s13314_s3 + $0xe8c] ss:$16 sps:$4 sm:$0xff]   ;;  %v9812_v2 = vld [vmem:[%s13314_s3 + $0xc88] ss:$16 sps:$4 sm:$0xff]  }
 0x3a6   : > { %7732 = vmatpush1.bf16.msra.mxu0 %v9734_v30  ;;  %v9815_v36 = vld [vmem:[%s13314_s3 + $0xe88] ss:$16 sps:$4 sm:$0xff]   ;;  %v9820_v27 = vld [vmem:[%s13314_s3 + $0xcac] ss:$16 sps:$4 sm:$0xff]  }
 0x3a7   : > { %7773 = vmatpush1.bf16.msra.mxu1 %v9737_v43  ;;  %7733 = vmatprep.subr.bf16.mxu0 %v9742_v44  ;;  %v9823_v42 = vld [vmem:[%s13314_s3 + $0xeac] ss:$16 sps:$4 sm:$0xff]   ;;  %v9818_v30 = vld [vmem:[%s13314_s3 + $0xca8] ss:$16 sps:$4 sm:$0xff]  }
 0x3a8   : > { %7774 = vmatprep.subr.bf16.mxu1 %v9745_v40  ;;  %v9821_v43 = vld [vmem:[%s13314_s3 + $0xea8] ss:$16 sps:$4 sm:$0xff]   ;;  %v9826_v44 = vld [vmem:[%s13314_s3 + $0xccc] ss:$16 sps:$4 sm:$0xff]  }
 0x3aa   : > { %7734 = vmatpush1.bf16.msra.mxu0 %v9740_v46  ;;  %v9829_v46 = vld [vmem:[%s13314_s3 + $0xecc] ss:$16 sps:$4 sm:$0xff]  }
 0x3ab   : > { %7775 = vmatpush1.bf16.msra.mxu1 %v9743_v48  ;;  %7735 = vmatprep.subr.bf16.mxu0 %v9748_v22 }
 0x3ac   : > { %7776 = vmatprep.subr.bf16.mxu1 %v9751_v58 }
 0x3ae   : > { %7736 = vmatpush1.bf16.msra.mxu0 %v9746_v60 }
 0x3af   : > { %7777 = vmatpush1.bf16.msra.mxu1 %v9749_v61  ;;  %7737 = vmatprep.subr.bf16.mxu0 %v9754_v4 }
 0x3b0   : > { %7778 = vmatprep.subr.bf16.mxu1 %v9757_v50  ;;  %v9824_v50 = vld [vmem:[%s13314_s3 + $0xcc8] ss:$16 sps:$4 sm:$0xff]  }
 0x3b2   : > { %7738 = vmatpush1.bf16.msra.mxu0 %v9752_v62 }
 0x3b3   : > { %7779 = vmatpush1.bf16.msra.mxu1 %v9755_v52  ;;  %7739 = vmatprep.subr.bf16.mxu0 %v9760_v63 }
 0x3b4   : > { %7780 = vmatprep.subr.bf16.mxu1 %v9763_v8 }
 0x3b6   : > { %7740 = vmatpush1.bf16.msra.mxu0 %v9758_v0 }
 0x3b7   : > { %7781 = vmatpush1.bf16.msra.mxu1 %v9761_v1  ;;  %7741 = vmatprep.subr.bf16.mxu0 %v9766_v55  ;;  %v9835_v1 = vld [vmem:[%s13314_s3 + $0xeec] ss:$16 sps:$4 sm:$0xff]   ;;  %v9830_v55 = vld [vmem:[%s13314_s3 + $0xce8] ss:$16 sps:$4 sm:$0xff]  }
 0x3b8   : > { %7782 = vmatprep.subr.bf16.mxu1 %v9769_v23  ;;  %v9833_v23 = vld [vmem:[%s13314_s3 + $0xee8] ss:$16 sps:$4 sm:$0xff]  }
 0x3ba   : > { %7742 = vmatpush1.bf16.msra.mxu0 %v9764_v32  ;;  %v9838_v32 = vld [vmem:[%s13314_s3 + $0xd0c] ss:$16 sps:$4 sm:$0xff]  }
 0x3bb   : > { %7783 = vmatpush1.bf16.msra.mxu1 %v9767_v7  ;;  %7743 = vmatprep.subr.bf16.mxu0 %v9772_v10  ;;  %v9841_v7 = vld [vmem:[%s13314_s3 + $0xf0c] ss:$16 sps:$4 sm:$0xff]   ;;  %v9836_v10 = vld [vmem:[%s13314_s3 + $0xd08] ss:$16 sps:$4 sm:$0xff]  }
 0x3bc   : > { %7784 = vmatprep.subr.bf16.mxu1 %v9775_v3  ;;  %v9839_v3 = vld [vmem:[%s13314_s3 + $0xf08] ss:$16 sps:$4 sm:$0xff]  }
 0x3be   : > { %7744 = vmatpush1.bf16.msra.mxu0 %v9770_v9  ;;  %v9844_v9 = vld [vmem:[%s13314_s3 + $0xd2c] ss:$16 sps:$4 sm:$0xff]  }
 0x3bf   : > { %7785 = vmatpush1.bf16.msra.mxu1 %v9773_v5  ;;  %7745 = vmatprep.subr.bf16.mxu0 %v9778_v35  ;;  %v9847_v5 = vld [vmem:[%s13314_s3 + $0xf2c] ss:$16 sps:$4 sm:$0xff]   ;;  %v9842_v35 = vld [vmem:[%s13314_s3 + $0xd28] ss:$16 sps:$4 sm:$0xff]  }
 0x3c0   : > { %7786 = vmatprep.subr.bf16.mxu1 %v9781_v29  ;;  %v9845_v29 = vld [vmem:[%s13314_s3 + $0xf28] ss:$16 sps:$4 sm:$0xff]  }
 0x3c2   : > { %7746 = vmatpush1.bf16.msra.mxu0 %v9776_v11  ;;  %v9850_v11 = vld [vmem:[%s13314_s3 + $0xd4c] ss:$16 sps:$4 sm:$0xff]  }
 0x3c3   : > { %7787 = vmatpush1.bf16.msra.mxu1 %v9779_v13  ;;  %7747 = vmatprep.subr.bf16.mxu0 %v9784_v14  ;;  %v9853_v13 = vld [vmem:[%s13314_s3 + $0xf4c] ss:$16 sps:$4 sm:$0xff]   ;;  %v9848_v14 = vld [vmem:[%s13314_s3 + $0xd48] ss:$16 sps:$4 sm:$0xff]  }
 0x3c4   : > { %7788 = vmatprep.subr.bf16.mxu1 %v9787_v15  ;;  %v9851_v15 = vld [vmem:[%s13314_s3 + $0xf48] ss:$16 sps:$4 sm:$0xff]  }
 0x3c6   : > { %7748 = vmatpush1.bf16.msra.mxu0 %v9782_v17  ;;  %v9856_v17 = vld [vmem:[%s13314_s3 + $0xd6c] ss:$16 sps:$4 sm:$0xff]  }
 0x3c7   : > { %7789 = vmatpush1.bf16.msra.mxu1 %v9785_v20  ;;  %7799 = vmatprep.subr.bf16.mxu0 %v9790_v26  ;;  %v9859_v20 = vld [vmem:[%s13314_s3 + $0xf6c] ss:$16 sps:$4 sm:$0xff]   ;;  %v9854_v26 = vld [vmem:[%s13314_s3 + $0xd68] ss:$16 sps:$4 sm:$0xff]  }
 0x3c8   : > { %7840 = vmatprep.subr.bf16.mxu1 %v9793_v28  ;;  %v9857_v28 = vld [vmem:[%s13314_s3 + $0xf68] ss:$16 sps:$4 sm:$0xff]  }
 0x3c9   : > { %7750 = vmatmul.mubr.bf16.vlgmr.msra.gmra.mrb[40].mxu0 %v12248_v56  ;;  %v9802_v56 = vld [vmem:[%s13314_s3 + $0xc4c] ss:$16 sps:$4 sm:$0xff]  }
 0x3ca   : > { %7791 = vmatmul.mubr.bf16.vlgmr.msra.gmra.mrb[40].mxu1 %v12256_v59  ;;  %7800 = vmatpush1.bf16.msra.mxu0 %v9788_v49  ;;  %v9805_v59 = vld [vmem:[%s13314_s3 + $0xe4c] ss:$16 sps:$4 sm:$0xff]  }
 0x3cb   : > { %7831 = vmatprep.mubr.bf16.mxu0 %v12345_v47  ;;  %7841 = vmatpush1.bf16.msra.mxu1 %v9791_v57  ;;  %v9800_v47 = vld [vmem:[%s13314_s3 + $0xc48] ss:$16 sps:$4 sm:$0xff]   ;;  %v9862_v49 = vld [vmem:[%s13314_s3 + $0xd8c] ss:$16 sps:$4 sm:$0xff]  }
 0x3cc   : > { %7872 = vmatprep.mubr.bf16.mxu1 %v12350_v53  ;;  %7801 = vmatprep.subr.bf16.mxu0 %v9796_v51  ;;  %v9808_v53 = vld [vmem:[%s13314_s3 + $0xc6c] ss:$16 sps:$4 sm:$0xff]   ;;  %v9860_v51 = vld [vmem:[%s13314_s3 + $0xd88] ss:$16 sps:$4 sm:$0xff]  }
 0x3cd   : > { %7842 = vmatprep.subr.bf16.mxu1 %v9799_v31  ;;  %v9865_v57 = vld [vmem:[%s13314_s3 + $0xf8c] ss:$16 sps:$4 sm:$0xff]   ;;  %v9863_v31 = vld [vmem:[%s13314_s3 + $0xf88] ss:$16 sps:$4 sm:$0xff]  }
 0x3ce   : > { %7802 = vmatpush1.bf16.msra.mxu0 %v9794_v34  ;;  %v9868_v34 = vld [vmem:[%s13314_s3 + $0xdac] ss:$16 sps:$4 sm:$0xff]  }
 0x3cf   : > { %7843 = vmatpush1.bf16.msra.mxu1 %v9797_v33  ;;  %7803 = vmatprep.subr.bf16.mxu0 %v9802_v56  ;;  %v9871_v33 = vld [vmem:[%s13314_s3 + $0xfac] ss:$16 sps:$4 sm:$0xff]   ;;  %v9866_v56 = vld [vmem:[%s13314_s3 + $0xda8] ss:$16 sps:$4 sm:$0xff]  }
 0x3d0   : > { %7844 = vmatprep.subr.bf16.mxu1 %v9805_v59  ;;  %v9869_v59 = vld [vmem:[%s13314_s3 + $0xfa8] ss:$16 sps:$4 sm:$0xff]  }
 0x3d2   : > { %7804 = vmatpush1.bf16.msra.mxu0 %v9800_v47  ;;  %v9874_v47 = vld [vmem:[%s13314_s3 + $0xdcc] ss:$16 sps:$4 sm:$0xff]  }
 0x3d3   : > { %7845 = vmatpush1.bf16.msra.mxu1 %v9803_v6  ;;  %7805 = vmatprep.subr.bf16.mxu0 %v9808_v53  ;;  %v9877_v6 = vld [vmem:[%s13314_s3 + $0xfcc] ss:$16 sps:$4 sm:$0xff]   ;;  %v9872_v53 = vld [vmem:[%s13314_s3 + $0xdc8] ss:$16 sps:$4 sm:$0xff]  }
 0x3d4   : > { %7846 = vmatprep.subr.bf16.mxu1 %v9811_v38  ;;  %v9875_v38 = vld [vmem:[%s13314_s3 + $0xfc8] ss:$16 sps:$4 sm:$0xff]  }
 0x3d6   : > { %7806 = vmatpush1.bf16.msra.mxu0 %v9806_v39  ;;  %v9880_v39 = vld [vmem:[%s13314_s3 + $0xdec] ss:$16 sps:$4 sm:$0xff]  }
 0x3d7   : > { %7847 = vmatpush1.bf16.msra.mxu1 %v9809_v12  ;;  %7807 = vmatprep.subr.bf16.mxu0 %v9814_v18  ;;  %v9883_v12 = vld [vmem:[%s13314_s3 + $0xfec] ss:$16 sps:$4 sm:$0xff]   ;;  %v9878_v18 = vld [vmem:[%s13314_s3 + $0xde8] ss:$16 sps:$4 sm:$0xff]  }
 0x3d8   : > { %7848 = vmatprep.subr.bf16.mxu1 %v9817_v21  ;;  %v9881_v21 = vld [vmem:[%s13314_s3 + $0xfe8] ss:$16 sps:$4 sm:$0xff]  }
 0x3da   : > { %7808 = vmatpush1.bf16.msra.mxu0 %v9812_v2  ;;  %v9886_v2 = vld [vmem:[%s13315_s4] sm:$0xf] }
 0x3db   : > { %7849 = vmatpush1.bf16.msra.mxu1 %v9815_v36  ;;  %7809 = vmatprep.subr.bf16.mxu0 %v9820_v27  ;;  %v4656_v36 = vrot.slane %v9886_v2, %v11745_v37  ;;  %v4660_v27 = vrot.slane %v9886_v2, %v11554_v25  ;;  %v9890_v2 = vld [vmem:[%s10037_s16 + $0x18] sm:$0xff] }
 0x3dc   : > { %v7505_v40 = vpop.f32.mrb[28].mxu0  ;;  %7850 = vmatprep.subr.bf16.mxu1 %v9823_v42 }
 0x3dd   : > { %v7506_v48 = vadd.f32 %v7505_v40, %v12959_v16  ;;  %v7546_v22 = vpop.f32.mrb[28].mxu1  ;;  %v7507_v58 = vpop.f32.mrb[29].mxu0  ;;  %v9827_v16 = vld [vmem:[%s13314_s3 + $0xec8] ss:$16 sps:$4 sm:$0xff]  }
 0x3de   : > { %v7508_v60 = vadd.f32 %v7507_v58, %v12967_v41  ;;  %v7548_v61 = vpop.f32.mrb[29].mxu1  ;;  %v7509_v4 = vpop.f32.mrb[30].mxu0  ;;  %7810 = vmatpush1.bf16.msra.mxu0 %v9818_v30  ;;  %v9832_v41 = vld [vmem:[%s13314_s3 + $0xcec] ss:$16 sps:$4 sm:$0xff]  }
 0x3df   : > { %v13161_v62 = vadd.f32 %v7546_v22, %v7506_v48  ;;  %v7550_v52 = vpop.f32.mrb[30].mxu1  ;;  %7851 = vmatpush1.bf16.msra.mxu1 %v9821_v43  ;;  %v7510_v63 = vpop.f32.mrb[31].mxu0  ;;  %7811 = vmatprep.subr.bf16.mxu0 %v9826_v44 }
 0x3e0   : > { %v13169_v8 = vadd.f32 %v7548_v61, %v7508_v60  ;;  %v7551_v0 = vpop.f32.mrb[31].mxu1  ;;  %7852 = vmatprep.subr.bf16.mxu1 %v9829_v46 }
 0x3e2   : > { %7812 = vmatpush1.bf16.msra.mxu0 %v9824_v50 }
 0x3e3   : > { %7853 = vmatpush1.bf16.msra.mxu1 %v9827_v16  ;;  %7813 = vmatprep.subr.bf16.mxu0 %v9832_v41 }
 0x3e4   : > { %7854 = vmatprep.subr.bf16.mxu1 %v9835_v1 }
 0x3e6   : > { %7814 = vmatpush1.bf16.msra.mxu0 %v9830_v55 }
 0x3e7   : > { %7855 = vmatpush1.bf16.msra.mxu1 %v9833_v23  ;;  %7815 = vmatprep.subr.bf16.mxu0 %v9838_v32 }
 0x3e8   : > { %7856 = vmatprep.subr.bf16.mxu1 %v9841_v7 }
 0x3ea   : > { %7816 = vmatpush1.bf16.msra.mxu0 %v9836_v10 }
 0x3eb   : > { %7857 = vmatpush1.bf16.msra.mxu1 %v9839_v3  ;;  %7817 = vmatprep.subr.bf16.mxu0 %v9844_v9 }
 0x3ec   : > { %7858 = vmatprep.subr.bf16.mxu1 %v9847_v5 }
 0x3ee   : > { %7818 = vmatpush1.bf16.msra.mxu0 %v9842_v35 }
 0x3ef   : > { %7859 = vmatpush1.bf16.msra.mxu1 %v9845_v29  ;;  %7819 = vmatprep.subr.bf16.mxu0 %v9850_v11 }
 0x3f0   : > { %7860 = vmatprep.subr.bf16.mxu1 %v9853_v13 }
 0x3f2   : > { %7820 = vmatpush1.bf16.msra.mxu0 %v9848_v14 }
 0x3f3   : > { %7861 = vmatpush1.bf16.msra.mxu1 %v9851_v15  ;;  %7821 = vmatprep.subr.bf16.mxu0 %v9856_v17 }
 0x3f4   : > { %7862 = vmatprep.subr.bf16.mxu1 %v9859_v20 }
 0x3f6   : > { %7822 = vmatpush1.bf16.msra.mxu0 %v9854_v26  ;;  %v9887_v26 = vld [vmem:[%s10037_s16] sm:$0xff] }
 0x3f7   : > { %7863 = vmatpush1.bf16.msra.mxu1 %v9857_v28  ;;  %7823 = vmatprep.subr.bf16.mxu0 %v9862_v49  ;;  %v7881_v28 = vadd.f32 %v9887_v26, %v13161_v62  ;;  %v9888_v49 = vld [vmem:[%s10037_s16 + $0x8] sm:$0xff] }
 0x3f8   : > { %7864 = vmatprep.subr.bf16.mxu1 %v9865_v57  ;;  %v7882_v57 = vadd.f32 %v9888_v49, %v13169_v8 }
 0x3fa   : > { %7824 = vmatpush1.bf16.msra.mxu0 %v9860_v51 }
 0x3fb   : > { %7865 = vmatpush1.bf16.msra.mxu1 %v9863_v31  ;;  %7825 = vmatprep.subr.bf16.mxu0 %v9868_v34 }
 0x3fc   : > { %7866 = vmatprep.subr.bf16.mxu1 %v9871_v33 }
 0x3fe   : > { %7826 = vmatpush1.bf16.msra.mxu0 %v9866_v56 }
 0x3ff   : > { %7867 = vmatpush1.bf16.msra.mxu1 %v9869_v59  ;;  %7827 = vmatprep.subr.bf16.mxu0 %v9874_v47 }
 0x400   : > { %7868 = vmatprep.subr.bf16.mxu1 %v9877_v6 }
 0x402   : > { %7828 = vmatpush1.bf16.msra.mxu0 %v9872_v53 }
 0x403   : > { %7869 = vmatpush1.bf16.msra.mxu1 %v9875_v38  ;;  %7829 = vmatprep.subr.bf16.mxu0 %v9880_v39 }
 0x404   : > { %7870 = vmatprep.subr.bf16.mxu1 %v9883_v12  ;;  %v9889_v12 = vld [vmem:[%s10037_s16 + $0x10] sm:$0xff] }
 0x406   : > { %7830 = vmatpush1.bf16.msra.mxu0 %v9878_v18 }
 0x407   : > { %7871 = vmatpush1.bf16.msra.mxu1 %v9881_v21  ;;  %v7887_v21 = vadd.f32 %v7882_v57, %v7881_v28 }
 0x409   : > { %7832 = vmatmul.mubr.bf16.vlgmr.msra.gmra.mrb[44].mxu0 %v12470_v45 }
 0x40a   : > { %7873 = vmatmul.mubr.bf16.vlgmr.msra.gmra.mrb[44].mxu1 %v12475_v54 }
 0x41c   : > { %v7587_v42 = vpop.f32.mrb[32].mxu0 }
 0x41d   : > { %v7588_v30 = vadd.f32 %v7587_v42, %v4656_v36  ;;  %v7628_v43 = vpop.f32.mrb[32].mxu1  ;;  %v7589_v44 = vpop.f32.mrb[33].mxu0 }
 0x41e   : > { %v7590_v40 = vadd.f32 %v7589_v44, %v4660_v27  ;;  %v7630_v46 = vpop.f32.mrb[33].mxu1  ;;  %v7591_v48 = vpop.f32.mrb[34].mxu0 }
 0x41f   : > { %v7629_v22 = vadd.f32 %v7628_v43, %v7588_v30  ;;  %v7632_v58 = vpop.f32.mrb[34].mxu1  ;;  %v7592_v45 = vpop.f32.mrb[35].mxu0 }
 0x420   : > { %v7631_v60 = vadd.f32 %v7630_v46, %v7590_v40  ;;  %v7633_v54 = vpop.f32.mrb[35].mxu1 }
 0x45c   : > { %v7669_v61 = vpop.f32.mrb[36].mxu0 }
 0x45d   : > { %v7670_v4 = vadd.f32 %v7669_v61, %v7629_v22  ;;  %v7710_v50 = vpop.f32.mrb[36].mxu1  ;;  %v7671_v52 = vpop.f32.mrb[37].mxu0 }
 0x45e   : > { %v7672_v63 = vadd.f32 %v7671_v52, %v7631_v60  ;;  %v7712_v16 = vpop.f32.mrb[37].mxu1  ;;  %v7673_v41 = vpop.f32.mrb[38].mxu0  ;;  %v7885_v52 = vld [vmem:[%s13316_s5] sm:$0xf] }
 0x45f   : > { %v7711_v0 = vadd.f32 %v7710_v50, %v7670_v4  ;;  %v7714_v1 = vpop.f32.mrb[38].mxu1  ;;  %v7674_v55 = vpop.f32.mrb[39].mxu0  ;;  %v7926_v41 = vrot.slane %v7885_v52, %v11745_v37 }
 0x460   : > { %v7713_v23 = vadd.f32 %v7712_v16, %v7672_v63  ;;  %v7715_v32 = vpop.f32.mrb[39].mxu1  ;;  %v7886_v63 = vld [vmem:[%s13317_s6] sm:$0xf]  ;;  %v7918_v16 = vrot.slane %v7885_v52, %v11736_v24  ;;  %v7930_v1 = vrot.slane %v7885_v52, %v11554_v25 }
 0x461   : > { %v7951_v32 = vrot.slane %v7886_v63, %v11745_v37 }
 0x49c   : > { %v7751_v7 = vpop.f32.mrb[40].mxu0 }
 0x49d   : > { %v7752_v10 = vadd.f32 %v7751_v7, %v7711_v0  ;;  %v7792_v3 = vpop.f32.mrb[40].mxu1  ;;  %v7753_v9 = vpop.f32.mrb[41].mxu0  ;;  %v7922_v0 = vrot.slane %v7885_v52, %v11540_v19  ;;  %v7947_v7 = vrot.slane %v7886_v63, %v11540_v19 }
 0x49e   : > { %v7754_v5 = vadd.f32 %v7753_v9, %v7713_v23  ;;  %v7794_v35 = vpop.f32.mrb[41].mxu1  ;;  %v7755_v29 = vpop.f32.mrb[42].mxu0  ;;  %v7943_v23 = vrot.slane %v7886_v63, %v11736_v24 }
 0x49f   : > { %v7793_v11 = vadd.f32 %v7792_v3, %v7752_v10  ;;  %v7796_v13 = vpop.f32.mrb[42].mxu1  ;;  %v7756_v14 = vpop.f32.mrb[43].mxu0  ;;  %v7955_v10 = vrot.slane %v7886_v63, %v11554_v25 }
 0x4a0   : > { %v7795_v15 = vadd.f32 %v7794_v35, %v7754_v5  ;;  %v7797_v17 = vpop.f32.mrb[43].mxu1 }
 0x4dc   : > { %v7833_v20 = vpop.f32.mrb[44].mxu0 }
 0x4dd   : > { %v7834_v51 = vadd.f32 %v7833_v20, %v7793_v11  ;;  %v7874_v31 = vpop.f32.mrb[44].mxu1  ;;  %v7835_v34 = vpop.f32.mrb[45].mxu0 }
 0x4de   : > { %v7836_v33 = vadd.f32 %v7835_v34, %v7795_v15  ;;  %v7876_v56 = vpop.f32.mrb[45].mxu1  ;;  %v7837_v59 = vpop.f32.mrb[46].mxu0 }
 0x4df   : > { %v7875_v47 = vadd.f32 %v7874_v31, %v7834_v51  ;;  %v7878_v6 = vpop.f32.mrb[46].mxu1  ;;  %v7838_v53 = vpop.f32.mrb[47].mxu0 }
 0x4e0   : > { %v7877_v38 = vadd.f32 %v7876_v56, %v7836_v33  ;;  %v7879_v39 = vpop.f32.mrb[47].mxu1 }
 0x4e1   : > { %v7883_v18 = vadd.f32 %v9889_v12, %v7875_v47 }
 0x4e2   : > { %v7884_v62 = vadd.f32 %v9890_v2, %v7877_v38 }
 0x4e3   : > { %v7888_v36 = vadd.f32 %v7887_v21, %v7883_v18 }
 0x4e5   : > { %v7889_v27 = vadd.f32 %v7888_v36, %v7884_v62 }
 0x4e7   : > { %7890 = vadd.xlane.f32.xlu0 %v7889_v27 }
 0x574   : > { %v7891_v8 = vpop.xlane.xlu0 %7890 }
 0x575   : > { %v7893_v42 = vmul.f32 0.001953125, %v7891_v8 }
 0x577   : > { %v7894_v30 = vsub.f32 %v7881_v28, %v7893_v42  ;;  %v7895_v43 = vsub.f32 %v7882_v57, %v7893_v42  ;;  %v7896_v44 = vsub.f32 %v7883_v18, %v7893_v42  ;;  %v7897_v40 = vsub.f32 %v7884_v62, %v7893_v42 }
 0x579   : > { %v7898_v46 = vmul.f32 %v7894_v30, %v7894_v30  ;;  %v7899_v48 = vmul.f32 %v7895_v43, %v7895_v43  ;;  %v7900_v22 = vmul.f32 %v7896_v44, %v7896_v44  ;;  %v7901_v45 = vmul.f32 %v7897_v40, %v7897_v40 }
 0x57b   : > { %v7902_v58 = vadd.f32 %v7899_v48, %v7898_v46 }
 0x57d   : > { %v7903_v60 = vadd.f32 %v7902_v58, %v7900_v22 }
 0x57f   : > { %v7904_v54 = vadd.f32 %v7903_v60, %v7901_v45 }
 0x581   : > { %7905 = vadd.xlane.f32.xlu0 %v7904_v54 }
 0x60e   : > { %v7906_v61 = vpop.xlane.xlu0 %7905 }
 0x60f   : > { %v7907_v4 = vmul.f32 0.001953125, %v7906_v61 }
 0x611   : > { %v7908_v50 = vadd.f32 1e-05, %v7907_v4 }
 0x613   : > { %9884 = vrsqrt.f32 %v7908_v50 }
 0x61d   : > { %v9885_v55 = vpop.eup %9884 }
 0x61e   : > { %v7910_v3 = vmul.f32 %v9885_v55, %v7894_v30  ;;  %v7911_v9 = vmul.f32 %v9885_v55, %v7895_v43  ;;  %v7912_v5 = vmul.f32 %v9885_v55, %v7896_v44  ;;  %v7913_v35 = vmul.f32 %v9885_v55, %v7897_v40 }
 0x620   : > { %v7935_v29 = vmul.f32 %v7918_v16, %v7910_v3  ;;  %v7936_v11 = vmul.f32 %v7922_v0, %v7911_v9  ;;  %v7937_v13 = vmul.f32 %v7926_v41, %v7912_v5  ;;  %v7938_v14 = vmul.f32 %v7930_v1, %v7913_v35 }
 0x622   : > { %v7960_v24 = vadd.f32 %v7943_v23, %v7935_v29  ;;  %v7961_v15 = vadd.f32 %v7947_v7, %v7936_v11  ;;  %v7962_v37 = vadd.f32 %v7951_v32, %v7937_v13  ;;  %v7963_v17 = vadd.f32 %v7955_v10, %v7938_v14 }
 0x624   : > { %7964 = vst [vmem:[%s278_s11] sm:$0xff] %v7960_v24  ;;  %7965 = vst [vmem:[%s278_s11 + $0x8] sm:$0xff] %v7961_v15 }
 0x625   : > { %7966 = vst [vmem:[%s278_s11 + $0x10] sm:$0xff] %v7962_v37  ;;  %7967 = vst [vmem:[%s278_s11 + $0x18] sm:$0xff] %v7963_v17 }
 0x626 PF: > { %s17_s24 = sadd.s32 1, %s9897_s24  }
 0x627   : > { %p14_p4 = scmp.ge.s32.totalorder %s17_s24, 4  }
 0x629   :  { %16 = sbr.rel (!%p14_p4) target bundleno = 1 (0x1), region = 78 }

</bundles_post_ra>
